<compile_context>
chip_gen: v5e
topology: v5e:2x2
jax: 0.10.0
libtpu: 0.0.40
codegen_flags: <defaults>
</compile_context>

<pallas_src>
import functools
import numpy as np

import jax
import jax.numpy as jnp
from jax.experimental import pallas as pl
from jax.experimental.pallas import tpu as pltpu


VMEM_LIMIT = 32 * 1024 * 1024  # safe on v5e/v6e (128 MiB) and v7x (64 MiB)


def _round_up(v, m):
    return v + (-v) % m


# ----------------------------- Pallas kernels ------------------------------

def _mm_bias_act_kernel(x_ref, w_ref, b_ref, o_ref, acc_ref, *, relu):
    """One (Mp, tn) output tile.  grid = (N_tiles, K_tiles); K (reduction) last."""
    k = pl.program_id(1)

    @pl.when(k == 0)
    def _():
        acc_ref[...] = jnp.zeros_like(acc_ref)

    acc_ref[...] += jnp.dot(x_ref[...], w_ref[...],
                            preferred_element_type=jnp.float32)

    @pl.when(k == pl.num_programs(1) - 1)
    def _():
        y = acc_ref[...] + b_ref[...]
        if relu:
            y = jnp.maximum(y, 0.0)
        o_ref[...] = y.astype(o_ref.dtype)


def _conv_bn_kernel(x_ref, w_ref, b_ref, g_ref, bb_ref, o_ref, *, m_real, eps):
    """conv3 matmul + bias + ReLU + training-mode BatchNorm, all in one pass.

    Batch statistics are taken over the first `m_real` rows only (the rest are
    zero-padding rows).
    """
    y = jnp.dot(x_ref[...], w_ref[...],
                preferred_element_type=jnp.float32) + b_ref[...]
    y = jnp.maximum(y, 0.0)

    rows = jax.lax.broadcasted_iota(jnp.int32, y.shape, 0)
    mask = (rows < m_real).astype(jnp.float32)
    mean = jnp.sum(y * mask, axis=0, keepdims=True) / m_real
    var = jnp.sum(((y - mean) ** 2) * mask, axis=0, keepdims=True) / m_real
    o_ref[...] = (y - mean) * jax.lax.rsqrt(var + eps) * g_ref[...] + bb_ref[...]


def _tail_kernel(h1_ref, m_ref, w2_ref, b2_ref, w3_ref, b3_ref, o_ref):
    """Fused tail: hidden dropout mask, fc2 + ReLU, fc3 + bias, log-softmax."""
    h1 = h1_ref[...] * m_ref[...]
    h2 = jnp.dot(h1.astype(jnp.bfloat16), w2_ref[...],
                 preferred_element_type=jnp.float32) + b2_ref[...]
    h2 = jnp.maximum(h2, 0.0)
    h3 = jnp.dot(h2.astype(jnp.bfloat16), w3_ref[...],
                 preferred_element_type=jnp.float32) + b3_ref[...]
    # padded class columns carry a -1e30 bias -> they never win the max and
    # contribute ~0 to the logsumexp.
    mx = jnp.max(h3, axis=1, keepdims=True)
    s = h3 - mx
    lse = jnp.log(jnp.sum(jnp.exp(s), axis=1, keepdims=True))
    o_ref[...] = s - lse


# ----------------------------- kernel wrappers ------------------------------

def matmul_bias_act(x, w, b, *, relu, n_out, out_dtype=jnp.float32,
                    tn=None, tk=None):
    """y = act(x @ w + b).  w is pre-padded (Kp, Np) bf16; b is (1, Np) f32."""
    M, K = x.shape
    Kp, Np = w.shape
    tn = Np if tn is None else tn
    tk = Kp if tk is None else tk
    Mp = _round_up(M, 16)
    xp = jnp.pad(x, ((0, Mp - M), (0, Kp - K))).astype(w.dtype)

    cost = pl.CostEstimate(
        flops=2 * Mp * Kp * Np,
        transcendentals=0,
        bytes_accessed=Mp * Kp * 2 + Kp * Np * 2 + Mp * Np * 4)

    out = pl.pallas_call(
        functools.partial(_mm_bias_act_kernel, relu=relu),
        out_shape=jax.ShapeDtypeStruct((Mp, Np), out_dtype),
        grid_spec=pltpu.PrefetchScalarGridSpec(
            num_scalar_prefetch=0,
            grid=(Np // tn, Kp // tk),
            in_specs=[
                pl.BlockSpec((Mp, tk), lambda j, k: (0, k)),
                pl.BlockSpec((tk, tn), lambda j, k: (k, j)),
                pl.BlockSpec((1, tn), lambda j, k: (0, j)),
            ],
            out_specs=pl.BlockSpec((Mp, tn), lambda j, k: (0, j)),
            scratch_shapes=[pltpu.VMEM((Mp, tn), jnp.float32)],
        ),
        compiler_params=pltpu.CompilerParams(
            dimension_semantics=("parallel", "arbitrary"),
            vmem_limit_bytes=VMEM_LIMIT),
        cost_estimate=cost,
    )(xp, w, b)
    return out[:M, :n_out]


def conv_bn(x, w, b, gamma, beta, *, n_out, eps=1e-5):
    """Single-step fused conv3 (as matmul) + bias + ReLU + BatchNorm."""
    M, K = x.shape
    Kp, Np = w.shape
    Mp = _round_up(M, 16)
    xp = jnp.pad(x, ((0, Mp - M), (0, Kp - K))).astype(w.dtype)

    out = pl.pallas_call(
        functools.partial(_conv_bn_kernel, m_real=M, eps=eps),
        out_shape=jax.ShapeDtypeStruct((Mp, Np), jnp.float32),
        grid=(1,),
        in_specs=[
            pl.BlockSpec((Mp, Kp), lambda i: (0, 0)),
            pl.BlockSpec((Kp, Np), lambda i: (0, 0)),
            pl.BlockSpec((1, Np), lambda i: (0, 0)),
            pl.BlockSpec((1, Np), lambda i: (0, 0)),
            pl.BlockSpec((1, Np), lambda i: (0, 0)),
        ],
        out_specs=pl.BlockSpec((Mp, Np), lambda i: (0, 0)),
        compiler_params=pltpu.CompilerParams(vmem_limit_bytes=VMEM_LIMIT),
    )(xp, w, b, gamma, beta)
    return out[:M, :n_out]


def fused_tail(h1, mask_hid, w2, b2, w3, b3, *, n_classes):
    """dropout(mask) -> fc2 -> ReLU -> fc3 -> log-softmax in one kernel."""
    M, H = h1.shape
    K2, N2 = w2.shape
    K3, N3 = w3.shape
    Mp = _round_up(M, 16)
    h1p = jnp.pad(h1.astype(jnp.float32), ((0, Mp - M), (0, K2 - H)))
    mp = jnp.pad(mask_hid.astype(jnp.float32), ((0, Mp - M), (0, K2 - H)))

    out = pl.pallas_call(
        _tail_kernel,
        out_shape=jax.ShapeDtypeStruct((Mp, N3), jnp.float32),
        grid=(1,),
        in_specs=[
            pl.BlockSpec((Mp, K2), lambda i: (0, 0)),
            pl.BlockSpec((Mp, K2), lambda i: (0, 0)),
            pl.BlockSpec((K2, N2), lambda i: (0, 0)),
            pl.BlockSpec((1, N2), lambda i: (0, 0)),
            pl.BlockSpec((K3, N3), lambda i: (0, 0)),
            pl.BlockSpec((1, N3), lambda i: (0, 0)),
        ],
        out_specs=pl.BlockSpec((Mp, N3), lambda i: (0, 0)),
        compiler_params=pltpu.CompilerParams(vmem_limit_bytes=VMEM_LIMIT),
    )(h1p, mp, w2, b2, w3, b3)
    return out[:M, :n_classes]


# ------------------------- channels-last im2col glue ------------------------

def _im2col_nhwc(x):
    """x (N,H,W,C) -> (N*Ho*Wo, 9*C), columns ordered (kh, kw, c_in)."""
    N, H, W, C = x.shape
    Ho, Wo = H - 2, W - 2
    cols = jnp.concatenate(
        [x[:, dy:dy + Ho, dx:dx + Wo, :] for dy in range(3) for dx in range(3)],
        axis=-1)
    return cols.reshape(N * Ho * Wo, 9 * C), (N, Ho, Wo)


def _adaptive_pool_matrix(in_size, out_size):
    # PyTorch AdaptiveAvgPool2d bins: [floor(i*in/out), ceil((i+1)*in/out))
    P = np.zeros((out_size, in_size), dtype=np.float32)
    for i in range(out_size):
        s = (i * in_size) // out_size
        e = -((-(i + 1) * in_size) // out_size)
        P[i, s:e] = 1.0 / (e - s)
    return jnp.asarray(P)


# ----------------------------- parameter prep -------------------------------

def _prep_w(w_kn):
    """(K, N) f32 -> zero-padded (Kp, Np) bf16 (MXU operand, K/N mult of 128)."""
    K, N = w_kn.shape
    Kp, Np = _round_up(K, 128), _round_up(N, 128)
    return jnp.pad(w_kn, ((0, Kp - K), (0, Np - N))).astype(jnp.bfloat16)


def _prep_b(b, fill=0.0):
    """(N,) -> (1, Np) f32, padded with `fill`."""
    N = b.shape[0]
    Np = _round_up(N, 128)
    return jnp.pad(b.astype(jnp.float32), (0, Np - N),
                   constant_values=fill).reshape(1, Np)


def init_params(key, in_channels):
    ks = jax.random.split(key, 16)
    f32 = jnp.float32

    def w(k, shape, fan_in):
        return jax.random.normal(k, shape, f32) / np.sqrt(fan_in)

    conv1_w = w(ks[0], (32, in_channels, 3, 3), in_channels * 9)
    conv1_b = jax.random.normal(ks[1], (32,), f32) * 0.01
    conv2_w = w(ks[2], (128, 32, 3, 3), 32 * 9)
    conv2_b = jax.random.normal(ks[3], (128,), f32) * 0.01
    conv3_w = w(ks[4], (256, 128, 3, 3), 128 * 9)
    conv3_b = jax.random.normal(ks[5], (256,), f32) * 0.01
    bn_gamma = 1.0 + 0.1 * jax.random.normal(ks[6], (256,), f32)
    bn_beta = 0.1 * jax.random.normal(ks[7], (256,), f32)
    fc1_w = w(ks[8], (512, 9216), 9216)
    fc1_b = jax.random.normal(ks[9], (512,), f32) * 0.01
    fc2_w = w(ks[10], (256, 512), 512)
    fc2_b = jax.random.normal(ks[11], (256,), f32) * 0.01
    fc3_w = w(ks[12], (10, 256), 256)
    fc3_b = jax.random.normal(ks[13], (10,), f32) * 0.01

    def conv_kn(w_oihw):
        # (Cout, Cin, 3, 3) -> (9*Cin, Cout) with K ordered (kh, kw, c_in),
        # matching the channels-last im2col column order.
        Cin, Cout = w_oihw.shape[1], w_oihw.shape[0]
        return _prep_w(jnp.transpose(w_oihw, (2, 3, 1, 0)).reshape(9 * Cin, Cout))

    # FC weights stored pre-transposed (K, N), pre-padded, bf16 — no .T or
    # padding work inside the forward pass.
    return {
        "conv1_w": conv_kn(conv1_w), "conv1_b": _prep_b(conv1_b),
        "conv2_w": conv_kn(conv2_w), "conv2_b": _prep_b(conv2_b),
        "conv3_w": conv_kn(conv3_w), "conv3_b": _prep_b(conv3_b),
        "bn_gamma": _prep_b(bn_gamma), "bn_beta": _prep_b(bn_beta),
        "fc1_w": _prep_w(fc1_w.T), "fc1_b": _prep_b(fc1_b),
        "fc2_w": _prep_w(fc2_w.T), "fc2_b": _prep_b(fc2_b),
        # padded class columns get a huge negative bias so they vanish in the
        # fused log-softmax.
        "fc3_w": _prep_w(fc3_w.T), "fc3_b": _prep_b(fc3_b, fill=-1e30),
    }


# ----------------------------- full forward --------------------------------

def teacher_forward(x_nchw, params, mask_in, mask_hid):
    # NCHW -> NHWC once; stay channels-last (C on the lane axis) afterwards.
    x = jnp.transpose(x_nchw, (0, 2, 3, 1)).astype(jnp.bfloat16)

    # conv1 + ReLU   (grid (1,1) single-step matmul)
    cols, (N, Ho, Wo) = _im2col_nhwc(x)
    h = matmul_bias_act(cols, params["conv1_w"], params["conv1_b"],
                        relu=True, n_out=32, out_dtype=jnp.bfloat16)
    h = h.reshape(N, Ho, Wo, 32)

    # conv2 + ReLU
    cols, (N, Ho, Wo) = _im2col_nhwc(h)
    h = matmul_bias_act(cols, params["conv2_w"], params["conv2_b"],
                        relu=True, n_out=128, out_dtype=jnp.bfloat16)
    h = h.reshape(N, Ho, Wo, 128)

    # conv3 + ReLU + BatchNorm2d(256) (training-mode batch stats), fused.
    cols, (N, Ho, Wo) = _im2col_nhwc(h)
    h = conv_bn(cols, params["conv3_w"], params["conv3_b"],
                params["bn_gamma"], params["bn_beta"], n_out=256)
    h = h.reshape(N, Ho, Wo, 256)

    # AdaptiveAvgPool2d((6, 6)) as linear pooling matrices (tiny XLA glue).
    Ph = _adaptive_pool_matrix(Ho, 6)
    Pw = _adaptive_pool_matrix(Wo, 6)
    h = jnp.einsum('ih,jw,nhwc->nijc', Ph, Pw, h)            # (N, 6, 6, 256)

    # PyTorch .view(-1, 9216) flattens NCHW order: feature = c*36 + i*6 + j.
    flat = jnp.transpose(h, (0, 3, 1, 2)).reshape(N, 256 * 36)

    # Input dropout folded into the fc1 operand (ReLU commutes with the
    # non-negative dropout scale, so fc1's fused ReLU stays correct).
    flat = flat * mask_in
    h1 = matmul_bias_act(flat, params["fc1_w"], params["fc1_b"],
                         relu=True, n_out=512, tn=256, tk=2304)

    # Fused tail: hidden dropout + fc2 + ReLU + fc3 + log-softmax.
    return fused_tail(h1, mask_hid, params["fc2_w"], params["fc2_b"],
                      params["fc3_w"], params["fc3_b"], n_classes=10)


if __name__ == "__main__":
    key = jax.random.PRNGKey(0)
    k_x, k_p, k_d1, k_d2 = jax.random.split(key, 4)

    in_channels = 4
    batch = 2
    # 16x16 input -> convs give 10x10 -> AdaptiveAvgPool to 6x6 -> 256*36 = 9216
    x = jax.random.normal(k_x, (batch, in_channels, 16, 16), jnp.float32)
    params = init_params(k_p, in_channels)

    # TODO(synk): torch F.dropout's RNG stream has no Pallas equivalent;
    # deterministic Bernoulli masks (p=0.5, scale 1/(1-p)) stand in for it.
    mask_in = jax.random.bernoulli(k_d1, 0.5, (batch, 9216)).astype(jnp.float32) / 0.5
    mask_hid = jax.random.bernoulli(k_d2, 0.5, (batch, 512)).astype(jnp.float32) / 0.5

    fwd = jax.jit(teacher_forward)
    out = fwd(x, params, mask_in, mask_hid)
    jax.block_until_ready(out)
    assert out.shape == (batch, 10) and out.dtype == jnp.float32
    assert bool(jnp.all(jnp.isfinite(out)))
    print("KERNEL_OK")
</pallas_src>

<mosaic_0001>
module attributes {stable_mosaic.version = 11 : i64} {
  func.func @_mm_bias_act_kernel(%arg0: i32, %arg1: i32, %arg2: memref<400x128xbf16, #tpu.memory_space<vmem>>, %arg3: memref<128x128xbf16, #tpu.memory_space<vmem>>, %arg4: memref<1x128xf32, #tpu.memory_space<vmem>>, %arg5: memref<400x128xbf16, #tpu.memory_space<vmem>>, %arg6: memref<400x128xf32, #tpu.memory_space<vmem>>) attributes {dimension_semantics = [#tpu.dimension_semantics<parallel>, #tpu.dimension_semantics<arbitrary>], iteration_bounds = array<i64: 1, 1>, scalar_prefetch = 0 : i64, scratch_operands = 1 : i64, tpu.core_type = #tpu.core_type<tc>, window_params = [{transform_indices = @transform_0, window_bounds = array<i64: 400, 128>}, {transform_indices = @transform_1, window_bounds = array<i64: 128, 128>}, {transform_indices = @transform_2, window_bounds = array<i64: 1, 128>}, {transform_indices = @transform_3, window_bounds = array<i64: 400, 128>}]} {
    %c0_i32 = arith.constant 0 : i32
    %0 = arith.cmpi eq, %arg1, %c0_i32 : i32
    %1 = arith.extui %0 : i1 to i32
    %c0_i32_0 = arith.constant 0 : i32
    %2 = arith.cmpi ne, %1, %c0_i32_0 : i32
    scf.if %2 {
      %cst_10 = arith.constant 0.000000e+00 : f32
      %12 = vector.broadcast %cst_10 : f32 to vector<400x128xf32>
      %c0_11 = arith.constant 0 : index
      %c0_12 = arith.constant 0 : index
      %13 = vector.load %arg6[%c0_11, %c0_12] : memref<400x128xf32, #tpu.memory_space<vmem>>, vector<400x128xf32>
      tpu.vector_store %arg6[%c0_11, %c0_12], %12 {strides = array<i32>} : memref<400x128xf32, #tpu.memory_space<vmem>>, vector<400x128xf32>,
    } else {
    }
    %c0 = arith.constant 0 : index
    %c0_1 = arith.constant 0 : index
    %3 = vector.load %arg6[%c0, %c0_1] : memref<400x128xf32, #tpu.memory_space<vmem>>, vector<400x128xf32>
    %c0_2 = arith.constant 0 : index
    %c0_3 = arith.constant 0 : index
    %4 = vector.load %arg2[%c0_2, %c0_3] : memref<400x128xbf16, #tpu.memory_space<vmem>>, vector<400x128xbf16>
    %c0_4 = arith.constant 0 : index
    %c0_5 = arith.constant 0 : index
    %5 = vector.load %arg3[%c0_4, %c0_5] : memref<128x128xbf16, #tpu.memory_space<vmem>>, vector<128x128xbf16>
    %cst = arith.constant dense<0.000000e+00> : vector<400x128xf32>
    %6 = tpu.matmul %4, %5, %cst {dimension_numbers = #tpu.dot_dimension_numbers<[1], [0], [0], [1], [0, 0, 1, 1], [], []>} : vector<400x128xbf16>, vector<128x128xbf16>, vector<400x128xf32> -> vector<400x128xf32>
    %7 = arith.addf %3, %6 : vector<400x128xf32>
    %c0_6 = arith.constant 0 : index
    %c0_7 = arith.constant 0 : index
    %8 = vector.load %arg6[%c0_6, %c0_7] : memref<400x128xf32, #tpu.memory_space<vmem>>, vector<400x128xf32>
    tpu.vector_store %arg6[%c0_6, %c0_7], %7 {strides = array<i32>} : memref<400x128xf32, #tpu.memory_space<vmem>>, vector<400x128xf32>,
    %c0_i32_8 = arith.constant 0 : i32
    %9 = arith.cmpi eq, %arg1, %c0_i32_8 : i32
    %10 = arith.extui %9 : i1 to i32
    %c0_i32_9 = arith.constant 0 : i32
    %11 = arith.cmpi ne, %10, %c0_i32_9 : i32
    scf.if %11 {
      %c0_10 = arith.constant 0 : index
      %c0_11 = arith.constant 0 : index
      %12 = vector.load %arg6[%c0_10, %c0_11] : memref<400x128xf32, #tpu.memory_space<vmem>>, vector<400x128xf32>
      %c0_12 = arith.constant 0 : index
      %c0_13 = arith.constant 0 : index
      %13 = vector.load %arg4[%c0_12, %c0_13] : memref<1x128xf32, #tpu.memory_space<vmem>>, vector<1x128xf32>
      %14 = vector.broadcast %13 : vector<1x128xf32> to vector<400x128xf32>
      %15 = arith.addf %12, %14 : vector<400x128xf32>
      %cst_14 = arith.constant 0.000000e+00 : f32
      %16 = vector.broadcast %cst_14 : f32 to vector<400x128xf32>
      %17 = arith.maximumf %15, %16 : vector<400x128xf32>
      %18 = arith.truncf %17 : vector<400x128xf32> to vector<400x128xbf16>
      %c0_15 = arith.constant 0 : index
      %c0_16 = arith.constant 0 : index
      %19 = vector.load %arg5[%c0_15, %c0_16] : memref<400x128xbf16, #tpu.memory_space<vmem>>, vector<400x128xbf16>
      tpu.vector_store %arg5[%c0_15, %c0_16], %18 {strides = array<i32>} : memref<400x128xbf16, #tpu.memory_space<vmem>>, vector<400x128xbf16>,
    } else {
    }
    return
  }
  func.func @transform_0(%arg0: i32, %arg1: i32) -> (i32, i32) {
    %c0_i32 = arith.constant 0 : i32
    %c0_i32_0 = arith.constant 0 : i32
    return %c0_i32, %arg1 : i32, i32
  }
  func.func @transform_1(%arg0: i32, %arg1: i32) -> (i32, i32) {
    %c0_i32 = arith.constant 0 : i32
    return %arg1, %arg0 : i32, i32
  }
  func.func @transform_2(%arg0: i32, %arg1: i32) -> (i32, i32) {
    %c0_i32 = arith.constant 0 : i32
    %c0_i32_0 = arith.constant 0 : i32
    return %c0_i32, %arg0 : i32, i32
  }
  func.func @transform_3(%arg0: i32, %arg1: i32) -> (i32, i32) {
    %c0_i32 = arith.constant 0 : i32
    %c0_i32_0 = arith.constant 0 : i32
    return %c0_i32, %arg0 : i32, i32
  }
}

module attributes {stable_mosaic.version = 11 : i64} {
  func.func @_mm_bias_act_kernel(%arg0: i32, %arg1: i32, %arg2: memref<288x384xbf16, #tpu.memory_space<vmem>>, %arg3: memref<384x128xbf16, #tpu.memory_space<vmem>>, %arg4: memref<1x128xf32, #tpu.memory_space<vmem>>, %arg5: memref<288x128xbf16, #tpu.memory_space<vmem>>, %arg6: memref<288x128xf32, #tpu.memory_space<vmem>>) attributes {dimension_semantics = [#tpu.dimension_semantics<parallel>, #tpu.dimension_semantics<arbitrary>], iteration_bounds = array<i64: 1, 1>, scalar_prefetch = 0 : i64, scratch_operands = 1 : i64, tpu.core_type = #tpu.core_type<tc>, window_params = [{transform_indices = @transform_0, window_bounds = array<i64: 288, 384>}, {transform_indices = @transform_1, window_bounds = array<i64: 384, 128>}, {transform_indices = @transform_2, window_bounds = array<i64: 1, 128>}, {transform_indices = @transform_3, window_bounds = array<i64: 288, 128>}]} {
    %c0_i32 = arith.constant 0 : i32
    %0 = arith.cmpi eq, %arg1, %c0_i32 : i32
    %1 = arith.extui %0 : i1 to i32
    %c0_i32_0 = arith.constant 0 : i32
    %2 = arith.cmpi ne, %1, %c0_i32_0 : i32
    scf.if %2 {
      %cst_10 = arith.constant 0.000000e+00 : f32
      %12 = vector.broadcast %cst_10 : f32 to vector<288x128xf32>
      %c0_11 = arith.constant 0 : index
      %c0_12 = arith.constant 0 : index
      %13 = vector.load %arg6[%c0_11, %c0_12] : memref<288x128xf32, #tpu.memory_space<vmem>>, vector<288x128xf32>
      tpu.vector_store %arg6[%c0_11, %c0_12], %12 {strides = array<i32>} : memref<288x128xf32, #tpu.memory_space<vmem>>, vector<288x128xf32>,
    } else {
    }
    %c0 = arith.constant 0 : index
    %c0_1 = arith.constant 0 : index
    %3 = vector.load %arg6[%c0, %c0_1] : memref<288x128xf32, #tpu.memory_space<vmem>>, vector<288x128xf32>
    %c0_2 = arith.constant 0 : index
    %c0_3 = arith.constant 0 : index
    %4 = vector.load %arg2[%c0_2, %c0_3] : memref<288x384xbf16, #tpu.memory_space<vmem>>, vector<288x384xbf16>
    %c0_4 = arith.constant 0 : index
    %c0_5 = arith.constant 0 : index
    %5 = vector.load %arg3[%c0_4, %c0_5] : memref<384x128xbf16, #tpu.memory_space<vmem>>, vector<384x128xbf16>
    %cst = arith.constant dense<0.000000e+00> : vector<288x128xf32>
    %6 = tpu.matmul %4, %5, %cst {dimension_numbers = #tpu.dot_dimension_numbers<[1], [0], [0], [1], [0, 0, 1, 1], [], []>} : vector<288x384xbf16>, vector<384x128xbf16>, vector<288x128xf32> -> vector<288x128xf32>
    %7 = arith.addf %3, %6 : vector<288x128xf32>
    %c0_6 = arith.constant 0 : index
    %c0_7 = arith.constant 0 : index
    %8 = vector.load %arg6[%c0_6, %c0_7] : memref<288x128xf32, #tpu.memory_space<vmem>>, vector<288x128xf32>
    tpu.vector_store %arg6[%c0_6, %c0_7], %7 {strides = array<i32>} : memref<288x128xf32, #tpu.memory_space<vmem>>, vector<288x128xf32>,
    %c0_i32_8 = arith.constant 0 : i32
    %9 = arith.cmpi eq, %arg1, %c0_i32_8 : i32
    %10 = arith.extui %9 : i1 to i32
    %c0_i32_9 = arith.constant 0 : i32
    %11 = arith.cmpi ne, %10, %c0_i32_9 : i32
    scf.if %11 {
      %c0_10 = arith.constant 0 : index
      %c0_11 = arith.constant 0 : index
      %12 = vector.load %arg6[%c0_10, %c0_11] : memref<288x128xf32, #tpu.memory_space<vmem>>, vector<288x128xf32>
      %c0_12 = arith.constant 0 : index
      %c0_13 = arith.constant 0 : index
      %13 = vector.load %arg4[%c0_12, %c0_13] : memref<1x128xf32, #tpu.memory_space<vmem>>, vector<1x128xf32>
      %14 = vector.broadcast %13 : vector<1x128xf32> to vector<288x128xf32>
      %15 = arith.addf %12, %14 : vector<288x128xf32>
      %cst_14 = arith.constant 0.000000e+00 : f32
      %16 = vector.broadcast %cst_14 : f32 to vector<288x128xf32>
      %17 = arith.maximumf %15, %16 : vector<288x128xf32>
      %18 = arith.truncf %17 : vector<288x128xf32> to vector<288x128xbf16>
      %c0_15 = arith.constant 0 : index
      %c0_16 = arith.constant 0 : index
      %19 = vector.load %arg5[%c0_15, %c0_16] : memref<288x128xbf16, #tpu.memory_space<vmem>>, vector<288x128xbf16>
      tpu.vector_store %arg5[%c0_15, %c0_16], %18 {strides = array<i32>} : memref<288x128xbf16, #tpu.memory_space<vmem>>, vector<288x128xbf16>,
    } else {
    }
    return
  }
  func.func @transform_0(%arg0: i32, %arg1: i32) -> (i32, i32) {
    %c0_i32 = arith.constant 0 : i32
    %c0_i32_0 = arith.constant 0 : i32
    return %c0_i32, %arg1 : i32, i32
  }
  func.func @transform_1(%arg0: i32, %arg1: i32) -> (i32, i32) {
    %c0_i32 = arith.constant 0 : i32
    return %arg1, %arg0 : i32, i32
  }
  func.func @transform_2(%arg0: i32, %arg1: i32) -> (i32, i32) {
    %c0_i32 = arith.constant 0 : i32
    %c0_i32_0 = arith.constant 0 : i32
    return %c0_i32, %arg0 : i32, i32
  }
  func.func @transform_3(%arg0: i32, %arg1: i32) -> (i32, i32) {
    %c0_i32 = arith.constant 0 : i32
    %c0_i32_0 = arith.constant 0 : i32
    return %c0_i32, %arg0 : i32, i32
  }
}

module attributes {stable_mosaic.version = 11 : i64} {
  func.func @_conv_bn_kernel(%arg0: i32, %arg1: memref<208x1152xbf16, #tpu.memory_space<vmem>>, %arg2: memref<1152x256xbf16, #tpu.memory_space<vmem>>, %arg3: memref<1x256xf32, #tpu.memory_space<vmem>>, %arg4: memref<1x256xf32, #tpu.memory_space<vmem>>, %arg5: memref<1x256xf32, #tpu.memory_space<vmem>>, %arg6: memref<208x256xf32, #tpu.memory_space<vmem>>) attributes {dimension_semantics = [#tpu.dimension_semantics<arbitrary>], iteration_bounds = array<i64: 1>, scalar_prefetch = 0 : i64, scratch_operands = 0 : i64, tpu.core_type = #tpu.core_type<tc>, window_params = [{pipeline_mode = #tpu.pipeline_mode<synchronous>, transform_indices = @transform_0, window_bounds = array<i64: 208, 1152>}, {pipeline_mode = #tpu.pipeline_mode<synchronous>, transform_indices = @transform_1, window_bounds = array<i64: 1152, 256>}, {pipeline_mode = #tpu.pipeline_mode<synchronous>, transform_indices = @transform_2, window_bounds = array<i64: 1, 256>}, {pipeline_mode = #tpu.pipeline_mode<synchronous>, transform_indices = @transform_3, window_bounds = array<i64: 1, 256>}, {pipeline_mode = #tpu.pipeline_mode<synchronous>, transform_indices = @transform_4, window_bounds = array<i64: 1, 256>}, {pipeline_mode = #tpu.pipeline_mode<synchronous>, transform_indices = @transform_5, window_bounds = array<i64: 208, 256>}]} {
    %c0 = arith.constant 0 : index
    %c0_0 = arith.constant 0 : index
    %0 = vector.load %arg1[%c0, %c0_0] : memref<208x1152xbf16, #tpu.memory_space<vmem>>, vector<208x1152xbf16>
    %c0_1 = arith.constant 0 : index
    %c0_2 = arith.constant 0 : index
    %1 = vector.load %arg2[%c0_1, %c0_2] : memref<1152x256xbf16, #tpu.memory_space<vmem>>, vector<1152x256xbf16>
    %cst = arith.constant dense<0.000000e+00> : vector<208x256xf32>
    %2 = tpu.matmul %0, %1, %cst {dimension_numbers = #tpu.dot_dimension_numbers<[1], [0], [0], [1], [0, 0, 1, 1], [], []>} : vector<208x1152xbf16>, vector<1152x256xbf16>, vector<208x256xf32> -> vector<208x256xf32>
    %c0_3 = arith.constant 0 : index
    %c0_4 = arith.constant 0 : index
    %3 = vector.load %arg3[%c0_3, %c0_4] : memref<1x256xf32, #tpu.memory_space<vmem>>, vector<1x256xf32>
    %4 = vector.broadcast %3 : vector<1x256xf32> to vector<208x256xf32>
    %5 = arith.addf %2, %4 : vector<208x256xf32>
    %cst_5 = arith.constant 0.000000e+00 : f32
    %6 = vector.broadcast %cst_5 : f32 to vector<208x256xf32>
    %7 = arith.maximumf %5, %6 : vector<208x256xf32>
    %8 = tpu.iota {dimensions = array<i32: 0>} : vector<208x256xi32>
    %c200_i32 = arith.constant 200 : i32
    %9 = vector.broadcast %c200_i32 : i32 to vector<208x256xi32>
    %10 = arith.cmpi slt, %8, %9 : vector<208x256xi32>
    %11 = arith.extui %10 : vector<208x256xi1> to vector<208x256xi32>
    %12 = arith.sitofp %11 : vector<208x256xi32> to vector<208x256xf32>
    %13 = arith.mulf %7, %12 : vector<208x256xf32>
    %cst_6 = arith.constant dense<0.000000e+00> : vector<256xf32>
    %14 = vector.multi_reduction <add>, %13, %cst_6 [0] : vector<208x256xf32> to vector<256xf32>
    %15 = vector.shape_cast %14 : vector<256xf32> to vector<1x256xf32>
    %cst_7 = arith.constant 2.000000e+02 : f32
    %16 = vector.broadcast %cst_7 : f32 to vector<1x256xf32>
    %17 = arith.divf %15, %16 : vector<1x256xf32>
    %18 = vector.broadcast %17 : vector<1x256xf32> to vector<208x256xf32>
    %19 = arith.subf %7, %18 : vector<208x256xf32>
    %20 = arith.mulf %19, %19 : vector<208x256xf32>
    %21 = arith.mulf %20, %12 : vector<208x256xf32>
    %cst_8 = arith.constant dense<0.000000e+00> : vector<256xf32>
    %22 = vector.multi_reduction <add>, %21, %cst_8 [0] : vector<208x256xf32> to vector<256xf32>
    %23 = vector.shape_cast %22 : vector<256xf32> to vector<1x256xf32>
    %cst_9 = arith.constant 2.000000e+02 : f32
    %24 = vector.broadcast %cst_9 : f32 to vector<1x256xf32>
    %25 = arith.divf %23, %24 : vector<1x256xf32>
    %26 = vector.broadcast %17 : vector<1x256xf32> to vector<208x256xf32>
    %27 = arith.subf %7, %26 : vector<208x256xf32>
    %cst_10 = arith.constant 9.99999974E-6 : f32
    %28 = vector.broadcast %cst_10 : f32 to vector<1x256xf32>
    %29 = arith.addf %25, %28 : vector<1x256xf32>
    %30 = math.rsqrt %29 : vector<1x256xf32>
    %31 = vector.broadcast %30 : vector<1x256xf32> to vector<208x256xf32>
    %32 = arith.mulf %27, %31 : vector<208x256xf32>
    %c0_11 = arith.constant 0 : index
    %c0_12 = arith.constant 0 : index
    %33 = vector.load %arg4[%c0_11, %c0_12] : memref<1x256xf32, #tpu.memory_space<vmem>>, vector<1x256xf32>
    %34 = vector.broadcast %33 : vector<1x256xf32> to vector<208x256xf32>
    %35 = arith.mulf %32, %34 : vector<208x256xf32>
    %c0_13 = arith.constant 0 : index
    %c0_14 = arith.constant 0 : index
    %36 = vector.load %arg5[%c0_13, %c0_14] : memref<1x256xf32, #tpu.memory_space<vmem>>, vector<1x256xf32>
    %37 = vector.broadcast %36 : vector<1x256xf32> to vector<208x256xf32>
    %38 = arith.addf %35, %37 : vector<208x256xf32>
    %c0_15 = arith.constant 0 : index
    %c0_16 = arith.constant 0 : index
    %39 = vector.load %arg6[%c0_15, %c0_16] : memref<208x256xf32, #tpu.memory_space<vmem>>, vector<208x256xf32>
    tpu.vector_store %arg6[%c0_15, %c0_16], %38 {strides = array<i32>} : memref<208x256xf32, #tpu.memory_space<vmem>>, vector<208x256xf32>,
    return
  }
  func.func @transform_0(%arg0: i32) -> (i32, i32) {
    %c0_i32 = arith.constant 0 : i32
    %c0_i32_0 = arith.constant 0 : i32
    %c0_i32_1 = arith.constant 0 : i32
    return %c0_i32, %c0_i32_0 : i32, i32
  }
  func.func @transform_1(%arg0: i32) -> (i32, i32) {
    %c0_i32 = arith.constant 0 : i32
    %c0_i32_0 = arith.constant 0 : i32
    %c0_i32_1 = arith.constant 0 : i32
    return %c0_i32, %c0_i32_0 : i32, i32
  }
  func.func @transform_2(%arg0: i32) -> (i32, i32) {
    %c0_i32 = arith.constant 0 : i32
    %c0_i32_0 = arith.constant 0 : i32
    %c0_i32_1 = arith.constant 0 : i32
    return %c0_i32, %c0_i32_0 : i32, i32
  }
  func.func @transform_3(%arg0: i32) -> (i32, i32) {
    %c0_i32 = arith.constant 0 : i32
    %c0_i32_0 = arith.constant 0 : i32
    %c0_i32_1 = arith.constant 0 : i32
    return %c0_i32, %c0_i32_0 : i32, i32
  }
  func.func @transform_4(%arg0: i32) -> (i32, i32) {
    %c0_i32 = arith.constant 0 : i32
    %c0_i32_0 = arith.constant 0 : i32
    %c0_i32_1 = arith.constant 0 : i32
    return %c0_i32, %c0_i32_0 : i32, i32
  }
  func.func @transform_5(%arg0: i32) -> (i32, i32) {
    %c0_i32 = arith.constant 0 : i32
    %c0_i32_0 = arith.constant 0 : i32
    %c0_i32_1 = arith.constant 0 : i32
    return %c0_i32, %c0_i32_0 : i32, i32
  }
}

module attributes {stable_mosaic.version = 11 : i64} {
  func.func @_mm_bias_act_kernel(%arg0: i32, %arg1: i32, %arg2: memref<16x2304xbf16, #tpu.memory_space<vmem>>, %arg3: memref<2304x256xbf16, #tpu.memory_space<vmem>>, %arg4: memref<1x256xf32, #tpu.memory_space<vmem>>, %arg5: memref<16x256xf32, #tpu.memory_space<vmem>>, %arg6: memref<16x256xf32, #tpu.memory_space<vmem>>) attributes {dimension_semantics = [#tpu.dimension_semantics<parallel>, #tpu.dimension_semantics<arbitrary>], iteration_bounds = array<i64: 2, 4>, scalar_prefetch = 0 : i64, scratch_operands = 1 : i64, tpu.core_type = #tpu.core_type<tc>, window_params = [{transform_indices = @transform_0, window_bounds = array<i64: 16, 2304>}, {transform_indices = @transform_1, window_bounds = array<i64: 2304, 256>}, {transform_indices = @transform_2, window_bounds = array<i64: 1, 256>}, {transform_indices = @transform_3, window_bounds = array<i64: 16, 256>}]} {
    %c0_i32 = arith.constant 0 : i32
    %0 = arith.cmpi eq, %arg1, %c0_i32 : i32
    %1 = arith.extui %0 : i1 to i32
    %c0_i32_0 = arith.constant 0 : i32
    %2 = arith.cmpi ne, %1, %c0_i32_0 : i32
    scf.if %2 {
      %cst_9 = arith.constant 0.000000e+00 : f32
      %12 = vector.broadcast %cst_9 : f32 to vector<16x256xf32>
      %c0_10 = arith.constant 0 : index
      %c0_11 = arith.constant 0 : index
      %13 = vector.load %arg6[%c0_10, %c0_11] : memref<16x256xf32, #tpu.memory_space<vmem>>, vector<16x256xf32>
      tpu.vector_store %arg6[%c0_10, %c0_11], %12 {strides = array<i32>} : memref<16x256xf32, #tpu.memory_space<vmem>>, vector<16x256xf32>,
    } else {
    }
    %c0 = arith.constant 0 : index
    %c0_1 = arith.constant 0 : index
    %3 = vector.load %arg6[%c0, %c0_1] : memref<16x256xf32, #tpu.memory_space<vmem>>, vector<16x256xf32>
    %c0_2 = arith.constant 0 : index
    %c0_3 = arith.constant 0 : index
    %4 = vector.load %arg2[%c0_2, %c0_3] : memref<16x2304xbf16, #tpu.memory_space<vmem>>, vector<16x2304xbf16>
    %c0_4 = arith.constant 0 : index
    %c0_5 = arith.constant 0 : index
    %5 = vector.load %arg3[%c0_4, %c0_5] : memref<2304x256xbf16, #tpu.memory_space<vmem>>, vector<2304x256xbf16>
    %cst = arith.constant dense<0.000000e+00> : vector<16x256xf32>
    %6 = tpu.matmul %4, %5, %cst {dimension_numbers = #tpu.dot_dimension_numbers<[1], [0], [0], [1], [0, 0, 1, 1], [], []>} : vector<16x2304xbf16>, vector<2304x256xbf16>, vector<16x256xf32> -> vector<16x256xf32>
    %7 = arith.addf %3, %6 : vector<16x256xf32>
    %c0_6 = arith.constant 0 : index
    %c0_7 = arith.constant 0 : index
    %8 = vector.load %arg6[%c0_6, %c0_7] : memref<16x256xf32, #tpu.memory_space<vmem>>, vector<16x256xf32>
    tpu.vector_store %arg6[%c0_6, %c0_7], %7 {strides = array<i32>} : memref<16x256xf32, #tpu.memory_space<vmem>>, vector<16x256xf32>,
    %c3_i32 = arith.constant 3 : i32
    %9 = arith.cmpi eq, %arg1, %c3_i32 : i32
    %10 = arith.extui %9 : i1 to i32
    %c0_i32_8 = arith.constant 0 : i32
    %11 = arith.cmpi ne, %10, %c0_i32_8 : i32
    scf.if %11 {
      %c0_9 = arith.constant 0 : index
      %c0_10 = arith.constant 0 : index
      %12 = vector.load %arg6[%c0_9, %c0_10] : memref<16x256xf32, #tpu.memory_space<vmem>>, vector<16x256xf32>
      %c0_11 = arith.constant 0 : index
      %c0_12 = arith.constant 0 : index
      %13 = vector.load %arg4[%c0_11, %c0_12] : memref<1x256xf32, #tpu.memory_space<vmem>>, vector<1x256xf32>
      %14 = vector.broadcast %13 : vector<1x256xf32> to vector<16x256xf32>
      %15 = arith.addf %12, %14 : vector<16x256xf32>
      %cst_13 = arith.constant 0.000000e+00 : f32
      %16 = vector.broadcast %cst_13 : f32 to vector<16x256xf32>
      %17 = arith.maximumf %15, %16 : vector<16x256xf32>
      %c0_14 = arith.constant 0 : index
      %c0_15 = arith.constant 0 : index
      %18 = vector.load %arg5[%c0_14, %c0_15] : memref<16x256xf32, #tpu.memory_space<vmem>>, vector<16x256xf32>
      tpu.vector_store %arg5[%c0_14, %c0_15], %17 {strides = array<i32>} : memref<16x256xf32, #tpu.memory_space<vmem>>, vector<16x256xf32>,
    } else {
    }
    return
  }
  func.func @transform_0(%arg0: i32, %arg1: i32) -> (i32, i32) {
    %c0_i32 = arith.constant 0 : i32
    %c0_i32_0 = arith.constant 0 : i32
    return %c0_i32, %arg1 : i32, i32
  }
  func.func @transform_1(%arg0: i32, %arg1: i32) -> (i32, i32) {
    %c0_i32 = arith.constant 0 : i32
    return %arg1, %arg0 : i32, i32
  }
  func.func @transform_2(%arg0: i32, %arg1: i32) -> (i32, i32) {
    %c0_i32 = arith.constant 0 : i32
    %c0_i32_0 = arith.constant 0 : i32
    return %c0_i32, %arg0 : i32, i32
  }
  func.func @transform_3(%arg0: i32, %arg1: i32) -> (i32, i32) {
    %c0_i32 = arith.constant 0 : i32
    %c0_i32_0 = arith.constant 0 : i32
    return %c0_i32, %arg0 : i32, i32
  }
}

module attributes {stable_mosaic.version = 11 : i64} {
  func.func @_tail_kernel(%arg0: i32, %arg1: memref<16x512xf32, #tpu.memory_space<vmem>>, %arg2: memref<16x512xf32, #tpu.memory_space<vmem>>, %arg3: memref<512x256xbf16, #tpu.memory_space<vmem>>, %arg4: memref<1x256xf32, #tpu.memory_space<vmem>>, %arg5: memref<256x128xbf16, #tpu.memory_space<vmem>>, %arg6: memref<1x128xf32, #tpu.memory_space<vmem>>, %arg7: memref<16x128xf32, #tpu.memory_space<vmem>>) attributes {dimension_semantics = [#tpu.dimension_semantics<arbitrary>], iteration_bounds = array<i64: 1>, scalar_prefetch = 0 : i64, scratch_operands = 0 : i64, tpu.core_type = #tpu.core_type<tc>, window_params = [{pipeline_mode = #tpu.pipeline_mode<synchronous>, transform_indices = @transform_0, window_bounds = array<i64: 16, 512>}, {pipeline_mode = #tpu.pipeline_mode<synchronous>, transform_indices = @transform_1, window_bounds = array<i64: 16, 512>}, {pipeline_mode = #tpu.pipeline_mode<synchronous>, transform_indices = @transform_2, window_bounds = array<i64: 512, 256>}, {pipeline_mode = #tpu.pipeline_mode<synchronous>, transform_indices = @transform_3, window_bounds = array<i64: 1, 256>}, {pipeline_mode = #tpu.pipeline_mode<synchronous>, transform_indices = @transform_4, window_bounds = array<i64: 256, 128>}, {pipeline_mode = #tpu.pipeline_mode<synchronous>, transform_indices = @transform_5, window_bounds = array<i64: 1, 128>}, {pipeline_mode = #tpu.pipeline_mode<synchronous>, transform_indices = @transform_6, window_bounds = array<i64: 16, 128>}]} {
    %c0 = arith.constant 0 : index
    %c0_0 = arith.constant 0 : index
    %0 = vector.load %arg1[%c0, %c0_0] : memref<16x512xf32, #tpu.memory_space<vmem>>, vector<16x512xf32>
    %c0_1 = arith.constant 0 : index
    %c0_2 = arith.constant 0 : index
    %1 = vector.load %arg2[%c0_1, %c0_2] : memref<16x512xf32, #tpu.memory_space<vmem>>, vector<16x512xf32>
    %2 = arith.mulf %0, %1 : vector<16x512xf32>
    %3 = arith.truncf %2 : vector<16x512xf32> to vector<16x512xbf16>
    %c0_3 = arith.constant 0 : index
    %c0_4 = arith.constant 0 : index
    %4 = vector.load %arg3[%c0_3, %c0_4] : memref<512x256xbf16, #tpu.memory_space<vmem>>, vector<512x256xbf16>
    %cst = arith.constant dense<0.000000e+00> : vector<16x256xf32>
    %5 = tpu.matmul %3, %4, %cst {dimension_numbers = #tpu.dot_dimension_numbers<[1], [0], [0], [1], [0, 0, 1, 1], [], []>} : vector<16x512xbf16>, vector<512x256xbf16>, vector<16x256xf32> -> vector<16x256xf32>
    %c0_5 = arith.constant 0 : index
    %c0_6 = arith.constant 0 : index
    %6 = vector.load %arg4[%c0_5, %c0_6] : memref<1x256xf32, #tpu.memory_space<vmem>>, vector<1x256xf32>
    %7 = vector.broadcast %6 : vector<1x256xf32> to vector<16x256xf32>
    %8 = arith.addf %5, %7 : vector<16x256xf32>
    %cst_7 = arith.constant 0.000000e+00 : f32
    %9 = vector.broadcast %cst_7 : f32 to vector<16x256xf32>
    %10 = arith.maximumf %8, %9 : vector<16x256xf32>
    %11 = arith.truncf %10 : vector<16x256xf32> to vector<16x256xbf16>
    %c0_8 = arith.constant 0 : index
    %c0_9 = arith.constant 0 : index
    %12 = vector.load %arg5[%c0_8, %c0_9] : memref<256x128xbf16, #tpu.memory_space<vmem>>, vector<256x128xbf16>
    %cst_10 = arith.constant dense<0.000000e+00> : vector<16x128xf32>
    %13 = tpu.matmul %11, %12, %cst_10 {dimension_numbers = #tpu.dot_dimension_numbers<[1], [0], [0], [1], [0, 0, 1, 1], [], []>} : vector<16x256xbf16>, vector<256x128xbf16>, vector<16x128xf32> -> vector<16x128xf32>
    %c0_11 = arith.constant 0 : index
    %c0_12 = arith.constant 0 : index
    %14 = vector.load %arg6[%c0_11, %c0_12] : memref<1x128xf32, #tpu.memory_space<vmem>>, vector<1x128xf32>
    %15 = vector.broadcast %14 : vector<1x128xf32> to vector<16x128xf32>
    %16 = arith.addf %13, %15 : vector<16x128xf32>
    %cst_13 = arith.constant dense<0xFF800000> : vector<16xf32>
    %17 = vector.multi_reduction <maximumf>, %16, %cst_13 [1] : vector<16x128xf32> to vector<16xf32>
    %18 = vector.shape_cast %17 : vector<16xf32> to vector<16x1xf32>
    %19 = vector.broadcast %18 : vector<16x1xf32> to vector<16x128xf32>
    %20 = arith.subf %16, %19 : vector<16x128xf32>
    %21 = math.exp %20 : vector<16x128xf32>
    %cst_14 = arith.constant dense<0.000000e+00> : vector<16xf32>
    %22 = vector.multi_reduction <add>, %21, %cst_14 [1] : vector<16x128xf32> to vector<16xf32>
    %23 = vector.shape_cast %22 : vector<16xf32> to vector<16x1xf32>
    %24 = math.log %23 : vector<16x1xf32>
    %25 = vector.broadcast %24 : vector<16x1xf32> to vector<16x128xf32>
    %26 = arith.subf %20, %25 : vector<16x128xf32>
    %c0_15 = arith.constant 0 : index
    %c0_16 = arith.constant 0 : index
    %27 = vector.load %arg7[%c0_15, %c0_16] : memref<16x128xf32, #tpu.memory_space<vmem>>, vector<16x128xf32>
    tpu.vector_store %arg7[%c0_15, %c0_16], %26 {strides = array<i32>} : memref<16x128xf32, #tpu.memory_space<vmem>>, vector<16x128xf32>,
    return
  }
  func.func @transform_0(%arg0: i32) -> (i32, i32) {
    %c0_i32 = arith.constant 0 : i32
    %c0_i32_0 = arith.constant 0 : i32
    %c0_i32_1 = arith.constant 0 : i32
    return %c0_i32, %c0_i32_0 : i32, i32
  }
  func.func @transform_1(%arg0: i32) -> (i32, i32) {
    %c0_i32 = arith.constant 0 : i32
    %c0_i32_0 = arith.constant 0 : i32
    %c0_i32_1 = arith.constant 0 : i32
    return %c0_i32, %c0_i32_0 : i32, i32
  }
  func.func @transform_2(%arg0: i32) -> (i32, i32) {
    %c0_i32 = arith.constant 0 : i32
    %c0_i32_0 = arith.constant 0 : i32
    %c0_i32_1 = arith.constant 0 : i32
    return %c0_i32, %c0_i32_0 : i32, i32
  }
  func.func @transform_3(%arg0: i32) -> (i32, i32) {
    %c0_i32 = arith.constant 0 : i32
    %c0_i32_0 = arith.constant 0 : i32
    %c0_i32_1 = arith.constant 0 : i32
    return %c0_i32, %c0_i32_0 : i32, i32
  }
  func.func @transform_4(%arg0: i32) -> (i32, i32) {
    %c0_i32 = arith.constant 0 : i32
    %c0_i32_0 = arith.constant 0 : i32
    %c0_i32_1 = arith.constant 0 : i32
    return %c0_i32, %c0_i32_0 : i32, i32
  }
  func.func @transform_5(%arg0: i32) -> (i32, i32) {
    %c0_i32 = arith.constant 0 : i32
    %c0_i32_0 = arith.constant 0 : i32
    %c0_i32_1 = arith.constant 0 : i32
    return %c0_i32, %c0_i32_0 : i32, i32
  }
  func.func @transform_6(%arg0: i32) -> (i32, i32) {
    %c0_i32 = arith.constant 0 : i32
    %c0_i32_0 = arith.constant 0 : i32
    %c0_i32_1 = arith.constant 0 : i32
    return %c0_i32, %c0_i32_0 : i32, i32
  }
}

</mosaic_0001>

<bundles_post_ra>
// kernel: teacher_forward.5
= control target key start
LH: loop header
LB: loop body
LE: loop exit
PB: predicated region body
PF: predicated region fallthrough
CT: control target
= control target key end

     0   :  { %8 = vsyncpa [#allocation4], 0  ;;  %s1536_s0 = inlined_call_operand.vmem [shape: bf16[400,128], index: 0, kind: input, shape index: {}]   ;;  %s1537_s1 = inlined_call_operand.hbm [shape: bf16[128,128], index: 1, kind: input, shape index: {}]   ;;  %s1538_s2 = inlined_call_operand.hbm [shape: f32[1,128], index: 2, kind: input, shape index: {}]   ;;  %s1539_s3 = inlined_call_operand.vmem [shape: bf16[400,128], index: 3, kind: output, shape index: {}]  }
   0x1   :  { %s16_s14 = sshll.u32 %s1537_s1, 4  ;;  %s17_s14 = int_to_ptr.hbm [resolvable:$true] %s16_s14 }
   0x2   :  { %9 = vsyncpa [#allocation6], 0  ;;  %s1304_s15 = smov [#allocation3]   ;;  %s30_s19 = sshll.u32 %s1538_s2, 4  ;;  %s31_s19 = int_to_ptr.hbm [resolvable:$true] %s30_s19 }
   0x3   :  { %s18_s16 = sshll.u32 %s1304_s15, 4  ;;  %s1305_s20 = smov 64   ;;  %s19_s16 = int_to_ptr.vmem [resolvable:$true] %s18_s16 }
   0x4   :  { %s1306_s21 = smov 4   ;;  %s1307_s22 = smov [#allocation5]  }
   0x5   :  { %24 = dma.hbm_to_vmem [thread:$0]  %s17_s14, 1024, %s19_s16, [#allocation4], %s1305_s20, %s1305_s20, %s1306_s21  }
   0x6   :  { %s32_s23 = sshll.u32 %s1307_s22, 4  ;;  %s33_s23 = int_to_ptr.vmem [resolvable:$true] %s32_s23 }
   0x7   :  { %35 = dma.hbm_to_vmem [thread:$0]  %s31_s19, 16, %s33_s23, [#allocation6]  }
   0x8   :  { %1300 = dma.done.wait [#allocation4], 1024  }
   0x9   :  { %1301 = vsyncadd [#allocation4], 4294966272 }
   0xa   :  { %1302 = dma.done.wait [#allocation6], 16  }
   0xb   :  { %1303 = vsyncadd [#allocation6], 4294967280  ;;  %v1073_v0 = vld [vmem:[#allocation3 + $0x38] sm:$0xff]  ;;  %v1072_v1 = vld [vmem:[#allocation3 + $0x30] sm:$0xff] }
   0xc   :  { %1224 = vmatpush.bf16.msra.mxu2 %v1073_v0  ;;  %1225 = vmatpush.bf16.msra.mxu3 %v1073_v0  ;;  %v1071_v2 = vld [vmem:[#allocation3 + $0x28] sm:$0xff]  ;;  %v1070_v3 = vld [vmem:[#allocation3 + $0x20] sm:$0xff]  ;;  %v1069_v4 = vld [vmem:[#allocation3 + $0x18] sm:$0xff] }
   0xd   :  { %412 = vmatpush.bf16.msra.mxu0 %v1073_v0  ;;  %1223 = vmatpush.bf16.msra.mxu1 %v1073_v0  ;;  %v1068_v5 = vld [vmem:[#allocation3 + $0x10] sm:$0xff]  ;;  %v1067_v6 = vld [vmem:[#allocation3 + $0x8] sm:$0xff]  ;;  %v1066_v7 = vld [vmem:[#allocation3] sm:$0xff] }
   0xe   :  { %v1053_v8 = vld [vmem:[%s1536_s0 + $0x60] sm:$0xff]  ;;  %v1060_v9 = vld [vmem:[%s1536_s0 + $0x98] sm:$0xff]  ;;  %v1047_v11 = vld [vmem:[%s1536_s0 + $0x30] sm:$0xff] }
   0xf   :  { %v1041_v10 = vld [vmem:[%s1536_s0] sm:$0xff]  ;;  %v1054_v12 = vld [vmem:[%s1536_s0 + $0x68] sm:$0xff]  ;;  %v1048_v15 = vld [vmem:[%s1536_s0 + $0x38] sm:$0xff] }
  0x10   :  { %1227 = vmatpush.bf16.msra.mxu2 %v1072_v1  ;;  %1228 = vmatpush.bf16.msra.mxu3 %v1072_v1  ;;  %v1061_v13 = vld [vmem:[%s1536_s0 + $0xa0] sm:$0xff]  ;;  %v1042_v14 = vld [vmem:[%s1536_s0 + $0x8] sm:$0xff]  ;;  %v1055_v16 = vld [vmem:[%s1536_s0 + $0x70] sm:$0xff] }
  0x11   :  { %413 = vmatpush.bf16.msra.mxu0 %v1072_v1  ;;  %1226 = vmatpush.bf16.msra.mxu1 %v1072_v1  ;;  %v1062_v17 = vld [vmem:[%s1536_s0 + $0xa8] sm:$0xff]  ;;  %v1043_v18 = vld [vmem:[%s1536_s0 + $0x10] sm:$0xff]  ;;  %v1049_v19 = vld [vmem:[%s1536_s0 + $0x40] sm:$0xff] }
  0x12   :  { %v1056_v20 = vld [vmem:[%s1536_s0 + $0x78] sm:$0xff]  ;;  %v1063_v21 = vld [vmem:[%s1536_s0 + $0xb0] sm:$0xff]  ;;  %v1050_v23 = vld [vmem:[%s1536_s0 + $0x48] sm:$0xff] }
  0x13   :  { %v1044_v22 = vld [vmem:[%s1536_s0 + $0x18] sm:$0xff]  ;;  %v1057_v24 = vld [vmem:[%s1536_s0 + $0x80] sm:$0xff]  ;;  %v1051_v27 = vld [vmem:[%s1536_s0 + $0x50] sm:$0xff] }
  0x14   :  { %1230 = vmatpush.bf16.msra.mxu2 %v1071_v2  ;;  %1231 = vmatpush.bf16.msra.mxu3 %v1071_v2  ;;  %v1064_v25 = vld [vmem:[%s1536_s0 + $0xb8] sm:$0xff]  ;;  %v1045_v26 = vld [vmem:[%s1536_s0 + $0x20] sm:$0xff]  ;;  %v1058_v28 = vld [vmem:[%s1536_s0 + $0x88] sm:$0xff] }
  0x15   :  { %414 = vmatpush.bf16.msra.mxu0 %v1071_v2  ;;  %1229 = vmatpush.bf16.msra.mxu1 %v1071_v2  ;;  %v1065_v29 = vld [vmem:[%s1536_s0 + $0xc0] sm:$0xff]  ;;  %v1046_v30 = vld [vmem:[%s1536_s0 + $0x28] sm:$0xff]  ;;  %v1052_v31 = vld [vmem:[%s1536_s0 + $0x58] sm:$0xff] }
  0x16   :  { %v1059_v32 = vld [vmem:[%s1536_s0 + $0x90] sm:$0xff]  ;;  %v1409_v35 = vld [vmem:[#allocation5] ss:$0 sm:$0xff] }
  0x18   :  { %1233 = vmatpush.bf16.msra.mxu2 %v1070_v3  ;;  %1234 = vmatpush.bf16.msra.mxu3 %v1070_v3 }
  0x19   :  { %415 = vmatpush.bf16.msra.mxu0 %v1070_v3  ;;  %1232 = vmatpush.bf16.msra.mxu1 %v1070_v3 }
  0x1c   :  { %1236 = vmatpush.bf16.msra.mxu2 %v1069_v4  ;;  %1237 = vmatpush.bf16.msra.mxu3 %v1069_v4 }
  0x1d   :  { %416 = vmatpush.bf16.msra.mxu0 %v1069_v4  ;;  %1235 = vmatpush.bf16.msra.mxu1 %v1069_v4 }
  0x20   :  { %1239 = vmatpush.bf16.msra.mxu2 %v1068_v5  ;;  %1240 = vmatpush.bf16.msra.mxu3 %v1068_v5 }
  0x21   :  { %417 = vmatpush.bf16.msra.mxu0 %v1068_v5  ;;  %1238 = vmatpush.bf16.msra.mxu1 %v1068_v5 }
  0x24   :  { %1242 = vmatpush.bf16.msra.mxu2 %v1067_v6  ;;  %1243 = vmatpush.bf16.msra.mxu3 %v1067_v6 }
  0x25   :  { %418 = vmatpush.bf16.msra.mxu0 %v1067_v6  ;;  %1241 = vmatpush.bf16.msra.mxu1 %v1067_v6 }
  0x28   :  { %1245 = vmatpush.bf16.msra.mxu2 %v1066_v7  ;;  %1246 = vmatpush.bf16.msra.mxu3 %v1066_v7 }
  0x29   :  { %419 = vmatpush.bf16.msra.mxu0 %v1066_v7  ;;  %1244 = vmatpush.bf16.msra.mxu1 %v1066_v7 }
  0x2b   :  { %480 = vmatmul.bf16.vlgmr.msra.gmra.mxu2 %v1053_v8  ;;  %515 = vmatmul.bf16.vlgmr.msra.gmra.mxu3 %v1060_v9 }
  0x2c   :  { %420 = vmatmul.bf16.vlgmr.msra.gmra.mxu0 %v1041_v10  ;;  %450 = vmatmul.bf16.vlgmr.msra.gmra.mxu1 %v1047_v11 }
  0x3b   :  { %485 = vmatmul.bf16.gmra.mxu2 %v1054_v12  ;;  %520 = vmatmul.bf16.gmra.mxu3 %v1061_v13 }
  0x3c   :  { %425 = vmatmul.bf16.gmra.mxu0 %v1042_v14  ;;  %455 = vmatmul.bf16.gmra.mxu1 %v1048_v15 }
  0x4b   :  { %490 = vmatmul.bf16.gmra.mxu2 %v1055_v16  ;;  %525 = vmatmul.bf16.gmra.mxu3 %v1062_v17 }
  0x4c   :  { %430 = vmatmul.bf16.gmra.mxu0 %v1043_v18  ;;  %460 = vmatmul.bf16.gmra.mxu1 %v1049_v19 }
  0x5b   :  { %495 = vmatmul.bf16.gmra.mxu2 %v1056_v20  ;;  %530 = vmatmul.bf16.gmra.mxu3 %v1063_v21 }
  0x5c   :  { %435 = vmatmul.bf16.gmra.mxu0 %v1044_v22  ;;  %465 = vmatmul.bf16.gmra.mxu1 %v1050_v23 }
  0x6b   :  { %500 = vmatmul.bf16.gmra.mxu2 %v1057_v24  ;;  %535 = vmatmul.bf16.gmra.mxu3 %v1064_v25 }
  0x6c   :  { %440 = vmatmul.bf16.gmra.mxu0 %v1045_v26  ;;  %470 = vmatmul.bf16.gmra.mxu1 %v1051_v27 }
  0x7b   :  { %505 = vmatmul.bf16.gmra.mxu2 %v1058_v28  ;;  %540 = vmatmul.bf16.gmra.mxu3 %v1065_v29 }
  0x7c   :  { %445 = vmatmul.bf16.gmra.mxu0 %v1046_v30  ;;  %475 = vmatmul.bf16.gmra.mxu1 %v1052_v31 }
  0x8b   :  { %510 = vmatmul.bf16.gmra.mxu2 %v1059_v32 }
  0xa9   :  { %v421_v33 = vpop.f32.mrf.mxu0  ;;  %v451_v34 = vpop.f32.mrf.mxu1 }
  0xaa   :  { %v703_v37 = vadd.f32 %v1409_v35, %v421_v33  ;;  %v715_v38 = vadd.f32 %v1409_v35, %v451_v34 }
  0xac   :  { %v753_v42 = vmax.f32 %v703_v37, 0.0  ;;  %v765_v43 = vmax.f32 %v715_v38, 0.0 }
  0xae   :  { %v481_v36 = vpop.f32.mrf.mxu2  ;;  %v516_v39 = vpop.f32.mrf.mxu3 }
  0xaf   :  { %v741_v46 = vadd.f32 %v1409_v35, %v516_v39  ;;  %v727_v49 = vadd.f32 %v1409_v35, %v481_v36 }
  0xb1   :  { %v423_v40 = vpop.f32.mrf.mxu0  ;;  %v453_v41 = vpop.f32.mrf.mxu1  ;;  %v791_v55 = vmax.f32 %v741_v46, 0.0  ;;  %v777_v57 = vmax.f32 %v727_v49, 0.0 }
  0xb2   :  { %v704_v44 = vadd.f32 %v1409_v35, %v423_v40  ;;  %v716_v45 = vadd.f32 %v1409_v35, %v453_v41 }
  0xb4   :  { %v754_v47 = vmax.f32 %v704_v44, 0.0  ;;  %v766_v48 = vmax.f32 %v716_v45, 0.0 }
  0xb6   :  { %v483_v50 = vpop.f32.mrf.mxu2  ;;  %v1077_v51 = vpack.c.bf16 %v754_v47, %v753_v42  ;;  %v1107_v52 = vpack.c.bf16 %v766_v48, %v765_v43  ;;  %v518_v53 = vpop.f32.mrf.mxu3 }
  0xb7   :  { %v728_v54 = vadd.f32 %v1409_v35, %v483_v50  ;;  %v742_v56 = vadd.f32 %v1409_v35, %v518_v53 }
  0xb8   :  { %1078 = vst [vmem:[%s1539_s3] sm:$0xff] %v1077_v51  }
  0xb9   :  { %v778_v58 = vmax.f32 %v728_v54, 0.0  ;;  %1204 = vst [vmem:[%s1539_s3 + $0x30] sm:$0xff] %v1107_v52   ;;  %v792_v59 = vmax.f32 %v742_v56, 0.0  ;;  %v426_v60 = vpop.f32.mrf.mxu0  ;;  %v456_v61 = vpop.f32.mrf.mxu1 }
  0xba   :  { %v705_v1 = vadd.f32 %v1409_v35, %v426_v60  ;;  %v717_v2 = vadd.f32 %v1409_v35, %v456_v61 }
  0xbb   :  { %v1137_v62 = vpack.c.bf16 %v778_v58, %v777_v57  ;;  %v1172_v63 = vpack.c.bf16 %v792_v59, %v791_v55 }
  0xbc   :  { %v755_v6 = vmax.f32 %v705_v1, 0.0  ;;  %v767_v7 = vmax.f32 %v717_v2, 0.0 }
  0xbd   :  { %1210 = vst [vmem:[%s1539_s3 + $0x60] sm:$0xff] %v1137_v62  }
  0xbe   :  { %v486_v0 = vpop.f32.mrf.mxu2  ;;  %1217 = vst [vmem:[%s1539_s3 + $0x98] sm:$0xff] %v1172_v63   ;;  %v521_v3 = vpop.f32.mrf.mxu3 }
  0xbf   :  { %v743_v10 = vadd.f32 %v1409_v35, %v521_v3  ;;  %v729_v13 = vadd.f32 %v1409_v35, %v486_v0 }
  0xc1   :  { %v428_v4 = vpop.f32.mrf.mxu0  ;;  %v458_v5 = vpop.f32.mrf.mxu1  ;;  %v793_v19 = vmax.f32 %v743_v10, 0.0  ;;  %v779_v21 = vmax.f32 %v729_v13, 0.0 }
  0xc2   :  { %v706_v8 = vadd.f32 %v1409_v35, %v428_v4  ;;  %v718_v9 = vadd.f32 %v1409_v35, %v458_v5 }
  0xc4   :  { %v756_v11 = vmax.f32 %v706_v8, 0.0  ;;  %v768_v12 = vmax.f32 %v718_v9, 0.0 }
  0xc6   :  { %v488_v14 = vpop.f32.mrf.mxu2  ;;  %v1082_v15 = vpack.c.bf16 %v756_v11, %v755_v6  ;;  %v1112_v16 = vpack.c.bf16 %v768_v12, %v767_v7  ;;  %v523_v17 = vpop.f32.mrf.mxu3 }
  0xc7   :  { %v730_v18 = vadd.f32 %v1409_v35, %v488_v14  ;;  %v744_v20 = vadd.f32 %v1409_v35, %v523_v17 }
  0xc8   :  { %1199 = vst [vmem:[%s1539_s3 + $0x8] sm:$0xff] %v1082_v15  }
  0xc9   :  { %v780_v22 = vmax.f32 %v730_v18, 0.0  ;;  %1205 = vst [vmem:[%s1539_s3 + $0x38] sm:$0xff] %v1112_v16   ;;  %v794_v23 = vmax.f32 %v744_v20, 0.0  ;;  %v431_v24 = vpop.f32.mrf.mxu0  ;;  %v461_v25 = vpop.f32.mrf.mxu1 }
  0xca   :  { %v707_v29 = vadd.f32 %v1409_v35, %v431_v24  ;;  %v719_v30 = vadd.f32 %v1409_v35, %v461_v25 }
  0xcb   :  { %v1142_v26 = vpack.c.bf16 %v780_v22, %v779_v21  ;;  %v1177_v27 = vpack.c.bf16 %v794_v23, %v793_v19 }
  0xcc   :  { %v757_v34 = vmax.f32 %v707_v29, 0.0  ;;  %v769_v36 = vmax.f32 %v719_v30, 0.0 }
  0xcd   :  { %1211 = vst [vmem:[%s1539_s3 + $0x68] sm:$0xff] %v1142_v26  }
  0xce   :  { %v491_v28 = vpop.f32.mrf.mxu2  ;;  %1218 = vst [vmem:[%s1539_s3 + $0xa0] sm:$0xff] %v1177_v27   ;;  %v526_v31 = vpop.f32.mrf.mxu3 }
  0xcf   :  { %v745_v39 = vadd.f32 %v1409_v35, %v526_v31  ;;  %v731_v42 = vadd.f32 %v1409_v35, %v491_v28 }
  0xd1   :  { %v433_v32 = vpop.f32.mrf.mxu0  ;;  %v463_v33 = vpop.f32.mrf.mxu1  ;;  %v795_v48 = vmax.f32 %v745_v39, 0.0  ;;  %v781_v50 = vmax.f32 %v731_v42, 0.0 }
  0xd2   :  { %v708_v37 = vadd.f32 %v1409_v35, %v433_v32  ;;  %v720_v38 = vadd.f32 %v1409_v35, %v463_v33 }
  0xd4   :  { %v758_v40 = vmax.f32 %v708_v37, 0.0  ;;  %v770_v41 = vmax.f32 %v720_v38, 0.0 }
  0xd6   :  { %v493_v43 = vpop.f32.mrf.mxu2  ;;  %v1087_v44 = vpack.c.bf16 %v758_v40, %v757_v34  ;;  %v1117_v45 = vpack.c.bf16 %v770_v41, %v769_v36  ;;  %v528_v46 = vpop.f32.mrf.mxu3 }
  0xd7   :  { %v732_v47 = vadd.f32 %v1409_v35, %v493_v43  ;;  %v746_v49 = vadd.f32 %v1409_v35, %v528_v46 }
  0xd8   :  { %1200 = vst [vmem:[%s1539_s3 + $0x10] sm:$0xff] %v1087_v44  }
  0xd9   :  { %v782_v51 = vmax.f32 %v732_v47, 0.0  ;;  %1206 = vst [vmem:[%s1539_s3 + $0x40] sm:$0xff] %v1117_v45   ;;  %v796_v52 = vmax.f32 %v746_v49, 0.0  ;;  %v436_v53 = vpop.f32.mrf.mxu0  ;;  %v466_v54 = vpop.f32.mrf.mxu1 }
  0xda   :  { %v709_v58 = vadd.f32 %v1409_v35, %v436_v53  ;;  %v721_v59 = vadd.f32 %v1409_v35, %v466_v54 }
  0xdb   :  { %v1147_v55 = vpack.c.bf16 %v782_v51, %v781_v50  ;;  %v1182_v56 = vpack.c.bf16 %v796_v52, %v795_v48 }
  0xdc   :  { %v759_v63 = vmax.f32 %v709_v58, 0.0  ;;  %v771_v0 = vmax.f32 %v721_v59, 0.0 }
  0xdd   :  { %1212 = vst [vmem:[%s1539_s3 + $0x70] sm:$0xff] %v1147_v55  }
  0xde   :  { %v496_v57 = vpop.f32.mrf.mxu2  ;;  %1219 = vst [vmem:[%s1539_s3 + $0xa8] sm:$0xff] %v1182_v56   ;;  %v531_v60 = vpop.f32.mrf.mxu3 }
  0xdf   :  { %v747_v3 = vadd.f32 %v1409_v35, %v531_v60  ;;  %v733_v6 = vadd.f32 %v1409_v35, %v496_v57 }
  0xe1   :  { %v438_v61 = vpop.f32.mrf.mxu0  ;;  %v468_v62 = vpop.f32.mrf.mxu1  ;;  %v797_v12 = vmax.f32 %v747_v3, 0.0  ;;  %v783_v14 = vmax.f32 %v733_v6, 0.0 }
  0xe2   :  { %v710_v1 = vadd.f32 %v1409_v35, %v438_v61  ;;  %v722_v2 = vadd.f32 %v1409_v35, %v468_v62 }
  0xe4   :  { %v760_v4 = vmax.f32 %v710_v1, 0.0  ;;  %v772_v5 = vmax.f32 %v722_v2, 0.0 }
  0xe6   :  { %v498_v7 = vpop.f32.mrf.mxu2  ;;  %v1092_v8 = vpack.c.bf16 %v760_v4, %v759_v63  ;;  %v1122_v9 = vpack.c.bf16 %v772_v5, %v771_v0  ;;  %v533_v10 = vpop.f32.mrf.mxu3 }
  0xe7   :  { %v734_v11 = vadd.f32 %v1409_v35, %v498_v7  ;;  %v748_v13 = vadd.f32 %v1409_v35, %v533_v10 }
  0xe8   :  { %1201 = vst [vmem:[%s1539_s3 + $0x18] sm:$0xff] %v1092_v8  }
  0xe9   :  { %v784_v15 = vmax.f32 %v734_v11, 0.0  ;;  %1207 = vst [vmem:[%s1539_s3 + $0x48] sm:$0xff] %v1122_v9   ;;  %v798_v16 = vmax.f32 %v748_v13, 0.0  ;;  %v441_v17 = vpop.f32.mrf.mxu0  ;;  %v471_v18 = vpop.f32.mrf.mxu1 }
  0xea   :  { %v711_v22 = vadd.f32 %v1409_v35, %v441_v17  ;;  %v723_v23 = vadd.f32 %v1409_v35, %v471_v18 }
  0xeb   :  { %v1152_v19 = vpack.c.bf16 %v784_v15, %v783_v14  ;;  %v1187_v20 = vpack.c.bf16 %v798_v16, %v797_v12 }
  0xec   :  { %v761_v27 = vmax.f32 %v711_v22, 0.0  ;;  %v773_v28 = vmax.f32 %v723_v23, 0.0 }
  0xed   :  { %1213 = vst [vmem:[%s1539_s3 + $0x78] sm:$0xff] %v1152_v19  }
  0xee   :  { %v501_v21 = vpop.f32.mrf.mxu2  ;;  %1220 = vst [vmem:[%s1539_s3 + $0xb0] sm:$0xff] %v1187_v20   ;;  %v536_v24 = vpop.f32.mrf.mxu3 }
  0xef   :  { %v749_v31 = vadd.f32 %v1409_v35, %v536_v24  ;;  %v735_v34 = vadd.f32 %v1409_v35, %v501_v21 }
  0xf1   :  { %v443_v25 = vpop.f32.mrf.mxu0  ;;  %v473_v26 = vpop.f32.mrf.mxu1  ;;  %v799_v41 = vmax.f32 %v749_v31, 0.0  ;;  %v785_v43 = vmax.f32 %v735_v34, 0.0 }
  0xf2   :  { %v712_v29 = vadd.f32 %v1409_v35, %v443_v25  ;;  %v724_v30 = vadd.f32 %v1409_v35, %v473_v26 }
  0xf4   :  { %v762_v32 = vmax.f32 %v712_v29, 0.0  ;;  %v774_v33 = vmax.f32 %v724_v30, 0.0 }
  0xf6   :  { %v503_v36 = vpop.f32.mrf.mxu2  ;;  %v1097_v37 = vpack.c.bf16 %v762_v32, %v761_v27  ;;  %v1127_v38 = vpack.c.bf16 %v774_v33, %v773_v28  ;;  %v538_v39 = vpop.f32.mrf.mxu3 }
  0xf7   :  { %v736_v40 = vadd.f32 %v1409_v35, %v503_v36  ;;  %v750_v42 = vadd.f32 %v1409_v35, %v538_v39 }
  0xf8   :  { %1202 = vst [vmem:[%s1539_s3 + $0x20] sm:$0xff] %v1097_v37  }
  0xf9   :  { %v786_v44 = vmax.f32 %v736_v40, 0.0  ;;  %1208 = vst [vmem:[%s1539_s3 + $0x50] sm:$0xff] %v1127_v38   ;;  %v800_v45 = vmax.f32 %v750_v42, 0.0  ;;  %v446_v46 = vpop.f32.mrf.mxu0  ;;  %v476_v47 = vpop.f32.mrf.mxu1 }
  0xfa   :  { %v713_v51 = vadd.f32 %v1409_v35, %v446_v46  ;;  %v725_v52 = vadd.f32 %v1409_v35, %v476_v47 }
  0xfb   :  { %v1157_v48 = vpack.c.bf16 %v786_v44, %v785_v43  ;;  %v1192_v49 = vpack.c.bf16 %v800_v45, %v799_v41 }
  0xfc   :  { %v763_v56 = vmax.f32 %v713_v51, 0.0  ;;  %v775_v57 = vmax.f32 %v725_v52, 0.0 }
  0xfd   :  { %1214 = vst [vmem:[%s1539_s3 + $0x80] sm:$0xff] %v1157_v48  }
  0xfe   :  { %v506_v50 = vpop.f32.mrf.mxu2  ;;  %1221 = vst [vmem:[%s1539_s3 + $0xb8] sm:$0xff] %v1192_v49   ;;  %v541_v53 = vpop.f32.mrf.mxu3 }
  0xff   :  { %v751_v60 = vadd.f32 %v1409_v35, %v541_v53  ;;  %v737_v63 = vadd.f32 %v1409_v35, %v506_v50 }
 0x101   :  { %v448_v54 = vpop.f32.mrf.mxu0  ;;  %v478_v55 = vpop.f32.mrf.mxu1  ;;  %v801_v5 = vmax.f32 %v751_v60, 0.0  ;;  %v787_v7 = vmax.f32 %v737_v63, 0.0 }
 0x102   :  { %v714_v58 = vadd.f32 %v1409_v35, %v448_v54  ;;  %v726_v59 = vadd.f32 %v1409_v35, %v478_v55 }
 0x104   :  { %v764_v61 = vmax.f32 %v714_v58, 0.0  ;;  %v776_v62 = vmax.f32 %v726_v59, 0.0 }
 0x106   :  { %v508_v0 = vpop.f32.mrf.mxu2  ;;  %v1102_v1 = vpack.c.bf16 %v764_v61, %v763_v56  ;;  %v1132_v2 = vpack.c.bf16 %v776_v62, %v775_v57  ;;  %v543_v3 = vpop.f32.mrf.mxu3 }
 0x107   :  { %v738_v4 = vadd.f32 %v1409_v35, %v508_v0  ;;  %v752_v6 = vadd.f32 %v1409_v35, %v543_v3 }
 0x108   :  { %1203 = vst [vmem:[%s1539_s3 + $0x28] sm:$0xff] %v1102_v1  }
 0x109   :  { %v788_v8 = vmax.f32 %v738_v4, 0.0  ;;  %1209 = vst [vmem:[%s1539_s3 + $0x58] sm:$0xff] %v1132_v2   ;;  %v802_v9 = vmax.f32 %v752_v6, 0.0 }
 0x10b   :  { %v1162_v10 = vpack.c.bf16 %v788_v8, %v787_v7  ;;  %v1197_v11 = vpack.c.bf16 %v802_v9, %v801_v5 }
 0x10d   :  { %1215 = vst [vmem:[%s1539_s3 + $0x88] sm:$0xff] %v1162_v10  }
 0x10e   :  { %v511_v12 = vpop.f32.mrf.mxu2  ;;  %1222 = vst [vmem:[%s1539_s3 + $0xc0] sm:$0xff] %v1197_v11  }
 0x10f   :  { %v739_v13 = vadd.f32 %v1409_v35, %v511_v12 }
 0x111   :  { %v789_v16 = vmax.f32 %v739_v13, 0.0 }
 0x116   :  { %v513_v14 = vpop.f32.mrf.mxu2 }
 0x117   :  { %v740_v15 = vadd.f32 %v1409_v35, %v513_v14 }
 0x119   :  { %v790_v17 = vmax.f32 %v740_v15, 0.0 }
 0x11b   :  { %v1167_v18 = vpack.c.bf16 %v790_v17, %v789_v16 }
 0x11d   :  { %1216 = vst [vmem:[%s1539_s3 + $0x90] sm:$0xff] %v1167_v18  }
 0x11e   :  { %907 = vsyncpa [#allocation4], 1 }
 0x11f   :  { %908 = vsyncpa [#allocation6], 1 }

// kernel: teacher_forward.6
= control target key start
LH: loop header
LB: loop body
LE: loop exit
PB: predicated region body
PF: predicated region fallthrough
CT: control target
= control target key end

     0   :  { %8 = vsyncpa [#allocation4], 0  ;;  %s2346_s0 = inlined_call_operand.vmem [shape: bf16[288,384], index: 0, kind: input, shape index: {}]   ;;  %s2347_s1 = inlined_call_operand.hbm [shape: bf16[384,128], index: 1, kind: input, shape index: {}]   ;;  %s2348_s2 = inlined_call_operand.hbm [shape: f32[1,128], index: 2, kind: input, shape index: {}]   ;;  %s2349_s3 = inlined_call_operand.vmem [shape: bf16[288,128], index: 3, kind: output, shape index: {}]  }
   0x1   :  { %s16_s14 = sshll.u32 %s2347_s1, 4  ;;  %s17_s14 = int_to_ptr.hbm [resolvable:$true] %s16_s14 }
   0x2   :  { %9 = vsyncpa [#allocation6], 0  ;;  %s1812_s15 = smov [#allocation3]   ;;  %s30_s19 = sshll.u32 %s2348_s2, 4  ;;  %s31_s19 = int_to_ptr.hbm [resolvable:$true] %s30_s19 }
   0x3   :  { %s18_s16 = sshll.u32 %s1812_s15, 4  ;;  %s1813_s20 = smov 64   ;;  %s19_s16 = int_to_ptr.vmem [resolvable:$true] %s18_s16 }
   0x4   :  { %s1814_s21 = smov 4   ;;  %s1815_s22 = smov [#allocation5]  }
   0x5   :  { %24 = dma.hbm_to_vmem [thread:$0]  %s17_s14, 3072, %s19_s16, [#allocation4], %s1813_s20, %s1813_s20, %s1814_s21  }
   0x6   :  { %s32_s23 = sshll.u32 %s1815_s22, 4  ;;  %s33_s23 = int_to_ptr.vmem [resolvable:$true] %s32_s23 }
   0x7   :  { %35 = dma.hbm_to_vmem [thread:$0]  %s31_s19, 16, %s33_s23, [#allocation6]  }
   0x8   :  { %1808 = dma.done.wait [#allocation4], 3072  }
   0x9   :  { %1809 = vsyncadd [#allocation4], 4294964224 }
   0xa   :  { %1810 = dma.done.wait [#allocation6], 16  }
   0xb   :  { %1811 = vsyncadd [#allocation6], 4294967280  ;;  %v1607_v0 = vld [vmem:[#allocation3 + $0x38] sm:$0xff]  ;;  %v1606_v3 = vld [vmem:[#allocation3 + $0x30] sm:$0xff] }
   0xc   :  { %v1842_v1 = vld [vmem:[#allocation3 + $0x78] sm:$0xff]  ;;  %672 = vmatpush.bf16.msra.mxu0 %v1607_v0  ;;  %1731 = vmatpush.bf16.msra.mxu3 %v1607_v0  ;;  %v1848_v4 = vld [vmem:[#allocation3 + $0x70] sm:$0xff]  ;;  %v1605_v6 = vld [vmem:[#allocation3 + $0x28] sm:$0xff] }
   0xd   :  { %v1844_v2 = vld [vmem:[#allocation3 + $0xb8] sm:$0xff]  ;;  %771 = vmatpush.bf16.msra.mxu1 %v1842_v1  ;;  %v1850_v5 = vld [vmem:[#allocation3 + $0xb0] sm:$0xff]  ;;  %v1613_v7 = vld [vmem:[#allocation3 + $0x68] sm:$0xff] }
   0xe   :  { %870 = vmatpush.bf16.msra.mxu2 %v1844_v2  ;;  %v1854_v8 = vld [vmem:[#allocation3 + $0xa8] sm:$0xff]  ;;  %v1604_v9 = vld [vmem:[#allocation3 + $0x20] sm:$0xff]  ;;  %v1603_v12 = vld [vmem:[#allocation3 + $0x18] sm:$0xff] }
   0xf   :  { %v1612_v10 = vld [vmem:[#allocation3 + $0x60] sm:$0xff]  ;;  %v1611_v13 = vld [vmem:[#allocation3 + $0x58] sm:$0xff]  ;;  %v1602_v15 = vld [vmem:[#allocation3 + $0x10] sm:$0xff] }
  0x10   :  { %673 = vmatpush.bf16.msra.mxu0 %v1606_v3  ;;  %1732 = vmatpush.bf16.msra.mxu3 %v1606_v3  ;;  %v1857_v11 = vld [vmem:[#allocation3 + $0xa0] sm:$0xff]  ;;  %v1860_v14 = vld [vmem:[#allocation3 + $0x98] sm:$0xff]  ;;  %v1610_v16 = vld [vmem:[#allocation3 + $0x50] sm:$0xff] }
  0x11   :  { %772 = vmatpush.bf16.msra.mxu1 %v1848_v4  ;;  %v1863_v17 = vld [vmem:[#allocation3 + $0x90] sm:$0xff]  ;;  %v1601_v18 = vld [vmem:[#allocation3 + $0x8] sm:$0xff]  ;;  %v1600_v21 = vld [vmem:[#allocation3] sm:$0xff] }
  0x12   :  { %871 = vmatpush.bf16.msra.mxu2 %v1850_v5  ;;  %v1609_v19 = vld [vmem:[#allocation3 + $0x48] sm:$0xff]  ;;  %v1608_v22 = vld [vmem:[#allocation3 + $0x40] sm:$0xff]  ;;  %v1404_v26 = vld [vmem:[%s2346_s0 + $0x150] sm:$0xf] }
  0x13   :  { %v1866_v20 = vld [vmem:[#allocation3 + $0x88] sm:$0xff]  ;;  %v1868_v23 = vld [vmem:[#allocation3 + $0x80] sm:$0xff]  ;;  %v1589_v27 = vld [vmem:[%s2346_s0 + $0x158] sm:$0xf0] }
  0x14   :  { %674 = vmatpush.bf16.msra.mxu0 %v1605_v6  ;;  %1733 = vmatpush.bf16.msra.mxu3 %v1605_v6  ;;  %v1236_v24 = vld [vmem:[%s2346_s0] sm:$0xf]  ;;  %v1547_v25 = vld [vmem:[%s2346_s0 + $0x8] sm:$0xf0]  ;;  %v1546_v28 = vld [vmem:[%s2346_s0 + $0x4] sm:$0xf]  ;;  %v1405_v33 = vor.u32 %v1589_v27, %v1404_v26 }
  0x15   :  { %773 = vmatpush.bf16.msra.mxu1 %v1613_v7  ;;  %v1238_v29 = vld [vmem:[%s2346_s0 + $0xc] sm:$0xf0]  ;;  %v1244_v30 = vld [vmem:[%s2346_s0 + $0x8] sm:$0xf]  ;;  %v1548_v31 = vld [vmem:[%s2346_s0 + $0x10] sm:$0xf0]  ;;  %v1237_v32 = vor.u32 %v1547_v25, %v1236_v24 }
  0x16   :  { %872 = vmatpush.bf16.msra.mxu2 %v1854_v8  ;;  %v1241_v34 = vor.u32 %v1546_v28, %v1238_v29  ;;  %v1245_v35 = vor.u32 %v1548_v31, %v1244_v30  ;;  %v1248_v36 = vld [vmem:[%s2346_s0 + $0x18] sm:$0xf]  ;;  %v1550_v37 = vld [vmem:[%s2346_s0 + $0x20] sm:$0xf0]  ;;  %v1416_v38 = vld [vmem:[%s2346_s0 + $0x168] sm:$0xf] }
  0x17   :  { %v1592_v39 = vld [vmem:[%s2346_s0 + $0x170] sm:$0xf0]  ;;  %v1549_v40 = vld [vmem:[%s2346_s0 + $0x1c] sm:$0xf]  ;;  %v1250_v41 = vld [vmem:[%s2346_s0 + $0x24] sm:$0xf0]  ;;  %v1249_v44 = vor.u32 %v1550_v37, %v1248_v36 }
  0x18   :  { %675 = vmatpush.bf16.msra.mxu0 %v1604_v9  ;;  %1734 = vmatpush.bf16.msra.mxu3 %v1604_v9  ;;  %v1256_v42 = vld [vmem:[%s2346_s0 + $0x20] sm:$0xf]  ;;  %v1551_v43 = vld [vmem:[%s2346_s0 + $0x28] sm:$0xf0]  ;;  %v1417_v45 = vor.u32 %v1592_v39, %v1416_v38  ;;  %v1253_v46 = vor.u32 %v1549_v40, %v1250_v41  ;;  %v1260_v48 = vld [vmem:[%s2346_s0 + $0x30] sm:$0xf] }
  0x19   :  { %774 = vmatpush.bf16.msra.mxu1 %v1612_v10  ;;  %v1257_v47 = vor.u32 %v1551_v43, %v1256_v42  ;;  %v1553_v49 = vld [vmem:[%s2346_s0 + $0x38] sm:$0xf0]  ;;  %v1428_v50 = vld [vmem:[%s2346_s0 + $0x180] sm:$0xf]  ;;  %v1595_v51 = vld [vmem:[%s2346_s0 + $0x188] sm:$0xf0] }
  0x1a   :  { %873 = vmatpush.bf16.msra.mxu2 %v1857_v11  ;;  %v1552_v52 = vld [vmem:[%s2346_s0 + $0x34] sm:$0xf]  ;;  %v1262_v53 = vld [vmem:[%s2346_s0 + $0x3c] sm:$0xf0]  ;;  %v1268_v54 = vld [vmem:[%s2346_s0 + $0x38] sm:$0xf]  ;;  %v1261_v56 = vor.u32 %v1553_v49, %v1260_v48  ;;  %v1429_v57 = vor.u32 %v1595_v51, %v1428_v50 }
  0x1b   :  { %v1554_v55 = vld [vmem:[%s2346_s0 + $0x40] sm:$0xf0]  ;;  %v1265_v58 = vor.u32 %v1552_v52, %v1262_v53  ;;  %v1272_v60 = vld [vmem:[%s2346_s0 + $0x48] sm:$0xf]  ;;  %v1556_v61 = vld [vmem:[%s2346_s0 + $0x50] sm:$0xf0] }
  0x1c   :  { %676 = vmatpush.bf16.msra.mxu0 %v1603_v12  ;;  %1735 = vmatpush.bf16.msra.mxu3 %v1603_v12  ;;  %v1269_v59 = vor.u32 %v1554_v55, %v1268_v54  ;;  %v1440_v62 = vld [vmem:[%s2346_s0 + $0x198] sm:$0xf]  ;;  %v1598_v63 = vld [vmem:[%s2346_s0 + $0x1a0] sm:$0xf0]  ;;  %v1555_v0 = vld [vmem:[%s2346_s0 + $0x4c] sm:$0xf] }
  0x1d   :  { %775 = vmatpush.bf16.msra.mxu1 %v1611_v13  ;;  %v1557_v3 = vld [vmem:[%s2346_s0 + $0x58] sm:$0xf0]  ;;  %v1559_v9 = vld [vmem:[%s2346_s0 + $0x68] sm:$0xf0]  ;;  %v1406_v12 = vld [vmem:[%s2346_s0 + $0x15c] sm:$0xf0] }
  0x1e   :  { %874 = vmatpush.bf16.msra.mxu2 %v1860_v14  ;;  %v1418_v24 = vld [vmem:[%s2346_s0 + $0x174] sm:$0xf0]  ;;  %v1298_v25 = vld [vmem:[%s2346_s0 + $0x84] sm:$0xf0]  ;;  %v1304_v26 = vld [vmem:[%s2346_s0 + $0x80] sm:$0xf] }
  0x1f   :  { %v1563_v27 = vld [vmem:[%s2346_s0 + $0x88] sm:$0xf0]  ;;  %v1430_v36 = vld [vmem:[%s2346_s0 + $0x18c] sm:$0xf0]  ;;  %v1310_v37 = vld [vmem:[%s2346_s0 + $0x9c] sm:$0xf0] }
  0x20   :  { %677 = vmatpush.bf16.msra.mxu0 %v1602_v15  ;;  %1736 = vmatpush.bf16.msra.mxu3 %v1602_v15  ;;  %v1560_v15 = vld [vmem:[%s2346_s0 + $0x70] sm:$0xf0]  ;;  %v1305_v31 = vor.u32 %v1563_v27, %v1304_v26  ;;  %v1316_v38 = vld [vmem:[%s2346_s0 + $0x98] sm:$0xf]  ;;  %v1566_v39 = vld [vmem:[%s2346_s0 + $0xa0] sm:$0xf0] }
  0x21   :  { %776 = vmatpush.bf16.msra.mxu1 %v1610_v16  ;;  %v1317_v43 = vor.u32 %v1566_v39, %v1316_v38  ;;  %v1442_v48 = vld [vmem:[%s2346_s0 + $0x1a4] sm:$0xf0]  ;;  %v1322_v49 = vld [vmem:[%s2346_s0 + $0xb4] sm:$0xf0]  ;;  %v1328_v50 = vld [vmem:[%s2346_s0 + $0xb0] sm:$0xf] }
  0x22   :  { %875 = vmatpush.bf16.msra.mxu2 %v1863_v17  ;;  %v1569_v51 = vld [vmem:[%s2346_s0 + $0xb8] sm:$0xf0] }
  0x23   :  { %v1329_v55 = vor.u32 %v1569_v51, %v1328_v50 }
  0x24   :  { %678 = vmatpush.bf16.msra.mxu0 %v1601_v18  ;;  %1737 = vmatpush.bf16.msra.mxu3 %v1601_v18 }
  0x25   :  { %777 = vmatpush.bf16.msra.mxu1 %v1609_v19 }
  0x26   :  { %876 = vmatpush.bf16.msra.mxu2 %v1866_v20 }
  0x28   :  { %679 = vmatpush.bf16.msra.mxu0 %v1600_v21  ;;  %1738 = vmatpush.bf16.msra.mxu3 %v1600_v21  ;;  %v1562_v21 = vld [vmem:[%s2346_s0 + $0x80] sm:$0xf0] }
  0x29   :  { %778 = vmatpush.bf16.msra.mxu1 %v1608_v22 }
  0x2a   :  { %877 = vmatpush.bf16.msra.mxu2 %v1868_v23 }
  0x2b   :  { %680 = vmatmul.bf16.vlgmr.msra.gmra.mxu0 %v1237_v32  ;;  %750 = vmatmul.bf16.vlgmr.msra.gmra.mxu3 %v1405_v33  ;;  %v1308_v32 = vld [vmem:[%s2346_s0 + $0x90] sm:$0xf]  ;;  %v1565_v33 = vld [vmem:[%s2346_s0 + $0x98] sm:$0xf0] }
  0x2c   :  { %1739 = vmatpush.bf16.msrb.mxu3 %v1842_v1  ;;  %779 = vmatmul.bf16.vlgmr.msra.gmra.mxu1 %v1241_v34  ;;  %v1274_v1 = vld [vmem:[%s2346_s0 + $0x54] sm:$0xf0]  ;;  %v1564_v34 = vld [vmem:[%s2346_s0 + $0x94] sm:$0xf]  ;;  %v1309_v40 = vor.u32 %v1565_v33, %v1308_v32 }
  0x2d   :  { %878 = vmatmul.bf16.vlgmr.msra.gmra.mxu2 %v1245_v35  ;;  %v1277_v6 = vor.u32 %v1555_v0, %v1274_v1  ;;  %v1594_v35 = vld [vmem:[%s2346_s0 + $0x184] sm:$0xf]  ;;  %v1313_v42 = vor.u32 %v1564_v34, %v1310_v37 }
  0x2e   :  { %v1433_v41 = vor.u32 %v1594_v35, %v1430_v36 }
  0x30   :  { %1740 = vmatpush.bf16.msrb.mxu3 %v1848_v4  ;;  %v1273_v4 = vor.u32 %v1556_v61, %v1272_v60  ;;  %v1590_v60 = vld [vmem:[%s2346_s0 + $0x160] sm:$0xf0]  ;;  %v1334_v61 = vld [vmem:[%s2346_s0 + $0xcc] sm:$0xf0] }
  0x34   :  { %1741 = vmatpush.bf16.msrb.mxu3 %v1613_v7 }
  0x38   :  { %1742 = vmatpush.bf16.msrb.mxu3 %v1612_v10  ;;  %v1558_v10 = vld [vmem:[%s2346_s0 + $0x64] sm:$0xf] }
  0x3b   :  { %685 = vmatmul.bf16.gmra.mxu0 %v1249_v44  ;;  %755 = vmatmul.bf16.gmra.mxu3 %v1417_v45  ;;  %v1320_v44 = vld [vmem:[%s2346_s0 + $0xa8] sm:$0xf]  ;;  %v1568_v45 = vld [vmem:[%s2346_s0 + $0xb0] sm:$0xf0] }
  0x3c   :  { %1743 = vmatpush.bf16.msrb.mxu3 %v1611_v13  ;;  %784 = vmatmul.bf16.gmra.mxu1 %v1253_v46  ;;  %v1286_v13 = vld [vmem:[%s2346_s0 + $0x6c] sm:$0xf0]  ;;  %v1567_v46 = vld [vmem:[%s2346_s0 + $0xac] sm:$0xf]  ;;  %v1321_v52 = vor.u32 %v1568_v45, %v1320_v44  ;;  %v1576_v44 = vld [vmem:[%s2346_s0 + $0xf4] sm:$0xf] }
  0x3d   :  { %883 = vmatmul.bf16.gmra.mxu2 %v1257_v47  ;;  %v1289_v18 = vor.u32 %v1558_v10, %v1286_v13  ;;  %v1597_v47 = vld [vmem:[%s2346_s0 + $0x19c] sm:$0xf]  ;;  %v1325_v54 = vor.u32 %v1567_v46, %v1322_v49  ;;  %v1574_v13 = vld [vmem:[%s2346_s0 + $0xe0] sm:$0xf0]  ;;  %v1436_v45 = vld [vmem:[%s2346_s0 + $0x188] sm:$0xf] }
  0x3e   :  { %v1445_v53 = vor.u32 %v1597_v47, %v1442_v48  ;;  %v1596_v46 = vld [vmem:[%s2346_s0 + $0x190] sm:$0xf0]  ;;  %v1358_v47 = vld [vmem:[%s2346_s0 + $0xfc] sm:$0xf0]  ;;  %v1364_v48 = vld [vmem:[%s2346_s0 + $0xf8] sm:$0xf] }
  0x3f   :  { %v1578_v49 = vld [vmem:[%s2346_s0 + $0x100] sm:$0xf0] }
  0x40   :  { %1744 = vmatpush.bf16.msrb.mxu3 %v1610_v16 }
  0x44   :  { %1745 = vmatpush.bf16.msrb.mxu3 %v1609_v19 }
  0x48   :  { %1746 = vmatpush.bf16.msrb.mxu3 %v1608_v22  ;;  %v1561_v22 = vld [vmem:[%s2346_s0 + $0x7c] sm:$0xf] }
  0x49   :  { %v1301_v30 = vor.u32 %v1561_v22, %v1298_v25 }
  0x4b   :  { %690 = vmatmul.bf16.gmra.mxu0 %v1261_v56  ;;  %760 = vmatmul.bf16.gmra.mxu3 %v1429_v57  ;;  %v1332_v56 = vld [vmem:[%s2346_s0 + $0xc0] sm:$0xf]  ;;  %v1571_v57 = vld [vmem:[%s2346_s0 + $0xc8] sm:$0xf0] }
  0x4c   :  { %1747 = vmatpush.bf16.msra.mxu3 %v1844_v2  ;;  %789 = vmatmul.bf16.gmra.mxu1 %v1265_v58  ;;  %v1280_v2 = vld [vmem:[%s2346_s0 + $0x50] sm:$0xf]  ;;  %v1570_v58 = vld [vmem:[%s2346_s0 + $0xc4] sm:$0xf]  ;;  %v1333_v0 = vor.u32 %v1571_v57, %v1332_v56 }
  0x4d   :  { %888 = vmatmul.bf16.gmra.mxu2 %v1269_v59  ;;  %v1281_v7 = vor.u32 %v1557_v3, %v1280_v2  ;;  %v1412_v59 = vld [vmem:[%s2346_s0 + $0x158] sm:$0xf]  ;;  %v1337_v3 = vor.u32 %v1570_v58, %v1334_v61  ;;  %v1361_v58 = vor.u32 %v1576_v44, %v1358_v47  ;;  %v1388_v44 = vld [vmem:[%s2346_s0 + $0x128] sm:$0xf] }
  0x4e   :  { %v1413_v1 = vor.u32 %v1590_v60, %v1412_v59  ;;  %v1365_v59 = vor.u32 %v1578_v49, %v1364_v48 }
  0x50   :  { %1748 = vmatpush.bf16.msra.mxu3 %v1850_v5  ;;  %v1441_v5 = vor.u32 %v1598_v63, %v1440_v62  ;;  %v1340_v62 = vld [vmem:[%s2346_s0 + $0xc8] sm:$0xf]  ;;  %v1572_v63 = vld [vmem:[%s2346_s0 + $0xd0] sm:$0xf0] }
  0x54   :  { %1749 = vmatpush.bf16.msra.mxu3 %v1854_v8  ;;  %v1284_v8 = vld [vmem:[%s2346_s0 + $0x60] sm:$0xf] }
  0x55   :  { %v1285_v16 = vor.u32 %v1559_v9, %v1284_v8 }
  0x58   :  { %1750 = vmatpush.bf16.msra.mxu3 %v1857_v11  ;;  %v1588_v11 = vld [vmem:[%s2346_s0 + $0x154] sm:$0xf] }
  0x5b   :  { %695 = vmatmul.bf16.gmra.mxu0 %v1273_v4  ;;  %765 = vmatmul.bf16.gmra.mxu3 %v1441_v5  ;;  %v1341_v4 = vor.u32 %v1572_v63, %v1340_v62 }
  0x5c   :  { %1751 = vmatpush.bf16.msra.mxu3 %v1860_v14  ;;  %794 = vmatmul.bf16.gmra.mxu1 %v1277_v6  ;;  %v1292_v14 = vld [vmem:[%s2346_s0 + $0x68] sm:$0xf] }
  0x5d   :  { %893 = vmatmul.bf16.gmra.mxu2 %v1281_v7  ;;  %v1293_v19 = vor.u32 %v1560_v15, %v1292_v14  ;;  %v1573_v15 = vld [vmem:[%s2346_s0 + $0xdc] sm:$0xf] }
  0x60   :  { %1752 = vmatpush.bf16.msra.mxu3 %v1863_v17  ;;  %v1409_v17 = vor.u32 %v1588_v11, %v1406_v12  ;;  %v2100_v11 = vld [vmem:[#allocation5] ss:$0 sm:$0xff]  ;;  %v1344_v12 = vld [vmem:[%s2346_s0 + $0xd8] sm:$0xf] }
  0x64   :  { %1753 = vmatpush.bf16.msra.mxu3 %v1866_v20  ;;  %v1296_v20 = vld [vmem:[%s2346_s0 + $0x78] sm:$0xf] }
  0x65   :  { %v1297_v28 = vor.u32 %v1562_v21, %v1296_v20  ;;  %v1575_v20 = vld [vmem:[%s2346_s0 + $0xe8] sm:$0xf0] }
  0x68   :  { %1754 = vmatpush.bf16.msra.mxu3 %v1868_v23  ;;  %v1591_v23 = vld [vmem:[%s2346_s0 + $0x16c] sm:$0xf] }
  0x69   :  { %v1421_v29 = vor.u32 %v1591_v23, %v1418_v24  ;;  %v1345_v24 = vor.u32 %v1574_v13, %v1344_v12  ;;  %v1448_v12 = vld [vmem:[%s2346_s0 + $0x1a0] sm:$0xf]  ;;  %v1599_v13 = vld [vmem:[%s2346_s0 + $0x1a8] sm:$0xf0] }
  0x6b   :  { %700 = vmatmul.bf16.gmra.mxu0 %v1285_v16  ;;  %849 = vmatmul.bf16.vlgmr.msrb.gmra.mxu3 %v1409_v17  ;;  %v1424_v16 = vld [vmem:[%s2346_s0 + $0x170] sm:$0xf]  ;;  %v1593_v17 = vld [vmem:[%s2346_s0 + $0x178] sm:$0xf0] }
  0x6c   :  { %799 = vmatmul.bf16.gmra.mxu1 %v1289_v18  ;;  %v1346_v18 = vld [vmem:[%s2346_s0 + $0xe4] sm:$0xf0]  ;;  %v1425_v25 = vor.u32 %v1593_v17, %v1424_v16  ;;  %v1581_v16 = vld [vmem:[%s2346_s0 + $0x118] sm:$0xf0] }
  0x6d   :  { %898 = vmatmul.bf16.gmra.mxu2 %v1293_v19  ;;  %v1352_v19 = vld [vmem:[%s2346_s0 + $0xe0] sm:$0xf] }
  0x7b   :  { %705 = vmatmul.bf16.gmra.mxu0 %v1297_v28  ;;  %854 = vmatmul.bf16.gmra.mxu3 %v1421_v29  ;;  %v1349_v29 = vor.u32 %v1573_v15, %v1346_v18  ;;  %v1376_v15 = vld [vmem:[%s2346_s0 + $0x110] sm:$0xf] }
  0x7c   :  { %804 = vmatmul.bf16.gmra.mxu1 %v1301_v30  ;;  %v1353_v30 = vor.u32 %v1575_v20, %v1352_v19 }
  0x7d   :  { %903 = vmatmul.bf16.gmra.mxu2 %v1305_v31 }
  0x8b   :  { %710 = vmatmul.bf16.gmra.mxu0 %v1309_v40  ;;  %859 = vmatmul.bf16.gmra.mxu3 %v1433_v41  ;;  %v1356_v41 = vld [vmem:[%s2346_s0 + $0xf0] sm:$0xf] }
  0x8c   :  { %809 = vmatmul.bf16.gmra.mxu1 %v1313_v42  ;;  %v1577_v42 = vld [vmem:[%s2346_s0 + $0xf8] sm:$0xf0] }
  0x8d   :  { %908 = vmatmul.bf16.gmra.mxu2 %v1317_v43 }
  0x9b   :  { %715 = vmatmul.bf16.gmra.mxu0 %v1321_v52  ;;  %864 = vmatmul.bf16.gmra.mxu3 %v1445_v53  ;;  %v1357_v53 = vor.u32 %v1577_v42, %v1356_v41  ;;  %v1583_v41 = vld [vmem:[%s2346_s0 + $0x128] sm:$0xf0]  ;;  %v1582_v42 = vld [vmem:[%s2346_s0 + $0x124] sm:$0xf] }
  0x9c   :  { %814 = vmatmul.bf16.gmra.mxu1 %v1325_v54  ;;  %v1437_v54 = vor.u32 %v1596_v46, %v1436_v45  ;;  %v1584_v45 = vld [vmem:[%s2346_s0 + $0x130] sm:$0xf0] }
  0x9d   :  { %913 = vmatmul.bf16.gmra.mxu2 %v1329_v55 }
  0xa8   :  { %v681_v2 = vpop.f32.mrf.mxu0 }
  0xa9   :  { %v780_v5 = vpop.f32.mrf.mxu1 }
  0xaa   :  { %v781_v8 = vadd.f32 %v780_v5, %v681_v2 }
  0xab   :  { %720 = vmatmul.bf16.gmra.mxu0 %v1333_v0  ;;  %948 = vmatmul.bf16.vlgmr.msra.gmra.mxu3 %v1413_v1 }
  0xac   :  { %819 = vmatmul.bf16.gmra.mxu1 %v1337_v3 }
  0xad   :  { %918 = vmatmul.bf16.gmra.mxu2 %v1341_v4 }
  0xae   :  { %v2098_v6 = vpop.f32.mrf.mxu3 }
  0xb0   :  { %v879_v7 = vpop.f32.mrf.mxu2  ;;  %v683_v9 = vpop.f32.mrf.mxu0 }
  0xb1   :  { %v782_v10 = vpop.f32.mrf.mxu1  ;;  %v880_v14 = vadd.f32 %v879_v7, %v781_v8  ;;  %v1368_v7 = vld [vmem:[%s2346_s0 + $0x108] sm:$0xf]  ;;  %v1580_v8 = vld [vmem:[%s2346_s0 + $0x110] sm:$0xf0] }
  0xb2   :  { %v783_v21 = vadd.f32 %v782_v10, %v683_v9  ;;  %v1579_v10 = vld [vmem:[%s2346_s0 + $0x10c] sm:$0xf]  ;;  %v1369_v20 = vor.u32 %v1580_v8, %v1368_v7  ;;  %v1586_v7 = vld [vmem:[%s2346_s0 + $0x140] sm:$0xf0]  ;;  %v1394_v8 = vld [vmem:[%s2346_s0 + $0x144] sm:$0xf0] }
  0xb3   :  { %v1084_v26 = vadd.f32 %v2100_v11, %v880_v14  ;;  %v1370_v14 = vld [vmem:[%s2346_s0 + $0x114] sm:$0xf0] }
  0xb5   :  { %v1120_v33 = vmax.f32 %v1084_v26, 0.0  ;;  %v1373_v26 = vor.u32 %v1579_v10, %v1370_v14  ;;  %v1587_v10 = vld [vmem:[%s2346_s0 + $0x148] sm:$0xf0] }
  0xb6   :  { %v2126_v22 = vpop.f32.mrf.mxu3 }
  0xb8   :  { %v881_v23 = vpop.f32.mrf.mxu2  ;;  %v686_v28 = vpop.f32.mrf.mxu0 }
  0xb9   :  { %v882_v27 = vadd.f32 %v881_v23, %v783_v21  ;;  %v785_v31 = vpop.f32.mrf.mxu1  ;;  %v1449_v21 = vor.u32 %v1599_v13, %v1448_v12 }
  0xba   :  { %v786_v38 = vadd.f32 %v785_v31, %v686_v28 }
  0xbb   :  { %v1085_v32 = vadd.f32 %v2100_v11, %v882_v27  ;;  %725 = vmatmul.bf16.gmra.mxu0 %v1345_v24  ;;  %953 = vmatmul.bf16.gmra.mxu3 %v1425_v25  ;;  %v1377_v27 = vor.u32 %v1581_v16, %v1376_v15 }
  0xbc   :  { %824 = vmatmul.bf16.gmra.mxu1 %v1349_v29 }
  0xbd   :  { %v1121_v34 = vmax.f32 %v1085_v32, 0.0  ;;  %923 = vmatmul.bf16.gmra.mxu2 %v1353_v30 }
  0xbe   :  { %v2130_v36 = vpop.f32.mrf.mxu3 }
  0xbf   :  { %v1627_v35 = vpack.c.bf16 %v1121_v34, %v1120_v33 }
  0xc0   :  { %v884_v37 = vpop.f32.mrf.mxu2  ;;  %v688_v39 = vpop.f32.mrf.mxu0 }
  0xc1   :  { %1628 = vst [vmem:[%s2349_s3] sm:$0xff] %v1627_v35   ;;  %v787_v40 = vpop.f32.mrf.mxu1  ;;  %v885_v43 = vadd.f32 %v884_v37, %v786_v38 }
  0xc2   :  { %v788_v50 = vadd.f32 %v787_v40, %v688_v39  ;;  %v1380_v40 = vld [vmem:[%s2346_s0 + $0x120] sm:$0xf] }
  0xc3   :  { %v1086_v55 = vadd.f32 %v2100_v11, %v885_v43  ;;  %v1382_v43 = vld [vmem:[%s2346_s0 + $0x12c] sm:$0xf0]  ;;  %v1381_v49 = vor.u32 %v1583_v41, %v1380_v40 }
  0xc5   :  { %v1122_v62 = vmax.f32 %v1086_v55, 0.0  ;;  %v1389_v55 = vor.u32 %v1584_v45, %v1388_v44 }
  0xc6   :  { %v2159_v51 = vpop.f32.mrf.mxu3 }
  0xc8   :  { %v886_v52 = vpop.f32.mrf.mxu2  ;;  %v691_v57 = vpop.f32.mrf.mxu0 }
  0xc9   :  { %v887_v56 = vadd.f32 %v886_v52, %v788_v50  ;;  %v790_v60 = vpop.f32.mrf.mxu1 }
  0xca   :  { %v791_v3 = vadd.f32 %v790_v60, %v691_v57 }
  0xcb   :  { %v1087_v61 = vadd.f32 %v2100_v11, %v887_v56  ;;  %730 = vmatmul.bf16.gmra.mxu0 %v1357_v53  ;;  %958 = vmatmul.bf16.gmra.mxu3 %v1437_v54  ;;  %v1385_v54 = vor.u32 %v1582_v42, %v1382_v43 }
  0xcc   :  { %829 = vmatmul.bf16.gmra.mxu1 %v1361_v58 }
  0xcd   :  { %v1123_v63 = vmax.f32 %v1087_v61, 0.0  ;;  %928 = vmatmul.bf16.gmra.mxu2 %v1365_v59 }
  0xce   :  { %v2163_v1 = vpop.f32.mrf.mxu3 }
  0xcf   :  { %v1632_v0 = vpack.c.bf16 %v1123_v63, %v1122_v62 }
  0xd0   :  { %v889_v2 = vpop.f32.mrf.mxu2  ;;  %v693_v4 = vpop.f32.mrf.mxu0 }
  0xd1   :  { %1714 = vst [vmem:[%s2349_s3 + $0x8] sm:$0xff] %v1632_v0   ;;  %v792_v5 = vpop.f32.mrf.mxu1  ;;  %v890_v9 = vadd.f32 %v889_v2, %v791_v3 }
  0xd2   :  { %v793_v17 = vadd.f32 %v792_v5, %v693_v4  ;;  %v1392_v5 = vld [vmem:[%s2346_s0 + $0x138] sm:$0xf] }
  0xd3   :  { %v1088_v23 = vadd.f32 %v2100_v11, %v890_v9  ;;  %v1400_v9 = vld [vmem:[%s2346_s0 + $0x140] sm:$0xf]  ;;  %v1393_v15 = vor.u32 %v1586_v7, %v1392_v5 }
  0xd5   :  { %v1124_v30 = vmax.f32 %v1088_v23, 0.0 }
  0xd6   :  { %v2192_v18 = vpop.f32.mrf.mxu3 }
  0xd8   :  { %v891_v19 = vpop.f32.mrf.mxu2  ;;  %v696_v25 = vpop.f32.mrf.mxu0 }
  0xd9   :  { %v892_v24 = vadd.f32 %v891_v19, %v793_v17  ;;  %v795_v28 = vpop.f32.mrf.mxu1 }
  0xda   :  { %v796_v35 = vadd.f32 %v795_v28, %v696_v25 }
  0xdb   :  { %v1089_v29 = vadd.f32 %v2100_v11, %v892_v24  ;;  %735 = vmatmul.bf16.gmra.mxu0 %v1369_v20  ;;  %963 = vmatmul.bf16.gmra.mxu3 %v1449_v21  ;;  %v1401_v21 = vor.u32 %v1587_v10, %v1400_v9 }
  0xdc   :  { %834 = vmatmul.bf16.gmra.mxu1 %v1373_v26 }
  0xdd   :  { %v1125_v31 = vmax.f32 %v1089_v29, 0.0  ;;  %933 = vmatmul.bf16.gmra.mxu2 %v1377_v27 }
  0xde   :  { %v2196_v33 = vpop.f32.mrf.mxu3 }
  0xdf   :  { %v1637_v32 = vpack.c.bf16 %v1125_v31, %v1124_v30 }
  0xe0   :  { %v894_v34 = vpop.f32.mrf.mxu2  ;;  %v698_v37 = vpop.f32.mrf.mxu0 }
  0xe1   :  { %1715 = vst [vmem:[%s2349_s3 + $0x10] sm:$0xff] %v1637_v32   ;;  %v797_v38 = vpop.f32.mrf.mxu1  ;;  %v895_v39 = vadd.f32 %v894_v34, %v796_v35 }
  0xe2   :  { %v798_v46 = vadd.f32 %v797_v38, %v698_v37 }
  0xe3   :  { %v1090_v50 = vadd.f32 %v2100_v11, %v895_v39 }
  0xe5   :  { %v1126_v58 = vmax.f32 %v1090_v50, 0.0 }
  0xe6   :  { %v2219_v47 = vpop.f32.mrf.mxu3 }
  0xe8   :  { %v896_v48 = vpop.f32.mrf.mxu2  ;;  %v701_v53 = vpop.f32.mrf.mxu0 }
  0xe9   :  { %v897_v52 = vadd.f32 %v896_v48, %v798_v46  ;;  %v800_v56 = vpop.f32.mrf.mxu1 }
  0xea   :  { %v801_v0 = vadd.f32 %v800_v56, %v701_v53 }
  0xeb   :  { %v1091_v57 = vadd.f32 %v2100_v11, %v897_v52  ;;  %740 = vmatmul.bf16.gmra.mxu0 %v1381_v49 }
  0xec   :  { %839 = vmatmul.bf16.gmra.mxu1 %v1385_v54 }
  0xed   :  { %v1127_v59 = vmax.f32 %v1091_v57, 0.0  ;;  %938 = vmatmul.bf16.gmra.mxu2 %v1389_v55 }
  0xee   :  { %v850_v61 = vpop.f32.mrf.mxu3 }
  0xef   :  { %v1642_v60 = vpack.c.bf16 %v1127_v59, %v1126_v58  ;;  %v2224_v62 = vadd.f32 %v850_v61, %v2098_v6  ;;  %v1585_v6 = vld [vmem:[%s2346_s0 + $0x13c] sm:$0xf] }
  0xf0   :  { %v899_v63 = vpop.f32.mrf.mxu2  ;;  %v703_v2 = vpop.f32.mrf.mxu0  ;;  %v1397_v20 = vor.u32 %v1585_v6, %v1394_v8 }
  0xf1   :  { %1716 = vst [vmem:[%s2349_s3 + $0x18] sm:$0xff] %v1642_v60   ;;  %v802_v3 = vpop.f32.mrf.mxu1  ;;  %v900_v4 = vadd.f32 %v899_v63, %v801_v0 }
  0xf2   :  { %v803_v12 = vadd.f32 %v802_v3, %v703_v2 }
  0xf3   :  { %v1092_v16 = vadd.f32 %v2100_v11, %v900_v4 }
  0xf5   :  { %v1128_v25 = vmax.f32 %v1092_v16, 0.0 }
  0xf6   :  { %v2247_v13 = vpop.f32.mrf.mxu3 }
  0xf8   :  { %v901_v14 = vpop.f32.mrf.mxu2  ;;  %v706_v19 = vpop.f32.mrf.mxu0 }
  0xf9   :  { %v902_v17 = vadd.f32 %v901_v14, %v803_v12  ;;  %v805_v23 = vpop.f32.mrf.mxu1 }
  0xfa   :  { %v806_v31 = vadd.f32 %v805_v23, %v706_v19 }
  0xfb   :  { %v1093_v24 = vadd.f32 %v2100_v11, %v902_v17  ;;  %745 = vmatmul.bf16.gmra.mxu0 %v1393_v15 }
  0xfc   :  { %844 = vmatmul.bf16.gmra.mxu1 %v1397_v20 }
  0xfd   :  { %v1129_v26 = vmax.f32 %v1093_v24, 0.0  ;;  %943 = vmatmul.bf16.gmra.mxu2 %v1401_v21 }
  0xfe   :  { %v855_v28 = vpop.f32.mrf.mxu3 }
  0xff   :  { %v1647_v27 = vpack.c.bf16 %v1129_v26, %v1128_v25  ;;  %v2252_v29 = vadd.f32 %v855_v28, %v2130_v36 }
 0x100   :  { %v904_v30 = vpop.f32.mrf.mxu2  ;;  %v708_v32 = vpop.f32.mrf.mxu0 }
 0x101   :  { %1717 = vst [vmem:[%s2349_s3 + $0x20] sm:$0xff] %v1647_v27   ;;  %v807_v34 = vpop.f32.mrf.mxu1  ;;  %v905_v35 = vadd.f32 %v904_v30, %v806_v31 }
 0x102   :  { %v808_v37 = vadd.f32 %v807_v34, %v708_v32  ;;  %v853_v34 = vadd.f32 %v2247_v13, %v2126_v22 }
 0x103   :  { %v1094_v40 = vadd.f32 %v2100_v11, %v905_v35 }
 0x105   :  { %v1130_v44 = vmax.f32 %v1094_v40, 0.0 }
 0x106   :  { %v2257_v38 = vpop.f32.mrf.mxu3 }
 0x108   :  { %v906_v39 = vpop.f32.mrf.mxu2  ;;  %v711_v42 = vpop.f32.mrf.mxu0 }
 0x109   :  { %v907_v41 = vadd.f32 %v906_v39, %v808_v37  ;;  %v810_v43 = vpop.f32.mrf.mxu1 }
 0x10a   :  { %v811_v52 = vadd.f32 %v810_v43, %v711_v42 }
 0x10b   :  { %v1095_v36 = vadd.f32 %v2100_v11, %v907_v41 }
 0x10d   :  { %v1131_v45 = vmax.f32 %v1095_v36, 0.0 }
 0x10e   :  { %v860_v48 = vpop.f32.mrf.mxu3 }
 0x10f   :  { %v1652_v46 = vpack.c.bf16 %v1131_v45, %v1130_v44  ;;  %v2262_v49 = vadd.f32 %v860_v48, %v2163_v1 }
 0x110   :  { %v909_v50 = vpop.f32.mrf.mxu2  ;;  %v713_v53 = vpop.f32.mrf.mxu0 }
 0x111   :  { %1718 = vst [vmem:[%s2349_s3 + $0x28] sm:$0xff] %v1652_v46   ;;  %v812_v54 = vpop.f32.mrf.mxu1  ;;  %v910_v55 = vadd.f32 %v909_v50, %v811_v52 }
 0x112   :  { %v813_v56 = vadd.f32 %v812_v54, %v713_v53 }
 0x113   :  { %v1096_v59 = vadd.f32 %v2100_v11, %v910_v55 }
 0x115   :  { %v1132_v0 = vmax.f32 %v1096_v59, 0.0 }
 0x116   :  { %v2267_v57 = vpop.f32.mrf.mxu3 }
 0x118   :  { %v911_v58 = vpop.f32.mrf.mxu2  ;;  %v716_v61 = vpop.f32.mrf.mxu0 }
 0x119   :  { %v912_v60 = vadd.f32 %v911_v58, %v813_v56  ;;  %v815_v63 = vpop.f32.mrf.mxu1 }
 0x11a   :  { %v816_v6 = vadd.f32 %v815_v63, %v716_v61  ;;  %v858_v61 = vadd.f32 %v2257_v38, %v2159_v51 }
 0x11b   :  { %v1097_v1 = vadd.f32 %v2100_v11, %v912_v60 }
 0x11d   :  { %v1133_v2 = vmax.f32 %v1097_v1, 0.0 }
 0x11e   :  { %v865_v4 = vpop.f32.mrf.mxu3 }
 0x11f   :  { %v1657_v3 = vpack.c.bf16 %v1133_v2, %v1132_v0  ;;  %v2272_v5 = vadd.f32 %v865_v4, %v2196_v33 }
 0x120   :  { %v914_v7 = vpop.f32.mrf.mxu2  ;;  %v718_v8 = vpop.f32.mrf.mxu0 }
 0x121   :  { %1719 = vst [vmem:[%s2349_s3 + $0x30] sm:$0xff] %v1657_v3   ;;  %v817_v9 = vpop.f32.mrf.mxu1  ;;  %v915_v10 = vadd.f32 %v914_v7, %v816_v6 }
 0x122   :  { %v818_v12 = vadd.f32 %v817_v9, %v718_v8 }
 0x123   :  { %v1098_v16 = vadd.f32 %v2100_v11, %v915_v10 }
 0x125   :  { %v1134_v21 = vmax.f32 %v1098_v16, 0.0 }
 0x126   :  { %v2277_v14 = vpop.f32.mrf.mxu3 }
 0x128   :  { %v916_v15 = vpop.f32.mrf.mxu2  ;;  %v721_v19 = vpop.f32.mrf.mxu0 }
 0x129   :  { %v917_v17 = vadd.f32 %v916_v15, %v818_v12  ;;  %v820_v20 = vpop.f32.mrf.mxu1 }
 0x12a   :  { %v821_v27 = vadd.f32 %v820_v20, %v721_v19 }
 0x12b   :  { %v1099_v33 = vadd.f32 %v2100_v11, %v917_v17 }
 0x12d   :  { %v1135_v23 = vmax.f32 %v1099_v33, 0.0 }
 0x12e   :  { %v949_v25 = vpop.f32.mrf.mxu3 }
 0x12f   :  { %v1662_v24 = vpack.c.bf16 %v1135_v23, %v1134_v21  ;;  %v950_v31 = vadd.f32 %v949_v25, %v2224_v62  ;;  %v863_v25 = vadd.f32 %v2267_v57, %v2192_v18 }
 0x130   :  { %v919_v26 = vpop.f32.mrf.mxu2  ;;  %v723_v28 = vpop.f32.mrf.mxu0 }
 0x131   :  { %1720 = vst [vmem:[%s2349_s3 + $0x38] sm:$0xff] %v1662_v24   ;;  %v822_v30 = vpop.f32.mrf.mxu1  ;;  %v920_v32 = vadd.f32 %v919_v26, %v821_v27  ;;  %v1112_v39 = vadd.f32 %v2100_v11, %v950_v31 }
 0x132   :  { %v823_v35 = vadd.f32 %v822_v30, %v723_v28 }
 0x133   :  { %v1100_v42 = vadd.f32 %v2100_v11, %v920_v32  ;;  %v1148_v62 = vmax.f32 %v1112_v39, 0.0 }
 0x135   :  { %v1136_v50 = vmax.f32 %v1100_v42, 0.0 }
 0x136   :  { %v951_v37 = vpop.f32.mrf.mxu3 }
 0x137   :  { %v952_v41 = vadd.f32 %v951_v37, %v853_v34 }
 0x138   :  { %v921_v40 = vpop.f32.mrf.mxu2  ;;  %v726_v36 = vpop.f32.mrf.mxu0 }
 0x139   :  { %v922_v43 = vadd.f32 %v921_v40, %v823_v35  ;;  %v1113_v44 = vadd.f32 %v2100_v11, %v952_v41  ;;  %v825_v45 = vpop.f32.mrf.mxu1 }
 0x13a   :  { %v826_v55 = vadd.f32 %v825_v45, %v726_v36 }
 0x13b   :  { %v1101_v46 = vadd.f32 %v2100_v11, %v922_v43  ;;  %v1149_v48 = vmax.f32 %v1113_v44, 0.0 }
 0x13d   :  { %v1137_v52 = vmax.f32 %v1101_v46, 0.0  ;;  %v1697_v22 = vpack.c.bf16 %v1149_v48, %v1148_v62 }
 0x13e   :  { %v954_v53 = vpop.f32.mrf.mxu3 }
 0x13f   :  { %v1667_v13 = vpack.c.bf16 %v1137_v52, %v1136_v50  ;;  %1727 = vst [vmem:[%s2349_s3 + $0x70] sm:$0xff] %v1697_v22   ;;  %v955_v59 = vadd.f32 %v954_v53, %v2252_v29  ;;  %v868_v52 = vadd.f32 %v2277_v14, %v2219_v47 }
 0x140   :  { %v924_v54 = vpop.f32.mrf.mxu2  ;;  %v728_v56 = vpop.f32.mrf.mxu0 }
 0x141   :  { %1721 = vst [vmem:[%s2349_s3 + $0x40] sm:$0xff] %v1667_v13   ;;  %v827_v58 = vpop.f32.mrf.mxu1  ;;  %v925_v60 = vadd.f32 %v924_v54, %v826_v55  ;;  %v1114_v0 = vadd.f32 %v2100_v11, %v955_v59 }
 0x142   :  { %v828_v63 = vadd.f32 %v827_v58, %v728_v56 }
 0x143   :  { %v1102_v4 = vadd.f32 %v2100_v11, %v925_v60  ;;  %v1150_v29 = vmax.f32 %v1114_v0, 0.0 }
 0x145   :  { %v1138_v15 = vmax.f32 %v1102_v4, 0.0 }
 0x146   :  { %v956_v1 = vpop.f32.mrf.mxu3 }
 0x147   :  { %v957_v3 = vadd.f32 %v956_v1, %v858_v61 }
 0x148   :  { %v926_v2 = vpop.f32.mrf.mxu2  ;;  %v731_v6 = vpop.f32.mrf.mxu0 }
 0x149   :  { %v927_v7 = vadd.f32 %v926_v2, %v828_v63  ;;  %v1115_v8 = vadd.f32 %v2100_v11, %v957_v3  ;;  %v830_v9 = vpop.f32.mrf.mxu1 }
 0x14a   :  { %v831_v20 = vadd.f32 %v830_v9, %v731_v6 }
 0x14b   :  { %v1103_v10 = vadd.f32 %v2100_v11, %v927_v7  ;;  %v1151_v12 = vmax.f32 %v1115_v8, 0.0 }
 0x14d   :  { %v1139_v16 = vmax.f32 %v1103_v10, 0.0  ;;  %v1702_v51 = vpack.c.bf16 %v1151_v12, %v1150_v29 }
 0x14e   :  { %v959_v17 = vpop.f32.mrf.mxu3 }
 0x14f   :  { %v1672_v38 = vpack.c.bf16 %v1139_v16, %v1138_v15  ;;  %1728 = vst [vmem:[%s2349_s3 + $0x78] sm:$0xff] %v1702_v51   ;;  %v960_v23 = vadd.f32 %v959_v17, %v2262_v49 }
 0x150   :  { %v929_v19 = vpop.f32.mrf.mxu2  ;;  %v733_v33 = vpop.f32.mrf.mxu0 }
 0x151   :  { %1722 = vst [vmem:[%s2349_s3 + $0x48] sm:$0xff] %v1672_v38   ;;  %v832_v21 = vpop.f32.mrf.mxu1  ;;  %v930_v24 = vadd.f32 %v929_v19, %v831_v20  ;;  %v1116_v28 = vadd.f32 %v2100_v11, %v960_v23 }
 0x152   :  { %v833_v26 = vadd.f32 %v832_v21, %v733_v33 }
 0x153   :  { %v1104_v32 = vadd.f32 %v2100_v11, %v930_v24  ;;  %v1152_v49 = vmax.f32 %v1116_v28, 0.0 }
 0x155   :  { %v1140_v42 = vmax.f32 %v1104_v32, 0.0 }
 0x156   :  { %v961_v27 = vpop.f32.mrf.mxu3 }
 0x157   :  { %v962_v31 = vadd.f32 %v961_v27, %v863_v25 }
 0x158   :  { %v931_v30 = vpop.f32.mrf.mxu2  ;;  %v736_v35 = vpop.f32.mrf.mxu0 }
 0x159   :  { %v932_v34 = vadd.f32 %v931_v30, %v833_v26  ;;  %v1117_v37 = vadd.f32 %v2100_v11, %v962_v31  ;;  %v835_v39 = vpop.f32.mrf.mxu1 }
 0x15a   :  { %v836_v45 = vadd.f32 %v835_v39, %v736_v35 }
 0x15b   :  { %v1105_v40 = vadd.f32 %v2100_v11, %v932_v34  ;;  %v1153_v41 = vmax.f32 %v1117_v37, 0.0 }
 0x15d   :  { %v1141_v43 = vmax.f32 %v1105_v40, 0.0  ;;  %v1707_v18 = vpack.c.bf16 %v1153_v41, %v1152_v49 }
 0x15e   :  { %v964_v36 = vpop.f32.mrf.mxu3 }
 0x15f   :  { %v1677_v57 = vpack.c.bf16 %v1141_v43, %v1140_v42  ;;  %1729 = vst [vmem:[%s2349_s3 + $0x80] sm:$0xff] %v1707_v18   ;;  %v965_v48 = vadd.f32 %v964_v36, %v2272_v5 }
 0x160   :  { %v934_v44 = vpop.f32.mrf.mxu2  ;;  %v738_v46 = vpop.f32.mrf.mxu0 }
 0x161   :  { %1723 = vst [vmem:[%s2349_s3 + $0x50] sm:$0xff] %v1677_v57   ;;  %v837_v62 = vpop.f32.mrf.mxu1  ;;  %v935_v50 = vadd.f32 %v934_v44, %v836_v45  ;;  %v1118_v53 = vadd.f32 %v2100_v11, %v965_v48 }
 0x162   :  { %v838_v22 = vadd.f32 %v837_v62, %v738_v46 }
 0x163   :  { %v1106_v56 = vadd.f32 %v2100_v11, %v935_v50  ;;  %v1154_v5 = vmax.f32 %v1118_v53, 0.0 }
 0x165   :  { %v1142_v0 = vmax.f32 %v1106_v56, 0.0 }
 0x166   :  { %v966_v13 = vpop.f32.mrf.mxu3 }
 0x167   :  { %v967_v55 = vadd.f32 %v966_v13, %v868_v52 }
 0x168   :  { %v936_v54 = vpop.f32.mrf.mxu2  ;;  %v741_v59 = vpop.f32.mrf.mxu0 }
 0x169   :  { %v937_v58 = vadd.f32 %v936_v54, %v838_v22  ;;  %v1119_v60 = vadd.f32 %v2100_v11, %v967_v55  ;;  %v840_v61 = vpop.f32.mrf.mxu1 }
 0x16a   :  { %v841_v4 = vadd.f32 %v840_v61, %v741_v59 }
 0x16b   :  { %v1107_v63 = vadd.f32 %v2100_v11, %v937_v58  ;;  %v1155_v1 = vmax.f32 %v1119_v60, 0.0 }
 0x16d   :  { %v1143_v2 = vmax.f32 %v1107_v63, 0.0  ;;  %v1712_v47 = vpack.c.bf16 %v1155_v1, %v1154_v5 }
 0x16f   :  { %v1682_v14 = vpack.c.bf16 %v1143_v2, %v1142_v0  ;;  %1730 = vst [vmem:[%s2349_s3 + $0x88] sm:$0xff] %v1712_v47  }
 0x170   :  { %v939_v3 = vpop.f32.mrf.mxu2  ;;  %v743_v7 = vpop.f32.mrf.mxu0 }
 0x171   :  { %1724 = vst [vmem:[%s2349_s3 + $0x58] sm:$0xff] %v1682_v14   ;;  %v842_v6 = vpop.f32.mrf.mxu1  ;;  %v940_v8 = vadd.f32 %v939_v3, %v841_v4 }
 0x172   :  { %v843_v9 = vadd.f32 %v842_v6, %v743_v7 }
 0x173   :  { %v1108_v29 = vadd.f32 %v2100_v11, %v940_v8 }
 0x175   :  { %v1144_v38 = vmax.f32 %v1108_v29, 0.0 }
 0x178   :  { %v941_v10 = vpop.f32.mrf.mxu2  ;;  %v746_v15 = vpop.f32.mrf.mxu0 }
 0x179   :  { %v942_v12 = vadd.f32 %v941_v10, %v843_v9  ;;  %v845_v16 = vpop.f32.mrf.mxu1 }
 0x17a   :  { %v846_v33 = vadd.f32 %v845_v16, %v746_v15 }
 0x17b   :  { %v1109_v51 = vadd.f32 %v2100_v11, %v942_v12 }
 0x17d   :  { %v1145_v17 = vmax.f32 %v1109_v51, 0.0 }
 0x17f   :  { %v1687_v19 = vpack.c.bf16 %v1145_v17, %v1144_v38 }
 0x180   :  { %v944_v20 = vpop.f32.mrf.mxu2  ;;  %v748_v21 = vpop.f32.mrf.mxu0 }
 0x181   :  { %1725 = vst [vmem:[%s2349_s3 + $0x60] sm:$0xff] %v1687_v19   ;;  %v847_v23 = vpop.f32.mrf.mxu1  ;;  %v945_v24 = vadd.f32 %v944_v20, %v846_v33 }
 0x182   :  { %v848_v25 = vadd.f32 %v847_v23, %v748_v21 }
 0x183   :  { %v1110_v27 = vadd.f32 %v2100_v11, %v945_v24 }
 0x185   :  { %v1146_v31 = vmax.f32 %v1110_v27, 0.0 }
 0x188   :  { %v946_v26 = vpop.f32.mrf.mxu2 }
 0x189   :  { %v947_v28 = vadd.f32 %v946_v26, %v848_v25 }
 0x18b   :  { %v1111_v30 = vadd.f32 %v2100_v11, %v947_v28 }
 0x18d   :  { %v1147_v32 = vmax.f32 %v1111_v30, 0.0 }
 0x18f   :  { %v1692_v34 = vpack.c.bf16 %v1147_v32, %v1146_v31 }
 0x191   :  { %1726 = vst [vmem:[%s2349_s3 + $0x68] sm:$0xff] %v1692_v34  }
 0x192   :  { %1232 = vsyncpa [#allocation4], 1 }
 0x193   :  { %1233 = vsyncpa [#allocation6], 1 }

// kernel: teacher_forward.7
= control target key start
LH: loop header
LB: loop body
LE: loop exit
PB: predicated region body
PF: predicated region fallthrough
CT: control target
= control target key end

     0   :  { %s8427_s1 = inlined_call_operand.vmem [shape: bf16[1152,256], index: 1, kind: input, shape index: {}]   ;;  %s8428_s0 = inlined_call_operand.vmem [shape: bf16[208,1152], index: 0, kind: input, shape index: {}]   ;;  %s8429_s2 = inlined_call_operand.vmem [shape: f32[1,256], index: 2, kind: input, shape index: {}]   ;;  %s8430_s3 = inlined_call_operand.vmem [shape: f32[1,256], index: 3, kind: input, shape index: {}]   ;;  %s8431_s4 = inlined_call_operand.vmem [shape: f32[1,256], index: 4, kind: input, shape index: {}]   ;;  %s8432_s5 = inlined_call_operand.vmem [shape: f32[208,256], index: 5, kind: output, shape index: {}]  }
   0x1   :  { %v4222_v0 = vld [vmem:[%s8427_s1 + $0x70] sm:$0xf]  ;;  %v4872_v1 = vld [vmem:[%s8427_s1 + $0x74] sm:$0xf0]  ;;  %v4214_v5 = vld [vmem:[%s8427_s1 + $0x60] sm:$0xf] }
   0x2   :  { %v4286_v2 = vld [vmem:[%s8427_s1 + $0xf0] sm:$0xf]  ;;  %v4223_v3 = vor.u32 %v4872_v1, %v4222_v0  ;;  %v4888_v4 = vld [vmem:[%s8427_s1 + $0xf4] sm:$0xf0]  ;;  %v4870_v6 = vld [vmem:[%s8427_s1 + $0x64] sm:$0xf0] }
   0x3   :  { %v4287_v7 = vor.u32 %v4888_v4, %v4286_v2  ;;  %v4278_v8 = vld [vmem:[%s8427_s1 + $0xe0] sm:$0xf]  ;;  %v4886_v9 = vld [vmem:[%s8427_s1 + $0xe4] sm:$0xf0]  ;;  %v4215_v10 = vor.u32 %v4870_v6, %v4214_v5  ;;  %v4206_v12 = vld [vmem:[%s8427_s1 + $0x50] sm:$0xf] }
   0x4   :  { %1618 = vmatpush.bf16.msra.mxu0 %v4223_v3  ;;  %5001 = vmatpush.bf16.msra.mxu2 %v4223_v3  ;;  %v4279_v11 = vor.u32 %v4886_v9, %v4278_v8  ;;  %v4868_v13 = vld [vmem:[%s8427_s1 + $0x54] sm:$0xf0]  ;;  %v4270_v14 = vld [vmem:[%s8427_s1 + $0xd0] sm:$0xf]  ;;  %v4198_v18 = vld [vmem:[%s8427_s1 + $0x40] sm:$0xf] }
   0x5   :  { %1692 = vmatpush.bf16.msra.mxu1 %v4287_v7  ;;  %5009 = vmatpush.bf16.msra.mxu3 %v4287_v7  ;;  %v4884_v15 = vld [vmem:[%s8427_s1 + $0xd4] sm:$0xf0]  ;;  %v4207_v16 = vor.u32 %v4868_v13, %v4206_v12  ;;  %v4866_v19 = vld [vmem:[%s8427_s1 + $0x44] sm:$0xf0]  ;;  %v4262_v20 = vld [vmem:[%s8427_s1 + $0xc0] sm:$0xf] }
   0x6   :  { %v4271_v17 = vor.u32 %v4884_v15, %v4270_v14  ;;  %v4882_v21 = vld [vmem:[%s8427_s1 + $0xc4] sm:$0xf0]  ;;  %v4199_v22 = vor.u32 %v4866_v19, %v4198_v18  ;;  %v4190_v24 = vld [vmem:[%s8427_s1 + $0x30] sm:$0xf]  ;;  %v4864_v25 = vld [vmem:[%s8427_s1 + $0x34] sm:$0xf0] }
   0x7   :  { %v4263_v23 = vor.u32 %v4882_v21, %v4262_v20  ;;  %v4254_v26 = vld [vmem:[%s8427_s1 + $0xb0] sm:$0xf]  ;;  %v4880_v27 = vld [vmem:[%s8427_s1 + $0xb4] sm:$0xf0]  ;;  %v4191_v28 = vor.u32 %v4864_v25, %v4190_v24  ;;  %v4182_v30 = vld [vmem:[%s8427_s1 + $0x20] sm:$0xf] }
   0x8   :  { %1619 = vmatpush.bf16.msra.mxu0 %v4215_v10  ;;  %5002 = vmatpush.bf16.msra.mxu2 %v4215_v10  ;;  %v4255_v29 = vor.u32 %v4880_v27, %v4254_v26  ;;  %v4862_v31 = vld [vmem:[%s8427_s1 + $0x24] sm:$0xf0]  ;;  %v4246_v32 = vld [vmem:[%s8427_s1 + $0xa0] sm:$0xf]  ;;  %v4174_v36 = vld [vmem:[%s8427_s1 + $0x10] sm:$0xf] }
   0x9   :  { %1693 = vmatpush.bf16.msra.mxu1 %v4279_v11  ;;  %5010 = vmatpush.bf16.msra.mxu3 %v4279_v11  ;;  %v4878_v33 = vld [vmem:[%s8427_s1 + $0xa4] sm:$0xf0]  ;;  %v4183_v34 = vor.u32 %v4862_v31, %v4182_v30  ;;  %v4860_v37 = vld [vmem:[%s8427_s1 + $0x14] sm:$0xf0]  ;;  %v4238_v38 = vld [vmem:[%s8427_s1 + $0x90] sm:$0xf] }
   0xa   :  { %v4247_v35 = vor.u32 %v4878_v33, %v4246_v32  ;;  %v4876_v39 = vld [vmem:[%s8427_s1 + $0x94] sm:$0xf0]  ;;  %v4175_v40 = vor.u32 %v4860_v37, %v4174_v36  ;;  %v4166_v41 = vld [vmem:[%s8427_s1] sm:$0xf]  ;;  %v4858_v43 = vld [vmem:[%s8427_s1 + $0x4] sm:$0xf0] }
   0xb   :  { %v4239_v42 = vor.u32 %v4876_v39, %v4238_v38  ;;  %v4230_v44 = vld [vmem:[%s8427_s1 + $0x80] sm:$0xf]  ;;  %v4874_v45 = vld [vmem:[%s8427_s1 + $0x84] sm:$0xf0]  ;;  %v4744_v47 = vld [vmem:[%s8428_s0 + $0x20] sm:$0xf0]  ;;  %v4167_v54 = vor.u32 %v4858_v43, %v4166_v41 }
   0xc   :  { %1620 = vmatpush.bf16.msra.mxu0 %v4207_v16  ;;  %5003 = vmatpush.bf16.msra.mxu2 %v4207_v16  ;;  %v3698_v46 = vld [vmem:[%s8428_s0] sm:$0xf]  ;;  %v3950_v48 = vld [vmem:[%s8428_s0 + $0x1f8] sm:$0xf]  ;;  %v4807_v49 = vld [vmem:[%s8428_s0 + $0x218] sm:$0xf0]  ;;  %v4231_v58 = vor.u32 %v4874_v45, %v4230_v44 }
   0xd   :  { %1694 = vmatpush.bf16.msra.mxu1 %v4271_v17  ;;  %5011 = vmatpush.bf16.msra.mxu3 %v4271_v17  ;;  %v4478_v50 = vld [vmem:[%s8427_s1 + $0x270] sm:$0xf]  ;;  %v4936_v51 = vld [vmem:[%s8427_s1 + $0x274] sm:$0xf0]  ;;  %v4740_v55 = vld [vmem:[%s8428_s0 + $0x4] sm:$0xf]  ;;  %v5205_v3 = vor.u32 %v4744_v47, %v3698_v46  ;;  %v5207_v4 = vor.u32 %v4807_v49, %v3950_v48 }
   0xe   :  { %v4542_v52 = vld [vmem:[%s8427_s1 + $0x2f0] sm:$0xf]  ;;  %v4952_v53 = vld [vmem:[%s8427_s1 + $0x2f4] sm:$0xf0]  ;;  %v3700_v56 = vld [vmem:[%s8428_s0 + $0x24] sm:$0xf0]  ;;  %v4479_v62 = vor.u32 %v4936_v51, %v4478_v50 }
   0xf   :  { %v4803_v57 = vld [vmem:[%s8428_s0 + $0x1fc] sm:$0xf]  ;;  %v3952_v59 = vld [vmem:[%s8428_s0 + $0x21c] sm:$0xf0]  ;;  %v4350_v60 = vld [vmem:[%s8427_s1 + $0x170] sm:$0xf]  ;;  %v4543_v63 = vor.u32 %v4952_v53, %v4542_v52  ;;  %v5218_v8 = vor.u32 %v4740_v55, %v3700_v56 }
  0x10   :  { %1621 = vmatpush.bf16.msra.mxu0 %v4199_v22  ;;  %5004 = vmatpush.bf16.msra.mxu2 %v4199_v22  ;;  %v4904_v61 = vld [vmem:[%s8427_s1 + $0x174] sm:$0xf0]  ;;  %v4414_v0 = vld [vmem:[%s8427_s1 + $0x1f0] sm:$0xf]  ;;  %v4470_v2 = vld [vmem:[%s8427_s1 + $0x260] sm:$0xf]  ;;  %v5220_v9 = vor.u32 %v4803_v57, %v3952_v59 }
  0x11   :  { %1695 = vmatpush.bf16.msra.mxu1 %v4263_v23  ;;  %5012 = vmatpush.bf16.msra.mxu3 %v4263_v23  ;;  %v4920_v1 = vld [vmem:[%s8427_s1 + $0x1f4] sm:$0xf0]  ;;  %v4934_v5 = vld [vmem:[%s8427_s1 + $0x264] sm:$0xf0]  ;;  %v4534_v6 = vld [vmem:[%s8427_s1 + $0x2e0] sm:$0xf]  ;;  %v4351_v10 = vor.u32 %v4904_v61, %v4350_v60 }
  0x12   :  { %v4950_v7 = vld [vmem:[%s8427_s1 + $0x2e4] sm:$0xf0]  ;;  %8568 = vst [vmem:[#allocation2_spill] sm:$0xff] %v5220_v9  ;;  %v4415_v11 = vor.u32 %v4920_v1, %v4414_v0  ;;  %v4342_v12 = vld [vmem:[%s8427_s1 + $0x160] sm:$0xf]  ;;  %v4471_v14 = vor.u32 %v4934_v5, %v4470_v2 }
  0x13   :  { %v4902_v13 = vld [vmem:[%s8427_s1 + $0x164] sm:$0xf0]  ;;  %v4535_v15 = vor.u32 %v4950_v7, %v4534_v6  ;;  %v4406_v16 = vld [vmem:[%s8427_s1 + $0x1e0] sm:$0xf]  ;;  %v4462_v18 = vld [vmem:[%s8427_s1 + $0x250] sm:$0xf] }
  0x14   :  { %1622 = vmatpush.bf16.msra.mxu0 %v4191_v28  ;;  %5005 = vmatpush.bf16.msra.mxu2 %v4191_v28  ;;  %v4918_v17 = vld [vmem:[%s8427_s1 + $0x1e4] sm:$0xf0]  ;;  %v4932_v19 = vld [vmem:[%s8427_s1 + $0x254] sm:$0xf0]  ;;  %v4526_v20 = vld [vmem:[%s8427_s1 + $0x2d0] sm:$0xf]  ;;  %v4343_v22 = vor.u32 %v4902_v13, %v4342_v12 }
  0x15   :  { %1696 = vmatpush.bf16.msra.mxu1 %v4255_v29  ;;  %5013 = vmatpush.bf16.msra.mxu3 %v4255_v29  ;;  %v4948_v21 = vld [vmem:[%s8427_s1 + $0x2d4] sm:$0xf0]  ;;  %v4407_v23 = vor.u32 %v4918_v17, %v4406_v16  ;;  %v4334_v24 = vld [vmem:[%s8427_s1 + $0x150] sm:$0xf]  ;;  %v4463_v26 = vor.u32 %v4932_v19, %v4462_v18  ;;  %v4454_v30 = vld [vmem:[%s8427_s1 + $0x240] sm:$0xf] }
  0x16   :  { %v4900_v25 = vld [vmem:[%s8427_s1 + $0x154] sm:$0xf0]  ;;  %v4527_v27 = vor.u32 %v4948_v21, %v4526_v20  ;;  %v4398_v28 = vld [vmem:[%s8427_s1 + $0x1d0] sm:$0xf]  ;;  %v4930_v31 = vld [vmem:[%s8427_s1 + $0x244] sm:$0xf0] }
  0x17   :  { %v4916_v29 = vld [vmem:[%s8427_s1 + $0x1d4] sm:$0xf0]  ;;  %v4518_v32 = vld [vmem:[%s8427_s1 + $0x2c0] sm:$0xf]  ;;  %v4946_v33 = vld [vmem:[%s8427_s1 + $0x2c4] sm:$0xf0]  ;;  %v4455_v38 = vor.u32 %v4930_v31, %v4454_v30 }
  0x18   :  { %1623 = vmatpush.bf16.msra.mxu0 %v4183_v34  ;;  %5006 = vmatpush.bf16.msra.mxu2 %v4183_v34  ;;  %v4335_v34 = vor.u32 %v4900_v25, %v4334_v24  ;;  %v4326_v36 = vld [vmem:[%s8427_s1 + $0x140] sm:$0xf]  ;;  %v4898_v37 = vld [vmem:[%s8427_s1 + $0x144] sm:$0xf0]  ;;  %v4519_v41 = vor.u32 %v4946_v33, %v4518_v32  ;;  %v4753_v43 = vld [vmem:[%s8428_s0 + $0x68] sm:$0xf0] }
  0x19   :  { %1697 = vmatpush.bf16.msra.mxu1 %v4247_v35  ;;  %5014 = vmatpush.bf16.msra.mxu3 %v4247_v35  ;;  %v4399_v35 = vor.u32 %v4916_v29, %v4398_v28  ;;  %v4390_v39 = vld [vmem:[%s8427_s1 + $0x1c0] sm:$0xf]  ;;  %v4816_v45 = vld [vmem:[%s8428_s0 + $0x260] sm:$0xf0]  ;;  %v4749_v46 = vld [vmem:[%s8428_s0 + $0x4c] sm:$0xf]  ;;  %v4327_v50 = vor.u32 %v4898_v37, %v4326_v36 }
  0x1a   :  { %v3986_v44 = vld [vmem:[%s8428_s0 + $0x240] sm:$0xf]  ;;  %v3736_v47 = vld [vmem:[%s8428_s0 + $0x6c] sm:$0xf0]  ;;  %v4812_v48 = vld [vmem:[%s8428_s0 + $0x244] sm:$0xf] }
  0x1b   :  { %v3988_v49 = vld [vmem:[%s8428_s0 + $0x264] sm:$0xf0]  ;;  %v5312_v53 = vor.u32 %v4816_v45, %v3986_v44  ;;  %v4318_v56 = vld [vmem:[%s8427_s1 + $0x130] sm:$0xf]  ;;  %v4896_v57 = vld [vmem:[%s8427_s1 + $0x134] sm:$0xf0] }
  0x1c   :  { %1624 = vmatpush.bf16.msra.mxu0 %v4175_v40  ;;  %5007 = vmatpush.bf16.msra.mxu2 %v4175_v40  ;;  %v4914_v40 = vld [vmem:[%s8427_s1 + $0x1c4] sm:$0xf0]  ;;  %v5316_v55 = vor.u32 %v4812_v48, %v3988_v49  ;;  %v4319_v59 = vor.u32 %v4896_v57, %v4318_v56  ;;  %v4912_v60 = vld [vmem:[%s8427_s1 + $0x1b4] sm:$0xf0]  ;;  %v4446_v61 = vld [vmem:[%s8427_s1 + $0x230] sm:$0xf] }
  0x1d   :  { %1698 = vmatpush.bf16.msra.mxu1 %v4239_v42  ;;  %5015 = vmatpush.bf16.msra.mxu3 %v4239_v42  ;;  %v3734_v42 = vld [vmem:[%s8428_s0 + $0x48] sm:$0xf]  ;;  %v4391_v51 = vor.u32 %v4914_v40, %v4390_v39  ;;  %v4510_v1 = vld [vmem:[%s8427_s1 + $0x2b0] sm:$0xf]  ;;  %v4944_v2 = vld [vmem:[%s8427_s1 + $0x2b4] sm:$0xf0] }
  0x1e   :  { %v5310_v52 = vor.u32 %v4753_v43, %v3734_v42  ;;  %8570 = vst [vmem:[#allocation4_spill] sm:$0xff] %v5316_v55  ;;  %v4511_v5 = vor.u32 %v4944_v2, %v4510_v1  ;;  %v3770_v6 = vld [vmem:[%s8428_s0 + $0x90] sm:$0xf]  ;;  %v4762_v7 = vld [vmem:[%s8428_s0 + $0xb0] sm:$0xf0] }
  0x1f   :  { %v4758_v12 = vld [vmem:[%s8428_s0 + $0x94] sm:$0xf]  ;;  %v3772_v13 = vld [vmem:[%s8428_s0 + $0xb4] sm:$0xf0]  ;;  %v5370_v16 = vor.u32 %v4762_v7, %v3770_v6  ;;  %v4310_v20 = vld [vmem:[%s8427_s1 + $0x120] sm:$0xf] }
  0x20   :  { %1625 = vmatpush.bf16.msra.mxu0 %v4167_v54  ;;  %5008 = vmatpush.bf16.msra.mxu2 %v4167_v54  ;;  %v5314_v54 = vor.u32 %v4749_v46, %v3736_v47  ;;  %v5374_v18 = vor.u32 %v4758_v12, %v3772_v13  ;;  %v4894_v21 = vld [vmem:[%s8427_s1 + $0x124] sm:$0xf0]  ;;  %v4438_v25 = vld [vmem:[%s8427_s1 + $0x220] sm:$0xf]  ;;  %v4302_v31 = vld [vmem:[%s8427_s1 + $0x110] sm:$0xf] }
  0x21   :  { %1699 = vmatpush.bf16.msra.mxu1 %v4231_v58  ;;  %5016 = vmatpush.bf16.msra.mxu3 %v4231_v58  ;;  %v4382_v58 = vld [vmem:[%s8427_s1 + $0x1b0] sm:$0xf]  ;;  %v4910_v24 = vld [vmem:[%s8427_s1 + $0x1a4] sm:$0xf0]  ;;  %v4502_v29 = vld [vmem:[%s8427_s1 + $0x2a0] sm:$0xf] }
  0x22   :  { %8569 = vst [vmem:[#allocation3_spill] sm:$0xff] %v5314_v54  ;;  %v4942_v30 = vld [vmem:[%s8427_s1 + $0x2a4] sm:$0xf0]  ;;  %v4892_v33 = vld [vmem:[%s8427_s1 + $0x114] sm:$0xf0] }
  0x23   :  { %1626 = vmatmul.bf16.vlgmr.msra.gmra.mxu0 %v5205_v3  ;;  %1661 = vmatmul.bf16.vlgmr.msra.gmra.mxu2 %v5207_v4  ;;  %8571 = vst [vmem:[#allocation5_spill] sm:$0xff] %v5374_v18  ;;  %v4503_v32 = vor.u32 %v4942_v30, %v4502_v29  ;;  %v4771_v36 = vld [vmem:[%s8428_s0 + $0xf8] sm:$0xf0]  ;;  %v4058_v37 = vld [vmem:[%s8428_s0 + $0x2d0] sm:$0xf] }
  0x24   :  { %1914 = vmatpush.bf16.msrb.mxu0 %v4479_v62  ;;  %1700 = vmatmul.bf16.vlgmr.msra.gmra.mxu1 %v5218_v8  ;;  %v4928_v62 = vld [vmem:[%s8427_s1 + $0x234] sm:$0xf0]  ;;  %v4767_v39 = vld [vmem:[%s8428_s0 + $0xdc] sm:$0xf]  ;;  %v3808_v40 = vld [vmem:[%s8428_s0 + $0xfc] sm:$0xf0] }
  0x25   :  { %1988 = vmatpush.bf16.msrb.mxu1 %v4543_v63  ;;  %1735 = vmatmul.bf16.vlgmr.msra.gmra.mxu3 %v5220_v9  ;;  %v4383_v63 = vor.u32 %v4912_v60, %v4382_v58  ;;  %v4447_v0 = vor.u32 %v4928_v62, %v4446_v61  ;;  %v4060_v42 = vld [vmem:[%s8428_s0 + $0x2f4] sm:$0xf0]  ;;  %v5440_v45 = vor.u32 %v4767_v39, %v3808_v40  ;;  %v4366_v47 = vld [vmem:[%s8427_s1 + $0x190] sm:$0xf]  ;;  %v4294_v60 = vld [vmem:[%s8427_s1 + $0x100] sm:$0xf] }
  0x26   :  { %1766 = vmatpush.bf16.msrb.mxu2 %v4351_v10  ;;  %1840 = vmatpush.bf16.msrb.mxu3 %v4415_v11  ;;  %v4022_v10 = vld [vmem:[%s8428_s0 + $0x288] sm:$0xf]  ;;  %v4825_v11 = vld [vmem:[%s8428_s0 + $0x2a8] sm:$0xf0]  ;;  %v4908_v48 = vld [vmem:[%s8427_s1 + $0x194] sm:$0xf0] }
  0x27   :  { %v5372_v17 = vor.u32 %v4825_v11, %v4022_v10  ;;  %8573 = vst [vmem:[#allocation7_spill] sm:$0xff] %v5440_v45  ;;  %v4430_v49 = vld [vmem:[%s8427_s1 + $0x210] sm:$0xf]  ;;  %v4940_v57 = vld [vmem:[%s8427_s1 + $0x294] sm:$0xf0] }
  0x28   :  { %1915 = vmatpush.bf16.msrb.mxu0 %v4471_v14  ;;  %v4821_v14 = vld [vmem:[%s8428_s0 + $0x28c] sm:$0xf]  ;;  %v4494_v56 = vld [vmem:[%s8427_s1 + $0x290] sm:$0xf]  ;;  %v4890_v61 = vld [vmem:[%s8427_s1 + $0x104] sm:$0xf0] }
  0x29   :  { %1989 = vmatpush.bf16.msrb.mxu1 %v4535_v15  ;;  %v4024_v15 = vld [vmem:[%s8428_s0 + $0x2ac] sm:$0xf0]  ;;  %v4358_v62 = vld [vmem:[%s8427_s1 + $0x180] sm:$0xf]  ;;  %v4094_v6 = vld [vmem:[%s8428_s0 + $0x318] sm:$0xf] }
  0x2a   :  { %1767 = vmatpush.bf16.msrb.mxu2 %v4343_v22  ;;  %1841 = vmatpush.bf16.msrb.mxu3 %v4407_v23  ;;  %v5376_v19 = vor.u32 %v4821_v14, %v4024_v15  ;;  %v4374_v22 = vld [vmem:[%s8427_s1 + $0x1a0] sm:$0xf]  ;;  %v4311_v23 = vor.u32 %v4894_v21, %v4310_v20  ;;  %v4843_v7 = vld [vmem:[%s8428_s0 + $0x338] sm:$0xf0]  ;;  %v4776_v10 = vld [vmem:[%s8428_s0 + $0x124] sm:$0xf] }
  0x2b   :  { %v3842_v2 = vld [vmem:[%s8428_s0 + $0x120] sm:$0xf]  ;;  %v3844_v11 = vld [vmem:[%s8428_s0 + $0x144] sm:$0xf0]  ;;  %v4839_v12 = vld [vmem:[%s8428_s0 + $0x31c] sm:$0xf]  ;;  %v5504_v15 = vor.u32 %v4843_v7, %v4094_v6 }
  0x2c   :  { %1916 = vmatpush.bf16.msrb.mxu0 %v4463_v26  ;;  %8572 = vst [vmem:[#allocation6_spill] sm:$0xff] %v5376_v19  ;;  %v4926_v26 = vld [vmem:[%s8427_s1 + $0x224] sm:$0xf0]  ;;  %v4096_v13 = vld [vmem:[%s8428_s0 + $0x33c] sm:$0xf0]  ;;  %v5506_v20 = vor.u32 %v4776_v10, %v3844_v11 }
  0x2d   :  { %1990 = vmatpush.bf16.msrb.mxu1 %v4527_v27  ;;  %v4375_v27 = vor.u32 %v4910_v24, %v4374_v22  ;;  %v4439_v28 = vor.u32 %v4926_v26, %v4438_v25  ;;  %v5508_v21 = vor.u32 %v4839_v12, %v4096_v13  ;;  %v4422_v22 = vld [vmem:[%s8427_s1 + $0x200] sm:$0xf]  ;;  %v4938_v26 = vld [vmem:[%s8427_s1 + $0x284] sm:$0xf0]  ;;  %v3880_v39 = vld [vmem:[%s8428_s0 + $0x18c] sm:$0xf0] }
  0x2e   :  { %1768 = vmatpush.bf16.msrb.mxu2 %v4335_v34  ;;  %1842 = vmatpush.bf16.msrb.mxu3 %v4399_v35  ;;  %v4303_v34 = vor.u32 %v4892_v33, %v4302_v31  ;;  %v3806_v35 = vld [vmem:[%s8428_s0 + $0xd8] sm:$0xf]  ;;  %8575 = vst [vmem:[#allocation9_spill] sm:$0xff] %v5506_v20  ;;  %v4486_v24 = vld [vmem:[%s8427_s1 + $0x280] sm:$0xf] }
  0x2f   :  { %v5436_v43 = vor.u32 %v4771_v36, %v3806_v35  ;;  %8576 = vst [vmem:[#allocation10_spill] sm:$0xff] %v5508_v21  ;;  %v4487_v29 = vor.u32 %v4938_v26, %v4486_v24  ;;  %v4670_v31 = vld [vmem:[%s8427_s1 + $0x3f0] sm:$0xf]  ;;  %v4789_v35 = vld [vmem:[%s8428_s0 + $0x188] sm:$0xf0] }
  0x30   :  { %1917 = vmatpush.bf16.msrb.mxu0 %v4455_v38  ;;  %v4834_v38 = vld [vmem:[%s8428_s0 + $0x2f0] sm:$0xf0]  ;;  %v4130_v36 = vld [vmem:[%s8428_s0 + $0x360] sm:$0xf]  ;;  %v4848_v40 = vld [vmem:[%s8428_s0 + $0x364] sm:$0xf] }
  0x31   :  { %1991 = vmatpush.bf16.msrb.mxu1 %v4519_v41  ;;  %v4830_v41 = vld [vmem:[%s8428_s0 + $0x2d4] sm:$0xf]  ;;  %v5438_v44 = vor.u32 %v4834_v38, %v4058_v37  ;;  %v4852_v37 = vld [vmem:[%s8428_s0 + $0x380] sm:$0xf0]  ;;  %v4785_v38 = vld [vmem:[%s8428_s0 + $0x16c] sm:$0xf] }
  0x32   :  { %1769 = vmatpush.bf16.msrb.mxu2 %v4327_v50  ;;  %1843 = vmatpush.bf16.msrb.mxu3 %v4391_v51  ;;  %v5442_v46 = vor.u32 %v4830_v41, %v4060_v42  ;;  %v4367_v50 = vor.u32 %v4908_v48, %v4366_v47  ;;  %v4924_v51 = vld [vmem:[%s8427_s1 + $0x214] sm:$0xf0]  ;;  %v4132_v41 = vld [vmem:[%s8428_s0 + $0x384] sm:$0xf0]  ;;  %v5564_v47 = vor.u32 %v4852_v37, %v4130_v36  ;;  %v4598_v12 = vld [vmem:[%s8427_s1 + $0x360] sm:$0xf] }
  0x33   :  { %1631 = vmatmul.bf16.gmra.mxu0 %v5310_v52  ;;  %1666 = vmatmul.bf16.gmra.mxu2 %v5312_v53  ;;  %v4431_v58 = vor.u32 %v4924_v51, %v4430_v49  ;;  %v5566_v48 = vor.u32 %v4785_v38, %v3880_v39  ;;  %v5568_v49 = vor.u32 %v4848_v40, %v4132_v41  ;;  %v5000_v51 = vld [vmem:[%s8427_s1 + $0x474] sm:$0xf0]  ;;  %v4966_v13 = vld [vmem:[%s8427_s1 + $0x364] sm:$0xf0]  ;;  %v3742_v26 = vld [vmem:[%s8428_s0 + $0x50] sm:$0xf] }
  0x34   :  { %1705 = vmatmul.bf16.gmra.mxu1 %v5314_v54  ;;  %1918 = vmatpush.bf16.msrb.mxu0 %v4447_v0  ;;  %8574 = vst [vmem:[#allocation8_spill] sm:$0xff] %v5442_v46  ;;  %v4906_v0 = vld [vmem:[%s8427_s1 + $0x184] sm:$0xf0]  ;;  %v3716_v36 = vld [vmem:[%s8428_s0 + $0x34] sm:$0xf0] }
  0x35   :  { %1740 = vmatmul.bf16.gmra.mxu3 %v5316_v55  ;;  %1992 = vmatpush.bf16.msrb.mxu1 %v4511_v5  ;;  %v4359_v1 = vor.u32 %v4906_v0, %v4358_v62  ;;  %v4780_v5 = vld [vmem:[%s8428_s0 + $0x140] sm:$0xf0]  ;;  %8577 = vst [vmem:[#allocation11_spill] sm:$0xff] %v5566_v48  ;;  %v4794_v62 = vld [vmem:[%s8428_s0 + $0x1b4] sm:$0xf] }
  0x36   :  { %1770 = vmatpush.bf16.msrb.mxu2 %v4319_v59  ;;  %1844 = vmatpush.bf16.msrb.mxu3 %v4383_v63  ;;  %v4495_v59 = vor.u32 %v4940_v57, %v4494_v56  ;;  %v4295_v63 = vor.u32 %v4890_v61, %v4294_v60  ;;  %v5502_v14 = vor.u32 %v4780_v5, %v3842_v2  ;;  %v4871_v56 = vld [vmem:[%s8427_s1 + $0x74] sm:$0xf]  ;;  %v3914_v60 = vld [vmem:[%s8428_s0 + $0x1b0] sm:$0xf]  ;;  %v4745_v0 = vld [vmem:[%s8428_s0 + $0x28] sm:$0xf0] }
  0x37   :  { %8578 = vst [vmem:[#allocation12_spill] sm:$0xff] %v5568_v49  ;;  %v4798_v61 = vld [vmem:[%s8428_s0 + $0x1d0] sm:$0xf0]  ;;  %v4741_v2 = vld [vmem:[%s8428_s0 + $0xc] sm:$0xf] }
  0x38   :  { %1919 = vmatpush.bf16.msrb.mxu0 %v4439_v28  ;;  %v4968_v28 = vld [vmem:[%s8427_s1 + $0x374] sm:$0xf0]  ;;  %v3708_v5 = vld [vmem:[%s8428_s0 + $0x2c] sm:$0xf0]  ;;  %v5610_v6 = vor.u32 %v4798_v61, %v3914_v60  ;;  %v4982_v24 = vld [vmem:[%s8427_s1 + $0x3e4] sm:$0xf0] }
  0x39   :  { %1993 = vmatpush.bf16.msrb.mxu1 %v4503_v32  ;;  %v4984_v32 = vld [vmem:[%s8427_s1 + $0x3f4] sm:$0xf0]  ;;  %v5616_v11 = vor.u32 %v4741_v2, %v3708_v5  ;;  %v4869_v41 = vld [vmem:[%s8427_s1 + $0x64] sm:$0xf]  ;;  %v4590_v60 = vld [vmem:[%s8427_s1 + $0x350] sm:$0xf] }
  0x3a   :  { %1771 = vmatpush.bf16.msrb.mxu2 %v4311_v23  ;;  %1845 = vmatpush.bf16.msrb.mxu3 %v4375_v27  ;;  %v4922_v23 = vld [vmem:[%s8427_s1 + $0x204] sm:$0xf0]  ;;  %v4606_v27 = vld [vmem:[%s8427_s1 + $0x370] sm:$0xf]  ;;  %v4671_v33 = vor.u32 %v4984_v32, %v4670_v31  ;;  %v4746_v32 = vld [vmem:[%s8428_s0 + $0x30] sm:$0xf0] }
  0x3b   :  { %v4423_v25 = vor.u32 %v4922_v23, %v4422_v22  ;;  %v4607_v30 = vor.u32 %v4968_v28, %v4606_v27  ;;  %8581 = vst [vmem:[#allocation15_spill] sm:$0xff] %v5616_v11  ;;  %v4662_v22 = vld [vmem:[%s8427_s1 + $0x3e0] sm:$0xf]  ;;  %v4599_v23 = vor.u32 %v4966_v13, %v4598_v12  ;;  %v4754_v27 = vld [vmem:[%s8428_s0 + $0x70] sm:$0xf0] }
  0x3c   :  { %1920 = vmatpush.bf16.msrb.mxu0 %v4431_v58  ;;  %v4224_v58 = vld [vmem:[%s8427_s1 + $0x78] sm:$0xf0]  ;;  %v4726_v28 = vld [vmem:[%s8427_s1 + $0x460] sm:$0xf]  ;;  %v3714_v31 = vld [vmem:[%s8428_s0 + $0x10] sm:$0xf]  ;;  %v5664_v37 = vor.u32 %v4754_v27, %v3742_v26 }
  0x3d   :  { %1994 = vmatpush.bf16.msrb.mxu1 %v4495_v59  ;;  %v4227_v59 = vor.u32 %v4871_v56, %v4224_v58  ;;  %v5666_v38 = vor.u32 %v4746_v32, %v3714_v31  ;;  %v294_v56 = vld [vmem:[%s8429_s2] sm:$0x3]  ;;  %v3778_v58 = vld [vmem:[%s8428_s0 + $0x98] sm:$0xf]  ;;  %v4751_v5 = vld [vmem:[%s8428_s0 + $0x5c] sm:$0xf] }
  0x3e   :  { %1772 = vmatpush.bf16.msrb.mxu2 %v4303_v34  ;;  %1846 = vmatpush.bf16.msrb.mxu3 %v4367_v50  ;;  %v3878_v34 = vld [vmem:[%s8428_s0 + $0x168] sm:$0xf]  ;;  %v4734_v50 = vld [vmem:[%s8427_s1 + $0x470] sm:$0xf]  ;;  %8582 = vst [vmem:[#allocation16_spill] sm:$0xff] %v5664_v37 }
  0x3f   :  { %v5562_v42 = vor.u32 %v4789_v35, %v3878_v34  ;;  %v4735_v57 = vor.u32 %v5000_v51, %v4734_v50  ;;  %v3744_v34 = vld [vmem:[%s8428_s0 + $0x74] sm:$0xf0]  ;;  %v4742_v35 = vld [vmem:[%s8428_s0 + $0x14] sm:$0xf]  ;;  %8583 = vst [vmem:[#allocation17_spill] sm:$0xff] %v5666_v38 }
  0x40   :  { %1921 = vmatpush.bf16.msrb.mxu0 %v4423_v25  ;;  %v4663_v25 = vor.u32 %v4982_v24, %v4662_v22  ;;  %v5670_v40 = vor.u32 %v4742_v35, %v3716_v36  ;;  %v4216_v50 = vld [vmem:[%s8427_s1 + $0x68] sm:$0xf0]  ;;  %v4964_v61 = vld [vmem:[%s8427_s1 + $0x354] sm:$0xf0]  ;;  %v3780_v2 = vld [vmem:[%s8428_s0 + $0xbc] sm:$0xf0] }
  0x41   :  { %1995 = vmatpush.bf16.msrb.mxu1 %v4487_v29  ;;  %v4998_v29 = vld [vmem:[%s8427_s1 + $0x464] sm:$0xf0]  ;;  %v4219_v51 = vor.u32 %v4869_v41, %v4216_v50  ;;  %v3752_v12 = vld [vmem:[%s8428_s0 + $0x7c] sm:$0xf0] }
  0x42   :  { %1773 = vmatpush.bf16.msrb.mxu2 %v4295_v63  ;;  %1847 = vmatpush.bf16.msrb.mxu3 %v4359_v1  ;;  %v3706_v63 = vld [vmem:[%s8428_s0 + $0x8] sm:$0xf]  ;;  %v3916_v1 = vld [vmem:[%s8428_s0 + $0x1d4] sm:$0xf0]  ;;  %8585 = vst [vmem:[#allocation19_spill] sm:$0xff] %v5670_v40 }
  0x43   :  { %1636 = vmatmul.bf16.gmra.mxu0 %v5370_v16  ;;  %1671 = vmatmul.bf16.gmra.mxu2 %v5372_v17  ;;  %v5612_v7 = vor.u32 %v4745_v0, %v3706_v63  ;;  %v5614_v10 = vor.u32 %v4794_v62, %v3916_v1  ;;  %v4759_v62 = vld [vmem:[%s8428_s0 + $0x9c] sm:$0xf]  ;;  %v3750_v63 = vld [vmem:[%s8428_s0 + $0x58] sm:$0xf]  ;;  %v4591_v1 = vor.u32 %v4964_v61, %v4590_v60  ;;  %v4772_v61 = vld [vmem:[%s8428_s0 + $0x100] sm:$0xf0] }
  0x44   :  { %1710 = vmatmul.bf16.gmra.mxu1 %v5374_v18  ;;  %2210 = vmatpush.bf16.msra.mxu0 %v4735_v57  ;;  %v5685_v57 = vperm.slane %v294_v56, 0  ;;  %v4755_v0 = vld [vmem:[%s8428_s0 + $0x78] sm:$0xf0]  ;;  %v5721_v24 = vor.u32 %v4759_v62, %v3780_v2  ;;  %v4996_v56 = vld [vmem:[%s8427_s1 + $0x454] sm:$0xf0] }
  0x45   :  { %1745 = vmatmul.bf16.gmra.mxu3 %v5376_v19  ;;  %2284 = vmatpush.bf16.msra.mxu1 %v4227_v59  ;;  %8579 = vst [vmem:[#allocation13_spill] sm:$0xff] %v5612_v7  ;;  %v4763_v59 = vld [vmem:[%s8428_s0 + $0xb8] sm:$0xf0]  ;;  %v5719_v22 = vor.u32 %v4755_v0, %v3750_v63  ;;  %v4867_v62 = vld [vmem:[%s8427_s1 + $0x54] sm:$0xf] }
  0x46   :  { %2062 = vmatpush.bf16.msra.mxu2 %v4607_v30  ;;  %2136 = vmatpush.bf16.msra.mxu3 %v4671_v33  ;;  %8580 = vst [vmem:[#allocation14_spill] sm:$0xff] %v5614_v10  ;;  %v4750_v30 = vld [vmem:[%s8428_s0 + $0x54] sm:$0xf]  ;;  %v4727_v33 = vor.u32 %v4998_v29, %v4726_v28  ;;  %v5717_v13 = vor.u32 %v4763_v59, %v3778_v58  ;;  %v4654_v28 = vld [vmem:[%s8427_s1 + $0x3d0] sm:$0xf] }
  0x47   :  { %v5668_v39 = vor.u32 %v4750_v30, %v3744_v34  ;;  %8587 = vst [vmem:[#allocation21_spill] sm:$0xff] %v5719_v22  ;;  %v4980_v29 = vld [vmem:[%s8427_s1 + $0x3d4] sm:$0xf0]  ;;  %v3814_v58 = vld [vmem:[%s8428_s0 + $0xe0] sm:$0xf] }
  0x48   :  { %2211 = vmatpush.bf16.msra.mxu0 %v4727_v33  ;;  %8586 = vst [vmem:[#allocation20_spill] sm:$0xff] %v5717_v13  ;;  %v4655_v30 = vor.u32 %v4980_v29, %v4654_v28  ;;  %v4208_v63 = vld [vmem:[%s8427_s1 + $0x58] sm:$0xf0]  ;;  %v4768_v0 = vld [vmem:[%s8428_s0 + $0xe4] sm:$0xf] }
  0x49   :  { %8584 = vst [vmem:[#allocation18_spill] sm:$0xff] %v5668_v39  ;;  %2285 = vmatpush.bf16.msra.mxu1 %v4219_v51  ;;  %v4718_v51 = vld [vmem:[%s8427_s1 + $0x450] sm:$0xf]  ;;  %v4764_v2 = vld [vmem:[%s8428_s0 + $0xc0] sm:$0xf0] }
  0x4a   :  { %2063 = vmatpush.bf16.msra.mxu2 %v4599_v23  ;;  %2137 = vmatpush.bf16.msra.mxu3 %v4663_v25  ;;  %8588 = vst [vmem:[#allocation22_spill] sm:$0xff] %v5721_v24  ;;  %v5723_v25 = vor.u32 %v4751_v5, %v3752_v12  ;;  %v4719_v59 = vor.u32 %v4996_v56, %v4718_v51  ;;  %v3816_v12 = vld [vmem:[%s8428_s0 + $0x104] sm:$0xf0] }
  0x4b   :  { %v4211_v5 = vor.u32 %v4867_v62, %v4208_v63 }
  0x4c   :  { %8589 = vst [vmem:[#allocation23_spill] sm:$0xff] %v5723_v25  ;;  %2212 = vmatpush.bf16.msra.mxu0 %v4719_v59 }
  0x4d   :  { %2286 = vmatpush.bf16.msra.mxu1 %v4211_v5  ;;  %v4962_v5 = vld [vmem:[%s8427_s1 + $0x344] sm:$0xf0] }
  0x4e   :  { %2064 = vmatpush.bf16.msra.mxu2 %v4591_v1  ;;  %2138 = vmatpush.bf16.msra.mxu3 %v4655_v30  ;;  %v3786_v1 = vld [vmem:[%s8428_s0 + $0xa0] sm:$0xf]  ;;  %v5781_v30 = vor.u32 %v4772_v61, %v3814_v58 }
  0x50   :  { %8590 = vst [vmem:[#allocation24_spill] sm:$0xff] %v5781_v30 }
  0x53   :  { %1641 = vmatmul.bf16.gmra.mxu0 %v5436_v43  ;;  %1676 = vmatmul.bf16.gmra.mxu2 %v5438_v44 }
  0x54   :  { %1715 = vmatmul.bf16.gmra.mxu1 %v5440_v45 }
  0x55   :  { %1750 = vmatmul.bf16.gmra.mxu3 %v5442_v46 }
  0x63   :  { %1646 = vmatmul.bf16.gmra.mxu0 %v5502_v14  ;;  %1681 = vmatmul.bf16.gmra.mxu2 %v5504_v15 }
  0x64   :  { %1720 = vmatmul.bf16.gmra.mxu1 %v5506_v20 }
  0x65   :  { %1755 = vmatmul.bf16.gmra.mxu3 %v5508_v21 }
  0x73   :  { %1651 = vmatmul.bf16.gmra.mxu0 %v5562_v42  ;;  %1686 = vmatmul.bf16.gmra.mxu2 %v5564_v47 }
  0x74   :  { %1725 = vmatmul.bf16.gmra.mxu1 %v5566_v48 }
  0x75   :  { %1760 = vmatmul.bf16.gmra.mxu3 %v5568_v49 }
  0x83   :  { %1656 = vmatmul.bf16.gmra.mxu0 %v5610_v6  ;;  %1774 = vmatmul.bf16.vlgmr.msrb.gmra.mxu2 %v5612_v7 }
  0x84   :  { %1730 = vmatmul.bf16.gmra.mxu1 %v5614_v10 }
  0x85   :  { %1848 = vmatmul.bf16.vlgmr.msrb.gmra.mxu3 %v5616_v11 }
  0x93   :  { %1779 = vmatmul.bf16.gmra.mxu2 %v5664_v37  ;;  %1922 = vmatmul.bf16.vlgmr.msrb.gmra.mxu0 %v5666_v38  ;;  %v4686_v38 = vld [vmem:[%s8427_s1 + $0x410] sm:$0xf] }
  0x94   :  { %1996 = vmatmul.bf16.vlgmr.msrb.gmra.mxu1 %v5670_v40 }
  0x95   :  { %1853 = vmatmul.bf16.gmra.mxu3 %v5668_v39 }
  0xa0   :  { %v1627_v23 = vpop.f32.mrf.mxu0 }
  0xa1   :  { %v1628_v26 = vadd.f32 %v1627_v23, %v5685_v57  ;;  %v1701_v27 = vpop.f32.mrf.mxu1  ;;  %v4760_v23 = vld [vmem:[%s8428_s0 + $0xa4] sm:$0xf] }
  0xa3   :  { %v5732_v31 = vadd.f32 %v1701_v27, %v1628_v26  ;;  %1784 = vmatmul.bf16.gmra.mxu2 %v5717_v13  ;;  %1927 = vmatmul.bf16.gmra.mxu0 %v5719_v22  ;;  %v3788_v26 = vld [vmem:[%s8428_s0 + $0xc4] sm:$0xf0] }
  0xa4   :  { %2001 = vmatmul.bf16.gmra.mxu1 %v5723_v25 }
  0xa5   :  { %1858 = vmatmul.bf16.gmra.mxu3 %v5721_v24 }
  0xa6   :  { %v1662_v32 = vpop.f32.mrf.mxu2 }
  0xa7   :  { %v1663_v33 = vadd.f32 %v1662_v32, %v5685_v57  ;;  %v5783_v32 = vor.u32 %v4764_v2, %v3786_v1  ;;  %v4582_v2 = vld [vmem:[%s8427_s1 + $0x340] sm:$0xf] }
  0xa8   :  { %v1736_v34 = vpop.f32.mrf.mxu3  ;;  %v1629_v35 = vpop.f32.mrf.mxu0 }
  0xa9   :  { %v5739_v36 = vadd.f32 %v1736_v34, %v1663_v33  ;;  %v1630_v41 = vadd.f32 %v1629_v35, %v5685_v57  ;;  %v1703_v50 = vpop.f32.mrf.mxu1  ;;  %8591 = vst [vmem:[#allocation25_spill] sm:$0xff] %v5783_v32  ;;  %v5785_v34 = vor.u32 %v4768_v0, %v3816_v12  ;;  %v5787_v35 = vor.u32 %v4760_v23, %v3788_v26  ;;  %v3850_v12 = vld [vmem:[%s8428_s0 + $0x128] sm:$0xf] }
  0xaa   :  { %v4583_v23 = vor.u32 %v4962_v5, %v4582_v2 }
  0xab   :  { %v5751_v60 = vadd.f32 %v1703_v50, %v1630_v41  ;;  %8592 = vst [vmem:[#allocation26_spill] sm:$0xff] %v5785_v34 }
  0xac   :  { %8593 = vst [vmem:[#allocation27_spill] sm:$0xff] %v5787_v35  ;;  %2065 = vmatpush.bf16.msra.mxu2 %v4583_v23 }
  0xae   :  { %v1664_v27 = vpop.f32.mrf.mxu2 }
  0xaf   :  { %v1665_v28 = vadd.f32 %v1664_v27, %v5685_v57  ;;  %v4781_v27 = vld [vmem:[%s8428_s0 + $0x148] sm:$0xf0] }
  0xb0   :  { %v1738_v29 = vpop.f32.mrf.mxu3  ;;  %v1632_v33 = vpop.f32.mrf.mxu0  ;;  %v5841_v5 = vor.u32 %v4781_v27, %v3850_v12  ;;  %v4710_v12 = vld [vmem:[%s8427_s1 + $0x440] sm:$0xf]  ;;  %v4994_v27 = vld [vmem:[%s8427_s1 + $0x444] sm:$0xf0] }
  0xb1   :  { %v5789_v41 = vadd.f32 %v1738_v29, %v1665_v28  ;;  %v1633_v50 = vadd.f32 %v1632_v33, %v5685_v57  ;;  %v1706_v51 = vpop.f32.mrf.mxu1  ;;  %v4646_v28 = vld [vmem:[%s8427_s1 + $0x3c0] sm:$0xf]  ;;  %v4978_v29 = vld [vmem:[%s8427_s1 + $0x3c4] sm:$0xf0]  ;;  %v4777_v33 = vld [vmem:[%s8428_s0 + $0x12c] sm:$0xf] }
  0xb2   :  { %8594 = vst [vmem:[#allocation28_spill] sm:$0xff] %v5841_v5 }
  0xb3   :  { %v5792_v56 = vadd.f32 %v1706_v51, %v1633_v50  ;;  %1789 = vmatmul.bf16.gmra.mxu2 %v5781_v30  ;;  %1932 = vmatmul.bf16.gmra.mxu0 %v5783_v32  ;;  %v3822_v50 = vld [vmem:[%s8428_s0 + $0xe8] sm:$0xf]  ;;  %v4773_v51 = vld [vmem:[%s8428_s0 + $0x108] sm:$0xf0] }
  0xb4   :  { %2006 = vmatmul.bf16.gmra.mxu1 %v5787_v35  ;;  %v5843_v23 = vor.u32 %v4773_v51, %v3822_v50 }
  0xb5   :  { %1863 = vmatmul.bf16.gmra.mxu3 %v5785_v34 }
  0xb6   :  { %v1667_v58 = vpop.f32.mrf.mxu2  ;;  %8595 = vst [vmem:[#allocation29_spill] sm:$0xff] %v5843_v23 }
  0xb7   :  { %v1668_v59 = vadd.f32 %v1667_v58, %v5685_v57  ;;  %v4647_v58 = vor.u32 %v4978_v29, %v4646_v28 }
  0xb8   :  { %v1741_v61 = vpop.f32.mrf.mxu3  ;;  %v1634_v62 = vpop.f32.mrf.mxu0 }
  0xb9   :  { %v5799_v63 = vadd.f32 %v1741_v61, %v1668_v59  ;;  %v1635_v0 = vadd.f32 %v1634_v62, %v5685_v57  ;;  %v1708_v1 = vpop.f32.mrf.mxu1  ;;  %v3852_v59 = vld [vmem:[%s8428_s0 + $0x14c] sm:$0xf0]  ;;  %v4769_v61 = vld [vmem:[%s8428_s0 + $0xec] sm:$0xf]  ;;  %2139 = vmatpush.bf16.msra.mxu3 %v4647_v58 }
  0xba   :  { %v3824_v62 = vld [vmem:[%s8428_s0 + $0x10c] sm:$0xf0]  ;;  %v5845_v29 = vor.u32 %v4777_v33, %v3852_v59  ;;  %v4711_v33 = vor.u32 %v4994_v27, %v4710_v12  ;;  %v4790_v12 = vld [vmem:[%s8428_s0 + $0x190] sm:$0xf0] }
  0xbb   :  { %v5811_v26 = vadd.f32 %v1708_v1, %v1635_v0  ;;  %v5847_v35 = vor.u32 %v4769_v61, %v3824_v62  ;;  %v4786_v27 = vld [vmem:[%s8428_s0 + $0x174] sm:$0xf] }
  0xbc   :  { %8596 = vst [vmem:[#allocation30_spill] sm:$0xff] %v5845_v29  ;;  %2213 = vmatpush.bf16.msra.mxu0 %v4711_v33  ;;  %v3858_v33 = vld [vmem:[%s8428_s0 + $0x130] sm:$0xf] }
  0xbd   :  { %8597 = vst [vmem:[#allocation31_spill] sm:$0xff] %v5847_v35 }
  0xbe   :  { %v1669_v0 = vpop.f32.mrf.mxu2 }
  0xbf   :  { %v1670_v1 = vadd.f32 %v1669_v0, %v5685_v57 }
  0xc0   :  { %v1743_v2 = vpop.f32.mrf.mxu3  ;;  %v1637_v28 = vpop.f32.mrf.mxu0 }
  0xc1   :  { %v5849_v25 = vadd.f32 %v1743_v2, %v1670_v1  ;;  %v1638_v40 = vadd.f32 %v1637_v28, %v5685_v57  ;;  %v1711_v49 = vpop.f32.mrf.mxu1  ;;  %v3886_v28 = vld [vmem:[%s8428_s0 + $0x170] sm:$0xf] }
  0xc3   :  { %v5852_v21 = vadd.f32 %v1711_v49, %v1638_v40  ;;  %1794 = vmatmul.bf16.gmra.mxu2 %v5841_v5  ;;  %1937 = vmatmul.bf16.gmra.mxu0 %v5843_v23  ;;  %v4865_v49 = vld [vmem:[%s8427_s1 + $0x44] sm:$0xf]  ;;  %v4200_v40 = vld [vmem:[%s8427_s1 + $0x48] sm:$0xf0] }
  0xc4   :  { %2011 = vmatmul.bf16.gmra.mxu1 %v5847_v35  ;;  %v4203_v50 = vor.u32 %v4865_v49, %v4200_v40  ;;  %v4782_v49 = vld [vmem:[%s8428_s0 + $0x150] sm:$0xf0]  ;;  %v3888_v40 = vld [vmem:[%s8428_s0 + $0x194] sm:$0xf0] }
  0xc5   :  { %1868 = vmatmul.bf16.gmra.mxu3 %v5845_v29  ;;  %v5905_v46 = vor.u32 %v4786_v27, %v3888_v40 }
  0xc6   :  { %v1672_v51 = vpop.f32.mrf.mxu2  ;;  %2287 = vmatpush.bf16.msra.mxu1 %v4203_v50  ;;  %v4778_v50 = vld [vmem:[%s8428_s0 + $0x134] sm:$0xf] }
  0xc7   :  { %v1673_v58 = vadd.f32 %v1672_v51, %v5685_v57  ;;  %v3860_v51 = vld [vmem:[%s8428_s0 + $0x154] sm:$0xf0]  ;;  %8600 = vst [vmem:[#allocation34_spill] sm:$0xff] %v5905_v46 }
  0xc8   :  { %v1746_v59 = vpop.f32.mrf.mxu3  ;;  %v1639_v61 = vpop.f32.mrf.mxu0  ;;  %v5907_v19 = vor.u32 %v4778_v50, %v3860_v51 }
  0xc9   :  { %v5871_v62 = vadd.f32 %v1746_v59, %v1673_v58  ;;  %v1640_v0 = vadd.f32 %v1639_v61, %v5685_v57  ;;  %v1713_v1 = vpop.f32.mrf.mxu1 }
  0xca   :  { %8601 = vst [vmem:[#allocation35_spill] sm:$0xff] %v5907_v19 }
  0xcb   :  { %v5874_v2 = vadd.f32 %v1713_v1, %v1640_v0  ;;  %v5901_v0 = vor.u32 %v4790_v12, %v3886_v28  ;;  %v5903_v1 = vor.u32 %v4782_v49, %v3858_v33  ;;  %v4574_v28 = vld [vmem:[%s8427_s1 + $0x330] sm:$0xf]  ;;  %v4960_v12 = vld [vmem:[%s8427_s1 + $0x334] sm:$0xf0] }
  0xcd   :  { %8598 = vst [vmem:[#allocation32_spill] sm:$0xff] %v5901_v0 }
  0xce   :  { %v1674_v58 = vpop.f32.mrf.mxu2  ;;  %8599 = vst [vmem:[#allocation33_spill] sm:$0xff] %v5903_v1 }
  0xcf   :  { %v1675_v59 = vadd.f32 %v1674_v58, %v5685_v57 }
  0xd0   :  { %v1748_v61 = vpop.f32.mrf.mxu3  ;;  %v1642_v35 = vpop.f32.mrf.mxu0 }
  0xd1   :  { %v5909_v55 = vadd.f32 %v1748_v61, %v1675_v59  ;;  %v1643_v9 = vadd.f32 %v1642_v35, %v5685_v57  ;;  %v1716_v10 = vpop.f32.mrf.mxu1  ;;  %v4575_v35 = vor.u32 %v4960_v12, %v4574_v28  ;;  %v3922_v61 = vld [vmem:[%s8428_s0 + $0x1b8] sm:$0xf]  ;;  %v4799_v28 = vld [vmem:[%s8428_s0 + $0x1d8] sm:$0xf0] }
  0xd3   :  { %v5912_v29 = vadd.f32 %v1716_v10, %v1643_v9  ;;  %1799 = vmatmul.bf16.gmra.mxu2 %v5901_v0  ;;  %1942 = vmatmul.bf16.gmra.mxu0 %v5903_v1  ;;  %v4638_v9 = vld [vmem:[%s8427_s1 + $0x3b0] sm:$0xf]  ;;  %v4976_v10 = vld [vmem:[%s8427_s1 + $0x3b4] sm:$0xf0]  ;;  %v5973_v0 = vor.u32 %v4799_v28, %v3922_v61 }
  0xd4   :  { %2016 = vmatmul.bf16.gmra.mxu1 %v5907_v19  ;;  %v4639_v27 = vor.u32 %v4976_v10, %v4638_v9  ;;  %2066 = vmatpush.bf16.msra.mxu2 %v4575_v35  ;;  %v4795_v35 = vld [vmem:[%s8428_s0 + $0x1bc] sm:$0xf]  ;;  %v4702_v9 = vld [vmem:[%s8427_s1 + $0x430] sm:$0xf]  ;;  %v4992_v10 = vld [vmem:[%s8427_s1 + $0x434] sm:$0xf0] }
  0xd5   :  { %1873 = vmatmul.bf16.gmra.mxu3 %v5905_v46  ;;  %v3896_v19 = vld [vmem:[%s8428_s0 + $0x19c] sm:$0xf0]  ;;  %8602 = vst [vmem:[#allocation36_spill] sm:$0xff] %v5973_v0 }
  0xd6   :  { %v1677_v33 = vpop.f32.mrf.mxu2  ;;  %2140 = vmatpush.bf16.msra.mxu3 %v4639_v27  ;;  %v4863_v27 = vld [vmem:[%s8427_s1 + $0x34] sm:$0xf] }
  0xd7   :  { %v1678_v49 = vadd.f32 %v1677_v33, %v5685_v57  ;;  %v3894_v33 = vld [vmem:[%s8428_s0 + $0x178] sm:$0xf] }
  0xd8   :  { %v1751_v40 = vpop.f32.mrf.mxu3  ;;  %v1644_v50 = vpop.f32.mrf.mxu0 }
  0xd9   :  { %v5931_v51 = vadd.f32 %v1751_v40, %v1678_v49  ;;  %v1645_v58 = vadd.f32 %v1644_v50, %v5685_v57  ;;  %v1718_v59 = vpop.f32.mrf.mxu1  ;;  %v4791_v49 = vld [vmem:[%s8428_s0 + $0x198] sm:$0xf0]  ;;  %v4703_v40 = vor.u32 %v4992_v10, %v4702_v9 }
  0xda   :  { %v4192_v50 = vld [vmem:[%s8427_s1 + $0x38] sm:$0xf0]  ;;  %v5975_v48 = vor.u32 %v4791_v49, %v3894_v33  ;;  %v4808_v33 = vld [vmem:[%s8428_s0 + $0x220] sm:$0xf0] }
  0xdb   :  { %v5940_v12 = vadd.f32 %v1718_v59, %v1645_v58  ;;  %v3924_v58 = vld [vmem:[%s8428_s0 + $0x1dc] sm:$0xf0]  ;;  %v4787_v59 = vld [vmem:[%s8428_s0 + $0x17c] sm:$0xf]  ;;  %v4195_v46 = vor.u32 %v4863_v27, %v4192_v50  ;;  %2214 = vmatpush.bf16.msra.mxu0 %v4703_v40  ;;  %v4804_v40 = vld [vmem:[%s8428_s0 + $0x204] sm:$0xf] }
  0xdc   :  { %8603 = vst [vmem:[#allocation37_spill] sm:$0xff] %v5975_v48  ;;  %v5977_v5 = vor.u32 %v4795_v35, %v3924_v58  ;;  %v5979_v34 = vor.u32 %v4787_v59, %v3896_v19  ;;  %v4566_v58 = vld [vmem:[%s8427_s1 + $0x320] sm:$0xf]  ;;  %v4958_v59 = vld [vmem:[%s8427_s1 + $0x324] sm:$0xf0] }
  0xdd   :  { %2288 = vmatpush.bf16.msra.mxu1 %v4195_v46 }
  0xde   :  { %v1679_v1 = vpop.f32.mrf.mxu2  ;;  %8604 = vst [vmem:[#allocation38_spill] sm:$0xff] %v5977_v5 }
  0xdf   :  { %v1680_v9 = vadd.f32 %v1679_v1, %v5685_v57  ;;  %8605 = vst [vmem:[#allocation39_spill] sm:$0xff] %v5979_v34 }
  0xe0   :  { %v1753_v10 = vpop.f32.mrf.mxu3  ;;  %v1647_v23 = vpop.f32.mrf.mxu0 }
  0xe1   :  { %v5981_v20 = vadd.f32 %v1753_v10, %v1680_v9  ;;  %v1648_v32 = vadd.f32 %v1647_v23, %v5685_v57  ;;  %v1721_v27 = vpop.f32.mrf.mxu1  ;;  %v4630_v9 = vld [vmem:[%s8427_s1 + $0x3a0] sm:$0xf] }
  0xe2   :  { %v3930_v10 = vld [vmem:[%s8428_s0 + $0x1c0] sm:$0xf] }
  0xe3   :  { %v5984_v50 = vadd.f32 %v1721_v27, %v1648_v32  ;;  %1804 = vmatmul.bf16.gmra.mxu2 %v5973_v0  ;;  %1947 = vmatmul.bf16.gmra.mxu0 %v5975_v48  ;;  %v3958_v32 = vld [vmem:[%s8428_s0 + $0x200] sm:$0xf]  ;;  %v4800_v27 = vld [vmem:[%s8428_s0 + $0x1e0] sm:$0xf0] }
  0xe4   :  { %2021 = vmatmul.bf16.gmra.mxu1 %v5979_v34  ;;  %v6035_v48 = vor.u32 %v4800_v27, %v3930_v10 }
  0xe5   :  { %1878 = vmatmul.bf16.gmra.mxu3 %v5977_v5  ;;  %v6033_v5 = vor.u32 %v4808_v33, %v3958_v32  ;;  %v4990_v32 = vld [vmem:[%s8427_s1 + $0x424] sm:$0xf0] }
  0xe6   :  { %v1682_v46 = vpop.f32.mrf.mxu2  ;;  %8607 = vst [vmem:[#allocation41_spill] sm:$0xff] %v6035_v48 }
  0xe7   :  { %v1683_v1 = vadd.f32 %v1682_v46, %v5685_v57  ;;  %v4567_v46 = vor.u32 %v4958_v59, %v4566_v58  ;;  %8606 = vst [vmem:[#allocation40_spill] sm:$0xff] %v6033_v5 }
  0xe8   :  { %v1756_v19 = vpop.f32.mrf.mxu3  ;;  %v1649_v61 = vpop.f32.mrf.mxu0 }
  0xe9   :  { %v5991_v28 = vadd.f32 %v1756_v19, %v1683_v1  ;;  %v1650_v23 = vadd.f32 %v1649_v61, %v5685_v57  ;;  %v1723_v35 = vpop.f32.mrf.mxu1  ;;  %v4974_v1 = vld [vmem:[%s8427_s1 + $0x3a4] sm:$0xf0]  ;;  %v4796_v61 = vld [vmem:[%s8428_s0 + $0x1c4] sm:$0xf]  ;;  %2067 = vmatpush.bf16.msra.mxu2 %v4567_v46 }
  0xea   :  { %v3960_v19 = vld [vmem:[%s8428_s0 + $0x224] sm:$0xf0] }
  0xeb   :  { %v6000_v49 = vadd.f32 %v1723_v35, %v1650_v23  ;;  %v3932_v23 = vld [vmem:[%s8428_s0 + $0x1e4] sm:$0xf0]  ;;  %v4631_v35 = vor.u32 %v4974_v1, %v4630_v9  ;;  %v6037_v30 = vor.u32 %v4804_v40, %v3960_v19 }
  0xec   :  { %v6039_v24 = vor.u32 %v4796_v61, %v3932_v23  ;;  %v4861_v61 = vld [vmem:[%s8427_s1 + $0x24] sm:$0xf]  ;;  %v4184_v23 = vld [vmem:[%s8427_s1 + $0x28] sm:$0xf0] }
  0xed   :  { %2141 = vmatpush.bf16.msra.mxu3 %v4631_v35  ;;  %8608 = vst [vmem:[#allocation42_spill] sm:$0xff] %v6037_v30  ;;  %v4187_v35 = vor.u32 %v4861_v61, %v4184_v23 }
  0xee   :  { %v1684_v34 = vpop.f32.mrf.mxu2  ;;  %8609 = vst [vmem:[#allocation43_spill] sm:$0xff] %v6039_v24 }
  0xef   :  { %v1685_v58 = vadd.f32 %v1684_v34, %v5685_v57  ;;  %v4694_v34 = vld [vmem:[%s8427_s1 + $0x420] sm:$0xf]  ;;  %2289 = vmatpush.bf16.msra.mxu1 %v4187_v35 }
  0xf0   :  { %v1758_v59 = vpop.f32.mrf.mxu3  ;;  %v1652_v0 = vpop.f32.mrf.mxu0 }
  0xf1   :  { %v6041_v45 = vadd.f32 %v1758_v59, %v1685_v58  ;;  %v1653_v22 = vadd.f32 %v1652_v0, %v5685_v57  ;;  %v1726_v9 = vpop.f32.mrf.mxu1  ;;  %v4695_v0 = vor.u32 %v4990_v32, %v4694_v34  ;;  %v3994_v59 = vld [vmem:[%s8428_s0 + $0x248] sm:$0xf]  ;;  %v4813_v34 = vld [vmem:[%s8428_s0 + $0x24c] sm:$0xf] }
  0xf2   :  { %v3966_v32 = vld [vmem:[%s8428_s0 + $0x208] sm:$0xf] }
  0xf3   :  { %v6044_v1 = vadd.f32 %v1726_v9, %v1653_v22  ;;  %1809 = vmatmul.bf16.gmra.mxu2 %v6033_v5  ;;  %1952 = vmatmul.bf16.gmra.mxu0 %v6035_v48  ;;  %v4817_v9 = vld [vmem:[%s8428_s0 + $0x268] sm:$0xf0] }
  0xf4   :  { %2026 = vmatmul.bf16.gmra.mxu1 %v6039_v24  ;;  %2215 = vmatpush.bf16.msra.mxu0 %v4695_v0  ;;  %v4809_v0 = vld [vmem:[%s8428_s0 + $0x228] sm:$0xf0]  ;;  %v6093_v61 = vor.u32 %v4817_v9, %v3994_v59  ;;  %v4558_v59 = vld [vmem:[%s8427_s1 + $0x310] sm:$0xf]  ;;  %v4956_v9 = vld [vmem:[%s8427_s1 + $0x314] sm:$0xf0] }
  0xf5   :  { %1883 = vmatmul.bf16.gmra.mxu3 %v6037_v30  ;;  %v6095_v23 = vor.u32 %v4809_v0, %v3966_v32 }
  0xf6   :  { %v1687_v33 = vpop.f32.mrf.mxu2  ;;  %8610 = vst [vmem:[#allocation44_spill] sm:$0xff] %v6093_v61 }
  0xf7   :  { %v1688_v22 = vadd.f32 %v1687_v33, %v5685_v57  ;;  %v3996_v33 = vld [vmem:[%s8428_s0 + $0x26c] sm:$0xf0]  ;;  %8611 = vst [vmem:[#allocation45_spill] sm:$0xff] %v6095_v23 }
  0xf8   :  { %v1761_v40 = vpop.f32.mrf.mxu3  ;;  %v1654_v10 = vpop.f32.mrf.mxu0  ;;  %v6097_v24 = vor.u32 %v4813_v34, %v3996_v33  ;;  %v4559_v34 = vor.u32 %v4956_v9, %v4558_v59  ;;  %v4822_v59 = vld [vmem:[%s8428_s0 + $0x294] sm:$0xf]  ;;  %v4002_v9 = vld [vmem:[%s8428_s0 + $0x250] sm:$0xf] }
  0xf9   :  { %v6057_v27 = vadd.f32 %v1761_v40, %v1688_v22  ;;  %v1655_v46 = vadd.f32 %v1654_v10, %v5685_v57  ;;  %v1728_v19 = vpop.f32.mrf.mxu1  ;;  %v4805_v22 = vld [vmem:[%s8428_s0 + $0x20c] sm:$0xf]  ;;  %v3968_v40 = vld [vmem:[%s8428_s0 + $0x22c] sm:$0xf0] }
  0xfa   :  { %8612 = vst [vmem:[#allocation46_spill] sm:$0xff] %v6097_v24  ;;  %v6099_v30 = vor.u32 %v4805_v22, %v3968_v40  ;;  %2068 = vmatpush.bf16.msra.mxu2 %v4559_v34  ;;  %v4818_v34 = vld [vmem:[%s8428_s0 + $0x270] sm:$0xf0] }
  0xfb   :  { %v6066_v58 = vadd.f32 %v1728_v19, %v1655_v46 }
  0xfc   :  { %8613 = vst [vmem:[#allocation47_spill] sm:$0xff] %v6099_v30 }
  0xfe   :  { %v1689_v10 = vpop.f32.mrf.mxu2 }
  0xff   :  { %v1690_v46 = vadd.f32 %v1689_v10, %v5685_v57  ;;  %v4622_v10 = vld [vmem:[%s8427_s1 + $0x390] sm:$0xf] }
 0x100   :  { %v1763_v19 = vpop.f32.mrf.mxu3  ;;  %v1657_v35 = vpop.f32.mrf.mxu0 }
 0x101   :  { %v6101_v48 = vadd.f32 %v1763_v19, %v1690_v46  ;;  %v1658_v5 = vadd.f32 %v1657_v35, %v5685_v57  ;;  %v1731_v13 = vpop.f32.mrf.mxu1  ;;  %v4972_v46 = vld [vmem:[%s8427_s1 + $0x394] sm:$0xf0] }
 0x102   :  { %v4623_v19 = vor.u32 %v4972_v46, %v4622_v10  ;;  %v6153_v46 = vor.u32 %v4818_v34, %v4002_v9 }
 0x103   :  { %v6104_v39 = vadd.f32 %v1731_v13, %v1658_v5  ;;  %1814 = vmatmul.bf16.gmra.mxu2 %v6093_v61  ;;  %1957 = vmatmul.bf16.gmra.mxu0 %v6095_v23 }
 0x104   :  { %2031 = vmatmul.bf16.gmra.mxu1 %v6099_v30  ;;  %2142 = vmatpush.bf16.msra.mxu3 %v4623_v19  ;;  %8615 = vst [vmem:[#allocation49_spill] sm:$0xff] %v6153_v46 }
 0x105   :  { %1888 = vmatmul.bf16.gmra.mxu3 %v6097_v24 }
 0x106   :  { %v1775_v32 = vpop.f32.mrf.mxu2 }
 0x107   :  { %v1776_v13 = vadd.f32 %v1775_v32, %v5732_v31  ;;  %v4030_v31 = vld [vmem:[%s8428_s0 + $0x290] sm:$0xf]  ;;  %v4032_v32 = vld [vmem:[%s8428_s0 + $0x2b4] sm:$0xf0] }
 0x108   :  { %v1849_v5 = vpop.f32.mrf.mxu3  ;;  %v1659_v0 = vpop.f32.mrf.mxu0  ;;  %v6155_v30 = vor.u32 %v4822_v59, %v4032_v32  ;;  %v4176_v59 = vld [vmem:[%s8427_s1 + $0x18] sm:$0xf0] }
 0x109   :  { %v1850_v33 = vadd.f32 %v1849_v5, %v1776_v13  ;;  %v1660_v22 = vadd.f32 %v1659_v0, %v5685_v57  ;;  %v1733_v40 = vpop.f32.mrf.mxu1  ;;  %v4826_v57 = vld [vmem:[%s8428_s0 + $0x2b0] sm:$0xf0]  ;;  %v4004_v5 = vld [vmem:[%s8428_s0 + $0x274] sm:$0xf0] }
 0x10a   :  { %v4814_v13 = vld [vmem:[%s8428_s0 + $0x254] sm:$0xf]  ;;  %v6151_v10 = vor.u32 %v4826_v57, %v4030_v31  ;;  %8616 = vst [vmem:[#allocation50_spill] sm:$0xff] %v6155_v30 }
 0x10b   :  { %v6124_v35 = vadd.f32 %v1733_v40, %v1660_v22  ;;  %v6157_v24 = vor.u32 %v4814_v13, %v4004_v5 }
 0x10c   :  { %8614 = vst [vmem:[#allocation48_spill] sm:$0xff] %v6151_v10 }
 0x10d   :  { %8617 = vst [vmem:[#allocation51_spill] sm:$0xff] %v6157_v24 }
 0x10e   :  { %v1777_v0 = vpop.f32.mrf.mxu2 }
 0x10f   :  { %v1778_v22 = vadd.f32 %v1777_v0, %v5751_v60  ;;  %v4988_v60 = vld [vmem:[%s8427_s1 + $0x414] sm:$0xf0] }
 0x110   :  { %v1851_v40 = vpop.f32.mrf.mxu3  ;;  %v1923_v19 = vpop.f32.mrf.mxu0  ;;  %v4687_v31 = vor.u32 %v4988_v60, %v4686_v38  ;;  %v4068_v60 = vld [vmem:[%s8428_s0 + $0x2fc] sm:$0xf0] }
 0x111   :  { %v1852_v23 = vadd.f32 %v1851_v40, %v1778_v22  ;;  %v1924_v61 = vadd.f32 %v1923_v19, %v1850_v33  ;;  %v1997_v18 = vpop.f32.mrf.mxu1  ;;  %v4859_v33 = vld [vmem:[%s8427_s1 + $0x14] sm:$0xf]  ;;  %v4066_v22 = vld [vmem:[%s8428_s0 + $0x2d8] sm:$0xf]  ;;  %v4835_v40 = vld [vmem:[%s8428_s0 + $0x2f8] sm:$0xf0] }
 0x112   :  { %v4179_v9 = vor.u32 %v4859_v33, %v4176_v59  ;;  %2216 = vmatpush.bf16.msra.mxu0 %v4687_v31  ;;  %v4831_v19 = vld [vmem:[%s8428_s0 + $0x2dc] sm:$0xf]  ;;  %v4040_v33 = vld [vmem:[%s8428_s0 + $0x2bc] sm:$0xf0] }
 0x113   :  { %v6165_v57 = vadd.f32 %v1997_v18, %v1924_v61  ;;  %1819 = vmatmul.bf16.gmra.mxu2 %v6151_v10  ;;  %1962 = vmatmul.bf16.gmra.mxu0 %v6153_v46  ;;  %v4823_v31 = vld [vmem:[%s8428_s0 + $0x29c] sm:$0xf]  ;;  %v4550_v10 = vld [vmem:[%s8427_s1 + $0x300] sm:$0xf] }
 0x114   :  { %2036 = vmatmul.bf16.gmra.mxu1 %v6157_v24 }
 0x115   :  { %1893 = vmatmul.bf16.gmra.mxu3 %v6155_v30  ;;  %2290 = vmatpush.bf16.msra.mxu1 %v4179_v9 }
 0x116   :  { %v1780_v18 = vpop.f32.mrf.mxu2 }
 0x117   :  { %v1781_v38 = vadd.f32 %v1780_v18, %v5792_v56  ;;  %v4038_v56 = vld [vmem:[%s8428_s0 + $0x298] sm:$0xf] }
 0x118   :  { %v1854_v61 = vpop.f32.mrf.mxu3  ;;  %v1925_v34 = vpop.f32.mrf.mxu0 }
 0x119   :  { %v1855_v32 = vadd.f32 %v1854_v61, %v1781_v38  ;;  %v1926_v13 = vadd.f32 %v1925_v34, %v1852_v23  ;;  %v1999_v5 = vpop.f32.mrf.mxu1  ;;  %v4827_v23 = vld [vmem:[%s8428_s0 + $0x2b8] sm:$0xf0]  ;;  %v6205_v38 = vor.u32 %v4835_v40, %v4066_v22 }
 0x11a   :  { %v6207_v61 = vor.u32 %v4827_v23, %v4038_v56 }
 0x11b   :  { %v6178_v0 = vadd.f32 %v1999_v5, %v1926_v13  ;;  %8618 = vst [vmem:[#allocation52_spill] sm:$0xff] %v6205_v38  ;;  %v6209_v13 = vor.u32 %v4831_v19, %v4068_v60  ;;  %v6211_v5 = vor.u32 %v4823_v31, %v4040_v33  ;;  %v4970_v19 = vld [vmem:[%s8427_s1 + $0x384] sm:$0xf0] }
 0x11c   :  { %8619 = vst [vmem:[#allocation53_spill] sm:$0xff] %v6207_v61 }
 0x11d   :  { %8620 = vst [vmem:[#allocation54_spill] sm:$0xff] %v6209_v13 }
 0x11e   :  { %v1782_v59 = vpop.f32.mrf.mxu2  ;;  %8621 = vst [vmem:[#allocation55_spill] sm:$0xff] %v6211_v5 }
 0x11f   :  { %v1783_v9 = vadd.f32 %v1782_v59, %v5811_v26  ;;  %v4954_v26 = vld [vmem:[%s8427_s1 + $0x304] sm:$0xf0]  ;;  %v4102_v59 = vld [vmem:[%s8428_s0 + $0x320] sm:$0xf] }
 0x120   :  { %v1856_v18 = vpop.f32.mrf.mxu3  ;;  %v1928_v34 = vpop.f32.mrf.mxu0  ;;  %v4551_v22 = vor.u32 %v4954_v26, %v4550_v10  ;;  %v4857_v26 = vld [vmem:[%s8427_s1 + $0x4] sm:$0xf] }
 0x121   :  { %v1857_v24 = vadd.f32 %v1856_v18, %v1783_v9  ;;  %v1929_v30 = vadd.f32 %v1928_v34, %v1855_v32  ;;  %v2002_v46 = vpop.f32.mrf.mxu1  ;;  %v4614_v32 = vld [vmem:[%s8427_s1 + $0x380] sm:$0xf]  ;;  %v4844_v9 = vld [vmem:[%s8428_s0 + $0x340] sm:$0xf0] }
 0x122   :  { %v4615_v56 = vor.u32 %v4970_v19, %v4614_v32  ;;  %2069 = vmatpush.bf16.msra.mxu2 %v4551_v22  ;;  %v4840_v34 = vld [vmem:[%s8428_s0 + $0x324] sm:$0xf]  ;;  %v4074_v22 = vld [vmem:[%s8428_s0 + $0x2e0] sm:$0xf] }
 0x123   :  { %v6219_v40 = vadd.f32 %v2002_v46, %v1929_v30  ;;  %1824 = vmatmul.bf16.gmra.mxu2 %v6205_v38  ;;  %1967 = vmatmul.bf16.gmra.mxu0 %v6207_v61  ;;  %v4836_v32 = vld [vmem:[%s8428_s0 + $0x300] sm:$0xf0] }
 0x124   :  { %2041 = vmatmul.bf16.gmra.mxu1 %v6211_v5  ;;  %2143 = vmatpush.bf16.msra.mxu3 %v4615_v56  ;;  %v4168_v56 = vld [vmem:[%s8427_s1 + $0x8] sm:$0xf0]  ;;  %v6273_v5 = vor.u32 %v4836_v32, %v4074_v22 }
 0x125   :  { %1898 = vmatmul.bf16.gmra.mxu3 %v6209_v13 }
 0x126   :  { %v1785_v30 = vpop.f32.mrf.mxu2  ;;  %8623 = vst [vmem:[#allocation57_spill] sm:$0xff] %v6273_v5 }
 0x127   :  { %v1786_v10 = vadd.f32 %v1785_v30, %v5852_v21  ;;  %v4678_v21 = vld [vmem:[%s8427_s1 + $0x400] sm:$0xf]  ;;  %v4104_v30 = vld [vmem:[%s8428_s0 + $0x344] sm:$0xf0] }
 0x128   :  { %v1859_v46 = vpop.f32.mrf.mxu3  ;;  %v1930_v23 = vpop.f32.mrf.mxu0  ;;  %v6275_v61 = vor.u32 %v4840_v34, %v4104_v30  ;;  %v4845_v30 = vld [vmem:[%s8428_s0 + $0x348] sm:$0xf0] }
 0x129   :  { %v1860_v60 = vadd.f32 %v1859_v46, %v1786_v10  ;;  %v1931_v31 = vadd.f32 %v1930_v23, %v1857_v24  ;;  %v2004_v33 = vpop.f32.mrf.mxu1  ;;  %v4986_v24 = vld [vmem:[%s8427_s1 + $0x404] sm:$0xf0]  ;;  %v4832_v10 = vld [vmem:[%s8428_s0 + $0x2e4] sm:$0xf]  ;;  %v4171_v23 = vor.u32 %v4857_v26, %v4168_v56 }
 0x12a   :  { %v4679_v19 = vor.u32 %v4986_v24, %v4678_v21  ;;  %v4076_v46 = vld [vmem:[%s8428_s0 + $0x304] sm:$0xf0]  ;;  %v6271_v24 = vor.u32 %v4844_v9, %v4102_v59  ;;  %8624 = vst [vmem:[#allocation58_spill] sm:$0xff] %v6275_v61 }
 0x12b   :  { %v6238_v18 = vadd.f32 %v2004_v33, %v1931_v31  ;;  %2291 = vmatpush.bf16.msra.mxu1 %v4171_v23  ;;  %v6277_v38 = vor.u32 %v4832_v10, %v4076_v46  ;;  %v4110_v56 = vld [vmem:[%s8428_s0 + $0x328] sm:$0xf]  ;;  %v4352_v46 = vld [vmem:[%s8427_s1 + $0x178] sm:$0xf0]  ;;  %v4140_v23 = vld [vmem:[%s8428_s0 + $0x38c] sm:$0xf0] }
 0x12c   :  { %2217 = vmatpush.bf16.msra.mxu0 %v4679_v19  ;;  %8622 = vst [vmem:[#allocation56_spill] sm:$0xff] %v6271_v24  ;;  %v4903_v19 = vld [vmem:[%s8427_s1 + $0x174] sm:$0xf] }
 0x12d   :  { %8625 = vst [vmem:[#allocation59_spill] sm:$0xff] %v6277_v38 }
 0x12e   :  { %v1787_v31 = vpop.f32.mrf.mxu2 }
 0x12f   :  { %v1788_v33 = vadd.f32 %v1787_v31, %v5874_v2  ;;  %v4841_v31 = vld [vmem:[%s8428_s0 + $0x32c] sm:$0xf] }
 0x130   :  { %v1861_v21 = vpop.f32.mrf.mxu3  ;;  %v1933_v13 = vpop.f32.mrf.mxu0 }
 0x131   :  { %v1862_v37 = vadd.f32 %v1861_v21, %v1788_v33  ;;  %v1934_v11 = vadd.f32 %v1933_v13, %v1860_v60  ;;  %v2007_v54 = vpop.f32.mrf.mxu1  ;;  %v4849_v60 = vld [vmem:[%s8428_s0 + $0x36c] sm:$0xf]  ;;  %v4112_v33 = vld [vmem:[%s8428_s0 + $0x34c] sm:$0xf0]  ;;  %v4355_v21 = vor.u32 %v4903_v19, %v4352_v46 }
 0x133   :  { %v6279_v7 = vadd.f32 %v2007_v54, %v1934_v11  ;;  %1829 = vmatmul.bf16.gmra.mxu2 %v6271_v24  ;;  %1972 = vmatmul.bf16.gmra.mxu0 %v6273_v5  ;;  %v4138_v54 = vld [vmem:[%s8428_s0 + $0x368] sm:$0xf]  ;;  %v4853_v11 = vld [vmem:[%s8428_s0 + $0x388] sm:$0xf0] }
 0x134   :  { %2046 = vmatmul.bf16.gmra.mxu1 %v6277_v38  ;;  %2432 = vmatpush.bf16.msrb.mxu3 %v4355_v21  ;;  %v4854_v21 = vld [vmem:[%s8428_s0 + $0x390] sm:$0xf0] }
 0x135   :  { %1903 = vmatmul.bf16.gmra.mxu3 %v6275_v61 }
 0x136   :  { %v1790_v2 = vpop.f32.mrf.mxu2 }
 0x137   :  { %v1791_v59 = vadd.f32 %v1790_v2, %v5912_v29  ;;  %v4887_v29 = vld [vmem:[%s8427_s1 + $0xf4] sm:$0xf] }
 0x138   :  { %v1864_v9 = vpop.f32.mrf.mxu3  ;;  %v1935_v34 = vpop.f32.mrf.mxu0 }
 0x139   :  { %v1865_v26 = vadd.f32 %v1864_v9, %v1791_v59  ;;  %v1936_v22 = vadd.f32 %v1935_v34, %v1862_v37  ;;  %v2009_v32 = vpop.f32.mrf.mxu1  ;;  %v4288_v37 = vld [vmem:[%s8427_s1 + $0xf8] sm:$0xf0]  ;;  %v6325_v34 = vor.u32 %v4853_v11, %v4138_v54 }
 0x13a   :  { %v4291_v10 = vor.u32 %v4887_v29, %v4288_v37  ;;  %v6329_v29 = vor.u32 %v4849_v60, %v4140_v23  ;;  %v6331_v37 = vor.u32 %v4841_v31, %v4112_v33  ;;  %v4416_v54 = vld [vmem:[%s8427_s1 + $0x1f8] sm:$0xf0]  ;;  %v4146_v33 = vld [vmem:[%s8428_s0 + $0x370] sm:$0xf] }
 0x13b   :  { %v6292_v13 = vadd.f32 %v2009_v32, %v1936_v22  ;;  %v6327_v22 = vor.u32 %v4845_v30, %v4110_v56 }
 0x13c   :  { %2358 = vmatpush.bf16.msrb.mxu2 %v4291_v10  ;;  %8626 = vst [vmem:[#allocation60_spill] sm:$0xff] %v6331_v37 }
 0x13e   :  { %v1792_v2 = vpop.f32.mrf.mxu2 }
 0x13f   :  { %v1793_v59 = vadd.f32 %v1792_v2, %v5940_v12  ;;  %v4919_v12 = vld [vmem:[%s8427_s1 + $0x1f4] sm:$0xf]  ;;  %v3722_v2 = vld [vmem:[%s8428_s0 + $0x18] sm:$0xf] }
 0x140   :  { %v1866_v9 = vpop.f32.mrf.mxu3  ;;  %v1938_v32 = vpop.f32.mrf.mxu0 }
 0x141   :  { %v1867_v38 = vadd.f32 %v1866_v9, %v1793_v59  ;;  %v1939_v61 = vadd.f32 %v1938_v32, %v1865_v26  ;;  %v2012_v5 = vpop.f32.mrf.mxu1  ;;  %v4480_v26 = vld [vmem:[%s8427_s1 + $0x278] sm:$0xf0]  ;;  %v4148_v59 = vld [vmem:[%s8428_s0 + $0x394] sm:$0xf0]  ;;  %v3724_v32 = vld [vmem:[%s8428_s0 + $0x3c] sm:$0xf0] }
 0x142   :  { %v4743_v9 = vld [vmem:[%s8428_s0 + $0x1c] sm:$0xf] }
 0x143   :  { %v6333_v24 = vadd.f32 %v2012_v5, %v1939_v61  ;;  %1834 = vmatmul.bf16.gmra.mxu2 %v6325_v34  ;;  %1977 = vmatmul.bf16.gmra.mxu0 %v6327_v22  ;;  %v4935_v61 = vld [vmem:[%s8427_s1 + $0x274] sm:$0xf]  ;;  %v4419_v5 = vor.u32 %v4919_v12, %v4416_v54 }
 0x144   :  { %2051 = vmatmul.bf16.gmra.mxu1 %v6331_v37  ;;  %v4483_v60 = vor.u32 %v4935_v61, %v4480_v26  ;;  %v4933_v37 = vld [vmem:[%s8427_s1 + $0x264] sm:$0xf] }
 0x145   :  { %1908 = vmatmul.bf16.gmra.mxu3 %v6329_v29  ;;  %2506 = vmatpush.bf16.msrb.mxu0 %v4419_v5  ;;  %v6379_v5 = vor.u32 %v4854_v21, %v4146_v33  ;;  %v4280_v33 = vld [vmem:[%s8427_s1 + $0xe8] sm:$0xf0] }
 0x146   :  { %v1795_v11 = vpop.f32.mrf.mxu2  ;;  %2580 = vmatpush.bf16.msrb.mxu1 %v4483_v60 }
 0x147   :  { %v1796_v19 = vadd.f32 %v1795_v11, %v5984_v50  ;;  %v4850_v50 = vld [vmem:[%s8428_s0 + $0x374] sm:$0xf] }
 0x148   :  { %v1869_v56 = vpop.f32.mrf.mxu3  ;;  %v1940_v30 = vpop.f32.mrf.mxu0  ;;  %v6383_v60 = vor.u32 %v4850_v50, %v4148_v59  ;;  %v4344_v50 = vld [vmem:[%s8427_s1 + $0x168] sm:$0xf0] }
 0x149   :  { %v1870_v10 = vadd.f32 %v1869_v56, %v1796_v19  ;;  %v1941_v46 = vadd.f32 %v1940_v30, %v1867_v38  ;;  %v2014_v23 = vpop.f32.mrf.mxu1  ;;  %v4747_v38 = vld [vmem:[%s8428_s0 + $0x38] sm:$0xf0]  ;;  %v6385_v19 = vor.u32 %v4743_v9, %v3724_v32 }
 0x14a   :  { %v6381_v26 = vor.u32 %v4747_v38, %v3722_v2  ;;  %8627 = vst [vmem:[#allocation61_spill] sm:$0xff] %v6383_v60 }
 0x14b   :  { %v6352_v31 = vadd.f32 %v2014_v23, %v1941_v46  ;;  %8628 = vst [vmem:[#allocation62_spill] sm:$0xff] %v6385_v19 }
 0x14e   :  { %v1797_v12 = vpop.f32.mrf.mxu2 }
 0x14f   :  { %v1798_v54 = vadd.f32 %v1797_v12, %v6000_v49  ;;  %v4885_v49 = vld [vmem:[%s8427_s1 + $0xe4] sm:$0xf] }
 0x150   :  { %v1871_v61 = vpop.f32.mrf.mxu3  ;;  %v1943_v11 = vpop.f32.mrf.mxu0  ;;  %v4283_v21 = vor.u32 %v4885_v49, %v4280_v33  ;;  %v4756_v49 = vld [vmem:[%s8428_s0 + $0x80] sm:$0xf0] }
 0x151   :  { %v1872_v56 = vadd.f32 %v1871_v61, %v1798_v54  ;;  %v1944_v30 = vadd.f32 %v1943_v11, %v1870_v10  ;;  %v2017_v46 = vpop.f32.mrf.mxu1  ;;  %v4901_v10 = vld [vmem:[%s8427_s1 + $0x164] sm:$0xf] }
 0x152   :  { %v4347_v38 = vor.u32 %v4901_v10, %v4344_v50  ;;  %2359 = vmatpush.bf16.msrb.mxu2 %v4283_v21  ;;  %v4748_v33 = vld [vmem:[%s8428_s0 + $0x40] sm:$0xf0]  ;;  %v3760_v50 = vld [vmem:[%s8428_s0 + $0x84] sm:$0xf0] }
 0x153   :  { %v6387_v23 = vadd.f32 %v2017_v46, %v1944_v30  ;;  %1982 = vmatmul.bf16.gmra.mxu0 %v6379_v5  ;;  %2070 = vmatmul.bf16.vlgmr.msra.gmra.mxu2 %v6381_v26  ;;  %v3758_v30 = vld [vmem:[%s8428_s0 + $0x60] sm:$0xf]  ;;  %v4917_v46 = vld [vmem:[%s8427_s1 + $0x1e4] sm:$0xf] }
 0x154   :  { %2056 = vmatmul.bf16.gmra.mxu1 %v6383_v60  ;;  %2433 = vmatpush.bf16.msrb.mxu3 %v4347_v38  ;;  %v4752_v21 = vld [vmem:[%s8428_s0 + $0x64] sm:$0xf] }
 0x155   :  { %2144 = vmatmul.bf16.vlgmr.msra.gmra.mxu3 %v6385_v19 }
 0x156   :  { %v1800_v2 = vpop.f32.mrf.mxu2 }
 0x157   :  { %v1801_v59 = vadd.f32 %v1800_v2, %v6044_v1  ;;  %v4408_v1 = vld [vmem:[%s8427_s1 + $0x1e8] sm:$0xf0] }
 0x158   :  { %v1874_v9 = vpop.f32.mrf.mxu3  ;;  %v1945_v32 = vpop.f32.mrf.mxu0  ;;  %v4411_v10 = vor.u32 %v4917_v46, %v4408_v1 }
 0x159   :  { %v1875_v12 = vadd.f32 %v1874_v9, %v1801_v59  ;;  %v1946_v54 = vadd.f32 %v1945_v32, %v1872_v56  ;;  %v2019_v61 = vpop.f32.mrf.mxu1  ;;  %v3730_v56 = vld [vmem:[%s8428_s0 + $0x20] sm:$0xf]  ;;  %v6433_v9 = vor.u32 %v4756_v49, %v3758_v30 }
 0x15a   :  { %2507 = vmatpush.bf16.msrb.mxu0 %v4411_v10  ;;  %v6435_v32 = vor.u32 %v4748_v33, %v3730_v56  ;;  %v4472_v10 = vld [vmem:[%s8427_s1 + $0x268] sm:$0xf0] }
 0x15b   :  { %v6406_v11 = vadd.f32 %v2019_v61, %v1946_v54  ;;  %8629 = vst [vmem:[#allocation63_spill] sm:$0xff] %v6433_v9  ;;  %v6437_v61 = vor.u32 %v4752_v21, %v3760_v50 }
 0x15c   :  { %8630 = vst [vmem:[#allocation64_spill] sm:$0xff] %v6435_v32 }
 0x15d   :  { %8631 = vst [vmem:[#allocation65_spill] sm:$0xff] %v6437_v61 }
 0x15e   :  { %v1802_v2 = vpop.f32.mrf.mxu2 }
 0x15f   :  { %v1803_v38 = vadd.f32 %v1802_v2, %v6066_v58  ;;  %v4475_v58 = vor.u32 %v4933_v37, %v4472_v10  ;;  %v3796_v10 = vld [vmem:[%s8428_s0 + $0xcc] sm:$0xf0] }
 0x160   :  { %v1876_v59 = vpop.f32.mrf.mxu3  ;;  %v1948_v54 = vpop.f32.mrf.mxu0 }
 0x161   :  { %v1877_v46 = vadd.f32 %v1876_v59, %v1803_v38  ;;  %v1949_v1 = vadd.f32 %v1948_v54, %v1875_v12  ;;  %v2022_v60 = vpop.f32.mrf.mxu1  ;;  %2581 = vmatpush.bf16.msrb.mxu1 %v4475_v58  ;;  %v4883_v38 = vld [vmem:[%s8427_s1 + $0xd4] sm:$0xf]  ;;  %v3766_v59 = vld [vmem:[%s8428_s0 + $0x68] sm:$0xf]  ;;  %v4757_v54 = vld [vmem:[%s8428_s0 + $0x88] sm:$0xf0] }
 0x163   :  { %v6445_v2 = vadd.f32 %v2022_v60, %v1949_v1  ;;  %2075 = vmatmul.bf16.gmra.mxu2 %v6433_v9  ;;  %2218 = vmatmul.bf16.vlgmr.msra.gmra.mxu0 %v6435_v32  ;;  %v3794_v60 = vld [vmem:[%s8428_s0 + $0xa8] sm:$0xf]  ;;  %v4761_v1 = vld [vmem:[%s8428_s0 + $0xac] sm:$0xf]  ;;  %v4899_v32 = vld [vmem:[%s8427_s1 + $0x154] sm:$0xf] }
 0x164   :  { %2292 = vmatmul.bf16.vlgmr.msra.gmra.mxu1 %v5205_v3  ;;  %v4272_v3 = vld [vmem:[%s8427_s1 + $0xd8] sm:$0xf0] }
 0x165   :  { %2149 = vmatmul.bf16.gmra.mxu3 %v6437_v61 }
 0x166   :  { %v1805_v12 = vpop.f32.mrf.mxu2 }
 0x167   :  { %v1806_v30 = vadd.f32 %v1805_v12, %v6104_v39  ;;  %v4765_v39 = vld [vmem:[%s8428_s0 + $0xc8] sm:$0xf0] }
 0x168   :  { %v1879_v49 = vpop.f32.mrf.mxu3  ;;  %v1950_v56 = vpop.f32.mrf.mxu0 }
 0x169   :  { %v1880_v33 = vadd.f32 %v1879_v49, %v1806_v30  ;;  %v1951_v21 = vadd.f32 %v1950_v56, %v1877_v46  ;;  %v2024_v50 = vpop.f32.mrf.mxu1  ;;  %v4275_v46 = vor.u32 %v4883_v38, %v4272_v3  ;;  %v6479_v49 = vor.u32 %v4765_v39, %v3794_v60 }
 0x16a   :  { %v6481_v56 = vor.u32 %v4757_v54, %v3766_v59 }
 0x16b   :  { %v6452_v37 = vadd.f32 %v2024_v50, %v1951_v21  ;;  %2360 = vmatpush.bf16.msrb.mxu2 %v4275_v46  ;;  %8632 = vst [vmem:[#allocation66_spill] sm:$0xff] %v6479_v49  ;;  %v6483_v50 = vor.u32 %v4761_v1, %v3796_v10  ;;  %v4336_v46 = vld [vmem:[%s8427_s1 + $0x158] sm:$0xf0] }
 0x16c   :  { %8633 = vst [vmem:[#allocation67_spill] sm:$0xff] %v6481_v56 }
 0x16d   :  { %8634 = vst [vmem:[#allocation68_spill] sm:$0xff] %v6483_v50 }
 0x16e   :  { %v1807_v58 = vpop.f32.mrf.mxu2 }
 0x16f   :  { %v1808_v12 = vadd.f32 %v1807_v58, %v6124_v35  ;;  %v4339_v35 = vor.u32 %v4899_v32, %v4336_v46  ;;  %v4915_v32 = vld [vmem:[%s8427_s1 + $0x1d4] sm:$0xf] }
 0x170   :  { %v1881_v30 = vpop.f32.mrf.mxu3  ;;  %v1953_v21 = vpop.f32.mrf.mxu0  ;;  %v4766_v46 = vld [vmem:[%s8428_s0 + $0xd0] sm:$0xf0] }
 0x171   :  { %v1882_v38 = vadd.f32 %v1881_v30, %v1808_v12  ;;  %v1954_v3 = vadd.f32 %v1953_v21, %v1880_v33  ;;  %v2027_v61 = vpop.f32.mrf.mxu1  ;;  %2434 = vmatpush.bf16.msrb.mxu3 %v4339_v35  ;;  %v4464_v21 = vld [vmem:[%s8427_s1 + $0x258] sm:$0xf0] }
 0x173   :  { %v6491_v58 = vadd.f32 %v2027_v61, %v1954_v3  ;;  %2080 = vmatmul.bf16.gmra.mxu2 %v6479_v49  ;;  %2223 = vmatmul.bf16.gmra.mxu0 %v6481_v56  ;;  %v4400_v61 = vld [vmem:[%s8427_s1 + $0x1d8] sm:$0xf0]  ;;  %v3802_v3 = vld [vmem:[%s8428_s0 + $0xb0] sm:$0xf] }
 0x174   :  { %2297 = vmatmul.bf16.gmra.mxu1 %v5310_v52  ;;  %v4403_v12 = vor.u32 %v4915_v32, %v4400_v61  ;;  %v3830_v52 = vld [vmem:[%s8428_s0 + $0xf0] sm:$0xf]  ;;  %v6533_v32 = vor.u32 %v4766_v46, %v3802_v3 }
 0x175   :  { %2154 = vmatmul.bf16.gmra.mxu3 %v6483_v50 }
 0x176   :  { %v1810_v33 = vpop.f32.mrf.mxu2  ;;  %2508 = vmatpush.bf16.msrb.mxu0 %v4403_v12  ;;  %8636 = vst [vmem:[#allocation70_spill] sm:$0xff] %v6533_v32 }
 0x177   :  { %v1811_v60 = vadd.f32 %v1810_v33, %v5739_v36  ;;  %v4931_v36 = vld [vmem:[%s8427_s1 + $0x254] sm:$0xf] }
 0x178   :  { %v1884_v39 = vpop.f32.mrf.mxu3  ;;  %v1955_v59 = vpop.f32.mrf.mxu0  ;;  %v4467_v35 = vor.u32 %v4931_v36, %v4464_v21  ;;  %v4770_v33 = vld [vmem:[%s8428_s0 + $0xf4] sm:$0xf] }
 0x179   :  { %v1885_v54 = vadd.f32 %v1884_v39, %v1811_v60  ;;  %v1956_v1 = vadd.f32 %v1955_v59, %v1882_v38  ;;  %v2029_v10 = vpop.f32.mrf.mxu1  ;;  %v4774_v38 = vld [vmem:[%s8428_s0 + $0x110] sm:$0xf0]  ;;  %v3832_v60 = vld [vmem:[%s8428_s0 + $0x114] sm:$0xf0] }
 0x17a   :  { %2582 = vmatpush.bf16.msrb.mxu1 %v4467_v35  ;;  %v6535_v12 = vor.u32 %v4770_v33, %v3832_v60 }
 0x17b   :  { %v6504_v30 = vadd.f32 %v2029_v10, %v1956_v1  ;;  %v6531_v10 = vor.u32 %v4774_v38, %v3830_v52 }
 0x17c   :  { %8637 = vst [vmem:[#allocation71_spill] sm:$0xff] %v6535_v12 }
 0x17d   :  { %8635 = vst [vmem:[#allocation69_spill] sm:$0xff] %v6531_v10 }
 0x17e   :  { %v1812_v39 = vpop.f32.mrf.mxu2 }
 0x17f   :  { %v1813_v59 = vadd.f32 %v1812_v39, %v5789_v41 }
 0x180   :  { %v1886_v1 = vpop.f32.mrf.mxu3  ;;  %v1958_v61 = vpop.f32.mrf.mxu0 }
 0x181   :  { %v1887_v36 = vadd.f32 %v1886_v1, %v1813_v59  ;;  %v1959_v21 = vadd.f32 %v1958_v61, %v1885_v54  ;;  %v2032_v50 = vpop.f32.mrf.mxu1  ;;  %v4264_v54 = vld [vmem:[%s8427_s1 + $0xc8] sm:$0xf0]  ;;  %v4783_v1 = vld [vmem:[%s8428_s0 + $0x158] sm:$0xf0]  ;;  %v3838_v61 = vld [vmem:[%s8428_s0 + $0xf8] sm:$0xf] }
 0x182   :  { %v4328_v59 = vld [vmem:[%s8427_s1 + $0x148] sm:$0xf0] }
 0x183   :  { %v6537_v56 = vadd.f32 %v2032_v50, %v1959_v21  ;;  %2085 = vmatmul.bf16.gmra.mxu2 %v6531_v10  ;;  %2228 = vmatmul.bf16.gmra.mxu0 %v6533_v32  ;;  %v4881_v50 = vld [vmem:[%s8427_s1 + $0xc4] sm:$0xf] }
 0x184   :  { %2302 = vmatmul.bf16.gmra.mxu1 %v5370_v16  ;;  %v4267_v60 = vor.u32 %v4881_v50, %v4264_v54  ;;  %v3866_v16 = vld [vmem:[%s8428_s0 + $0x138] sm:$0xf] }
 0x185   :  { %2159 = vmatmul.bf16.gmra.mxu3 %v6535_v12 }
 0x186   :  { %v1815_v41 = vpop.f32.mrf.mxu2  ;;  %2361 = vmatpush.bf16.msrb.mxu2 %v4267_v60 }
 0x187   :  { %v1816_v52 = vadd.f32 %v1815_v41, %v5799_v63  ;;  %v4897_v63 = vld [vmem:[%s8427_s1 + $0x144] sm:$0xf]  ;;  %v4779_v41 = vld [vmem:[%s8428_s0 + $0x13c] sm:$0xf] }
 0x188   :  { %v1889_v38 = vpop.f32.mrf.mxu3  ;;  %v1960_v3 = vpop.f32.mrf.mxu0  ;;  %v4331_v21 = vor.u32 %v4897_v63, %v4328_v59 }
 0x189   :  { %v1890_v46 = vadd.f32 %v1889_v38, %v1816_v52  ;;  %v1961_v35 = vadd.f32 %v1960_v3, %v1887_v36  ;;  %v2034_v33 = vpop.f32.mrf.mxu1  ;;  %v4775_v36 = vld [vmem:[%s8428_s0 + $0x118] sm:$0xf0]  ;;  %v3868_v52 = vld [vmem:[%s8428_s0 + $0x15c] sm:$0xf0] }
 0x18a   :  { %2435 = vmatpush.bf16.msrb.mxu3 %v4331_v21  ;;  %v6579_v50 = vor.u32 %v4775_v36, %v3838_v61  ;;  %v6581_v60 = vor.u32 %v4779_v41, %v3868_v52 }
 0x18b   :  { %v6550_v39 = vadd.f32 %v2034_v33, %v1961_v35  ;;  %v6577_v33 = vor.u32 %v4783_v1, %v3866_v16  ;;  %v4392_v16 = vld [vmem:[%s8427_s1 + $0x1c8] sm:$0xf0] }
 0x18c   :  { %8639 = vst [vmem:[#allocation73_spill] sm:$0xff] %v6579_v50  ;;  %v4456_v1 = vld [vmem:[%s8427_s1 + $0x248] sm:$0xf0] }
 0x18d   :  { %8638 = vst [vmem:[#allocation72_spill] sm:$0xff] %v6577_v33 }
 0x18e   :  { %v1817_v38 = vpop.f32.mrf.mxu2  ;;  %8640 = vst [vmem:[#allocation74_spill] sm:$0xff] %v6581_v60 }
 0x18f   :  { %v1818_v3 = vadd.f32 %v1817_v38, %v5849_v25  ;;  %v4913_v25 = vld [vmem:[%s8427_s1 + $0x1c4] sm:$0xf] }
 0x190   :  { %v1891_v35 = vpop.f32.mrf.mxu3  ;;  %v1963_v54 = vpop.f32.mrf.mxu0 }
 0x191   :  { %v1892_v63 = vadd.f32 %v1891_v35, %v1818_v3  ;;  %v1964_v59 = vadd.f32 %v1963_v54, %v1890_v46  ;;  %v2037_v12 = vpop.f32.mrf.mxu1  ;;  %v4395_v46 = vor.u32 %v4913_v25, %v4392_v16  ;;  %v3902_v54 = vld [vmem:[%s8428_s0 + $0x180] sm:$0xf]  ;;  %v4784_v25 = vld [vmem:[%s8428_s0 + $0x160] sm:$0xf0]  ;;  %v3904_v16 = vld [vmem:[%s8428_s0 + $0x1a4] sm:$0xf0] }
 0x193   :  { %v6583_v32 = vadd.f32 %v2037_v12, %v1964_v59  ;;  %2090 = vmatmul.bf16.gmra.mxu2 %v6577_v33  ;;  %2233 = vmatmul.bf16.gmra.mxu0 %v6579_v50  ;;  %v4929_v12 = vld [vmem:[%s8427_s1 + $0x244] sm:$0xf] }
 0x194   :  { %2307 = vmatmul.bf16.gmra.mxu1 %v5436_v43  ;;  %v4459_v61 = vor.u32 %v4929_v12, %v4456_v1  ;;  %2509 = vmatpush.bf16.msrb.mxu0 %v4395_v46  ;;  %v4792_v59 = vld [vmem:[%s8428_s0 + $0x1a0] sm:$0xf0] }
 0x195   :  { %2164 = vmatmul.bf16.gmra.mxu3 %v6581_v60 }
 0x196   :  { %v1820_v36 = vpop.f32.mrf.mxu2  ;;  %2583 = vmatpush.bf16.msrb.mxu1 %v4459_v61  ;;  %v6623_v61 = vor.u32 %v4792_v59, %v3902_v54  ;;  %v4256_v54 = vld [vmem:[%s8427_s1 + $0xb8] sm:$0xf0]  ;;  %v4895_v59 = vld [vmem:[%s8427_s1 + $0x134] sm:$0xf] }
 0x197   :  { %v1821_v21 = vadd.f32 %v1820_v36, %v5871_v62  ;;  %v3874_v62 = vld [vmem:[%s8428_s0 + $0x140] sm:$0xf] }
 0x198   :  { %v1894_v41 = vpop.f32.mrf.mxu3  ;;  %v1965_v52 = vpop.f32.mrf.mxu0  ;;  %8641 = vst [vmem:[#allocation75_spill] sm:$0xff] %v6623_v61  ;;  %v6625_v36 = vor.u32 %v4784_v25, %v3874_v62  ;;  %v4320_v62 = vld [vmem:[%s8427_s1 + $0x138] sm:$0xf0] }
 0x199   :  { %v1895_v38 = vadd.f32 %v1894_v41, %v1821_v21  ;;  %v1966_v3 = vadd.f32 %v1965_v52, %v1892_v63  ;;  %v2039_v43 = vpop.f32.mrf.mxu1  ;;  %v4788_v63 = vld [vmem:[%s8428_s0 + $0x184] sm:$0xf]  ;;  %v4323_v25 = vor.u32 %v4895_v59, %v4320_v62  ;;  %v4793_v59 = vld [vmem:[%s8428_s0 + $0x1a8] sm:$0xf0] }
 0x19a   :  { %8642 = vst [vmem:[#allocation76_spill] sm:$0xff] %v6625_v36  ;;  %v6627_v41 = vor.u32 %v4788_v63, %v3904_v16 }
 0x19b   :  { %v6602_v35 = vadd.f32 %v2039_v43, %v1966_v3  ;;  %2436 = vmatpush.bf16.msrb.mxu3 %v4323_v25  ;;  %v4448_v25 = vld [vmem:[%s8427_s1 + $0x238] sm:$0xf0] }
 0x19c   :  { %8643 = vst [vmem:[#allocation77_spill] sm:$0xff] %v6627_v41 }
 0x19e   :  { %v1822_v46 = vpop.f32.mrf.mxu2 }
 0x19f   :  { %v1823_v12 = vadd.f32 %v1822_v46, %v5909_v55  ;;  %v4879_v55 = vld [vmem:[%s8427_s1 + $0xb4] sm:$0xf] }
 0x1a0   :  { %v1896_v1 = vpop.f32.mrf.mxu3  ;;  %v1968_v21 = vpop.f32.mrf.mxu0 }
 0x1a1   :  { %v1897_v52 = vadd.f32 %v1896_v1, %v1823_v12  ;;  %v1969_v3 = vadd.f32 %v1968_v21, %v1895_v38  ;;  %v2042_v43 = vpop.f32.mrf.mxu1  ;;  %v4259_v38 = vor.u32 %v4879_v55, %v4256_v54  ;;  %v4384_v54 = vld [vmem:[%s8427_s1 + $0x1b8] sm:$0xf0] }
 0x1a3   :  { %v6629_v60 = vadd.f32 %v2042_v43, %v1969_v3  ;;  %2095 = vmatmul.bf16.gmra.mxu2 %v6623_v61  ;;  %2238 = vmatmul.bf16.gmra.mxu0 %v6625_v36  ;;  %v3938_v3 = vld [vmem:[%s8428_s0 + $0x1c8] sm:$0xf]  ;;  %v4801_v43 = vld [vmem:[%s8428_s0 + $0x1e8] sm:$0xf0] }
 0x1a4   :  { %2312 = vmatmul.bf16.gmra.mxu1 %v5502_v14  ;;  %2362 = vmatpush.bf16.msrb.mxu2 %v4259_v38  ;;  %v3910_v38 = vld [vmem:[%s8428_s0 + $0x188] sm:$0xf] }
 0x1a5   :  { %2169 = vmatmul.bf16.gmra.mxu3 %v6627_v41  ;;  %v6681_v41 = vor.u32 %v4801_v43, %v3938_v3 }
 0x1a6   :  { %v1825_v63 = vpop.f32.mrf.mxu2 }
 0x1a7   :  { %v1826_v16 = vadd.f32 %v1825_v63, %v5931_v51  ;;  %v4911_v51 = vld [vmem:[%s8427_s1 + $0x1b4] sm:$0xf]  ;;  %v4797_v63 = vld [vmem:[%s8428_s0 + $0x1cc] sm:$0xf]  ;;  %8644 = vst [vmem:[#allocation78_spill] sm:$0xff] %v6681_v41 }
 0x1a8   :  { %v1899_v46 = vpop.f32.mrf.mxu3  ;;  %v1970_v12 = vpop.f32.mrf.mxu0  ;;  %v4387_v62 = vor.u32 %v4911_v51, %v4384_v54  ;;  %v6683_v51 = vor.u32 %v4793_v59, %v3910_v38 }
 0x1a9   :  { %v1900_v1 = vadd.f32 %v1899_v46, %v1826_v16  ;;  %v1971_v21 = vadd.f32 %v1970_v12, %v1897_v52  ;;  %v2044_v14 = vpop.f32.mrf.mxu1  ;;  %v4927_v52 = vld [vmem:[%s8427_s1 + $0x234] sm:$0xf]  ;;  %v3940_v16 = vld [vmem:[%s8428_s0 + $0x1ec] sm:$0xf0] }
 0x1aa   :  { %v4451_v46 = vor.u32 %v4927_v52, %v4448_v25  ;;  %2510 = vmatpush.bf16.msrb.mxu0 %v4387_v62  ;;  %8645 = vst [vmem:[#allocation79_spill] sm:$0xff] %v6683_v51  ;;  %v6685_v36 = vor.u32 %v4797_v63, %v3940_v16  ;;  %v3946_v25 = vld [vmem:[%s8428_s0 + $0x1d0] sm:$0xf]  ;;  %v4802_v63 = vld [vmem:[%s8428_s0 + $0x1f0] sm:$0xf0] }
 0x1ab   :  { %v6654_v55 = vadd.f32 %v2044_v14, %v1971_v21 }
 0x1ac   :  { %2584 = vmatpush.bf16.msrb.mxu1 %v4451_v46  ;;  %8646 = vst [vmem:[#allocation80_spill] sm:$0xff] %v6685_v36  ;;  %v4312_v46 = vld [vmem:[%s8427_s1 + $0x128] sm:$0xf0] }
 0x1ae   :  { %v1827_v12 = vpop.f32.mrf.mxu2 }
 0x1af   :  { %v1828_v21 = vadd.f32 %v1827_v12, %v5981_v20  ;;  %v4806_v12 = vld [vmem:[%s8428_s0 + $0x214] sm:$0xf] }
 0x1b0   :  { %v1901_v14 = vpop.f32.mrf.mxu3  ;;  %v1973_v54 = vpop.f32.mrf.mxu0 }
 0x1b1   :  { %v1902_v61 = vadd.f32 %v1901_v14, %v1828_v21  ;;  %v1974_v50 = vadd.f32 %v1973_v54, %v1900_v1  ;;  %v2047_v33 = vpop.f32.mrf.mxu1  ;;  %v3976_v21 = vld [vmem:[%s8428_s0 + $0x234] sm:$0xf0] }
 0x1b3   :  { %v6687_v10 = vadd.f32 %v2047_v33, %v1974_v50  ;;  %2100 = vmatmul.bf16.gmra.mxu2 %v6681_v41  ;;  %2243 = vmatmul.bf16.gmra.mxu0 %v6683_v51  ;;  %v3974_v33 = vld [vmem:[%s8428_s0 + $0x210] sm:$0xf]  ;;  %v4810_v50 = vld [vmem:[%s8428_s0 + $0x230] sm:$0xf0] }
 0x1b4   :  { %2317 = vmatmul.bf16.gmra.mxu1 %v5562_v42  ;;  %v4877_v42 = vld [vmem:[%s8427_s1 + $0xa4] sm:$0xf] }
 0x1b5   :  { %2174 = vmatmul.bf16.gmra.mxu3 %v6685_v36 }
 0x1b6   :  { %v1830_v20 = vpop.f32.mrf.mxu2 }
 0x1b7   :  { %v1831_v3 = vadd.f32 %v1830_v20, %v5991_v28  ;;  %v4248_v28 = vld [vmem:[%s8427_s1 + $0xa8] sm:$0xf0] }
 0x1b8   :  { %v1904_v43 = vpop.f32.mrf.mxu3  ;;  %v1975_v52 = vpop.f32.mrf.mxu0  ;;  %v4251_v16 = vor.u32 %v4877_v42, %v4248_v28 }
 0x1b9   :  { %v1905_v38 = vadd.f32 %v1904_v43, %v1831_v3  ;;  %v1976_v59 = vadd.f32 %v1975_v52, %v1902_v61  ;;  %v2049_v62 = vpop.f32.mrf.mxu1  ;;  %v4893_v61 = vld [vmem:[%s8427_s1 + $0x124] sm:$0xf]  ;;  %v6727_v43 = vor.u32 %v4810_v50, %v3974_v33  ;;  %v6729_v52 = vor.u32 %v4802_v63, %v3946_v25  ;;  %v4376_v33 = vld [vmem:[%s8427_s1 + $0x1a8] sm:$0xf0] }
 0x1ba   :  { %v4315_v14 = vor.u32 %v4893_v61, %v4312_v46  ;;  %2363 = vmatpush.bf16.msrb.mxu2 %v4251_v16 }
 0x1bb   :  { %v6700_v1 = vadd.f32 %v2049_v62, %v1976_v59  ;;  %8647 = vst [vmem:[#allocation81_spill] sm:$0xff] %v6727_v43  ;;  %v6731_v62 = vor.u32 %v4806_v12, %v3976_v21  ;;  %v4440_v12 = vld [vmem:[%s8427_s1 + $0x228] sm:$0xf0] }
 0x1bc   :  { %8648 = vst [vmem:[#allocation82_spill] sm:$0xff] %v6729_v52  ;;  %2437 = vmatpush.bf16.msrb.mxu3 %v4315_v14 }
 0x1bd   :  { %8649 = vst [vmem:[#allocation83_spill] sm:$0xff] %v6731_v62 }
 0x1be   :  { %v1832_v54 = vpop.f32.mrf.mxu2 }
 0x1bf   :  { %v1833_v20 = vadd.f32 %v1832_v54, %v6041_v45  ;;  %v4909_v45 = vld [vmem:[%s8427_s1 + $0x1a4] sm:$0xf]  ;;  %v4819_v54 = vld [vmem:[%s8428_s0 + $0x278] sm:$0xf0] }
 0x1c0   :  { %v1906_v3 = vpop.f32.mrf.mxu3  ;;  %v1978_v59 = vpop.f32.mrf.mxu0 }
 0x1c1   :  { %v1907_v42 = vadd.f32 %v1906_v3, %v1833_v20  ;;  %v1979_v28 = vadd.f32 %v1978_v59, %v1905_v38  ;;  %v2052_v36 = vpop.f32.mrf.mxu1  ;;  %v4379_v38 = vor.u32 %v4909_v45, %v4376_v33  ;;  %v3982_v20 = vld [vmem:[%s8428_s0 + $0x218] sm:$0xf]  ;;  %v4811_v3 = vld [vmem:[%s8428_s0 + $0x238] sm:$0xf0] }
 0x1c2   :  { %v4815_v59 = vld [vmem:[%s8428_s0 + $0x25c] sm:$0xf] }
 0x1c3   :  { %v6733_v51 = vadd.f32 %v2052_v36, %v1979_v28  ;;  %2105 = vmatmul.bf16.gmra.mxu2 %v6727_v43  ;;  %2248 = vmatmul.bf16.gmra.mxu0 %v6729_v52 }
 0x1c4   :  { %2322 = vmatmul.bf16.gmra.mxu1 %v5610_v6  ;;  %2511 = vmatpush.bf16.msrb.mxu0 %v4379_v38  ;;  %v4925_v6 = vld [vmem:[%s8427_s1 + $0x224] sm:$0xf] }
 0x1c5   :  { %2179 = vmatmul.bf16.gmra.mxu3 %v6731_v62  ;;  %v4443_v21 = vor.u32 %v4925_v6, %v4440_v12  ;;  %v4240_v12 = vld [vmem:[%s8427_s1 + $0x98] sm:$0xf0] }
 0x1c6   :  { %v1835_v50 = vpop.f32.mrf.mxu2 }
 0x1c7   :  { %v1836_v36 = vadd.f32 %v1835_v50, %v6057_v27  ;;  %v4010_v27 = vld [vmem:[%s8428_s0 + $0x258] sm:$0xf]  ;;  %2585 = vmatpush.bf16.msrb.mxu1 %v4443_v21  ;;  %v6775_v50 = vor.u32 %v4811_v3, %v3982_v20 }
 0x1c8   :  { %v1909_v61 = vpop.f32.mrf.mxu3  ;;  %v1980_v25 = vpop.f32.mrf.mxu0  ;;  %v6773_v38 = vor.u32 %v4819_v54, %v4010_v27 }
 0x1c9   :  { %v1910_v63 = vadd.f32 %v1909_v61, %v1836_v36  ;;  %v1981_v16 = vadd.f32 %v1980_v25, %v1907_v42  ;;  %v2054_v46 = vpop.f32.mrf.mxu1  ;;  %v4012_v42 = vld [vmem:[%s8428_s0 + $0x27c] sm:$0xf0]  ;;  %8651 = vst [vmem:[#allocation85_spill] sm:$0xff] %v6775_v50 }
 0x1ca   :  { %8650 = vst [vmem:[#allocation84_spill] sm:$0xff] %v6773_v38  ;;  %v6777_v61 = vor.u32 %v4815_v59, %v4012_v42 }
 0x1cb   :  { %v6752_v14 = vadd.f32 %v2054_v46, %v1981_v16 }
 0x1cc   :  { %8652 = vst [vmem:[#allocation86_spill] sm:$0xff] %v6777_v61 }
 0x1ce   :  { %v1837_v28 = vpop.f32.mrf.mxu2 }
 0x1cf   :  { %v1838_v45 = vadd.f32 %v1837_v28, %v6101_v48  ;;  %v4875_v48 = vld [vmem:[%s8427_s1 + $0x94] sm:$0xf]  ;;  %v4304_v28 = vld [vmem:[%s8427_s1 + $0x118] sm:$0xf0] }
 0x1d0   :  { %v1911_v33 = vpop.f32.mrf.mxu3  ;;  %v1983_v36 = vpop.f32.mrf.mxu0  ;;  %v4243_v21 = vor.u32 %v4875_v48, %v4240_v12  ;;  %v4048_v48 = vld [vmem:[%s8428_s0 + $0x2c4] sm:$0xf0] }
 0x1d1   :  { %v1912_v25 = vadd.f32 %v1911_v33, %v1838_v45  ;;  %v1984_v16 = vadd.f32 %v1983_v36, %v1910_v63  ;;  %v2057_v46 = vpop.f32.mrf.mxu1  ;;  %v4828_v36 = vld [vmem:[%s8428_s0 + $0x2c0] sm:$0xf0] }
 0x1d2   :  { %2364 = vmatpush.bf16.msrb.mxu2 %v4243_v21 }
 0x1d3   :  { %v6779_v6 = vadd.f32 %v2057_v46, %v1984_v16  ;;  %2110 = vmatmul.bf16.gmra.mxu2 %v6773_v38  ;;  %2253 = vmatmul.bf16.gmra.mxu0 %v6775_v50  ;;  %v4820_v16 = vld [vmem:[%s8428_s0 + $0x280] sm:$0xf0] }
 0x1d4   :  { %2327 = vmatmul.bf16.gmra.mxu1 %v5207_v4  ;;  %v4891_v4 = vld [vmem:[%s8427_s1 + $0x114] sm:$0xf]  ;;  %v4824_v46 = vld [vmem:[%s8428_s0 + $0x2a4] sm:$0xf] }
 0x1d5   :  { %2184 = vmatmul.bf16.gmra.mxu3 %v6777_v61  ;;  %v4307_v45 = vor.u32 %v4891_v4, %v4304_v28  ;;  %v4873_v50 = vld [vmem:[%s8427_s1 + $0x84] sm:$0xf] }
 0x1d6   :  { %v2071_v63 = vpop.f32.mrf.mxu2 }
 0x1d7   :  { %v2072_v27 = vadd.f32 %v2071_v63, %v6165_v57  ;;  %v4046_v57 = vld [vmem:[%s8428_s0 + $0x2a0] sm:$0xf]  ;;  %2438 = vmatpush.bf16.msrb.mxu3 %v4307_v45  ;;  %v4907_v45 = vld [vmem:[%s8427_s1 + $0x194] sm:$0xf] }
 0x1d8   :  { %v2145_v54 = vpop.f32.mrf.mxu3  ;;  %v1985_v20 = vpop.f32.mrf.mxu0 }
 0x1d9   :  { %v2146_v3 = vadd.f32 %v2145_v54, %v2072_v27  ;;  %v1986_v59 = vadd.f32 %v1985_v20, %v1912_v25  ;;  %v2059_v42 = vpop.f32.mrf.mxu1  ;;  %v4018_v25 = vld [vmem:[%s8428_s0 + $0x260] sm:$0xf]  ;;  %v6819_v27 = vor.u32 %v4828_v36, %v4046_v57  ;;  %v4432_v36 = vld [vmem:[%s8427_s1 + $0x218] sm:$0xf0] }
 0x1da   :  { %v6821_v54 = vor.u32 %v4820_v16, %v4018_v25 }
 0x1db   :  { %v6798_v33 = vadd.f32 %v2059_v42, %v1986_v59  ;;  %8653 = vst [vmem:[#allocation87_spill] sm:$0xff] %v6819_v27  ;;  %v6823_v59 = vor.u32 %v4824_v46, %v4048_v48 }
 0x1dc   :  { %8654 = vst [vmem:[#allocation88_spill] sm:$0xff] %v6821_v54 }
 0x1dd   :  { %8655 = vst [vmem:[#allocation89_spill] sm:$0xff] %v6823_v59 }
 0x1de   :  { %v2073_v12 = vpop.f32.mrf.mxu2 }
 0x1df   :  { %v2074_v63 = vadd.f32 %v2073_v12, %v6178_v0  ;;  %v4368_v0 = vld [vmem:[%s8427_s1 + $0x198] sm:$0xf0] }
 0x1e0   :  { %v2147_v21 = vpop.f32.mrf.mxu3  ;;  %v2219_v20 = vpop.f32.mrf.mxu0  ;;  %v4371_v57 = vor.u32 %v4907_v45, %v4368_v0  ;;  %v4082_v0 = vld [vmem:[%s8428_s0 + $0x2e8] sm:$0xf] }
 0x1e1   :  { %v2148_v42 = vadd.f32 %v2147_v21, %v2074_v63  ;;  %v6825_v4 = vadd.f32 %v2219_v20, %v2146_v3  ;;  %v6827_v28 = vpop.f32.mrf.mxu1  ;;  %v4923_v3 = vld [vmem:[%s8427_s1 + $0x214] sm:$0xf] }
 0x1e2   :  { %2512 = vmatpush.bf16.msrb.mxu0 %v4371_v57  ;;  %v4435_v16 = vor.u32 %v4923_v3, %v4432_v36  ;;  %v4054_v57 = vld [vmem:[%s8428_s0 + $0x2a8] sm:$0xf]  ;;  %v4833_v36 = vld [vmem:[%s8428_s0 + $0x2ec] sm:$0xf] }
 0x1e3   :  { %2115 = vmatmul.bf16.gmra.mxu2 %v6819_v27  ;;  %2258 = vmatmul.bf16.gmra.mxu0 %v6821_v54  ;;  %v8512_v20 = vmax.f32 %v6825_v4, 0.0 }
 0x1e4   :  { %2332 = vmatmul.bf16.gmra.mxu1 %v5312_v53 }
 0x1e5   :  { %2189 = vmatmul.bf16.gmra.mxu3 %v6823_v59  ;;  %2586 = vmatpush.bf16.msrb.mxu1 %v4435_v16 }
 0x1e6   :  { %v2076_v25 = vpop.f32.mrf.mxu2 }
 0x1e7   :  { %v2077_v46 = vadd.f32 %v2076_v25, %v6219_v40  ;;  %v4837_v40 = vld [vmem:[%s8428_s0 + $0x308] sm:$0xf0]  ;;  %v4084_v25 = vld [vmem:[%s8428_s0 + $0x30c] sm:$0xf0] }
 0x1e8   :  { %v2150_v48 = vpop.f32.mrf.mxu3  ;;  %v2221_v12 = vpop.f32.mrf.mxu0  ;;  %v6879_v61 = vor.u32 %v4833_v36, %v4084_v25 }
 0x1e9   :  { %v2151_v63 = vadd.f32 %v2150_v48, %v2077_v46  ;;  %v6846_v21 = vadd.f32 %v2221_v12, %v2148_v42  ;;  %v6848_v53 = vpop.f32.mrf.mxu1  ;;  %v4829_v42 = vld [vmem:[%s8428_s0 + $0x2c8] sm:$0xf0]  ;;  %v6875_v12 = vor.u32 %v4837_v40, %v4082_v0 }
 0x1ea   :  { %v6877_v59 = vor.u32 %v4829_v42, %v4054_v57  ;;  %8658 = vst [vmem:[#allocation92_spill] sm:$0xff] %v6879_v61 }
 0x1eb   :  { %v8511_v45 = vmax.f32 %v6846_v21, 0.0  ;;  %8656 = vst [vmem:[#allocation90_spill] sm:$0xff] %v6875_v12 }
 0x1ec   :  { %8657 = vst [vmem:[#allocation91_spill] sm:$0xff] %v6877_v59 }
 0x1ed   :  { %v3159_v3 = vadd.f32 %v8511_v45, %v8512_v20 }
 0x1ee   :  { %v2078_v16 = vpop.f32.mrf.mxu2 }
 0x1ef   :  { %v2079_v46 = vadd.f32 %v2078_v16, %v6238_v18  ;;  %v4232_v18 = vld [vmem:[%s8427_s1 + $0x88] sm:$0xf0] }
 0x1f0   :  { %v2152_v48 = vpop.f32.mrf.mxu3  ;;  %v2224_v54 = vpop.f32.mrf.mxu0  ;;  %v4235_v0 = vor.u32 %v4873_v50, %v4232_v18  ;;  %v4296_v50 = vld [vmem:[%s8427_s1 + $0x108] sm:$0xf0] }
 0x1f1   :  { %v2153_v45 = vadd.f32 %v2152_v48, %v2079_v46  ;;  %v6881_v20 = vadd.f32 %v2224_v54, %v2151_v63  ;;  %v6883_v27 = vpop.f32.mrf.mxu1  ;;  %v4889_v63 = vld [vmem:[%s8427_s1 + $0x104] sm:$0xf]  ;;  %v4118_v48 = vld [vmem:[%s8428_s0 + $0x330] sm:$0xf] }
 0x1f2   :  { %2365 = vmatpush.bf16.msrb.mxu2 %v4235_v0  ;;  %v4299_v42 = vor.u32 %v4889_v63, %v4296_v50  ;;  %v4846_v0 = vld [vmem:[%s8428_s0 + $0x350] sm:$0xf0]  ;;  %v4090_v63 = vld [vmem:[%s8428_s0 + $0x2f0] sm:$0xf] }
 0x1f3   :  { %v8515_v40 = vmax.f32 %v6881_v20, 0.0  ;;  %2120 = vmatmul.bf16.gmra.mxu2 %v6875_v12  ;;  %2263 = vmatmul.bf16.gmra.mxu0 %v6877_v59  ;;  %v4838_v50 = vld [vmem:[%s8428_s0 + $0x310] sm:$0xf0]  ;;  %v6943_v59 = vor.u32 %v4846_v0, %v4118_v48  ;;  %v4154_v0 = vld [vmem:[%s8428_s0 + $0x378] sm:$0xf] }
 0x1f4   :  { %2337 = vmatmul.bf16.gmra.mxu1 %v5372_v17  ;;  %2439 = vmatpush.bf16.msrb.mxu3 %v4299_v42  ;;  %v4905_v42 = vld [vmem:[%s8427_s1 + $0x184] sm:$0xf]  ;;  %v6945_v12 = vor.u32 %v4838_v50, %v4090_v63  ;;  %v4847_v63 = vld [vmem:[%s8428_s0 + $0x358] sm:$0xf0] }
 0x1f5   :  { %2194 = vmatmul.bf16.gmra.mxu3 %v6879_v61  ;;  %v3160_v54 = vadd.f32 %v3159_v3, %v8515_v40  ;;  %v4424_v61 = vld [vmem:[%s8427_s1 + $0x208] sm:$0xf0]  ;;  %8659 = vst [vmem:[#allocation93_spill] sm:$0xff] %v6943_v59 }
 0x1f6   :  { %v2081_v57 = vpop.f32.mrf.mxu2  ;;  %8660 = vst [vmem:[#allocation94_spill] sm:$0xff] %v6945_v12 }
 0x1f7   :  { %v2082_v36 = vadd.f32 %v2081_v57, %v6279_v7  ;;  %v4842_v7 = vld [vmem:[%s8428_s0 + $0x334] sm:$0xf] }
 0x1f8   :  { %v2155_v25 = vpop.f32.mrf.mxu3  ;;  %v2226_v16 = vpop.f32.mrf.mxu0 }
 0x1f9   :  { %v2156_v17 = vadd.f32 %v2155_v25, %v2082_v36  ;;  %v6905_v46 = vadd.f32 %v2226_v16, %v2153_v45  ;;  %v6907_v3 = vpop.f32.mrf.mxu1  ;;  %v4120_v45 = vld [vmem:[%s8428_s0 + $0x354] sm:$0xf0]  ;;  %v4360_v36 = vld [vmem:[%s8427_s1 + $0x188] sm:$0xf0]  ;;  %v4921_v25 = vld [vmem:[%s8427_s1 + $0x204] sm:$0xf] }
 0x1fa   :  { %v4363_v40 = vor.u32 %v4905_v42, %v4360_v36  ;;  %v4427_v62 = vor.u32 %v4921_v25, %v4424_v61  ;;  %v6947_v52 = vor.u32 %v4842_v7, %v4120_v45  ;;  %v4126_v45 = vld [vmem:[%s8428_s0 + $0x338] sm:$0xf]  ;;  %v4544_v25 = vld [vmem:[%s8427_s1 + $0x2f8] sm:$0xf0] }
 0x1fb   :  { %v8517_v18 = vmax.f32 %v6905_v46, 0.0 }
 0x1fc   :  { %8661 = vst [vmem:[#allocation95_spill] sm:$0xff] %v6947_v52  ;;  %2513 = vmatpush.bf16.msrb.mxu0 %v4363_v40  ;;  %2587 = vmatpush.bf16.msrb.mxu1 %v4427_v62 }
 0x1fd   :  { %v3161_v57 = vadd.f32 %v3160_v54, %v8517_v18 }
 0x1fe   :  { %v2083_v16 = vpop.f32.mrf.mxu2 }
 0x1ff   :  { %v2084_v54 = vadd.f32 %v2083_v16, %v6292_v13  ;;  %v4967_v16 = vld [vmem:[%s8427_s1 + $0x374] sm:$0xf] }
 0x200   :  { %v2157_v18 = vpop.f32.mrf.mxu3  ;;  %v2229_v38 = vpop.f32.mrf.mxu0 }
 0x201   :  { %v2158_v43 = vadd.f32 %v2157_v18, %v2084_v54  ;;  %v6949_v41 = vadd.f32 %v2229_v38, %v2156_v17  ;;  %v6951_v42 = vpop.f32.mrf.mxu1 }
 0x203   :  { %v8526_v36 = vmax.f32 %v6949_v41, 0.0  ;;  %2125 = vmatmul.bf16.gmra.mxu2 %v6943_v59  ;;  %2268 = vmatmul.bf16.gmra.mxu0 %v6945_v12 }
 0x204   :  { %2342 = vmatmul.bf16.gmra.mxu1 %v5438_v44  ;;  %v4855_v44 = vld [vmem:[%s8428_s0 + $0x398] sm:$0xf0] }
 0x205   :  { %2199 = vmatmul.bf16.gmra.mxu3 %v6947_v52  ;;  %v3162_v13 = vadd.f32 %v3161_v57, %v8526_v36  ;;  %v4951_v57 = vld [vmem:[%s8427_s1 + $0x2f4] sm:$0xf] }
 0x206   :  { %v2086_v61 = vpop.f32.mrf.mxu2 }
 0x207   :  { %v2087_v38 = vadd.f32 %v2086_v61, %v6333_v24  ;;  %v4851_v24 = vld [vmem:[%s8428_s0 + $0x37c] sm:$0xf]  ;;  %v4547_v61 = vor.u32 %v4951_v57, %v4544_v25 }
 0x208   :  { %v2160_v40 = vpop.f32.mrf.mxu3  ;;  %v2231_v17 = vpop.f32.mrf.mxu0 }
 0x209   :  { %v2161_v48 = vadd.f32 %v2160_v40, %v2087_v38  ;;  %v6961_v62 = vadd.f32 %v2231_v17, %v2158_v43  ;;  %v6963_v18 = vpop.f32.mrf.mxu1  ;;  %v4156_v43 = vld [vmem:[%s8428_s0 + $0x39c] sm:$0xf0]  ;;  %v4608_v38 = vld [vmem:[%s8427_s1 + $0x378] sm:$0xf0]  ;;  %v6999_v17 = vor.u32 %v4855_v44, %v4154_v0  ;;  %2654 = vmatpush.bf16.msra.mxu2 %v4547_v61 }
 0x20a   :  { %v4611_v36 = vor.u32 %v4967_v16, %v4608_v38  ;;  %v7003_v12 = vor.u32 %v4851_v24, %v4156_v43  ;;  %v4162_v38 = vld [vmem:[%s8428_s0 + $0x380] sm:$0xf] }
 0x20b   :  { %v8525_v7 = vmax.f32 %v6961_v62, 0.0  ;;  %8662 = vst [vmem:[#allocation96_spill] sm:$0xff] %v6999_v17 }
 0x20c   :  { %8664 = vst [vmem:[#allocation98_spill] sm:$0xff] %v7003_v12  ;;  %2728 = vmatpush.bf16.msra.mxu3 %v4611_v36  ;;  %v4672_v36 = vld [vmem:[%s8427_s1 + $0x3f8] sm:$0xf0] }
 0x20d   :  { %v3163_v50 = vadd.f32 %v3162_v13, %v8525_v7  ;;  %v7001_v7 = vor.u32 %v4847_v63, %v4126_v45 }
 0x20e   :  { %v2088_v54 = vpop.f32.mrf.mxu2 }
 0x20f   :  { %v2089_v13 = vadd.f32 %v2088_v54, %v6352_v31  ;;  %8663 = vst [vmem:[#allocation97_spill] sm:$0xff] %v7001_v7 }
 0x210   :  { %v2162_v40 = vpop.f32.mrf.mxu3  ;;  %v2234_v52 = vpop.f32.mrf.mxu0 }
 0x211   :  { %v2163_v59 = vadd.f32 %v2162_v40, %v2089_v13  ;;  %v7005_v49 = vadd.f32 %v2234_v52, %v2161_v48  ;;  %v7007_v57 = vpop.f32.mrf.mxu1  ;;  %v4983_v52 = vld [vmem:[%s8427_s1 + $0x3f4] sm:$0xf] }
 0x212   :  { %v4999_v48 = vld [vmem:[%s8427_s1 + $0x474] sm:$0xf]  ;;  %v4675_v44 = vor.u32 %v4983_v52, %v4672_v36 }
 0x213   :  { %v8536_v25 = vmax.f32 %v7005_v49, 0.0  ;;  %2130 = vmatmul.bf16.gmra.mxu2 %v6999_v17  ;;  %2273 = vmatmul.bf16.gmra.mxu0 %v7001_v7  ;;  %v8685_v17 = vld [vmem:[#allocation26_spill] sm:$0xff] }
 0x214   :  { %2347 = vmatmul.bf16.gmra.mxu1 %v5504_v15  ;;  %v4736_v15 = vld [vmem:[%s8427_s1 + $0x478] sm:$0xf0]  ;;  %2802 = vmatpush.bf16.msra.mxu0 %v4675_v44 }
 0x215   :  { %2204 = vmatmul.bf16.gmra.mxu3 %v7003_v12  ;;  %v3164_v31 = vadd.f32 %v3163_v50, %v8536_v25  ;;  %v4739_v45 = vor.u32 %v4999_v48, %v4736_v15  ;;  %v8681_v12 = vld [vmem:[#allocation25_spill] sm:$0xff] }
 0x216   :  { %v2091_v0 = vpop.f32.mrf.mxu2 }
 0x217   :  { %v2092_v24 = vadd.f32 %v2091_v0, %v6387_v23  ;;  %2876 = vmatpush.bf16.msra.mxu1 %v4739_v45  ;;  %v4856_v23 = vld [vmem:[%s8428_s0 + $0x3a0] sm:$0xf0]  ;;  %v4536_v45 = vld [vmem:[%s8427_s1 + $0x2e8] sm:$0xf0] }
 0x218   :  { %v2165_v43 = vpop.f32.mrf.mxu3  ;;  %v2236_v63 = vpop.f32.mrf.mxu0  ;;  %v7043_v36 = vor.u32 %v4856_v23, %v4162_v38 }
 0x219   :  { %v2166_v50 = vadd.f32 %v2165_v43, %v2092_v24  ;;  %v7029_v16 = vadd.f32 %v2236_v63, %v2163_v59  ;;  %v7031_v54 = vpop.f32.mrf.mxu1  ;;  %v4949_v43 = vld [vmem:[%s8427_s1 + $0x2e4] sm:$0xf] }
 0x21a   :  { %8665 = vst [vmem:[#allocation99_spill] sm:$0xff] %v7043_v36  ;;  %v4965_v63 = vld [vmem:[%s8427_s1 + $0x364] sm:$0xf] }
 0x21b   :  { %v8533_v61 = vmax.f32 %v7029_v16, 0.0 }
 0x21d   :  { %v3165_v13 = vadd.f32 %v3164_v31, %v8533_v61  ;;  %v8666_v31 = vld [vmem:[#allocation13_spill] sm:$0xff] }
 0x21e   :  { %v2093_v40 = vpop.f32.mrf.mxu2 }
 0x21f   :  { %v2094_v59 = vadd.f32 %v2093_v40, %v6406_v11 }
 0x220   :  { %v2167_v52 = vpop.f32.mrf.mxu3  ;;  %v2239_v48 = vpop.f32.mrf.mxu0 }
 0x221   :  { %v2168_v0 = vadd.f32 %v2167_v52, %v2094_v59  ;;  %v7045_v44 = vadd.f32 %v2239_v48, %v2166_v50  ;;  %v7047_v15 = vpop.f32.mrf.mxu1  ;;  %v4539_v50 = vor.u32 %v4949_v43, %v4536_v45  ;;  %v4981_v45 = vld [vmem:[%s8427_s1 + $0x3e4] sm:$0xf] }
 0x223   :  { %v8532_v24 = vmax.f32 %v7045_v44, 0.0  ;;  %2278 = vmatmul.bf16.gmra.mxu0 %v7043_v36  ;;  %2366 = vmatmul.bf16.vlgmr.msrb.gmra.mxu2 %v5218_v8 }
 0x224   :  { %2352 = vmatmul.bf16.gmra.mxu1 %v5564_v47  ;;  %v4600_v47 = vld [vmem:[%s8427_s1 + $0x368] sm:$0xf0]  ;;  %2655 = vmatpush.bf16.msra.mxu2 %v4539_v50 }
 0x225   :  { %2440 = vmatmul.bf16.vlgmr.msrb.gmra.mxu3 %v8666_v31  ;;  %v3166_v11 = vadd.f32 %v3165_v13, %v8532_v24  ;;  %v4603_v13 = vor.u32 %v4965_v63, %v4600_v47 }
 0x226   :  { %v2096_v8 = vpop.f32.mrf.mxu2 }
 0x227   :  { %v2097_v38 = vadd.f32 %v2096_v8, %v6445_v2  ;;  %2729 = vmatpush.bf16.msra.mxu3 %v4603_v13  ;;  %v4664_v2 = vld [vmem:[%s8427_s1 + $0x3e8] sm:$0xf0] }
 0x228   :  { %v2170_v23 = vpop.f32.mrf.mxu3  ;;  %v2241_v40 = vpop.f32.mrf.mxu0  ;;  %v4667_v8 = vor.u32 %v4981_v45, %v4664_v2  ;;  %v8668_v2 = vld [vmem:[#allocation15_spill] sm:$0xff] }
 0x229   :  { %v2171_v59 = vadd.f32 %v2170_v23, %v2097_v38  ;;  %v7069_v52 = vadd.f32 %v2241_v40, %v2168_v0  ;;  %v7071_v48 = vpop.f32.mrf.mxu1  ;;  %v4728_v40 = vld [vmem:[%s8427_s1 + $0x468] sm:$0xf0] }
 0x22a   :  { %2803 = vmatpush.bf16.msra.mxu0 %v4667_v8 }
 0x22b   :  { %v8531_v31 = vmax.f32 %v7069_v52, 0.0 }
 0x22d   :  { %v3167_v43 = vadd.f32 %v3166_v11, %v8531_v31  ;;  %v4997_v11 = vld [vmem:[%s8427_s1 + $0x464] sm:$0xf] }
 0x22e   :  { %v2098_v63 = vpop.f32.mrf.mxu2  ;;  %v4731_v31 = vor.u32 %v4997_v11, %v4728_v40 }
 0x22f   :  { %v2099_v0 = vadd.f32 %v2098_v63, %v6452_v37  ;;  %v8667_v37 = vld [vmem:[#allocation3_spill] sm:$0xff]  ;;  %v8669_v63 = vld [vmem:[#allocation16_spill] sm:$0xff] }
 0x230   :  { %v2172_v50 = vpop.f32.mrf.mxu3  ;;  %v2244_v47 = vpop.f32.mrf.mxu0  ;;  %2877 = vmatpush.bf16.msra.mxu1 %v4731_v31 }
 0x231   :  { %v2173_v38 = vadd.f32 %v2172_v50, %v2099_v0  ;;  %v7083_v23 = vadd.f32 %v2244_v47, %v2171_v59  ;;  %v7085_v13 = vpop.f32.mrf.mxu1  ;;  %v8670_v59 = vld [vmem:[#allocation17_spill] sm:$0xff] }
 0x233   :  { %v8535_v45 = vmax.f32 %v7083_v23, 0.0  ;;  %2371 = vmatmul.bf16.gmra.mxu2 %v8667_v37  ;;  %2514 = vmatmul.bf16.vlgmr.msrb.gmra.mxu0 %v8668_v2 }
 0x234   :  { %2588 = vmatmul.bf16.vlgmr.msrb.gmra.mxu1 %v8670_v59 }
 0x235   :  { %2445 = vmatmul.bf16.gmra.mxu3 %v8669_v63  ;;  %v3168_v8 = vadd.f32 %v3167_v43, %v8535_v45  ;;  %v4947_v43 = vld [vmem:[%s8427_s1 + $0x2d4] sm:$0xf] }
 0x236   :  { %v2101_v0 = vpop.f32.mrf.mxu2 }
 0x237   :  { %v2102_v50 = vadd.f32 %v2101_v0, %v6491_v58  ;;  %v4528_v58 = vld [vmem:[%s8427_s1 + $0x2d8] sm:$0xf0] }
 0x238   :  { %v2175_v47 = vpop.f32.mrf.mxu3  ;;  %v2246_v24 = vpop.f32.mrf.mxu0  ;;  %v4531_v63 = vor.u32 %v4947_v43, %v4528_v58  ;;  %v8673_v58 = vld [vmem:[#allocation18_spill] sm:$0xff] }
 0x239   :  { %v2176_v11 = vadd.f32 %v2175_v47, %v2102_v50  ;;  %v7101_v40 = vadd.f32 %v2246_v24, %v2173_v38  ;;  %v7103_v61 = vpop.f32.mrf.mxu1 }
 0x23a   :  { %2656 = vmatpush.bf16.msra.mxu2 %v4531_v63 }
 0x23b   :  { %v8534_v37 = vmax.f32 %v7101_v40, 0.0 }
 0x23d   :  { %v3169_v2 = vadd.f32 %v3168_v8, %v8534_v37  ;;  %v4963_v8 = vld [vmem:[%s8427_s1 + $0x354] sm:$0xf]  ;;  %v4592_v37 = vld [vmem:[%s8427_s1 + $0x358] sm:$0xf0] }
 0x23e   :  { %v2103_v31 = vpop.f32.mrf.mxu2  ;;  %v4595_v45 = vor.u32 %v4963_v8, %v4592_v37 }
 0x23f   :  { %v2104_v24 = vadd.f32 %v2103_v31, %v6504_v30  ;;  %v8672_v30 = vld [vmem:[#allocation5_spill] sm:$0xff]  ;;  %v8674_v31 = vld [vmem:[#allocation20_spill] sm:$0xff] }
 0x240   :  { %v2177_v38 = vpop.f32.mrf.mxu3  ;;  %v2249_v59 = vpop.f32.mrf.mxu0  ;;  %2730 = vmatpush.bf16.msra.mxu3 %v4595_v45 }
 0x241   :  { %v2178_v0 = vadd.f32 %v2177_v38, %v2104_v24  ;;  %v7115_v50 = vadd.f32 %v2249_v59, %v2176_v11  ;;  %v7117_v47 = vpop.f32.mrf.mxu1  ;;  %v8675_v11 = vld [vmem:[#allocation21_spill] sm:$0xff] }
 0x242   :  { %8671 = vst [vmem:[#allocation13_spill] sm:$0xff] %v7117_v47 }
 0x243   :  { %v8539_v43 = vmax.f32 %v7115_v50, 0.0  ;;  %2376 = vmatmul.bf16.gmra.mxu2 %v8672_v30  ;;  %2519 = vmatmul.bf16.gmra.mxu0 %v8673_v58  ;;  %v4979_v30 = vld [vmem:[%s8427_s1 + $0x3d4] sm:$0xf]  ;;  %v4656_v58 = vld [vmem:[%s8427_s1 + $0x3d8] sm:$0xf0] }
 0x244   :  { %2593 = vmatmul.bf16.gmra.mxu1 %v8675_v11 }
 0x245   :  { %2450 = vmatmul.bf16.gmra.mxu3 %v8674_v31  ;;  %v3170_v63 = vadd.f32 %v3169_v2, %v8539_v43  ;;  %v4659_v2 = vor.u32 %v4979_v30, %v4656_v58  ;;  %v8680_v43 = vld [vmem:[#allocation24_spill] sm:$0xff] }
 0x246   :  { %v2106_v24 = vpop.f32.mrf.mxu2 }
 0x247   :  { %v2107_v38 = vadd.f32 %v2106_v24, %v6537_v56  ;;  %2804 = vmatpush.bf16.msra.mxu0 %v4659_v2  ;;  %v8678_v2 = vld [vmem:[#allocation7_spill] sm:$0xff] }
 0x248   :  { %v2180_v59 = vpop.f32.mrf.mxu3  ;;  %v2251_v25 = vpop.f32.mrf.mxu0 }
 0x249   :  { %v2181_v37 = vadd.f32 %v2180_v59, %v2107_v38  ;;  %v7133_v8 = vadd.f32 %v2251_v25, %v2178_v0  ;;  %v7135_v36 = vpop.f32.mrf.mxu1  ;;  %v4995_v25 = vld [vmem:[%s8427_s1 + $0x454] sm:$0xf]  ;;  %v4720_v0 = vld [vmem:[%s8427_s1 + $0x458] sm:$0xf0] }
 0x24a   :  { %8676 = vst [vmem:[#allocation3_spill] sm:$0xff] %v7135_v36  ;;  %v4723_v11 = vor.u32 %v4995_v25, %v4720_v0 }
 0x24b   :  { %v8538_v45 = vmax.f32 %v7133_v8, 0.0 }
 0x24c   :  { %2878 = vmatpush.bf16.msra.mxu1 %v4723_v11 }
 0x24d   :  { %v3171_v56 = vadd.f32 %v3170_v63, %v8538_v45  ;;  %v8679_v45 = vld [vmem:[#allocation22_spill] sm:$0xff] }
 0x24e   :  { %v2108_v31 = vpop.f32.mrf.mxu2 }
 0x24f   :  { %v2109_v58 = vadd.f32 %v2108_v31, %v6550_v39  ;;  %v4945_v31 = vld [vmem:[%s8427_s1 + $0x2c4] sm:$0xf] }
 0x250   :  { %v2182_v24 = vpop.f32.mrf.mxu3  ;;  %v2254_v38 = vpop.f32.mrf.mxu0 }
 0x251   :  { %v7152_v59 = vadd.f32 %v2254_v38, %v2181_v37  ;;  %v7154_v30 = vpop.f32.mrf.mxu1  ;;  %v2183_v37 = vadd.f32 %v2182_v24, %v2109_v58  ;;  %v4961_v58 = vld [vmem:[%s8427_s1 + $0x344] sm:$0xf] }
 0x252   :  { %8677 = vst [vmem:[#allocation15_spill] sm:$0xff] %v7154_v30  ;;  %v8687_v30 = vld [vmem:[#allocation29_spill] sm:$0xff] }
 0x253   :  { %v8542_v63 = vmax.f32 %v7152_v59, 0.0  ;;  %2381 = vmatmul.bf16.gmra.mxu2 %v8678_v2  ;;  %2524 = vmatmul.bf16.gmra.mxu0 %v8679_v45  ;;  %v4584_v2 = vld [vmem:[%s8427_s1 + $0x348] sm:$0xf0] }
 0x254   :  { %2598 = vmatmul.bf16.gmra.mxu1 %v8681_v12 }
 0x255   :  { %2455 = vmatmul.bf16.gmra.mxu3 %v8680_v43  ;;  %v3172_v25 = vadd.f32 %v3171_v56, %v8542_v63  ;;  %v4520_v43 = vld [vmem:[%s8427_s1 + $0x2c8] sm:$0xf0] }
 0x256   :  { %v2111_v0 = vpop.f32.mrf.mxu2  ;;  %v4523_v12 = vor.u32 %v4945_v31, %v4520_v43 }
 0x257   :  { %v2112_v45 = vadd.f32 %v2111_v0, %v6583_v32 }
 0x258   :  { %v2185_v11 = vpop.f32.mrf.mxu3  ;;  %v2256_v38 = vpop.f32.mrf.mxu0  ;;  %2657 = vmatpush.bf16.msra.mxu2 %v4523_v12 }
 0x259   :  { %v7164_v7 = vadd.f32 %v2256_v38, %v2183_v37  ;;  %v7166_v39 = vpop.f32.mrf.mxu1  ;;  %v4587_v38 = vor.u32 %v4961_v58, %v4584_v2  ;;  %v2186_v63 = vadd.f32 %v2185_v11, %v2112_v45  ;;  %v4993_v45 = vld [vmem:[%s8427_s1 + $0x444] sm:$0xf] }
 0x25a   :  { %8682 = vst [vmem:[#allocation16_spill] sm:$0xff] %v7166_v39  ;;  %v8686_v39 = vld [vmem:[#allocation28_spill] sm:$0xff] }
 0x25b   :  { %v8543_v56 = vmax.f32 %v7164_v7, 0.0  ;;  %2731 = vmatpush.bf16.msra.mxu3 %v4587_v38 }
 0x25d   :  { %v3173_v24 = vadd.f32 %v3172_v25, %v8543_v56  ;;  %v8684_v56 = vld [vmem:[#allocation9_spill] sm:$0xff] }
 0x25e   :  { %v2113_v37 = vpop.f32.mrf.mxu2 }
 0x25f   :  { %v2114_v25 = vadd.f32 %v2113_v37, %v6602_v35  ;;  %v4648_v35 = vld [vmem:[%s8427_s1 + $0x3c8] sm:$0xf0] }
 0x260   :  { %v2187_v31 = vpop.f32.mrf.mxu3  ;;  %v2259_v43 = vpop.f32.mrf.mxu0 }
 0x261   :  { %v7184_v32 = vadd.f32 %v2259_v43, %v2186_v63  ;;  %v7186_v0 = vpop.f32.mrf.mxu1  ;;  %v4977_v63 = vld [vmem:[%s8427_s1 + $0x3c4] sm:$0xf] }
 0x262   :  { %8683 = vst [vmem:[#allocation17_spill] sm:$0xff] %v7186_v0 }
 0x263   :  { %v8545_v12 = vmax.f32 %v7184_v32, 0.0  ;;  %2386 = vmatmul.bf16.gmra.mxu2 %v8684_v56  ;;  %2529 = vmatmul.bf16.gmra.mxu0 %v8685_v17  ;;  %v4651_v56 = vor.u32 %v4977_v63, %v4648_v35 }
 0x264   :  { %2603 = vmatmul.bf16.gmra.mxu1 %v8687_v30  ;;  %v4712_v30 = vld [vmem:[%s8427_s1 + $0x448] sm:$0xf0] }
 0x265   :  { %2460 = vmatmul.bf16.gmra.mxu3 %v8686_v39  ;;  %v3174_v11 = vadd.f32 %v3173_v24, %v8545_v12  ;;  %v2188_v39 = vadd.f32 %v2187_v31, %v2114_v25  ;;  %v4715_v58 = vor.u32 %v4993_v45, %v4712_v30  ;;  %2805 = vmatpush.bf16.msra.mxu0 %v4651_v56 }
 0x266   :  { %v2116_v17 = vpop.f32.mrf.mxu2 }
 0x267   :  { %2879 = vmatpush.bf16.msra.mxu1 %v4715_v58  ;;  %v2117_v43 = vadd.f32 %v2116_v17, %v6629_v60  ;;  %v8691_v60 = vld [vmem:[#allocation30_spill] sm:$0xff]  ;;  %v8692_v17 = vld [vmem:[#allocation32_spill] sm:$0xff]  ;;  %v8693_v58 = vld [vmem:[#allocation33_spill] sm:$0xff] }
 0x268   :  { %v2190_v24 = vpop.f32.mrf.mxu3  ;;  %v2261_v2 = vpop.f32.mrf.mxu0 }
 0x269   :  { %v7208_v37 = vadd.f32 %v2261_v2, %v2188_v39  ;;  %v7210_v38 = vpop.f32.mrf.mxu1  ;;  %v2191_v0 = vadd.f32 %v2190_v24, %v2117_v43  ;;  %v8690_v39 = vld [vmem:[#allocation11_spill] sm:$0xff]  ;;  %v4959_v24 = vld [vmem:[%s8427_s1 + $0x334] sm:$0xf] }
 0x26a   :  { %8688 = vst [vmem:[#allocation5_spill] sm:$0xff] %v7210_v38 }
 0x26b   :  { %v8547_v12 = vmax.f32 %v7208_v37, 0.0 }
 0x26d   :  { %v3175_v63 = vadd.f32 %v3174_v11, %v8547_v12 }
 0x26e   :  { %v2118_v35 = vpop.f32.mrf.mxu2 }
 0x26f   :  { %v2119_v56 = vadd.f32 %v2118_v35, %v6654_v55  ;;  %v4512_v55 = vld [vmem:[%s8427_s1 + $0x2b8] sm:$0xf0] }
 0x270   :  { %v2192_v36 = vpop.f32.mrf.mxu3  ;;  %v2264_v31 = vpop.f32.mrf.mxu0  ;;  %v4576_v35 = vld [vmem:[%s8427_s1 + $0x338] sm:$0xf0] }
 0x271   :  { %v7216_v25 = vadd.f32 %v2264_v31, %v2191_v0  ;;  %v7218_v45 = vpop.f32.mrf.mxu1  ;;  %v4943_v0 = vld [vmem:[%s8427_s1 + $0x2b4] sm:$0xf]  ;;  %v2193_v31 = vadd.f32 %v2192_v36, %v2119_v56  ;;  %v4640_v56 = vld [vmem:[%s8427_s1 + $0x3b8] sm:$0xf0] }
 0x272   :  { %8689 = vst [vmem:[#allocation18_spill] sm:$0xff] %v7218_v45  ;;  %v4515_v43 = vor.u32 %v4943_v0, %v4512_v55  ;;  %v4975_v36 = vld [vmem:[%s8427_s1 + $0x3b4] sm:$0xf]  ;;  %v8696_v45 = vld [vmem:[#allocation14_spill] sm:$0xff] }
 0x273   :  { %v8546_v30 = vmax.f32 %v7216_v25, 0.0  ;;  %2391 = vmatmul.bf16.gmra.mxu2 %v8690_v39  ;;  %2534 = vmatmul.bf16.gmra.mxu0 %v8691_v60  ;;  %v4579_v39 = vor.u32 %v4959_v24, %v4576_v35  ;;  %v4991_v55 = vld [vmem:[%s8427_s1 + $0x434] sm:$0xf] }
 0x274   :  { %2608 = vmatmul.bf16.gmra.mxu1 %v8693_v58  ;;  %2658 = vmatpush.bf16.msra.mxu2 %v4515_v43  ;;  %v4643_v43 = vor.u32 %v4975_v36, %v4640_v56  ;;  %v8697_v36 = vld [vmem:[#allocation34_spill] sm:$0xff]  ;;  %v8698_v56 = vld [vmem:[#allocation36_spill] sm:$0xff] }
 0x275   :  { %2465 = vmatmul.bf16.gmra.mxu3 %v8692_v17  ;;  %v3176_v11 = vadd.f32 %v3175_v63, %v8546_v30 }
 0x276   :  { %v2121_v2 = vpop.f32.mrf.mxu2  ;;  %2732 = vmatpush.bf16.msra.mxu3 %v4579_v39  ;;  %2806 = vmatpush.bf16.msra.mxu0 %v4643_v43 }
 0x277   :  { %v2122_v30 = vadd.f32 %v2121_v2, %v6687_v10  ;;  %v4704_v10 = vld [vmem:[%s8427_s1 + $0x438] sm:$0xf0] }
 0x278   :  { %v2195_v63 = vpop.f32.mrf.mxu3  ;;  %v2266_v60 = vpop.f32.mrf.mxu0  ;;  %v4707_v35 = vor.u32 %v4991_v55, %v4704_v10 }
 0x279   :  { %v7240_v17 = vadd.f32 %v2266_v60, %v2193_v31  ;;  %v7242_v58 = vpop.f32.mrf.mxu1  ;;  %v2196_v2 = vadd.f32 %v2195_v63, %v2122_v30  ;;  %v8699_v30 = vld [vmem:[#allocation37_spill] sm:$0xff] }
 0x27a   :  { %8694 = vst [vmem:[#allocation20_spill] sm:$0xff] %v7242_v58  ;;  %2880 = vmatpush.bf16.msra.mxu1 %v4707_v35 }
 0x27b   :  { %v8548_v12 = vmax.f32 %v7240_v17, 0.0 }
 0x27d   :  { %v3177_v0 = vadd.f32 %v3176_v11, %v8548_v12 }
 0x27e   :  { %v2123_v24 = vpop.f32.mrf.mxu2 }
 0x27f   :  { %v2124_v12 = vadd.f32 %v2123_v24, %v6700_v1 }
 0x280   :  { %v2197_v11 = vpop.f32.mrf.mxu3  ;;  %v2269_v31 = vpop.f32.mrf.mxu0 }
 0x281   :  { %v7260_v39 = vadd.f32 %v2269_v31, %v2196_v2  ;;  %v7262_v60 = vpop.f32.mrf.mxu1  ;;  %v2198_v43 = vadd.f32 %v2197_v11, %v2124_v12 }
 0x282   :  { %8695 = vst [vmem:[#allocation21_spill] sm:$0xff] %v7262_v60 }
 0x283   :  { %v8550_v58 = vmax.f32 %v7260_v39, 0.0  ;;  %2396 = vmatmul.bf16.gmra.mxu2 %v8696_v45  ;;  %2539 = vmatmul.bf16.gmra.mxu0 %v8697_v36 }
 0x284   :  { %2613 = vmatmul.bf16.gmra.mxu1 %v8699_v30 }
 0x285   :  { %2470 = vmatmul.bf16.gmra.mxu3 %v8698_v56  ;;  %v3178_v63 = vadd.f32 %v3177_v0, %v8550_v58 }
 0x286   :  { %v2126_v55 = vpop.f32.mrf.mxu2 }
 0x287   :  { %v2127_v1 = vadd.f32 %v2126_v55, %v6733_v51  ;;  %v8702_v51 = vld [vmem:[#allocation38_spill] sm:$0xff]  ;;  %v8703_v55 = vld [vmem:[#allocation40_spill] sm:$0xff] }
 0x288   :  { %v2200_v10 = vpop.f32.mrf.mxu3  ;;  %v2271_v2 = vpop.f32.mrf.mxu0 }
 0x289   :  { %v7272_v35 = vadd.f32 %v2271_v2, %v2198_v43  ;;  %v7276_v45 = vpop.f32.mrf.mxu1  ;;  %v2201_v56 = vadd.f32 %v2200_v10, %v2127_v1  ;;  %v8701_v43 = vld [vmem:[#allocation2_spill] sm:$0xff]  ;;  %v8704_v2 = vld [vmem:[#allocation41_spill] sm:$0xff] }
 0x28a   :  { %8700 = vst [vmem:[#allocation7_spill] sm:$0xff] %v7276_v45 }
 0x28b   :  { %v8549_v24 = vmax.f32 %v7272_v35, 0.0 }
 0x28d   :  { %v3179_v31 = vadd.f32 %v3178_v63, %v8549_v24 }
 0x28e   :  { %v2128_v36 = vpop.f32.mrf.mxu2 }
 0x28f   :  { %v2129_v12 = vadd.f32 %v2128_v36, %v6752_v14 }
 0x290   :  { %v2202_v30 = vpop.f32.mrf.mxu3  ;;  %v2274_v60 = vpop.f32.mrf.mxu0 }
 0x291   :  { %v7280_v0 = vadd.f32 %v2274_v60, %v2201_v56  ;;  %v7290_v10 = vpop.f32.mrf.mxu1  ;;  %v2203_v60 = vadd.f32 %v2202_v30, %v2129_v12  ;;  %v5024_v30 = vld [vmem:[%s8429_s2] sm:$0x3] }
 0x292   :  { %8705 = vst [vmem:[#allocation22_spill] sm:$0xff] %v7290_v10  ;;  %v7303_v12 = vperm.slane %v5024_v30, 1 }
 0x293   :  { %v8551_v11 = vmax.f32 %v7280_v0, 0.0  ;;  %2401 = vmatmul.bf16.gmra.mxu2 %v8701_v43  ;;  %2544 = vmatmul.bf16.gmra.mxu0 %v8702_v51 }
 0x294   :  { %2618 = vmatmul.bf16.gmra.mxu1 %v8704_v2  ;;  %v2294_v30 = vadd.f32 %v6827_v28, %v7303_v12 }
 0x295   :  { %2475 = vmatmul.bf16.gmra.mxu3 %v8703_v55  ;;  %v3180_v63 = vadd.f32 %v3179_v31, %v8551_v11 }
 0x296   :  { %v2131_v1 = vpop.f32.mrf.mxu2 }
 0x297   :  { %v2132_v36 = vadd.f32 %v2131_v1, %v6779_v6  ;;  %v5027_v6 = vmov 200.0  }
 0x298   :  { %v2205_v56 = vpop.f32.mrf.mxu3  ;;  %v2276_v24 = vpop.f32.mrf.mxu0  ;;  %5018 = vrcp.f32 %v5027_v6 }
 0x299   :  { %v7292_v14 = vadd.f32 %v2276_v24, %v2203_v60  ;;  %v2206_v2 = vadd.f32 %v2205_v56, %v2132_v36  ;;  %v7298_v58 = vpop.f32.mrf.mxu1  ;;  %v8707_v60 = vld [vmem:[#allocation4_spill] sm:$0xff]  ;;  %v8708_v56 = vld [vmem:[#allocation42_spill] sm:$0xff] }
 0x29a   :  { %8706 = vst [vmem:[#allocation24_spill] sm:$0xff] %v7298_v58  ;;  %v8709_v36 = vld [vmem:[#allocation44_spill] sm:$0xff] }
 0x29b   :  { %v8552_v43 = vmax.f32 %v7292_v14, 0.0 }
 0x29d   :  { %v3181_v51 = vadd.f32 %v3180_v63, %v8552_v43  ;;  %v8710_v43 = vld [vmem:[#allocation45_spill] sm:$0xff] }
 0x29e   :  { %v2133_v55 = vpop.f32.mrf.mxu2  ;;  %v5019_v6 = vpop.eup %5018 }
 0x29f   :  { %v2134_v1 = vadd.f32 %v2133_v55, %v6798_v33  ;;  %vm3226_vm0 = vweird.f32 %v5019_v6 }
 0x2a0   :  { %v2207_v31 = vpop.f32.mrf.mxu3  ;;  %v2279_v11 = vpop.f32.mrf.mxu0 }
 0x2a1   :  { %v7305_v24 = vadd.f32 %v2279_v11, %v2206_v2  ;;  %v2208_v58 = vadd.f32 %v2207_v31, %v2134_v1  ;;  %v7317_v45 = vpop.f32.mrf.mxu1  ;;  %v8713_v31 = vld [vmem:[#allocation6_spill] sm:$0xff] }
 0x2a2   :  { %8711 = vst [vmem:[#allocation25_spill] sm:$0xff] %v7317_v45  ;;  %v8714_v1 = vld [vmem:[#allocation46_spill] sm:$0xff] }
 0x2a3   :  { %v8555_v63 = vmax.f32 %v7305_v24, 0.0  ;;  %2406 = vmatmul.bf16.gmra.mxu2 %v8707_v60  ;;  %2549 = vmatmul.bf16.gmra.mxu0 %v8708_v56 }
 0x2a4   :  { %2623 = vmatmul.bf16.gmra.mxu1 %v8710_v43 }
 0x2a5   :  { %2480 = vmatmul.bf16.gmra.mxu3 %v8709_v36  ;;  %v3182_v11 = vadd.f32 %v3181_v51, %v8555_v63  ;;  %v3222_v36 = vmul.f32 200.0, %v5019_v6 }
 0x2a6   :  { %v2367_v2 = vpop.f32.mrf.mxu2 }
 0x2a7   :  { %v2368_v33 = vadd.f32 %v2367_v2, %v2294_v30  ;;  %v3223_v47 = vsub.f32 1.0, %v3222_v36  ;;  %v8715_v30 = vld [vmem:[#allocation48_spill] sm:$0xff]  ;;  %v8716_v2 = vld [vmem:[#allocation49_spill] sm:$0xff] }
 0x2a8   :  { %v2441_v55 = vpop.f32.mrf.mxu3  ;;  %v2281_v10 = vpop.f32.mrf.mxu0 }
 0x2a9   :  { %v2442_v60 = vadd.f32 %v2441_v55, %v2368_v33  ;;  %v7319_v56 = vadd.f32 %v2281_v10, %v2208_v58  ;;  %v3224_v19 = vmul.f32 %v5019_v6, %v3223_v47  ;;  %v7322_v63 = vpop.f32.mrf.mxu1 }
 0x2aa   :  { %8712 = vst [vmem:[#allocation9_spill] sm:$0xff] %v7322_v63 }
 0x2ab   :  { %v3000_v43 = vmax.f32 %v7319_v56, 0.0  ;;  %v3225_v10 = vadd.f32 %v5019_v6, %v3224_v19  ;;  %v8719_v19 = vmax.f32 %v6825_v4, 0.0  ;;  %v8727_v4 = vmax.f32 %v6961_v62, 0.0 }
 0x2ac   :  { %v8732_v62 = vmax.f32 %v7083_v23, 0.0  ;;  %v8737_v23 = vmax.f32 %v7164_v7, 0.0 }
 0x2ad   :  { %v3157_v38 = vmul.f32 0.0, %v3000_v43  ;;  %v7330_v55 = vsel %vm3226_vm0, %v5019_v6, %v3225_v10  ;;  %v8723_v6 = vmax.f32 %v6881_v20, 0.0  ;;  %v8729_v20 = vmax.f32 %v7029_v16, 0.0 }
 0x2ae   :  { %v2369_v47 = vpop.f32.mrf.mxu2  ;;  %8717 = vst [vmem:[#allocation26_spill] sm:$0xff] %v7330_v55 }
 0x2af   :  { %v3183_v28 = vadd.f32 %v3182_v11, %v3157_v38  ;;  %v2296_v38 = vadd.f32 %v6848_v53, %v7303_v12  ;;  %v8721_v53 = vmax.f32 %v6846_v21, 0.0  ;;  %v8728_v21 = vmax.f32 %v7005_v49, 0.0 }
 0x2b0   :  { %v8733_v49 = vmax.f32 %v7101_v40, 0.0  ;;  %v8738_v40 = vmax.f32 %v7184_v32, 0.0  ;;  %v8743_v32 = vmax.f32 %v7260_v39, 0.0 }
 0x2b1   :  { %v3184_v9 = vrot.slane %v3183_v28, 4  ;;  %v2370_v56 = vadd.f32 %v2369_v47, %v2296_v38 }
 0x2b3   :  { %v3185_v51 = vadd.f32 %v3184_v9, %v3183_v28  ;;  %2411 = vmatmul.bf16.gmra.mxu2 %v8713_v31  ;;  %2554 = vmatmul.bf16.gmra.mxu0 %v8714_v1  ;;  %v2443_v9 = vpop.f32.mrf.mxu3  ;;  %v2515_v28 = vpop.f32.mrf.mxu0 }
 0x2b4   :  { %2628 = vmatmul.bf16.gmra.mxu1 %v8716_v2  ;;  %v2589_v31 = vpop.f32.mrf.mxu1  ;;  %v2444_v1 = vadd.f32 %v2443_v9, %v2370_v56 }
 0x2b5   :  { %2485 = vmatmul.bf16.gmra.mxu3 %v8715_v30  ;;  %v3186_v58 = vrot.slane %v3185_v51, 2  ;;  %v2516_v30 = vadd.f32 %v2515_v28, %v2442_v60  ;;  %v8726_v60 = vmax.f32 %v6949_v41, 0.0  ;;  %v8731_v41 = vmax.f32 %v7069_v52, 0.0 }
 0x2b6   :  { %v8736_v52 = vmax.f32 %v7152_v59, 0.0  ;;  %v8741_v59 = vmax.f32 %v7240_v17, 0.0  ;;  %v8746_v17 = vmax.f32 %v7292_v14, 0.0 }
 0x2b7   :  { %v3187_v33 = vadd.f32 %v3186_v58, %v3185_v51  ;;  %v7333_v63 = vadd.f32 %v2589_v31, %v2516_v30 }
 0x2b9   :  { %v3188_v11 = vrot.slane %v3187_v33, 1  ;;  %8718 = vst [vmem:[#allocation28_spill] sm:$0xff] %v7333_v63 }
 0x2bb   :  { %v3189_v36 = vadd.f32 %v3188_v11, %v3187_v33  ;;  %v8725_v33 = vmax.f32 %v6905_v46, 0.0  ;;  %v8730_v46 = vmax.f32 %v7045_v44, 0.0  ;;  %v2446_v16 = vpop.f32.mrf.mxu3  ;;  %v8735_v44 = vmax.f32 %v7133_v8, 0.0 }
 0x2bc   :  { %v8740_v8 = vmax.f32 %v7216_v25, 0.0  ;;  %v2591_v7 = vpop.f32.mrf.mxu1  ;;  %v8745_v25 = vmax.f32 %v7280_v0, 0.0 }
 0x2bd   :  { %v3228_v2 = vmul.f32 %v7330_v55, %v3189_v36 }
 0x2bf   :  { %v7337_v51 = vsub.f32 %v8719_v19, %v3228_v2  ;;  %v7341_v58 = vsub.f32 %v8721_v53, %v3228_v2  ;;  %v7345_v10 = vsub.f32 %v8723_v6, %v3228_v2  ;;  %v7349_v38 = vsub.f32 %v8725_v33, %v3228_v2  ;;  %v2372_v19 = vpop.f32.mrf.mxu2 }
 0x2c0   :  { %v7353_v11 = vsub.f32 %v8726_v60, %v3228_v2  ;;  %v7357_v47 = vsub.f32 %v8727_v4, %v3228_v2  ;;  %v7361_v9 = vsub.f32 %v8728_v21, %v3228_v2  ;;  %v7365_v56 = vsub.f32 %v8729_v20, %v3228_v2 }
 0x2c1   :  { %8720 = vst [vmem:[#allocation29_spill] sm:$0xff] %v7337_v51  ;;  %v7369_v36 = vsub.f32 %v8730_v46, %v3228_v2  ;;  %v7373_v28 = vsub.f32 %v8731_v41, %v3228_v2  ;;  %v7377_v31 = vsub.f32 %v8732_v62, %v3228_v2  ;;  %v7381_v30 = vsub.f32 %v8733_v49, %v3228_v2  ;;  %v2517_v62 = vpop.f32.mrf.mxu0  ;;  %v8742_v49 = vld [vmem:[#allocation8_spill] sm:$0xff] }
 0x2c2   :  { %8722 = vst [vmem:[#allocation11_spill] sm:$0xff] %v7341_v58  ;;  %v8734_v53 = vmax.f32 %v7115_v50, 0.0  ;;  %v7389_v33 = vsub.f32 %v8735_v44, %v3228_v2  ;;  %v7393_v60 = vsub.f32 %v8736_v52, %v3228_v2  ;;  %v7397_v4 = vsub.f32 %v8737_v23, %v3228_v2 }
 0x2c3   :  { %8724 = vst [vmem:[#allocation30_spill] sm:$0xff] %v7345_v10  ;;  %v7401_v21 = vsub.f32 %v8738_v40, %v3228_v2  ;;  %v8739_v50 = vmax.f32 %v7208_v37, 0.0  ;;  %v7409_v46 = vsub.f32 %v8740_v8, %v3228_v2  ;;  %v7413_v41 = vsub.f32 %v8741_v59, %v3228_v2  ;;  %2416 = vmatmul.bf16.gmra.mxu2 %v8742_v49  ;;  %v8747_v40 = vld [vmem:[#allocation52_spill] sm:$0xff]  ;;  %v8749_v59 = vld [vmem:[#allocation50_spill] sm:$0xff] }
 0x2c4   :  { %v7385_v6 = vsub.f32 %v8734_v53, %v3228_v2  ;;  %v7418_v53 = vsub.f32 %v8743_v32, %v3228_v2  ;;  %v8744_v37 = vmax.f32 %v7272_v35, 0.0  ;;  %v7426_v52 = vsub.f32 %v8745_v25, %v3228_v2  ;;  %2559 = vmatmul.bf16.gmra.mxu0 %v8749_v59  ;;  %v8750_v35 = vld [vmem:[#allocation53_spill] sm:$0xff]  ;;  %v2448_v32 = vpop.f32.mrf.mxu3  ;;  %v2594_v25 = vpop.f32.mrf.mxu1 }
 0x2c5   :  { %v7405_v20 = vsub.f32 %v8739_v50, %v3228_v2  ;;  %v7430_v23 = vsub.f32 %v8746_v17, %v3228_v2  ;;  %2490 = vmatmul.bf16.gmra.mxu3 %v8747_v40  ;;  %v8748_v50 = vmax.f32 %v7305_v24, 0.0  ;;  %v7437_v39 = vsub.f32 %v3000_v43, %v3228_v2  ;;  %2633 = vmatmul.bf16.gmra.mxu1 %v8750_v35 }
 0x2c6   :  { %v7422_v44 = vsub.f32 %v8744_v37, %v3228_v2  ;;  %v3282_v0 = vmul.f32 %v7337_v51, %v7337_v51  ;;  %v3284_v14 = vmul.f32 %v7341_v58, %v7341_v58  ;;  %v2299_v37 = vadd.f32 %v6883_v27, %v7303_v12 }
 0x2c7   :  { %v7435_v8 = vsub.f32 %v8748_v50, %v3228_v2  ;;  %v2374_v49 = vpop.f32.mrf.mxu2  ;;  %v2301_v24 = vadd.f32 %v6907_v3, %v7303_v12  ;;  %v3286_v43 = vmul.f32 %v7345_v10, %v7345_v10  ;;  %v2518_v50 = vadd.f32 %v2517_v62, %v2444_v1 }
 0x2c8   :  { %v3386_v17 = vadd.f32 %v3284_v14, %v3282_v0  ;;  %v2373_v40 = vadd.f32 %v2372_v19, %v2299_v37  ;;  %v3288_v35 = vmul.f32 %v7349_v38, %v7349_v38  ;;  %v2304_v3 = vadd.f32 %v6951_v42, %v7303_v12 }
 0x2c9   :  { %v2520_v2 = vpop.f32.mrf.mxu0  ;;  %v2375_v59 = vadd.f32 %v2374_v49, %v2301_v24  ;;  %v7453_v58 = vadd.f32 %v2591_v7, %v2518_v50  ;;  %v3290_v10 = vmul.f32 %v7353_v11, %v7353_v11  ;;  %v3292_v1 = vmul.f32 %v7357_v47, %v7357_v47 }
 0x2ca   :  { %v3387_v63 = vadd.f32 %v3386_v17, %v3286_v43  ;;  %v2447_v45 = vadd.f32 %v2446_v16, %v2373_v40  ;;  %v3294_v42 = vmul.f32 %v7361_v9, %v7361_v9  ;;  %v8753_v43 = vld [vmem:[#allocation54_spill] sm:$0xff]  ;;  %v3298_v17 = vmul.f32 %v7369_v36, %v7369_v36 }
 0x2cb   :  { %v2449_v27 = vadd.f32 %v2448_v32, %v2375_v59  ;;  %v8751_v32 = vld [vmem:[#allocation10_spill] sm:$0xff] }
 0x2cc   :  { %v3388_v51 = vadd.f32 %v3387_v63, %v3288_v35  ;;  %v2521_v55 = vadd.f32 %v2520_v2, %v2447_v45  ;;  %v2451_v19 = vpop.f32.mrf.mxu3  ;;  %v2596_v49 = vpop.f32.mrf.mxu1  ;;  %v8752_v45 = vld [vmem:[#allocation56_spill] sm:$0xff]  ;;  %v8754_v2 = vld [vmem:[#allocation57_spill] sm:$0xff]  ;;  %v3300_v35 = vmul.f32 %v7373_v28, %v7373_v28 }
 0x2ce   :  { %v3389_v62 = vadd.f32 %v3388_v51, %v3290_v10  ;;  %v7461_v14 = vadd.f32 %v2594_v25, %v2521_v55  ;;  %v3296_v51 = vmul.f32 %v7365_v56, %v7365_v56  ;;  %v2306_v25 = vadd.f32 %v6963_v18, %v7303_v12 }
 0x2cf   :  { %v2377_v0 = vpop.f32.mrf.mxu2  ;;  %v3304_v18 = vmul.f32 %v7381_v30, %v7381_v30 }
 0x2d0   :  { %v2378_v16 = vadd.f32 %v2377_v0, %v2304_v3  ;;  %v3390_v37 = vadd.f32 %v3389_v62, %v3292_v1  ;;  %v3302_v1 = vmul.f32 %v7377_v31, %v7377_v31 }
 0x2d1   :  { %v2522_v7 = vpop.f32.mrf.mxu0 }
 0x2d2   :  { %v2452_v24 = vadd.f32 %v2451_v19, %v2378_v16  ;;  %v2523_v63 = vadd.f32 %v2522_v7, %v2449_v27  ;;  %v3391_v55 = vadd.f32 %v3390_v37, %v3294_v42  ;;  %v2309_v42 = vadd.f32 %v7007_v57, %v7303_v12 }
 0x2d3   :  { %2421 = vmatmul.bf16.gmra.mxu2 %v8751_v32  ;;  %v3306_v37 = vmul.f32 %v7385_v6, %v7385_v6 }
 0x2d4   :  { %2564 = vmatmul.bf16.gmra.mxu0 %v8753_v43  ;;  %v7470_v10 = vadd.f32 %v2596_v49, %v2523_v63  ;;  %v3392_v40 = vadd.f32 %v3391_v55, %v3296_v51  ;;  %v2453_v59 = vpop.f32.mrf.mxu3  ;;  %v2599_v19 = vpop.f32.mrf.mxu1  ;;  %v3308_v51 = vmul.f32 %v7389_v33, %v7389_v33 }
 0x2d5   :  { %2495 = vmatmul.bf16.gmra.mxu3 %v8752_v45  ;;  %2638 = vmatmul.bf16.gmra.mxu1 %v8754_v2 }
 0x2d6   :  { %v3393_v27 = vadd.f32 %v3392_v40, %v3298_v17  ;;  %v8755_v17 = vld [vmem:[#allocation12_spill] sm:$0xff]  ;;  %v3310_v40 = vmul.f32 %v7393_v60, %v7393_v60 }
 0x2d7   :  { %v2379_v50 = vpop.f32.mrf.mxu2 }
 0x2d8   :  { %v2380_v3 = vadd.f32 %v2379_v50, %v2306_v25  ;;  %v3394_v62 = vadd.f32 %v3393_v27, %v3300_v35  ;;  %v8756_v35 = vld [vmem:[#allocation58_spill] sm:$0xff]  ;;  %v3312_v27 = vmul.f32 %v7397_v4, %v7397_v4 }
 0x2d9   :  { %v2525_v0 = vpop.f32.mrf.mxu0 }
 0x2da   :  { %v2454_v16 = vadd.f32 %v2453_v59, %v2380_v3  ;;  %v2526_v7 = vadd.f32 %v2525_v0, %v2452_v24  ;;  %v3395_v49 = vadd.f32 %v3394_v62, %v3302_v1  ;;  %v3314_v1 = vmul.f32 %v7401_v21, %v7401_v21 }
 0x2dc   :  { %v7483_v32 = vadd.f32 %v2599_v19, %v2526_v7  ;;  %v3396_v63 = vadd.f32 %v3395_v49, %v3304_v18  ;;  %v2456_v43 = vpop.f32.mrf.mxu3  ;;  %v2601_v25 = vpop.f32.mrf.mxu1  ;;  %v2311_v19 = vadd.f32 %v7031_v54, %v7303_v12  ;;  %v3320_v54 = vmul.f32 %v7413_v41, %v7413_v41 }
 0x2de   :  { %v3397_v55 = vadd.f32 %v3396_v63, %v3306_v37  ;;  %v3318_v63 = vmul.f32 %v7409_v46, %v7409_v46 }
 0x2df   :  { %v2382_v45 = vpop.f32.mrf.mxu2 }
 0x2e0   :  { %v2383_v24 = vadd.f32 %v2382_v45, %v2309_v42  ;;  %v3398_v50 = vadd.f32 %v3397_v55, %v3308_v51 }
 0x2e1   :  { %v2527_v2 = vpop.f32.mrf.mxu0 }
 0x2e2   :  { %v2457_v57 = vadd.f32 %v2456_v43, %v2383_v24  ;;  %v2528_v59 = vadd.f32 %v2527_v2, %v2454_v16  ;;  %v3399_v3 = vadd.f32 %v3398_v50, %v3310_v40  ;;  %v2314_v24 = vadd.f32 %v7047_v15, %v7303_v12  ;;  %v4504_v40 = vld [vmem:[%s8427_s1 + $0x2a8] sm:$0xf0]  ;;  %v4957_v50 = vld [vmem:[%s8427_s1 + $0x324] sm:$0xf] }
 0x2e3   :  { %2426 = vmatmul.bf16.gmra.mxu2 %v8755_v17  ;;  %v3322_v2 = vmul.f32 %v7418_v53, %v7418_v53  ;;  %v4941_v17 = vld [vmem:[%s8427_s1 + $0x2a4] sm:$0xf]  ;;  %v4568_v15 = vld [vmem:[%s8427_s1 + $0x328] sm:$0xf0] }
 0x2e4   :  { %2569 = vmatmul.bf16.gmra.mxu0 %v8756_v35  ;;  %v7498_v0 = vadd.f32 %v2601_v25, %v2528_v59  ;;  %v3400_v62 = vadd.f32 %v3399_v3, %v3312_v27  ;;  %v2458_v7 = vpop.f32.mrf.mxu3  ;;  %v2604_v37 = vpop.f32.mrf.mxu1  ;;  %v3324_v27 = vmul.f32 %v7422_v44, %v7422_v44 }
 0x2e5   :  { %2500 = vmatmul.bf16.gmra.mxu3 %v6325_v34  ;;  %2643 = vmatmul.bf16.gmra.mxu1 %v6327_v22  ;;  %v3316_v34 = vmul.f32 %v7405_v20, %v7405_v20 }
 0x2e6   :  { %v3401_v18 = vadd.f32 %v3400_v62, %v3314_v1 }
 0x2e7   :  { %v2384_v16 = vpop.f32.mrf.mxu2 }
 0x2e8   :  { %v2385_v49 = vadd.f32 %v2384_v16, %v2311_v19  ;;  %v3402_v22 = vadd.f32 %v3401_v18, %v3316_v34  ;;  %v4571_v19 = vor.u32 %v4957_v50, %v4568_v15  ;;  %v4939_v18 = vld [vmem:[%s8427_s1 + $0x294] sm:$0xf]  ;;  %v4488_v50 = vld [vmem:[%s8427_s1 + $0x288] sm:$0xf0] }
 0x2e9   :  { %v2530_v42 = vpop.f32.mrf.mxu0 }
 0x2ea   :  { %v2459_v45 = vadd.f32 %v2458_v7, %v2385_v49  ;;  %v2531_v43 = vadd.f32 %v2530_v42, %v2457_v57  ;;  %v3403_v51 = vadd.f32 %v3402_v22, %v3318_v63  ;;  %v4507_v57 = vor.u32 %v4941_v17, %v4504_v40  ;;  %2733 = vmatpush.bf16.msra.mxu3 %v4571_v19  ;;  %v4496_v49 = vld [vmem:[%s8427_s1 + $0x298] sm:$0xf0]  ;;  %v4955_v42 = vld [vmem:[%s8427_s1 + $0x314] sm:$0xf] }
 0x2eb   :  { %v3326_v7 = vmul.f32 %v7426_v52, %v7426_v52  ;;  %v3328_v22 = vmul.f32 %v7430_v23, %v7430_v23  ;;  %v3330_v17 = vmul.f32 %v7435_v8, %v7435_v8 }
 0x2ec   :  { %v7511_v55 = vadd.f32 %v2604_v37, %v2531_v43  ;;  %v3404_v25 = vadd.f32 %v3403_v51, %v3320_v54  ;;  %v2461_v35 = vpop.f32.mrf.mxu3  ;;  %2659 = vmatpush.bf16.msra.mxu2 %v4507_v57  ;;  %v2606_v16 = vpop.f32.mrf.mxu1  ;;  %v4499_v43 = vor.u32 %v4939_v18, %v4496_v49  ;;  %v4560_v54 = vld [vmem:[%s8427_s1 + $0x318] sm:$0xf0]  ;;  %v3332_v51 = vmul.f32 %v7437_v39, %v7437_v39 }
 0x2ee   :  { %v3405_v3 = vadd.f32 %v3404_v25, %v3322_v2  ;;  %v4563_v2 = vor.u32 %v4955_v42, %v4560_v54  ;;  %v8757_v42 = vld [vmem:[#allocation19_spill] sm:$0xff] }
 0x2ef   :  { %v2387_v59 = vpop.f32.mrf.mxu2  ;;  %v4632_v54 = vld [vmem:[%s8427_s1 + $0x3a8] sm:$0xf0] }
 0x2f0   :  { %v2388_v1 = vadd.f32 %v2387_v59, %v2314_v24  ;;  %v3406_v34 = vadd.f32 %v3405_v3, %v3324_v27  ;;  %2660 = vmatpush.bf16.msra.mxu2 %v4499_v43  ;;  %2734 = vmatpush.bf16.msra.mxu3 %v4563_v2  ;;  %v4973_v43 = vld [vmem:[%s8427_s1 + $0x3a4] sm:$0xf] }
 0x2f1   :  { %v2532_v62 = vpop.f32.mrf.mxu0 }
 0x2f2   :  { %v2462_v37 = vadd.f32 %v2461_v35, %v2388_v1  ;;  %v2533_v63 = vadd.f32 %v2532_v62, %v2459_v45  ;;  %v3407_v24 = vadd.f32 %v3406_v34, %v3326_v7  ;;  %v2316_v45 = vadd.f32 %v7071_v48, %v7303_v12  ;;  %v4552_v48 = vld [vmem:[%s8427_s1 + $0x308] sm:$0xf0] }
 0x2f3   :  { %v3384_v35 = vmul.f32 0.0, %v3332_v51  ;;  %v4635_v51 = vor.u32 %v4973_v43, %v4632_v54  ;;  %v8758_v43 = vld [vmem:[#allocation26_spill] sm:$0xff] }
 0x2f4   :  { %2574 = vmatmul.bf16.gmra.mxu0 %v6329_v29  ;;  %v7550_v25 = vadd.f32 %v2606_v16, %v2533_v63  ;;  %v3408_v40 = vadd.f32 %v3407_v24, %v3328_v22  ;;  %v4937_v29 = vld [vmem:[%s8427_s1 + $0x284] sm:$0xf]  ;;  %v2463_v59 = vpop.f32.mrf.mxu3  ;;  %v2609_v62 = vpop.f32.mrf.mxu1  ;;  %v2319_v63 = vadd.f32 %v7085_v13, %v7303_v12 }
 0x2f5   :  { %2648 = vmatmul.bf16.gmra.mxu1 %v6379_v5  ;;  %v4953_v5 = vld [vmem:[%s8427_s1 + $0x304] sm:$0xf]  ;;  %v4491_v57 = vor.u32 %v4937_v29, %v4488_v50  ;;  %2807 = vmatpush.bf16.msra.mxu0 %v4635_v51 }
 0x2f6   :  { %v3409_v27 = vadd.f32 %v3408_v40, %v3330_v17  ;;  %v4555_v3 = vor.u32 %v4953_v5, %v4552_v48  ;;  %v4971_v5 = vld [vmem:[%s8427_s1 + $0x394] sm:$0xf] }
 0x2f7   :  { %v2389_v15 = vpop.f32.mrf.mxu2  ;;  %2661 = vmatpush.bf16.msra.mxu2 %v4491_v57  ;;  %v4624_v57 = vld [vmem:[%s8427_s1 + $0x398] sm:$0xf0]  ;;  %v4987_v48 = vld [vmem:[%s8427_s1 + $0x414] sm:$0xf] }
 0x2f8   :  { %v2390_v19 = vadd.f32 %v2389_v15, %v2316_v45  ;;  %v3410_v16 = vadd.f32 %v3409_v27, %v3384_v35  ;;  %2735 = vmatpush.bf16.msra.mxu3 %v4555_v3  ;;  %v4627_v35 = vor.u32 %v4971_v5, %v4624_v57  ;;  %v4688_v27 = vld [vmem:[%s8427_s1 + $0x418] sm:$0xf0]  ;;  %v8762_v5 = vld [vmem:[#allocation64_spill] sm:$0xff] }
 0x2f9   :  { %v2535_v1 = vpop.f32.mrf.mxu0  ;;  %v8763_v57 = vld [vmem:[#allocation13_spill] sm:$0xff] }
 0x2fa   :  { %v2464_v7 = vadd.f32 %v2463_v59, %v2390_v19  ;;  %v2536_v34 = vadd.f32 %v2535_v1, %v2462_v37  ;;  %v3411_v18 = vrot.slane %v3410_v16, 4  ;;  %2662 = vmatmul.bf16.vlgmr.msra.gmra.mxu2 %v8757_v42  ;;  %v4989_v37 = vld [vmem:[%s8427_s1 + $0x424] sm:$0xf]  ;;  %v4691_v19 = vor.u32 %v4987_v48, %v4688_v27  ;;  %2808 = vmatpush.bf16.msra.mxu0 %v4627_v35 }
 0x2fb   :  { %2736 = vmatmul.bf16.vlgmr.msra.gmra.mxu3 %v6381_v26  ;;  %v4696_v26 = vld [vmem:[%s8427_s1 + $0x428] sm:$0xf0]  ;;  %v2324_v48 = vadd.f32 %v8763_v57, %v7303_v12  ;;  %v8768_v57 = vld [vmem:[#allocation66_spill] sm:$0xff] }
 0x2fc   :  { %v7569_v49 = vadd.f32 %v2609_v62, %v2536_v34  ;;  %v3412_v22 = vadd.f32 %v3411_v18, %v3410_v16  ;;  %v2466_v13 = vpop.f32.mrf.mxu3  ;;  %v4699_v45 = vor.u32 %v4989_v37, %v4696_v26  ;;  %v2611_v29 = vpop.f32.mrf.mxu1  ;;  %v2321_v62 = vadd.f32 %v7103_v61, %v7303_v12  ;;  %v4969_v34 = vld [vmem:[%s8427_s1 + $0x384] sm:$0xf] }
 0x2fd   :  { %v4985_v18 = vld [vmem:[%s8427_s1 + $0x404] sm:$0xf] }
 0x2fe   :  { %v3413_v2 = vrot.slane %v3412_v22, 2  ;;  %2881 = vmatpush.bf16.msra.mxu1 %v4699_v45 }
 0x2ff   :  { %v2392_v24 = vpop.f32.mrf.mxu2 }
 0x300   :  { %v2393_v17 = vadd.f32 %v2392_v24, %v2319_v63  ;;  %v3414_v50 = vadd.f32 %v3413_v2, %v3412_v22  ;;  %v4680_v63 = vld [vmem:[%s8427_s1 + $0x408] sm:$0xf0] }
 0x301   :  { %v2537_v40 = vpop.f32.mrf.mxu0  ;;  %v4683_v37 = vor.u32 %v4985_v18, %v4680_v63 }
 0x302   :  { %v2467_v15 = vadd.f32 %v2466_v13, %v2393_v17  ;;  %v2538_v59 = vadd.f32 %v2537_v40, %v2464_v7  ;;  %v3415_v3 = vrot.slane %v3414_v50, 1  ;;  %2882 = vmatpush.bf16.msra.mxu1 %v4691_v19  ;;  %v4616_v7 = vld [vmem:[%s8427_s1 + $0x388] sm:$0xf0] }
 0x303   :  { %v4619_v42 = vor.u32 %v4969_v34, %v4616_v7  ;;  %v8759_v40 = vld [vmem:[#allocation23_spill] sm:$0xff] }
 0x304   :  { %v7599_v1 = vadd.f32 %v2611_v29, %v2538_v59  ;;  %v3416_v16 = vadd.f32 %v3415_v3, %v3414_v50  ;;  %v2468_v22 = vpop.f32.mrf.mxu3  ;;  %v2614_v24 = vpop.f32.mrf.mxu1  ;;  %v8760_v29 = vld [vmem:[#allocation62_spill] sm:$0xff]  ;;  %v8761_v50 = vld [vmem:[#allocation63_spill] sm:$0xff] }
 0x305   :  { %2809 = vmatpush.bf16.msra.mxu0 %v4619_v42  ;;  %v8764_v42 = vld [vmem:[#allocation3_spill] sm:$0xff] }
 0x306   :  { %v3448_v54 = vmul.f32 %v3416_v16, %v8758_v43  ;;  %2883 = vmatpush.bf16.msra.mxu1 %v4683_v37  ;;  %v2326_v63 = vadd.f32 %v8764_v42, %v7303_v12  ;;  %v8772_v42 = vld [vmem:[#allocation30_spill] sm:$0xff] }
 0x307   :  { %v2394_v61 = vpop.f32.mrf.mxu2 }
 0x308   :  { %v2395_v51 = vadd.f32 %v2394_v61, %v2321_v62  ;;  %v3450_v13 = vadd.f32 1e-05, %v3448_v54  ;;  %2810 = vmatmul.bf16.vlgmr.msra.gmra.mxu0 %v8760_v29 }
 0x309   :  { %v2540_v26 = vpop.f32.mrf.mxu0  ;;  %2884 = vmatmul.bf16.vlgmr.msra.gmra.mxu1 %v8762_v5  ;;  %v8767_v5 = vld [vmem:[#allocation65_spill] sm:$0xff] }
 0x30a   :  { %v2469_v2 = vadd.f32 %v2468_v22, %v2395_v51  ;;  %v2541_v45 = vadd.f32 %v2540_v26, %v2467_v15  ;;  %5020 = vrsqrt.f32 %v3450_v13  ;;  %2667 = vmatmul.bf16.gmra.mxu2 %v8759_v40  ;;  %vm3458_vm2 = vweird.f32 %v3450_v13 }
 0x30b   :  { %2741 = vmatmul.bf16.gmra.mxu3 %v8761_v50  ;;  %v8766_v50 = vld [vmem:[#allocation27_spill] sm:$0xff] }
 0x30c   :  { %v7616_v17 = vadd.f32 %v2614_v24, %v2541_v45  ;;  %v2471_v35 = vpop.f32.mrf.mxu3  ;;  %v2616_v19 = vpop.f32.mrf.mxu1 }
 0x30f   :  { %v2397_v59 = vpop.f32.mrf.mxu2 }
 0x310   :  { %v2398_v27 = vadd.f32 %v2397_v59, %v2324_v48  ;;  %v5021_v15 = vpop.eup %5020  ;;  %v8769_v48 = vld [vmem:[#allocation67_spill] sm:$0xff] }
 0x311   :  { %v2542_v3 = vpop.f32.mrf.mxu0  ;;  %v3453_v34 = vmul.f32 %v5021_v15, %v3450_v13  ;;  %vm3459_vm1 = vweird.f32 %v5021_v15 }
 0x312   :  { %v2472_v62 = vadd.f32 %v2471_v35, %v2398_v27  ;;  %v2543_v16 = vadd.f32 %v2542_v3, %v2469_v2  ;;  %vm3460_vm3 = vmor %vm3458_vm2, %vm3459_vm1  ;;  %v3524_v3 = vld [vmem:[%s8430_s3] sm:$0x3] }
 0x313   :  { %v3454_v18 = vmul.f32 %v5021_v15, %v3453_v34 }
 0x314   :  { %v7624_v7 = vadd.f32 %v2616_v19, %v2543_v16  ;;  %v2473_v54 = vpop.f32.mrf.mxu3  ;;  %v2619_v24 = vpop.f32.mrf.mxu1  ;;  %v8770_v16 = vld [vmem:[#allocation29_spill] sm:$0xff] }
 0x315   :  { %v3455_v61 = vmul.f32 0.5, %v3454_v18  ;;  %v8771_v18 = vld [vmem:[#allocation11_spill] sm:$0xff] }
 0x317   :  { %v2399_v22 = vpop.f32.mrf.mxu2  ;;  %v3456_v51 = vsub.f32 1.5, %v3455_v61  ;;  %v7655_v61 = vperm.slane %v3524_v3, 0  ;;  %v8775_v3 = vld [vmem:[#allocation17_spill] sm:$0xff] }
 0x318   :  { %v2400_v37 = vadd.f32 %v2399_v22, %v2326_v63  ;;  %2815 = vmatmul.bf16.gmra.mxu0 %v8767_v5 }
 0x319   :  { %v2545_v26 = vpop.f32.mrf.mxu0  ;;  %v3457_v29 = vmul.f32 %v5021_v15, %v3456_v51  ;;  %2889 = vmatmul.bf16.gmra.mxu1 %v8769_v48 }
 0x31a   :  { %v7628_v45 = vadd.f32 %v2473_v54, %v2400_v37  ;;  %v2546_v40 = vadd.f32 %v2545_v26, %v2472_v62  ;;  %2672 = vmatmul.bf16.gmra.mxu2 %v8766_v50  ;;  %v8773_v37 = vld [vmem:[#allocation15_spill] sm:$0xff] }
 0x31b   :  { %2746 = vmatmul.bf16.gmra.mxu3 %v8768_v57  ;;  %v7640_v27 = vsel %vm3460_vm3, %v5021_v15, %v3457_v29  ;;  %v3582_v15 = vld [vmem:[%s8431_s4] sm:$0x3]  ;;  %v2329_v51 = vadd.f32 %v8773_v37, %v7303_v12 }
 0x31c   :  { %v7630_v2 = vadd.f32 %v2619_v24, %v2546_v40  ;;  %v7638_v35 = vpop.f32.mrf.mxu3  ;;  %v7647_v62 = vpop.f32.mrf.mxu1  ;;  %v3472_v34 = vmul.f32 %v7640_v27, %v8770_v16  ;;  %v3474_v13 = vmul.f32 %v7640_v27, %v8771_v18  ;;  %v3476_v63 = vmul.f32 %v7640_v27, %v8772_v42 }
 0x31d   :  { %v3478_v22 = vmul.f32 %v7640_v27, %v7349_v38  ;;  %v3480_v54 = vmul.f32 %v7640_v27, %v7353_v11  ;;  %v3482_v26 = vmul.f32 %v7640_v27, %v7357_v47  ;;  %v7668_v24 = vperm.slane %v3582_v15, 0  ;;  %v8774_v11 = vld [vmem:[#allocation16_spill] sm:$0xff] }
 0x31e   :  { %8765 = vst [vmem:[#allocation32_spill] sm:$0xff] %v7630_v2  ;;  %v3484_v40 = vmul.f32 %v7640_v27, %v7361_v9  ;;  %v3530_v29 = vmul.f32 %v7655_v61, %v3472_v34  ;;  %v3532_v50 = vmul.f32 %v7655_v61, %v3474_v13  ;;  %v3534_v38 = vmul.f32 %v7655_v61, %v3476_v63  ;;  %v8776_v34 = vld [vmem:[#allocation5_spill] sm:$0xff]  ;;  %v8777_v2 = vld [vmem:[#allocation31_spill] sm:$0xff] }
 0x31f   :  { %v7636_v59 = vpop.f32.mrf.mxu2  ;;  %v2331_v48 = vadd.f32 %v8774_v11, %v7303_v12  ;;  %v2334_v47 = vadd.f32 %v8775_v3, %v7303_v12  ;;  %v3486_v16 = vmul.f32 %v7640_v27, %v7365_v56  ;;  %v3536_v9 = vmul.f32 %v7655_v61, %v3478_v22 }
 0x320   :  { %v7686_v18 = vadd.f32 %v8776_v34, %v7303_v12  ;;  %v3488_v13 = vmul.f32 %v7640_v27, %v7369_v36  ;;  %v3490_v42 = vmul.f32 %v7640_v27, %v7373_v28  ;;  %v3538_v63 = vmul.f32 %v7655_v61, %v3480_v54 }
 0x321   :  { %v7645_v19 = vpop.f32.mrf.mxu0  ;;  %v3492_v56 = vmul.f32 %v7640_v27, %v7377_v31  ;;  %v3494_v22 = vmul.f32 %v7640_v27, %v7381_v30  ;;  %v3496_v11 = vmul.f32 %v7640_v27, %v7385_v6  ;;  %v3540_v36 = vmul.f32 %v7655_v61, %v3482_v26 }
 0x322   :  { %v3542_v3 = vmul.f32 %v7655_v61, %v3484_v40  ;;  %v3588_v28 = vadd.f32 %v7668_v24, %v3530_v29  ;;  %v3590_v54 = vadd.f32 %v7668_v24, %v3532_v50  ;;  %v3592_v34 = vadd.f32 %v7668_v24, %v3534_v38 }
 0x323   :  { %v3498_v43 = vmul.f32 %v7640_v27, %v7389_v33  ;;  %v3500_v31 = vmul.f32 %v7640_v27, %v7393_v60  ;;  %v3544_v30 = vmul.f32 %v7655_v61, %v3486_v16  ;;  %v3594_v6 = vadd.f32 %v7668_v24, %v3536_v9 }
 0x324   :  { %v7675_v57 = vpop.f32.mrf.mxu3  ;;  %v7695_v37 = vpop.f32.mrf.mxu1  ;;  %v3502_v26 = vmul.f32 %v7640_v27, %v7397_v4  ;;  %v3504_v40 = vmul.f32 %v7640_v27, %v7401_v21  ;;  %v3546_v29 = vmul.f32 %v7655_v61, %v3488_v13  ;;  %v3596_v50 = vadd.f32 %v7668_v24, %v3538_v63  ;;  %3640 = vst [vmem:[%s8432_s5] sm:$0xff] %v3588_v28 }
 0x325   :  { %v3506_v33 = vmul.f32 %v7640_v27, %v7405_v20  ;;  %v3508_v60 = vmul.f32 %v7640_v27, %v7409_v46  ;;  %v3598_v4 = vadd.f32 %v7668_v24, %v3540_v36  ;;  %3642 = vst [vmem:[%s8432_s5 + $0x10] sm:$0xff] %v3590_v54  ;;  %v3510_v21 = vmul.f32 %v7640_v27, %v7413_v41  ;;  %v8778_v54 = vld [vmem:[#allocation69_spill] sm:$0xff] }
 0x326   :  { %v3512_v38 = vmul.f32 %v7640_v27, %v7418_v53  ;;  %v3550_v16 = vmul.f32 %v7655_v61, %v3492_v56  ;;  %v3600_v20 = vadd.f32 %v7668_v24, %v3542_v3  ;;  %3644 = vst [vmem:[%s8432_s5 + $0x20] sm:$0xff] %v3592_v34  ;;  %v3552_v13 = vmul.f32 %v7655_v61, %v3494_v22  ;;  %v8779_v34 = vld [vmem:[#allocation68_spill] sm:$0xff] }
 0x327   :  { %v2404_v5 = vpop.f32.mrf.mxu2  ;;  %v3556_v63 = vmul.f32 %v7655_v61, %v3498_v43  ;;  %v3602_v41 = vadd.f32 %v7668_v24, %v3544_v30  ;;  %3646 = vst [vmem:[%s8432_s5 + $0x30] sm:$0xff] %v3594_v6  ;;  %v3558_v53 = vmul.f32 %v7655_v61, %v3500_v31  ;;  %v3604_v56 = vadd.f32 %v7668_v24, %v3546_v29 }
 0x328   :  { %3648 = vst [vmem:[%s8432_s5 + $0x40] sm:$0xff] %v3596_v50  ;;  %v2403_v22 = vadd.f32 %v7636_v59, %v2329_v51  ;;  %v2405_v28 = vadd.f32 %v2404_v5, %v2331_v48  ;;  %2820 = vmatmul.bf16.gmra.mxu0 %v8779_v34  ;;  %v3608_v30 = vadd.f32 %v7668_v24, %v3550_v16 }
 0x329   :  { %v7693_v15 = vpop.f32.mrf.mxu0  ;;  %3650 = vst [vmem:[%s8432_s5 + $0x50] sm:$0xff] %v3598_v4  ;;  %v3560_v51 = vmul.f32 %v7655_v61, %v3502_v26  ;;  %v3610_v5 = vadd.f32 %v7668_v24, %v3552_v13  ;;  %v3514_v6 = vmul.f32 %v7640_v27, %v7422_v44  ;;  %v3516_v29 = vmul.f32 %v7640_v27, %v7426_v52 }
 0x32a   :  { %2677 = vmatmul.bf16.gmra.mxu2 %v8777_v2  ;;  %v3548_v2 = vmul.f32 %v7655_v61, %v3490_v42  ;;  %v3554_v42 = vmul.f32 %v7655_v61, %v3496_v11  ;;  %v2548_v11 = vadd.f32 %v7645_v19, %v7628_v45  ;;  %3652 = vst [vmem:[%s8432_s5 + $0x60] sm:$0xff] %v3600_v20  ;;  %v8780_v19 = vld [vmem:[#allocation70_spill] sm:$0xff] }
 0x32b   :  { %2751 = vmatmul.bf16.gmra.mxu3 %v8778_v54  ;;  %v2477_v45 = vadd.f32 %v7638_v35, %v2403_v22  ;;  %2894 = vmatmul.bf16.gmra.mxu1 %v8780_v19  ;;  %3654 = vst [vmem:[%s8432_s5 + $0x70] sm:$0xff] %v3602_v41  ;;  %v2479_v48 = vadd.f32 %v7675_v57, %v2405_v28  ;;  %v8781_v22 = vld [vmem:[#allocation35_spill] sm:$0xff] }
 0x32c   :  { %v2481_v9 = vpop.f32.mrf.mxu3  ;;  %v2626_v36 = vpop.f32.mrf.mxu1  ;;  %v3606_v3 = vadd.f32 %v7668_v24, %v3548_v2  ;;  %v7769_v59 = vadd.f32 %v7647_v62, %v2548_v11  ;;  %v3562_v35 = vmul.f32 %v7655_v61, %v3504_v40  ;;  %v3612_v62 = vadd.f32 %v7668_v24, %v3554_v42  ;;  %3656 = vst [vmem:[%s8432_s5 + $0x80] sm:$0xff] %v3604_v56 }
 0x32d   :  { %v2551_v26 = vadd.f32 %v7693_v15, %v2477_v45  ;;  %v3564_v50 = vmul.f32 %v7655_v61, %v3506_v33  ;;  %v3614_v57 = vadd.f32 %v7668_v24, %v3556_v63  ;;  %v3518_v40 = vmul.f32 %v7640_v27, %v7430_v23  ;;  %3660 = vst [vmem:[%s8432_s5 + $0xa0] sm:$0xff] %v3608_v30 }
 0x32e   :  { %3658 = vst [vmem:[%s8432_s5 + $0x90] sm:$0xff] %v3606_v3  ;;  %v3566_v2 = vmul.f32 %v7655_v61, %v3508_v60  ;;  %v3616_v4 = vadd.f32 %v7668_v24, %v3558_v53  ;;  %v3568_v16 = vmul.f32 %v7655_v61, %v3510_v21  ;;  %v3618_v20 = vadd.f32 %v7668_v24, %v3560_v51 }
 0x32f   :  { %v2407_v46 = vpop.f32.mrf.mxu2  ;;  %v7801_v52 = vadd.f32 %v7695_v37, %v2551_v26  ;;  %3662 = vst [vmem:[%s8432_s5 + $0xb0] sm:$0xff] %v3610_v5  ;;  %v3522_v37 = vmul.f32 %v7640_v27, %v7437_v39  ;;  %v3620_v21 = vadd.f32 %v7668_v24, %v3562_v35  ;;  %v3572_v63 = vmul.f32 %v7655_v61, %v3514_v6  ;;  %v8784_v6 = vld [vmem:[#allocation71_spill] sm:$0xff]  ;;  %v8785_v26 = vld [vmem:[#allocation73_spill] sm:$0xff] }
 0x330   :  { %v2408_v31 = vadd.f32 %v2407_v46, %v2334_v47  ;;  %v3520_v46 = vmul.f32 %v7640_v27, %v7435_v8  ;;  %3664 = vst [vmem:[%s8432_s5 + $0xc0] sm:$0xff] %v3612_v62  ;;  %v3574_v27 = vmul.f32 %v7655_v61, %v3516_v29  ;;  %v3576_v41 = vmul.f32 %v7655_v61, %v3518_v40  ;;  %v8786_v29 = vld [vmem:[#allocation20_spill] sm:$0xff] }
 0x331   :  { %v2552_v43 = vpop.f32.mrf.mxu0  ;;  %3666 = vst [vmem:[%s8432_s5 + $0xd0] sm:$0xff] %v3614_v57  ;;  %v3626_v53 = vadd.f32 %v7668_v24, %v3568_v16  ;;  %v3580_v28 = vmul.f32 %v7655_v61, %v3522_v37  ;;  %v3630_v54 = vadd.f32 %v7668_v24, %v3572_v63  ;;  %v8789_v63 = vld [vmem:[#allocation75_spill] sm:$0xff] }
 0x332   :  { %v2482_v47 = vadd.f32 %v2481_v9, %v2408_v31  ;;  %v2553_v44 = vadd.f32 %v2552_v43, %v2479_v48  ;;  %v3570_v9 = vmul.f32 %v7655_v61, %v3512_v38  ;;  %v3624_v38 = vadd.f32 %v7668_v24, %v3566_v2  ;;  %3668 = vst [vmem:[%s8432_s5 + $0xe0] sm:$0xff] %v3616_v4 }
 0x333   :  { %3670 = vst [vmem:[%s8432_s5 + $0xf0] sm:$0xff] %v3618_v20  ;;  %v3578_v11 = vmul.f32 %v7655_v61, %v3520_v46  ;;  %v3632_v34 = vadd.f32 %v7668_v24, %v3574_v27  ;;  %v3634_v45 = vadd.f32 %v7668_v24, %v3576_v41  ;;  %v3638_v48 = vadd.f32 %v7668_v24, %v3580_v28  ;;  %v8787_v20 = vld [vmem:[#allocation39_spill] sm:$0xff]  ;;  %v8791_v27 = vld [vmem:[#allocation76_spill] sm:$0xff] }
 0x334   :  { %v2483_v33 = vpop.f32.mrf.mxu3  ;;  %v7808_v23 = vadd.f32 %v2626_v36, %v2553_v44  ;;  %v2629_v42 = vpop.f32.mrf.mxu1  ;;  %v3628_v43 = vadd.f32 %v7668_v24, %v3570_v9  ;;  %3672 = vst [vmem:[%s8432_s5 + $0x100] sm:$0xff] %v3620_v21  ;;  %v8782_v36 = vld [vmem:[#allocation18_spill] sm:$0xff]  ;;  %v8792_v41 = vld [vmem:[#allocation7_spill] sm:$0xff] }
 0x335   :  { %v2339_v3 = vadd.f32 %v8782_v36, %v7303_v12  ;;  %3676 = vst [vmem:[%s8432_s5 + $0x120] sm:$0xff] %v3624_v38  ;;  %v3636_v19 = vadd.f32 %v7668_v24, %v3578_v11 }
 0x336   :  { %3678 = vst [vmem:[%s8432_s5 + $0x130] sm:$0xff] %v3626_v53  ;;  %v2346_v53 = vadd.f32 %v8792_v41, %v7303_v12 }
 0x337   :  { %v2409_v15 = vpop.f32.mrf.mxu2  ;;  %3680 = vst [vmem:[%s8432_s5 + $0x140] sm:$0xff] %v3628_v43 }
 0x338   :  { %v2410_v60 = vadd.f32 %v2409_v15, %v7686_v18  ;;  %v3622_v18 = vadd.f32 %v7668_v24, %v3564_v50  ;;  %3682 = vst [vmem:[%s8432_s5 + $0x150] sm:$0xff] %v3630_v54  ;;  %2825 = vmatmul.bf16.gmra.mxu0 %v8784_v6  ;;  %v2341_v50 = vadd.f32 %v8786_v29, %v7303_v12  ;;  %v8796_v6 = vld [vmem:[#allocation77_spill] sm:$0xff] }
 0x339   :  { %v2555_v13 = vpop.f32.mrf.mxu0  ;;  %3684 = vst [vmem:[%s8432_s5 + $0x160] sm:$0xff] %v3632_v34 }
 0x33a   :  { %v2484_v8 = vadd.f32 %v2483_v33, %v2410_v60  ;;  %v2556_v39 = vadd.f32 %v2555_v13, %v2482_v47  ;;  %2682 = vmatmul.bf16.gmra.mxu2 %v8781_v22  ;;  %3674 = vst [vmem:[%s8432_s5 + $0x110] sm:$0xff] %v3622_v18  ;;  %v8783_v47 = vld [vmem:[#allocation72_spill] sm:$0xff]  ;;  %v8788_v60 = vld [vmem:[#allocation21_spill] sm:$0xff]  ;;  %v8790_v18 = vld [vmem:[#allocation74_spill] sm:$0xff] }
 0x33b   :  { %2756 = vmatmul.bf16.gmra.mxu3 %v8783_v47  ;;  %2899 = vmatmul.bf16.gmra.mxu1 %v8785_v26  ;;  %3686 = vst [vmem:[%s8432_s5 + $0x170] sm:$0xff] %v3634_v45  ;;  %v2344_v46 = vadd.f32 %v8788_v60, %v7303_v12  ;;  %v8795_v47 = vld [vmem:[#allocation78_spill] sm:$0xff]  ;;  %v8797_v26 = vld [vmem:[#allocation79_spill] sm:$0xff] }
 0x33c   :  { %v7835_v56 = vadd.f32 %v2629_v42, %v2556_v39  ;;  %v2486_v30 = vpop.f32.mrf.mxu3  ;;  %v2631_v5 = vpop.f32.mrf.mxu1  ;;  %3688 = vst [vmem:[%s8432_s5 + $0x180] sm:$0xff] %v3636_v19 }
 0x33d   :  { %3690 = vst [vmem:[%s8432_s5 + $0x190] sm:$0xff] %v3638_v48 }
 0x33f   :  { %v2412_v31 = vpop.f32.mrf.mxu2 }
 0x340   :  { %v2413_v61 = vadd.f32 %v2412_v31, %v2339_v3  ;;  %v8793_v31 = vld [vmem:[#allocation43_spill] sm:$0xff] }
 0x341   :  { %v2557_v51 = vpop.f32.mrf.mxu0 }
 0x342   :  { %v2487_v35 = vadd.f32 %v2486_v30, %v2413_v61  ;;  %v2558_v62 = vadd.f32 %v2557_v51, %v2484_v8  ;;  %v8794_v30 = vld [vmem:[#allocation22_spill] sm:$0xff] }
 0x343   :  { %v2349_v45 = vadd.f32 %v8794_v30, %v7303_v12 }
 0x344   :  { %v7875_v24 = vadd.f32 %v2631_v5, %v2558_v62  ;;  %v2488_v44 = vpop.f32.mrf.mxu3  ;;  %v2634_v4 = vpop.f32.mrf.mxu1 }
 0x347   :  { %v2414_v57 = vpop.f32.mrf.mxu2 }
 0x348   :  { %v2415_v40 = vadd.f32 %v2414_v57, %v2341_v50  ;;  %2830 = vmatmul.bf16.gmra.mxu0 %v8790_v18  ;;  %v8798_v50 = vld [vmem:[#allocation24_spill] sm:$0xff] }
 0x349   :  { %v2560_v2 = vpop.f32.mrf.mxu0  ;;  %v2351_v57 = vadd.f32 %v8798_v50, %v7303_v12 }
 0x34a   :  { %v2489_v15 = vadd.f32 %v2488_v44, %v2415_v40  ;;  %v2561_v33 = vadd.f32 %v2560_v2, %v2487_v35  ;;  %2687 = vmatmul.bf16.gmra.mxu2 %v8787_v20 }
 0x34b   :  { %2761 = vmatmul.bf16.gmra.mxu3 %v8789_v63  ;;  %2904 = vmatmul.bf16.gmra.mxu1 %v8791_v27 }
 0x34c   :  { %v7885_v16 = vadd.f32 %v2634_v4, %v2561_v33  ;;  %v2491_v9 = vpop.f32.mrf.mxu3  ;;  %v2636_v42 = vpop.f32.mrf.mxu1 }
 0x34f   :  { %v2417_v37 = vpop.f32.mrf.mxu2 }
 0x350   :  { %v2418_v21 = vadd.f32 %v2417_v37, %v2344_v46  ;;  %v8799_v46 = vld [vmem:[#allocation47_spill] sm:$0xff]  ;;  %v8800_v37 = vld [vmem:[#allocation25_spill] sm:$0xff] }
 0x351   :  { %v2562_v13 = vpop.f32.mrf.mxu0 }
 0x352   :  { %v2492_v8 = vadd.f32 %v2491_v9, %v2418_v21  ;;  %v2563_v39 = vadd.f32 %v2562_v13, %v2489_v15  ;;  %v2354_v9 = vadd.f32 %v8800_v37, %v7303_v12 }
 0x354   :  { %v7893_v38 = vadd.f32 %v2636_v42, %v2563_v39  ;;  %v2493_v11 = vpop.f32.mrf.mxu3  ;;  %v2639_v3 = vpop.f32.mrf.mxu1  ;;  %v8802_v39 = vld [vmem:[#allocation80_spill] sm:$0xff] }
 0x357   :  { %v2419_v22 = vpop.f32.mrf.mxu2 }
 0x358   :  { %v2420_v43 = vadd.f32 %v2419_v22, %v2346_v53  ;;  %2835 = vmatmul.bf16.gmra.mxu0 %v8796_v6  ;;  %v8803_v53 = vld [vmem:[#allocation82_spill] sm:$0xff] }
 0x359   :  { %v2565_v36 = vpop.f32.mrf.mxu0 }
 0x35a   :  { %v2494_v28 = vadd.f32 %v2493_v11, %v2420_v43  ;;  %v2566_v54 = vadd.f32 %v2565_v36, %v2492_v8  ;;  %2692 = vmatmul.bf16.gmra.mxu2 %v8793_v31  ;;  %v8801_v8 = vld [vmem:[#allocation81_spill] sm:$0xff] }
 0x35b   :  { %2766 = vmatmul.bf16.gmra.mxu3 %v8795_v47  ;;  %2909 = vmatmul.bf16.gmra.mxu1 %v8797_v26  ;;  %v8804_v11 = vld [vmem:[#allocation9_spill] sm:$0xff] }
 0x35c   :  { %v7897_v34 = vadd.f32 %v2639_v3, %v2566_v54  ;;  %v2496_v19 = vpop.f32.mrf.mxu3  ;;  %v2641_v48 = vpop.f32.mrf.mxu1  ;;  %v2356_v43 = vadd.f32 %v8804_v11, %v7303_v12  ;;  %v8808_v12 = vld [vmem:[#allocation83_spill] sm:$0xff] }
 0x35f   :  { %v2422_v61 = vpop.f32.mrf.mxu2 }
 0x360   :  { %v2423_v51 = vadd.f32 %v2422_v61, %v2349_v45 }
 0x361   :  { %v2567_v5 = vpop.f32.mrf.mxu0 }
 0x362   :  { %v2497_v35 = vadd.f32 %v2496_v19, %v2423_v51  ;;  %v2568_v62 = vadd.f32 %v2567_v5, %v2494_v28  ;;  %v8805_v19 = vld [vmem:[#allocation51_spill] sm:$0xff]  ;;  %v8806_v5 = vld [vmem:[#allocation28_spill] sm:$0xff] }
 0x364   :  { %v7905_v29 = vadd.f32 %v2641_v48, %v2568_v62  ;;  %v2498_v40 = vpop.f32.mrf.mxu3  ;;  %v2644_v15 = vpop.f32.mrf.mxu1  ;;  %v8807_v62 = vld [vmem:[#allocation84_spill] sm:$0xff] }
 0x367   :  { %v2424_v44 = vpop.f32.mrf.mxu2 }
 0x368   :  { %v2425_v2 = vadd.f32 %v2424_v44, %v2351_v57  ;;  %2840 = vmatmul.bf16.gmra.mxu0 %v8802_v39  ;;  %v8809_v57 = vld [vmem:[#allocation85_spill] sm:$0xff] }
 0x369   :  { %v2570_v4 = vpop.f32.mrf.mxu0 }
 0x36a   :  { %v2499_v33 = vadd.f32 %v2498_v40, %v2425_v2  ;;  %v2571_v20 = vadd.f32 %v2570_v4, %v2497_v35  ;;  %2697 = vmatmul.bf16.gmra.mxu2 %v8799_v46 }
 0x36b   :  { %2771 = vmatmul.bf16.gmra.mxu3 %v8801_v8  ;;  %2914 = vmatmul.bf16.gmra.mxu1 %v8803_v53  ;;  %v8812_v8 = vld [vmem:[#allocation86_spill] sm:$0xff] }
 0x36c   :  { %v7909_v60 = vadd.f32 %v2644_v15, %v2571_v20  ;;  %v2501_v13 = vpop.f32.mrf.mxu3  ;;  %v2646_v18 = vpop.f32.mrf.mxu1 }
 0x36f   :  { %v2427_v21 = vpop.f32.mrf.mxu2 }
 0x370   :  { %v2428_v42 = vadd.f32 %v2427_v21, %v2354_v9  ;;  %v8810_v9 = vld [vmem:[#allocation55_spill] sm:$0xff] }
 0x371   :  { %v2572_v63 = vpop.f32.mrf.mxu0 }
 0x372   :  { %v2502_v27 = vadd.f32 %v2501_v13, %v2428_v42  ;;  %v2573_v41 = vadd.f32 %v2572_v63, %v2499_v33 }
 0x374   :  { %v7917_v22 = vadd.f32 %v2646_v18, %v2573_v41  ;;  %v2503_v3 = vpop.f32.mrf.mxu3  ;;  %v2649_v31 = vpop.f32.mrf.mxu1  ;;  %v8811_v18 = vld [vmem:[#allocation87_spill] sm:$0xff]  ;;  %v8813_v41 = vld [vmem:[#allocation88_spill] sm:$0xff] }
 0x377   :  { %v2429_v36 = vpop.f32.mrf.mxu2 }
 0x378   :  { %v2430_v28 = vadd.f32 %v2429_v36, %v2356_v43  ;;  %2845 = vmatmul.bf16.gmra.mxu0 %v8808_v12  ;;  %v8816_v12 = vld [vmem:[#allocation89_spill] sm:$0xff] }
 0x379   :  { %v2575_v54 = vpop.f32.mrf.mxu0 }
 0x37a   :  { %v2504_v30 = vadd.f32 %v2503_v3, %v2430_v28  ;;  %v2576_v45 = vadd.f32 %v2575_v54, %v2502_v27  ;;  %2702 = vmatmul.bf16.gmra.mxu2 %v8805_v19 }
 0x37b   :  { %2776 = vmatmul.bf16.gmra.mxu3 %v8807_v62  ;;  %2919 = vmatmul.bf16.gmra.mxu1 %v8809_v57  ;;  %v8817_v57 = vld [vmem:[#allocation91_spill] sm:$0xff] }
 0x37c   :  { %v7921_v61 = vadd.f32 %v2649_v31, %v2576_v45  ;;  %v2651_v35 = vpop.f32.mrf.mxu1 }
 0x37e   :  { %v2737_v47 = vpop.f32.mrf.mxu3 }
 0x37f   :  { %v2663_v51 = vpop.f32.mrf.mxu2 }
 0x380   :  { %v2664_v48 = vadd.f32 %v2663_v51, %v8806_v5  ;;  %v8814_v51 = vld [vmem:[#allocation59_spill] sm:$0xff] }
 0x381   :  { %v2577_v6 = vpop.f32.mrf.mxu0 }
 0x382   :  { %v2738_v26 = vadd.f32 %v2737_v47, %v2664_v48  ;;  %v2578_v50 = vadd.f32 %v2577_v6, %v2504_v30 }
 0x384   :  { %v7928_v44 = vadd.f32 %v2651_v35, %v2578_v50 }
 0x386   :  { %v2739_v4 = vpop.f32.mrf.mxu3  ;;  %v2885_v46 = vpop.f32.mrf.mxu1 }
 0x387   :  { %v2665_v40 = vpop.f32.mrf.mxu2 }
 0x388   :  { %v2666_v2 = vadd.f32 %v2665_v40, %v7453_v58  ;;  %2850 = vmatmul.bf16.gmra.mxu0 %v8812_v8 }
 0x389   :  { %v2811_v15 = vpop.f32.mrf.mxu0 }
 0x38a   :  { %v2740_v33 = vadd.f32 %v2739_v4, %v2666_v2  ;;  %v2812_v20 = vadd.f32 %v2811_v15, %v2738_v26  ;;  %2707 = vmatmul.bf16.gmra.mxu2 %v8810_v9  ;;  %v8818_v9 = vld [vmem:[#allocation60_spill] sm:$0xff] }
 0x38b   :  { %2781 = vmatmul.bf16.gmra.mxu3 %v8811_v18  ;;  %2924 = vmatmul.bf16.gmra.mxu1 %v8813_v41 }
 0x38c   :  { %v7931_v37 = vadd.f32 %v2885_v46, %v2812_v20 }
 0x38e   :  { %v2742_v42 = vpop.f32.mrf.mxu3  ;;  %v2887_v27 = vpop.f32.mrf.mxu1  ;;  %v2951_v11 = vmax.f32 %v7931_v37, 0.0 }
 0x38f   :  { %v2668_v21 = vpop.f32.mrf.mxu2 }
 0x390   :  { %v2669_v13 = vadd.f32 %v2668_v21, %v7461_v14 }
 0x391   :  { %v2813_v63 = vpop.f32.mrf.mxu0 }
 0x392   :  { %v2743_v39 = vadd.f32 %v2742_v42, %v2669_v13  ;;  %v2814_v58 = vadd.f32 %v2813_v63, %v2740_v33 }
 0x394   :  { %v7938_v53 = vadd.f32 %v2887_v27, %v2814_v58  ;;  %v8820_v58 = vld [vmem:[#allocation92_spill] sm:$0xff]  ;;  %v8821_v27 = vld [vmem:[#allocation94_spill] sm:$0xff] }
 0x396   :  { %v2953_v43 = vmax.f32 %v7938_v53, 0.0  ;;  %v2744_v28 = vpop.f32.mrf.mxu3  ;;  %v2890_v45 = vpop.f32.mrf.mxu1 }
 0x397   :  { %v2670_v36 = vpop.f32.mrf.mxu2 }
 0x398   :  { %v3190_v14 = vadd.f32 %v2953_v43, %v2951_v11  ;;  %v2671_v3 = vadd.f32 %v2670_v36, %v7470_v10  ;;  %v8815_v10 = vld [vmem:[#allocation90_spill] sm:$0xff]  ;;  %2855 = vmatmul.bf16.gmra.mxu0 %v8816_v12 }
 0x399   :  { %v2816_v54 = vpop.f32.mrf.mxu0 }
 0x39a   :  { %v2745_v31 = vadd.f32 %v2744_v28, %v2671_v3  ;;  %v2817_v30 = vadd.f32 %v2816_v54, %v2743_v39  ;;  %2712 = vmatmul.bf16.gmra.mxu2 %v8814_v51  ;;  %v8819_v39 = vld [vmem:[#allocation93_spill] sm:$0xff] }
 0x39b   :  { %2786 = vmatmul.bf16.gmra.mxu3 %v8815_v10  ;;  %2929 = vmatmul.bf16.gmra.mxu1 %v8817_v57  ;;  %v8822_v51 = vld [vmem:[#allocation61_spill] sm:$0xff]  ;;  %v8824_v57 = vld [vmem:[#allocation95_spill] sm:$0xff] }
 0x39c   :  { %v7947_v19 = vadd.f32 %v2890_v45, %v2817_v30 }
 0x39e   :  { %v2955_v5 = vmax.f32 %v7947_v19, 0.0  ;;  %v2747_v35 = vpop.f32.mrf.mxu3  ;;  %v2892_v40 = vpop.f32.mrf.mxu1 }
 0x39f   :  { %v2673_v48 = vpop.f32.mrf.mxu2 }
 0x3a0   :  { %v3191_v47 = vadd.f32 %v3190_v14, %v2955_v5  ;;  %v2674_v6 = vadd.f32 %v2673_v48, %v7483_v32 }
 0x3a1   :  { %v2818_v62 = vpop.f32.mrf.mxu0 }
 0x3a2   :  { %v2748_v26 = vadd.f32 %v2747_v35, %v2674_v6  ;;  %v2819_v50 = vadd.f32 %v2818_v62, %v2745_v31 }
 0x3a4   :  { %v7957_v2 = vadd.f32 %v2892_v40, %v2819_v50  ;;  %v8825_v40 = vld [vmem:[#allocation97_spill] sm:$0xff] }
 0x3a6   :  { %v2957_v4 = vmax.f32 %v7957_v2, 0.0  ;;  %v2749_v20 = vpop.f32.mrf.mxu3 }
 0x3a7   :  { %v2675_v15 = vpop.f32.mrf.mxu2 }
 0x3a8   :  { %v3192_v33 = vadd.f32 %v3191_v47, %v2957_v4  ;;  %v2676_v32 = vadd.f32 %v2675_v15, %v7498_v0  ;;  %v2895_v63 = vpop.f32.mrf.mxu1  ;;  %2860 = vmatmul.bf16.gmra.mxu0 %v8820_v58 }
 0x3a9   :  { %v2821_v21 = vpop.f32.mrf.mxu0 }
 0x3aa   :  { %v2750_v46 = vadd.f32 %v2749_v20, %v2676_v32  ;;  %2717 = vmatmul.bf16.gmra.mxu2 %v8818_v9  ;;  %v2822_v42 = vadd.f32 %v2821_v21, %v2748_v26 }
 0x3ab   :  { %2791 = vmatmul.bf16.gmra.mxu3 %v8819_v39  ;;  %2934 = vmatmul.bf16.gmra.mxu1 %v8821_v27 }
 0x3ac   :  { %v7965_v8 = vadd.f32 %v2895_v63, %v2822_v42 }
 0x3ae   :  { %v2959_v0 = vmax.f32 %v7965_v8, 0.0  ;;  %v2752_v41 = vpop.f32.mrf.mxu3 }
 0x3af   :  { %v2678_v13 = vpop.f32.mrf.mxu2 }
 0x3b0   :  { %v2679_v18 = vadd.f32 %v2678_v13, %v7511_v55  ;;  %v3193_v36 = vadd.f32 %v3192_v33, %v2959_v0  ;;  %v2897_v31 = vpop.f32.mrf.mxu1 }
 0x3b1   :  { %v2823_v3 = vpop.f32.mrf.mxu0 }
 0x3b2   :  { %v2753_v14 = vadd.f32 %v2752_v41, %v2679_v18  ;;  %v2824_v54 = vadd.f32 %v2823_v3, %v2750_v46 }
 0x3b4   :  { %v7974_v30 = vadd.f32 %v2897_v31, %v2824_v54  ;;  %v8826_v54 = vld [vmem:[#allocation98_spill] sm:$0xff] }
 0x3b6   :  { %v2961_v45 = vmax.f32 %v7974_v30, 0.0  ;;  %v2754_v48 = vpop.f32.mrf.mxu3 }
 0x3b7   :  { %v2680_v28 = vpop.f32.mrf.mxu2 }
 0x3b8   :  { %v2681_v55 = vadd.f32 %v2680_v28, %v7550_v25  ;;  %v3194_v47 = vadd.f32 %v3193_v36, %v2961_v45  ;;  %v2900_v12 = vpop.f32.mrf.mxu1  ;;  %v8823_v25 = vld [vmem:[#allocation96_spill] sm:$0xff]  ;;  %2865 = vmatmul.bf16.gmra.mxu0 %v8824_v57 }
 0x3b9   :  { %v2826_v35 = vpop.f32.mrf.mxu0 }
 0x3ba   :  { %2722 = vmatmul.bf16.gmra.mxu2 %v8822_v51  ;;  %v2755_v6 = vadd.f32 %v2754_v48, %v2681_v55  ;;  %v2827_v10 = vadd.f32 %v2826_v35, %v2753_v14 }
 0x3bb   :  { %2796 = vmatmul.bf16.gmra.mxu3 %v8823_v25  ;;  %2939 = vmatmul.bf16.gmra.mxu1 %v8825_v40 }
 0x3bc   :  { %v7981_v50 = vadd.f32 %v2900_v12, %v2827_v10 }
 0x3be   :  { %v2963_v15 = vmax.f32 %v7981_v50, 0.0  ;;  %v2757_v33 = vpop.f32.mrf.mxu3 }
 0x3bf   :  { %v2683_v62 = vpop.f32.mrf.mxu2 }
 0x3c0   :  { %v2684_v26 = vadd.f32 %v2683_v62, %v7569_v49  ;;  %v3195_v32 = vadd.f32 %v3194_v47, %v2963_v15  ;;  %v2902_v13 = vpop.f32.mrf.mxu1 }
 0x3c1   :  { %v2828_v46 = vpop.f32.mrf.mxu0 }
 0x3c2   :  { %v2758_v20 = vadd.f32 %v2757_v33, %v2684_v26  ;;  %v2829_v21 = vadd.f32 %v2828_v46, %v2755_v6  ;;  %v8828_v46 = vld [vmem:[#allocation32_spill] sm:$0xff] }
 0x3c4   :  { %v7990_v42 = vadd.f32 %v2902_v13, %v2829_v21 }
 0x3c6   :  { %v2965_v63 = vmax.f32 %v7990_v42, 0.0  ;;  %v2759_v18 = vpop.f32.mrf.mxu3 }
 0x3c7   :  { %v2685_v9 = vpop.f32.mrf.mxu2 }
 0x3c8   :  { %v2686_v49 = vadd.f32 %v2685_v9, %v7599_v1  ;;  %v3196_v39 = vadd.f32 %v3195_v32, %v2965_v63  ;;  %v2905_v14 = vpop.f32.mrf.mxu1  ;;  %2870 = vmatmul.bf16.gmra.mxu0 %v8826_v54  ;;  %v8827_v1 = vld [vmem:[#allocation99_spill] sm:$0xff] }
 0x3c9   :  { %v2831_v27 = vpop.f32.mrf.mxu0 }
 0x3ca   :  { %v2760_v58 = vadd.f32 %v2759_v18, %v2686_v49  ;;  %v2832_v36 = vadd.f32 %v2831_v27, %v2758_v20 }
 0x3cb   :  { %2944 = vmatmul.bf16.gmra.mxu1 %v8827_v1 }
 0x3cc   :  { %v7996_v28 = vadd.f32 %v2905_v14, %v2832_v36 }
 0x3ce   :  { %v2967_v31 = vmax.f32 %v7996_v28, 0.0  ;;  %v2762_v55 = vpop.f32.mrf.mxu3 }
 0x3cf   :  { %v2688_v41 = vpop.f32.mrf.mxu2 }
 0x3d0   :  { %v2689_v3 = vadd.f32 %v2688_v41, %v7616_v17  ;;  %v3197_v51 = vadd.f32 %v3196_v39, %v2967_v31  ;;  %v2907_v62 = vpop.f32.mrf.mxu1 }
 0x3d1   :  { %v2833_v47 = vpop.f32.mrf.mxu0 }
 0x3d2   :  { %v2763_v48 = vadd.f32 %v2762_v55, %v2689_v3  ;;  %v2834_v35 = vadd.f32 %v2833_v47, %v2760_v58 }
 0x3d4   :  { %v8004_v17 = vadd.f32 %v2907_v62, %v2834_v35 }
 0x3d6   :  { %v2969_v12 = vmax.f32 %v8004_v17, 0.0  ;;  %v2764_v26 = vpop.f32.mrf.mxu3 }
 0x3d7   :  { %v2690_v6 = vpop.f32.mrf.mxu2 }
 0x3d8   :  { %v2691_v10 = vadd.f32 %v2690_v6, %v7624_v7  ;;  %v3198_v25 = vadd.f32 %v3197_v51, %v2969_v12  ;;  %v2910_v20 = vpop.f32.mrf.mxu1 }
 0x3d9   :  { %v2836_v40 = vpop.f32.mrf.mxu0 }
 0x3da   :  { %v2765_v57 = vadd.f32 %v2764_v26, %v2691_v10  ;;  %v2837_v32 = vadd.f32 %v2836_v40, %v2763_v48 }
 0x3dc   :  { %v8010_v21 = vadd.f32 %v2910_v20, %v2837_v32 }
 0x3de   :  { %v2971_v13 = vmax.f32 %v8010_v21, 0.0  ;;  %v2767_v7 = vpop.f32.mrf.mxu3 }
 0x3df   :  { %v2693_v33 = vpop.f32.mrf.mxu2 }
 0x3e0   :  { %v2694_v9 = vadd.f32 %v2693_v33, %v8828_v46  ;;  %v3199_v49 = vadd.f32 %v3198_v25, %v2971_v13  ;;  %v2912_v41 = vpop.f32.mrf.mxu1 }
 0x3e1   :  { %v2838_v39 = vpop.f32.mrf.mxu0 }
 0x3e2   :  { %v2768_v18 = vadd.f32 %v2767_v7, %v2694_v9  ;;  %v2839_v27 = vadd.f32 %v2838_v39, %v2765_v57 }
 0x3e4   :  { %v8016_v14 = vadd.f32 %v2912_v41, %v2839_v27 }
 0x3e6   :  { %v2973_v3 = vmax.f32 %v8016_v14, 0.0  ;;  %v2769_v54 = vpop.f32.mrf.mxu3 }
 0x3e7   :  { %v2695_v58 = vpop.f32.mrf.mxu2 }
 0x3e8   :  { %v2696_v36 = vadd.f32 %v2695_v58, %v7769_v59  ;;  %v3200_v1 = vadd.f32 %v3199_v49, %v2973_v3  ;;  %v2915_v6 = vpop.f32.mrf.mxu1 }
 0x3e9   :  { %v2841_v51 = vpop.f32.mrf.mxu0 }
 0x3ea   :  { %v2770_v55 = vadd.f32 %v2769_v54, %v2696_v36  ;;  %v2842_v47 = vadd.f32 %v2841_v51, %v2768_v18 }
 0x3ec   :  { %v8022_v62 = vadd.f32 %v2915_v6, %v2842_v47 }
 0x3ee   :  { %v2975_v10 = vmax.f32 %v8022_v62, 0.0  ;;  %v2772_v59 = vpop.f32.mrf.mxu3 }
 0x3ef   :  { %v2698_v48 = vpop.f32.mrf.mxu2 }
 0x3f0   :  { %v2699_v35 = vadd.f32 %v2698_v48, %v7801_v52  ;;  %v3201_v26 = vadd.f32 %v3200_v1, %v2975_v10  ;;  %v2917_v32 = vpop.f32.mrf.mxu1 }
 0x3f1   :  { %v2843_v57 = vpop.f32.mrf.mxu0 }
 0x3f2   :  { %v2773_v25 = vadd.f32 %v2772_v59, %v2699_v35  ;;  %v2844_v33 = vadd.f32 %v2843_v57, %v2770_v55 }
 0x3f4   :  { %v8027_v20 = vadd.f32 %v2917_v32, %v2844_v33 }
 0x3f6   :  { %v2977_v46 = vmax.f32 %v8027_v20, 0.0  ;;  %v2774_v9 = vpop.f32.mrf.mxu3 }
 0x3f7   :  { %v2700_v40 = vpop.f32.mrf.mxu2 }
 0x3f8   :  { %v3202_v52 = vadd.f32 %v3201_v26, %v2977_v46  ;;  %v2920_v39 = vpop.f32.mrf.mxu1  ;;  %v2701_v58 = vadd.f32 %v2700_v40, %v7808_v23 }
 0x3f9   :  { %v2846_v7 = vpop.f32.mrf.mxu0 }
 0x3fa   :  { %v2847_v18 = vadd.f32 %v2846_v7, %v2773_v25  ;;  %v2775_v54 = vadd.f32 %v2774_v9, %v2701_v58 }
 0x3fc   :  { %v8033_v27 = vadd.f32 %v2920_v39, %v2847_v18 }
 0x3fe   :  { %v2979_v41 = vmax.f32 %v8033_v27, 0.0  ;;  %v2777_v36 = vpop.f32.mrf.mxu3 }
 0x3ff   :  { %v2703_v49 = vpop.f32.mrf.mxu2 }
 0x400   :  { %v3203_v1 = vadd.f32 %v3202_v52, %v2979_v41  ;;  %v2922_v47 = vpop.f32.mrf.mxu1  ;;  %v2704_v6 = vadd.f32 %v2703_v49, %v7835_v56 }
 0x401   :  { %v2848_v55 = vpop.f32.mrf.mxu0 }
 0x402   :  { %v2849_v48 = vadd.f32 %v2848_v55, %v2775_v54  ;;  %v2778_v26 = vadd.f32 %v2777_v36, %v2704_v6 }
 0x404   :  { %v8039_v35 = vadd.f32 %v2922_v47, %v2849_v48 }
 0x406   :  { %v8567_v59 = vmax.f32 %v8039_v35, 0.0  ;;  %v2779_v23 = vpop.f32.mrf.mxu3  ;;  %v8830_v30 = vmax.f32 %v8039_v35, 0.0 }
 0x407   :  { %v2705_v51 = vpop.f32.mrf.mxu2 }
 0x408   :  { %v3204_v25 = vadd.f32 %v3203_v1, %v8567_v59  ;;  %v2925_v32 = vpop.f32.mrf.mxu1  ;;  %v2706_v9 = vadd.f32 %v2705_v51, %v7875_v24 }
 0x409   :  { %v2851_v57 = vpop.f32.mrf.mxu0 }
 0x40a   :  { %v2852_v33 = vadd.f32 %v2851_v57, %v2778_v26  ;;  %v2780_v49 = vadd.f32 %v2779_v23, %v2706_v9 }
 0x40c   :  { %v8045_v52 = vadd.f32 %v2925_v32, %v2852_v33 }
 0x40e   :  { %v8566_v7 = vmax.f32 %v8045_v52, 0.0  ;;  %v2782_v56 = vpop.f32.mrf.mxu3  ;;  %v8831_v50 = vmax.f32 %v8045_v52, 0.0 }
 0x40f   :  { %v2708_v40 = vpop.f32.mrf.mxu2 }
 0x410   :  { %v3205_v18 = vadd.f32 %v3204_v25, %v8566_v7  ;;  %v2927_v54 = vpop.f32.mrf.mxu1  ;;  %v2709_v1 = vadd.f32 %v2708_v40, %v7885_v16 }
 0x411   :  { %v2853_v39 = vpop.f32.mrf.mxu0 }
 0x412   :  { %v2854_v36 = vadd.f32 %v2853_v39, %v2780_v49  ;;  %v2783_v51 = vadd.f32 %v2782_v56, %v2709_v1 }
 0x414   :  { %v8051_v55 = vadd.f32 %v2927_v54, %v2854_v36 }
 0x416   :  { %v8564_v48 = vmax.f32 %v8051_v55, 0.0  ;;  %v2784_v24 = vpop.f32.mrf.mxu3  ;;  %v8832_v42 = vmax.f32 %v8051_v55, 0.0 }
 0x417   :  { %v2710_v58 = vpop.f32.mrf.mxu2 }
 0x418   :  { %v3206_v47 = vadd.f32 %v3205_v18, %v8564_v48  ;;  %v2930_v57 = vpop.f32.mrf.mxu1  ;;  %v2711_v25 = vadd.f32 %v2710_v58, %v7893_v38 }
 0x419   :  { %v2856_v6 = vpop.f32.mrf.mxu0 }
 0x41a   :  { %v2857_v26 = vadd.f32 %v2856_v6, %v2783_v51  ;;  %v2785_v40 = vadd.f32 %v2784_v24, %v2711_v25 }
 0x41c   :  { %v8057_v33 = vadd.f32 %v2930_v57, %v2857_v26 }
 0x41e   :  { %v8563_v32 = vmax.f32 %v8057_v33, 0.0  ;;  %v2787_v16 = vpop.f32.mrf.mxu3  ;;  %v8833_v28 = vmax.f32 %v8057_v33, 0.0 }
 0x41f   :  { %v2713_v23 = vpop.f32.mrf.mxu2 }
 0x420   :  { %v3207_v9 = vadd.f32 %v3206_v47, %v8563_v32  ;;  %v2932_v36 = vpop.f32.mrf.mxu1  ;;  %v2714_v18 = vadd.f32 %v2713_v23, %v7897_v34 }
 0x421   :  { %v2858_v49 = vpop.f32.mrf.mxu0 }
 0x422   :  { %v2859_v39 = vadd.f32 %v2858_v49, %v2785_v40  ;;  %v2788_v58 = vadd.f32 %v2787_v16, %v2714_v18 }
 0x424   :  { %v8063_v54 = vadd.f32 %v2932_v36, %v2859_v39 }
 0x426   :  { %v8562_v1 = vmax.f32 %v8063_v54, 0.0  ;;  %v2789_v38 = vpop.f32.mrf.mxu3  ;;  %v8834_v17 = vmax.f32 %v8063_v54, 0.0 }
 0x427   :  { %v2715_v56 = vpop.f32.mrf.mxu2 }
 0x428   :  { %v3208_v51 = vadd.f32 %v3207_v9, %v8562_v1  ;;  %v2935_v26 = vpop.f32.mrf.mxu1  ;;  %v2716_v47 = vadd.f32 %v2715_v56, %v7905_v29 }
 0x429   :  { %v2861_v6 = vpop.f32.mrf.mxu0 }
 0x42a   :  { %v2862_v24 = vadd.f32 %v2861_v6, %v2788_v58  ;;  %v2790_v34 = vadd.f32 %v2789_v38, %v2716_v47 }
 0x42c   :  { %v8069_v25 = vadd.f32 %v2935_v26, %v2862_v24 }
 0x42e   :  { %v8561_v40 = vmax.f32 %v8069_v25, 0.0  ;;  %v2792_v49 = vpop.f32.mrf.mxu3  ;;  %v8835_v21 = vmax.f32 %v8069_v25, 0.0 }
 0x42f   :  { %v2718_v57 = vpop.f32.mrf.mxu2 }
 0x430   :  { %v3209_v23 = vadd.f32 %v3208_v51, %v8561_v40  ;;  %v2937_v36 = vpop.f32.mrf.mxu1  ;;  %v2719_v9 = vadd.f32 %v2718_v57, %v7909_v60 }
 0x431   :  { %v2863_v39 = vpop.f32.mrf.mxu0 }
 0x432   :  { %v2864_v16 = vadd.f32 %v2863_v39, %v2790_v34  ;;  %v2793_v29 = vadd.f32 %v2792_v49, %v2719_v9 }
 0x434   :  { %v8075_v18 = vadd.f32 %v2937_v36, %v2864_v16 }
 0x436   :  { %v8565_v6 = vmax.f32 %v8075_v18, 0.0  ;;  %v2794_v47 = vpop.f32.mrf.mxu3  ;;  %v8836_v14 = vmax.f32 %v8075_v18, 0.0 }
 0x437   :  { %v2720_v58 = vpop.f32.mrf.mxu2 }
 0x438   :  { %v3210_v56 = vadd.f32 %v3209_v23, %v8565_v6  ;;  %v2940_v26 = vpop.f32.mrf.mxu1  ;;  %v2721_v51 = vadd.f32 %v2720_v58, %v7917_v22 }
 0x439   :  { %v2866_v24 = vpop.f32.mrf.mxu0 }
 0x43a   :  { %v2867_v38 = vadd.f32 %v2866_v24, %v2793_v29  ;;  %v2795_v1 = vadd.f32 %v2794_v47, %v2721_v51 }
 0x43c   :  { %v2941_v40 = vadd.f32 %v2940_v26, %v2867_v38 }
 0x43e   :  { %v2995_v34 = vmax.f32 %v2941_v40, 0.0  ;;  %v2797_v9 = vpop.f32.mrf.mxu3 }
 0x43f   :  { %v2723_v39 = vpop.f32.mrf.mxu2 }
 0x440   :  { %v3211_v60 = vadd.f32 %v3210_v56, %v2995_v34  ;;  %v2942_v36 = vpop.f32.mrf.mxu1  ;;  %v2724_v32 = vadd.f32 %v2723_v39, %v7921_v61 }
 0x441   :  { %v2868_v57 = vpop.f32.mrf.mxu0 }
 0x442   :  { %v2869_v16 = vadd.f32 %v2868_v57, %v2795_v1  ;;  %v2798_v23 = vadd.f32 %v2797_v9, %v2724_v32 }
 0x444   :  { %v2943_v49 = vadd.f32 %v2942_v36, %v2869_v16 }
 0x446   :  { %v2997_v48 = vmax.f32 %v2943_v49, 0.0  ;;  %v2799_v38 = vpop.f32.mrf.mxu3 }
 0x447   :  { %v2725_v29 = vpop.f32.mrf.mxu2 }
 0x448   :  { %v3212_v6 = vadd.f32 %v3211_v60, %v2997_v48  ;;  %v2945_v59 = vpop.f32.mrf.mxu1  ;;  %v2726_v22 = vadd.f32 %v2725_v29, %v7928_v44 }
 0x449   :  { %v2871_v24 = vpop.f32.mrf.mxu0 }
 0x44a   :  { %v2872_v7 = vadd.f32 %v2871_v24, %v2798_v23  ;;  %v2800_v56 = vadd.f32 %v2799_v38, %v2726_v22  ;;  %v8829_v24 = vld [vmem:[#allocation26_spill] sm:$0xff] }
 0x44c   :  { %v2946_v40 = vadd.f32 %v2945_v59, %v2872_v7 }
 0x44e   :  { %v2999_v58 = vmax.f32 %v2946_v40, 0.0 }
 0x450   :  { %v3213_v26 = vadd.f32 %v3212_v6, %v2999_v58  ;;  %v2947_v51 = vpop.f32.mrf.mxu1 }
 0x451   :  { %v2873_v1 = vpop.f32.mrf.mxu0 }
 0x452   :  { %v2874_v47 = vadd.f32 %v2873_v1, %v2800_v56 }
 0x454   :  { %v2948_v61 = vadd.f32 %v2947_v51, %v2874_v47 }
 0x456   :  { %v3001_v39 = vmax.f32 %v2948_v61, 0.0 }
 0x458   :  { %v3158_v57 = vmul.f32 0.0, %v3001_v39 }
 0x45a   :  { %v3214_v16 = vadd.f32 %v3213_v26, %v3158_v57 }
 0x45c   :  { %v3215_v32 = vrot.slane %v3214_v16, 4 }
 0x45e   :  { %v3216_v60 = vadd.f32 %v3215_v32, %v3214_v16 }
 0x460   :  { %v3217_v36 = vrot.slane %v3216_v60, 2 }
 0x462   :  { %v3218_v49 = vadd.f32 %v3217_v36, %v3216_v60 }
 0x464   :  { %v3219_v9 = vrot.slane %v3218_v49, 1 }
 0x466   :  { %v3220_v23 = vadd.f32 %v3219_v9, %v3218_v49 }
 0x468   :  { %v3229_v44 = vmul.f32 %v8829_v24, %v3220_v23 }
 0x46a   :  { %v8086_v59 = vsub.f32 %v2951_v11, %v3229_v44  ;;  %v8090_v7 = vsub.f32 %v2953_v43, %v3229_v44  ;;  %v8094_v6 = vsub.f32 %v2955_v5, %v3229_v44  ;;  %v8098_v29 = vsub.f32 %v2957_v4, %v3229_v44 }
 0x46b   :  { %v8102_v22 = vsub.f32 %v2959_v0, %v3229_v44  ;;  %v8106_v37 = vsub.f32 %v2961_v45, %v3229_v44  ;;  %v8110_v53 = vsub.f32 %v2963_v15, %v3229_v44  ;;  %v8114_v11 = vsub.f32 %v2965_v63, %v3229_v44 }
 0x46c   :  { %v8118_v43 = vsub.f32 %v2967_v31, %v3229_v44  ;;  %v8122_v19 = vsub.f32 %v2969_v12, %v3229_v44  ;;  %v8126_v5 = vsub.f32 %v2971_v13, %v3229_v44  ;;  %v8130_v2 = vsub.f32 %v2973_v3, %v3229_v44 }
 0x46d   :  { %v8134_v4 = vsub.f32 %v2975_v10, %v3229_v44  ;;  %v8138_v8 = vsub.f32 %v2977_v46, %v3229_v44  ;;  %v8142_v0 = vsub.f32 %v2979_v41, %v3229_v44  ;;  %v8146_v45 = vsub.f32 %v8830_v30, %v3229_v44 }
 0x46e   :  { %v8150_v15 = vsub.f32 %v8831_v50, %v3229_v44  ;;  %v8154_v63 = vsub.f32 %v8832_v42, %v3229_v44  ;;  %v8158_v31 = vsub.f32 %v8833_v28, %v3229_v44  ;;  %v8162_v12 = vsub.f32 %v8834_v17, %v3229_v44 }
 0x46f   :  { %v8166_v13 = vsub.f32 %v8835_v21, %v3229_v44  ;;  %v8170_v3 = vsub.f32 %v8836_v14, %v3229_v44  ;;  %v8172_v62 = vsub.f32 %v2995_v34, %v3229_v44  ;;  %v8174_v10 = vsub.f32 %v2997_v48, %v3229_v44 }
 0x470   :  { %v8176_v20 = vsub.f32 %v2999_v58, %v3229_v44  ;;  %v8178_v46 = vsub.f32 %v3001_v39, %v3229_v44  ;;  %v3283_v27 = vmul.f32 %v8086_v59, %v8086_v59  ;;  %v3285_v41 = vmul.f32 %v8090_v7, %v8090_v7 }
 0x471   :  { %v3287_v35 = vmul.f32 %v8094_v6, %v8094_v6  ;;  %v3289_v55 = vmul.f32 %v8098_v29, %v8098_v29  ;;  %v3291_v48 = vmul.f32 %v8102_v22, %v8102_v22  ;;  %v3293_v25 = vmul.f32 %v8106_v37, %v8106_v37 }
 0x472   :  { %v3417_v52 = vadd.f32 %v3285_v41, %v3283_v27  ;;  %v3295_v34 = vmul.f32 %v8110_v53, %v8110_v53  ;;  %v3297_v58 = vmul.f32 %v8114_v11, %v8114_v11  ;;  %v3299_v56 = vmul.f32 %v8118_v43, %v8118_v43 }
 0x473   :  { %v3301_v1 = vmul.f32 %v8122_v19, %v8122_v19  ;;  %v3303_v51 = vmul.f32 %v8126_v5, %v8126_v5  ;;  %v3305_v39 = vmul.f32 %v8130_v2, %v8130_v2  ;;  %v3307_v16 = vmul.f32 %v8134_v4, %v8134_v4 }
 0x474   :  { %v3418_v33 = vadd.f32 %v3417_v52, %v3287_v35  ;;  %v3309_v60 = vmul.f32 %v8138_v8, %v8138_v8  ;;  %v3311_v49 = vmul.f32 %v8142_v0, %v8142_v0  ;;  %v3313_v23 = vmul.f32 %v8146_v45, %v8146_v45 }
 0x475   :  { %v3315_v30 = vmul.f32 %v8150_v15, %v8150_v15  ;;  %v3317_v42 = vmul.f32 %v8154_v63, %v8154_v63  ;;  %v3319_v17 = vmul.f32 %v8158_v31, %v8158_v31  ;;  %v3321_v14 = vmul.f32 %v8162_v12, %v8162_v12 }
 0x476   :  { %v3419_v54 = vadd.f32 %v3418_v33, %v3289_v55  ;;  %v3323_v41 = vmul.f32 %v8166_v13, %v8166_v13  ;;  %v3325_v52 = vmul.f32 %v8170_v3, %v8170_v3  ;;  %v3327_v33 = vmul.f32 %v8172_v62, %v8172_v62 }
 0x478   :  { %v3420_v18 = vadd.f32 %v3419_v54, %v3291_v48  ;;  %v3329_v54 = vmul.f32 %v8174_v10, %v8174_v10 }
 0x47a   :  { %v3421_v40 = vadd.f32 %v3420_v18, %v3293_v25  ;;  %v3333_v25 = vmul.f32 %v8178_v46, %v8178_v46 }
 0x47c   :  { %v3422_v38 = vadd.f32 %v3421_v40, %v3295_v34  ;;  %v3331_v34 = vmul.f32 %v8176_v20, %v8176_v20 }
 0x47e   :  { %v3423_v26 = vadd.f32 %v3422_v38, %v3297_v58  ;;  %v3385_v58 = vmul.f32 0.0, %v3333_v25 }
 0x480   :  { %v3424_v47 = vadd.f32 %v3423_v26, %v3299_v56 }
 0x482   :  { %v3425_v61 = vadd.f32 %v3424_v47, %v3301_v1 }
 0x484   :  { %v3426_v57 = vadd.f32 %v3425_v61, %v3303_v51 }
 0x486   :  { %v3427_v32 = vadd.f32 %v3426_v57, %v3305_v39 }
 0x488   :  { %v3428_v36 = vadd.f32 %v3427_v32, %v3307_v16 }
 0x48a   :  { %v3429_v9 = vadd.f32 %v3428_v36, %v3309_v60 }
 0x48c   :  { %v3430_v44 = vadd.f32 %v3429_v9, %v3311_v49 }
 0x48e   :  { %v3431_v50 = vadd.f32 %v3430_v44, %v3313_v23 }
 0x490   :  { %v3432_v28 = vadd.f32 %v3431_v50, %v3315_v30 }
 0x492   :  { %v3433_v21 = vadd.f32 %v3432_v28, %v3317_v42  ;;  %v5025_v42 = vld [vmem:[%s8430_s3] sm:$0x3] }
 0x493   :  { %v8244_v28 = vperm.slane %v5025_v42, 1 }
 0x494   :  { %v3434_v27 = vadd.f32 %v3433_v21, %v3319_v17 }
 0x496   :  { %v3435_v35 = vadd.f32 %v3434_v27, %v3321_v14 }
 0x498   :  { %v3436_v55 = vadd.f32 %v3435_v35, %v3323_v41 }
 0x49a   :  { %v3437_v48 = vadd.f32 %v3436_v55, %v3325_v52 }
 0x49c   :  { %v3438_v18 = vadd.f32 %v3437_v48, %v3327_v33 }
 0x49e   :  { %v3439_v40 = vadd.f32 %v3438_v18, %v3329_v54 }
 0x4a0   :  { %v3440_v38 = vadd.f32 %v3439_v40, %v3331_v34 }
 0x4a2   :  { %v3441_v56 = vadd.f32 %v3440_v38, %v3385_v58 }
 0x4a4   :  { %v3442_v26 = vrot.slane %v3441_v56, 4 }
 0x4a6   :  { %v3443_v1 = vadd.f32 %v3442_v26, %v3441_v56 }
 0x4a8   :  { %v3444_v47 = vrot.slane %v3443_v1, 2 }
 0x4aa   :  { %v3445_v51 = vadd.f32 %v3444_v47, %v3443_v1 }
 0x4ac   :  { %v3446_v61 = vrot.slane %v3445_v51, 1 }
 0x4ae   :  { %v3447_v39 = vadd.f32 %v3446_v61, %v3445_v51 }
 0x4b0   :  { %v3449_v57 = vmul.f32 %v3447_v39, %v8829_v24 }
 0x4b2   :  { %v3451_v16 = vadd.f32 1e-05, %v3449_v57 }
 0x4b4   :  { %5022 = vrsqrt.f32 %v3451_v16  ;;  %vm3468_vm5 = vweird.f32 %v3451_v16 }
 0x4ba   :  { %v5023_v32 = vpop.eup %5022 }
 0x4bb   :  { %v3463_v60 = vmul.f32 %v5023_v32, %v3451_v16  ;;  %vm3469_vm4 = vweird.f32 %v5023_v32 }
 0x4bc   :  { %vm3470_vm6 = vmor %vm3468_vm5, %vm3469_vm4 }
 0x4bd   :  { %v3464_v36 = vmul.f32 %v5023_v32, %v3463_v60 }
 0x4bf   :  { %v3465_v49 = vmul.f32 0.5, %v3464_v36 }
 0x4c1   :  { %v3466_v9 = vsub.f32 1.5, %v3465_v49 }
 0x4c3   :  { %v3467_v23 = vmul.f32 %v5023_v32, %v3466_v9 }
 0x4c5   :  { %v8233_v44 = vsel %vm3470_vm6, %v5023_v32, %v3467_v23 }
 0x4c6   :  { %v3473_v30 = vmul.f32 %v8233_v44, %v8086_v59  ;;  %v3475_v50 = vmul.f32 %v8233_v44, %v8090_v7  ;;  %v3477_v24 = vmul.f32 %v8233_v44, %v8094_v6  ;;  %v3479_v17 = vmul.f32 %v8233_v44, %v8098_v29  ;;  %v5026_v7 = vld [vmem:[%s8431_s4] sm:$0x3] }
 0x4c7   :  { %v3481_v21 = vmul.f32 %v8233_v44, %v8102_v22  ;;  %v3483_v59 = vmul.f32 %v8233_v44, %v8106_v37  ;;  %v8255_v6 = vperm.slane %v5026_v7, 1  ;;  %v3485_v14 = vmul.f32 %v8233_v44, %v8110_v53 }
 0x4c8   :  { %v3531_v27 = vmul.f32 %v8244_v28, %v3473_v30  ;;  %v3533_v41 = vmul.f32 %v8244_v28, %v3475_v50  ;;  %v3535_v29 = vmul.f32 %v8244_v28, %v3477_v24  ;;  %v3487_v22 = vmul.f32 %v8233_v44, %v8114_v11 }
 0x4c9   :  { %v3537_v37 = vmul.f32 %v8244_v28, %v3479_v17  ;;  %v3489_v35 = vmul.f32 %v8233_v44, %v8118_v43  ;;  %v3539_v52 = vmul.f32 %v8244_v28, %v3481_v21  ;;  %v3491_v55 = vmul.f32 %v8233_v44, %v8122_v19 }
 0x4ca   :  { %v3493_v53 = vmul.f32 %v8233_v44, %v8126_v5  ;;  %v3541_v33 = vmul.f32 %v8244_v28, %v3483_v59  ;;  %v3543_v48 = vmul.f32 %v8244_v28, %v3485_v14  ;;  %v3589_v54 = vadd.f32 %v8255_v6, %v3531_v27 }
 0x4cb   :  { %v3591_v11 = vadd.f32 %v8255_v6, %v3533_v41  ;;  %v3593_v25 = vadd.f32 %v8255_v6, %v3535_v29  ;;  %v3495_v43 = vmul.f32 %v8233_v44, %v8130_v2  ;;  %v3545_v18 = vmul.f32 %v8244_v28, %v3487_v22 }
 0x4cc   :  { %v3595_v19 = vadd.f32 %v8255_v6, %v3537_v37  ;;  %v3497_v5 = vmul.f32 %v8233_v44, %v8134_v4  ;;  %v3547_v34 = vmul.f32 %v8244_v28, %v3489_v35  ;;  %v3597_v40 = vadd.f32 %v8255_v6, %v3539_v52  ;;  %3641 = vst [vmem:[%s8432_s5 + $0x8] sm:$0xff] %v3589_v54 }
 0x4cd   :  { %v3499_v58 = vmul.f32 %v8233_v44, %v8138_v8  ;;  %v3549_v2 = vmul.f32 %v8244_v28, %v3491_v55  ;;  %v3599_v38 = vadd.f32 %v8255_v6, %v3541_v33  ;;  %3643 = vst [vmem:[%s8432_s5 + $0x18] sm:$0xff] %v3591_v11  ;;  %v3501_v4 = vmul.f32 %v8233_v44, %v8142_v0 }
 0x4ce   :  { %v3551_v56 = vmul.f32 %v8244_v28, %v3493_v53  ;;  %v3601_v26 = vadd.f32 %v8255_v6, %v3543_v48  ;;  %3645 = vst [vmem:[%s8432_s5 + $0x28] sm:$0xff] %v3593_v25  ;;  %v3503_v8 = vmul.f32 %v8233_v44, %v8146_v45  ;;  %v3553_v1 = vmul.f32 %v8244_v28, %v3495_v43 }
 0x4cf   :  { %v3603_v47 = vadd.f32 %v8255_v6, %v3545_v18  ;;  %3647 = vst [vmem:[%s8432_s5 + $0x38] sm:$0xff] %v3595_v19  ;;  %v3505_v0 = vmul.f32 %v8233_v44, %v8150_v15  ;;  %v3555_v51 = vmul.f32 %v8244_v28, %v3497_v5  ;;  %v3605_v61 = vadd.f32 %v8255_v6, %v3547_v34 }
 0x4d0   :  { %3649 = vst [vmem:[%s8432_s5 + $0x48] sm:$0xff] %v3597_v40  ;;  %v3507_v45 = vmul.f32 %v8233_v44, %v8154_v63  ;;  %v3557_v39 = vmul.f32 %v8244_v28, %v3499_v58  ;;  %v3607_v57 = vadd.f32 %v8255_v6, %v3549_v2  ;;  %v3509_v15 = vmul.f32 %v8233_v44, %v8158_v31 }
 0x4d1   :  { %3651 = vst [vmem:[%s8432_s5 + $0x58] sm:$0xff] %v3599_v38  ;;  %v3559_v16 = vmul.f32 %v8244_v28, %v3501_v4  ;;  %v3609_v32 = vadd.f32 %v8255_v6, %v3551_v56  ;;  %v3511_v63 = vmul.f32 %v8233_v44, %v8162_v12  ;;  %v3561_v60 = vmul.f32 %v8244_v28, %v3503_v8 }
 0x4d2   :  { %3653 = vst [vmem:[%s8432_s5 + $0x68] sm:$0xff] %v3601_v26  ;;  %v3611_v36 = vadd.f32 %v8255_v6, %v3553_v1  ;;  %v3513_v31 = vmul.f32 %v8233_v44, %v8166_v13  ;;  %v3563_v49 = vmul.f32 %v8244_v28, %v3505_v0  ;;  %v3613_v9 = vadd.f32 %v8255_v6, %v3555_v51 }
 0x4d3   :  { %3655 = vst [vmem:[%s8432_s5 + $0x78] sm:$0xff] %v3603_v47  ;;  %v3515_v12 = vmul.f32 %v8233_v44, %v8170_v3  ;;  %v3565_v23 = vmul.f32 %v8244_v28, %v3507_v45  ;;  %v3615_v30 = vadd.f32 %v8255_v6, %v3557_v39  ;;  %v3517_v13 = vmul.f32 %v8233_v44, %v8172_v62 }
 0x4d4   :  { %3657 = vst [vmem:[%s8432_s5 + $0x88] sm:$0xff] %v3605_v61  ;;  %v3567_v50 = vmul.f32 %v8244_v28, %v3509_v15  ;;  %v3617_v24 = vadd.f32 %v8255_v6, %v3559_v16  ;;  %v3519_v3 = vmul.f32 %v8233_v44, %v8174_v10  ;;  %v3569_v42 = vmul.f32 %v8244_v28, %v3511_v63 }
 0x4d5   :  { %3659 = vst [vmem:[%s8432_s5 + $0x98] sm:$0xff] %v3607_v57  ;;  %v3619_v17 = vadd.f32 %v8255_v6, %v3561_v60  ;;  %v3521_v62 = vmul.f32 %v8233_v44, %v8176_v20  ;;  %v3571_v21 = vmul.f32 %v8244_v28, %v3513_v31  ;;  %v3621_v59 = vadd.f32 %v8255_v6, %v3563_v49 }
 0x4d6   :  { %3661 = vst [vmem:[%s8432_s5 + $0xa8] sm:$0xff] %v3609_v32  ;;  %v3523_v10 = vmul.f32 %v8233_v44, %v8178_v46  ;;  %v3573_v7 = vmul.f32 %v8244_v28, %v3515_v12  ;;  %v3623_v14 = vadd.f32 %v8255_v6, %v3565_v23  ;;  %v3575_v20 = vmul.f32 %v8244_v28, %v3517_v13 }
 0x4d7   :  { %3663 = vst [vmem:[%s8432_s5 + $0xb8] sm:$0xff] %v3611_v36  ;;  %v3625_v27 = vadd.f32 %v8255_v6, %v3567_v50  ;;  %v3577_v41 = vmul.f32 %v8244_v28, %v3519_v3  ;;  %v3627_v46 = vadd.f32 %v8255_v6, %v3569_v42  ;;  %v3579_v44 = vmul.f32 %v8244_v28, %v3521_v62 }
 0x4d8   :  { %3665 = vst [vmem:[%s8432_s5 + $0xc8] sm:$0xff] %v3613_v9  ;;  %v3629_v29 = vadd.f32 %v8255_v6, %v3571_v21  ;;  %v3581_v22 = vmul.f32 %v8244_v28, %v3523_v10  ;;  %v3631_v37 = vadd.f32 %v8255_v6, %v3573_v7  ;;  %v3633_v35 = vadd.f32 %v8255_v6, %v3575_v20 }
 0x4d9   :  { %3667 = vst [vmem:[%s8432_s5 + $0xd8] sm:$0xff] %v3615_v30  ;;  %v3635_v52 = vadd.f32 %v8255_v6, %v3577_v41  ;;  %v3637_v28 = vadd.f32 %v8255_v6, %v3579_v44 }
 0x4da   :  { %3669 = vst [vmem:[%s8432_s5 + $0xe8] sm:$0xff] %v3617_v24  ;;  %v3639_v55 = vadd.f32 %v8255_v6, %v3581_v22 }
 0x4db   :  { %3671 = vst [vmem:[%s8432_s5 + $0xf8] sm:$0xff] %v3619_v17 }
 0x4dc   :  { %3673 = vst [vmem:[%s8432_s5 + $0x108] sm:$0xff] %v3621_v59 }
 0x4dd   :  { %3675 = vst [vmem:[%s8432_s5 + $0x118] sm:$0xff] %v3623_v14 }
 0x4de   :  { %3677 = vst [vmem:[%s8432_s5 + $0x128] sm:$0xff] %v3625_v27 }
 0x4df   :  { %3679 = vst [vmem:[%s8432_s5 + $0x138] sm:$0xff] %v3627_v46 }
 0x4e0   :  { %3681 = vst [vmem:[%s8432_s5 + $0x148] sm:$0xff] %v3629_v29 }
 0x4e1   :  { %3683 = vst [vmem:[%s8432_s5 + $0x158] sm:$0xff] %v3631_v37 }
 0x4e2   :  { %3685 = vst [vmem:[%s8432_s5 + $0x168] sm:$0xff] %v3633_v35 }
 0x4e3   :  { %3687 = vst [vmem:[%s8432_s5 + $0x178] sm:$0xff] %v3635_v52 }
 0x4e4   :  { %3689 = vst [vmem:[%s8432_s5 + $0x188] sm:$0xff] %v3637_v28 }
 0x4e5   :  { %3691 = vst [vmem:[%s8432_s5 + $0x198] sm:$0xff] %v3639_v55 }

// kernel: teacher_forward.8
= control target key start
LH: loop header
LB: loop body
LE: loop exit
PB: predicated region body
PF: predicated region fallthrough
CT: control target
= control target key end

     0   :  { %s8477_s0 = inlined_call_operand.vmem [shape: bf16[16,9216], index: 0, kind: input, shape index: {}]   ;;  %s8478_s1 = inlined_call_operand.vmem [shape: bf16[9216,512], index: 1, kind: input, shape index: {}]   ;;  %s8479_s2 = inlined_call_operand.vmem [shape: f32[1,512], index: 2, kind: input, shape index: {}]   ;;  %s8480_s3 = inlined_call_operand.vmem [shape: f32[16,512], index: 3, kind: output, shape index: {}]  }
   0x1   :  { %8482 = sst [smem:[#allocation7_spill]] %s8477_s0 }
   0x2   :  { %8483 = sst [smem:[#allocation8_spill]] %s8478_s1 }
   0x3   :  { %s6930_s12 = smov 0   ;;  %s6932_s13 = smov 0  }
   0x4   :  { %s6934_s14 = smov 0   ;;  %s6936_s15 = smov 0  }
   0x5   :  { %s6938_s16 = smov 0   ;;  %s6940_s17 = smov 0  }
   0x6   :  { %s6942_s18 = smov 0   ;;  %s6944_s19 = smov 0  }
   0x7   :  { %s6946_s20 = smov 0   ;;  %s6948_s21 = smov 0  }
   0x8   :  { %s6950_s22 = smov 0  }
   0x9 LB: > { %s5177_s23 = sadd.s32 4294967295, %s6907_s22   ;;  %s22_s24 = sadd.s32 1, %s6899_s20  ;;  %s6907_s22 = sphi %s6950_s22, %s13_s22   ;;  %s6903_s21 = sphi %s6948_s21, %s8500_s21   ;;  %s6899_s20 = sphi %s6946_s20, %s8499_s20   ;;  %s6895_s19 = sphi %s6944_s19, %s8498_s19   ;;  %s6891_s18 = sphi %s6942_s18, %s8497_s18   ;;  %s6887_s17 = sphi %s6940_s17, %s8496_s17   ;;  %s6883_s16 = sphi %s6938_s16, %s8495_s16   ;;  %s6879_s15 = sphi %s6936_s15, %s8494_s15   ;;  %s6875_s14 = sphi %s6934_s14, %s8493_s14   ;;  %s6871_s13 = sphi %s6932_s13, %s8492_s13   ;;  %s6867_s12 = sphi %s6930_s12, %s8491_s12  }
   0xa   : > { %p23_p0 = scmp.ge.s32.totalorder %s22_s24, 4  ;;  %s25_s25 = sadd.s32 1, %s6903_s21 }
   0xb   : > { %s32_s26 = sadd.s32 1, %s6887_s17  ;;  %p39_p1 = scmp.ne.s32.totalorder %s6887_s17, %s6883_s16 }
   0xc   : > { %s8502_s24 = smov (%p23_p0, %s22_s24), 0  ;;  %s8504_s25 = smov (!%p23_p0, %s25_s25), %s6903_s21 }
   0xd   : > { %s29_s27 = ssub.s32 %s6899_s20, %s8502_s24  ;;  %p40_p2 = scmp.eq.s32.totalorder %s6907_s22, 0 }
   0xe   : > { %p27_p3 = scmp.ge.s32.totalorder %s8504_s25, 2  ;;  %p30_p4 = scmp.eq.s32.totalorder %s29_s27, 0 }
   0xf   : > { %p6997_p5 = por %p40_p2, %p39_p1  ;;  %s60_s29 = sadd.s32 1, %s6879_s15 }
  0x10   : > { %s8506_s25 = smov (%p27_p3, %s8504_s25), 0  ;;  %p67_p6 = scmp.ne.s32.totalorder %s6879_s15, %s6875_s14 }
  0x11   : > { %8485 = sst [smem:[#allocation6_spill]] %s8506_s25  ;;  %s56_s4 = ssub.s32 %s6903_s21, %s8506_s25 }
  0x12   : > { %s7005_s30 = scalar_select %p30_p4, %s6887_s17, %s32_s26  }
  0x13   : > { %s57_s5 = sor.u32 %s56_s4, %s29_s27  ;;  %p110_p7 = scmp.eq.s32.totalorder %s56_s4, 0 }
  0x14   : > { %p58_p8 = scmp.eq.s32.totalorder %s57_s5, 0  ;;  %p7011_p9 = por %p67_p6, %p40_p2 }
  0x15   : > { %s112_s7 = sadd.s32 1, %s6871_s13  ;;  %p122_p10 = scmp.ne.s32.totalorder %s6871_s13, %s6867_s12 }
  0x16   : > { %s7019_s8 = scalar_select %p58_p8, %s6879_s15, %s60_s29  }
  0x17   : > { %s7022_s9 = scalar_select %p110_p7, %s6871_s13, %s112_s7  }
  0x18   : > { %p123_p11 = scmp.eq.s32.totalorder %s5177_s23, 7  ;;  %p5180_p13 = scmp.ge.s32.totalorder %s6907_s22, 8 }
  0x1a   : > { %p7024_p12 = por %p123_p11, %p122_p10  ;;  %145 = sbr.rel (%p5180_p13) target bundleno = 356 (0x164), region = 16 }
  0x1f   : > { %148 = sbr.rel (!%p6997_p5) target bundleno = 58 (0x3a), region = 20  ;;  %s150_s11 = sand.u32 (%p6997_p5), 1, %s6887_s17  }
  0x20   : > { %s6419_s26 = smul.u32 (%p6997_p5), 72, %s6899_s20  ;;  %s8488_s0 = sld [smem:[#allocation7_spill]] (%p6997_p5) }
  0x21   : > { %s6728_s27 = smul.u32 (%p6997_p5), 144, %s150_s11 }
  0x23   : > { %s7041_s23 = scalar_lea.vmem (%p6997_p5), [#allocation3], %s6728_s27 }
  0x26   : > { %s7036_s5 = scalar_lea.vmem %s8488_s0, %s6419_s26 }
  0x27   : > { %v168_v0 = vld [vmem:[%s7036_s5] sm:$0xff]  ;;  %v170_v1 = vld [vmem:[%s7036_s5 + $0x8] sm:$0xff]  ;;  %v172_v2 = vld [vmem:[%s7036_s5 + $0x10] sm:$0xff] }
  0x28   : > { %169 = vst [vmem:[%s7041_s23] sm:$0xff] %v168_v0  ;;  %v174_v3 = vld [vmem:[%s7036_s5 + $0x18] sm:$0xff]  ;;  %v176_v4 = vld [vmem:[%s7036_s5 + $0x20] sm:$0xff]  ;;  %v178_v5 = vld [vmem:[%s7036_s5 + $0x28] sm:$0xff] }
  0x29   : > { %171 = vst [vmem:[%s7041_s23 + $0x8] sm:$0xff] %v170_v1  ;;  %v180_v6 = vld [vmem:[%s7036_s5 + $0x30] sm:$0xff]  ;;  %v182_v7 = vld [vmem:[%s7036_s5 + $0x38] sm:$0xff]  ;;  %v184_v8 = vld [vmem:[%s7036_s5 + $0x40] sm:$0xff] }
  0x2a   : > { %173 = vst [vmem:[%s7041_s23 + $0x10] sm:$0xff] %v172_v2  ;;  %v186_v9 = vld [vmem:[%s7036_s5 + $0x120] sm:$0xff]  ;;  %v188_v10 = vld [vmem:[%s7036_s5 + $0x128] sm:$0xff]  ;;  %v190_v11 = vld [vmem:[%s7036_s5 + $0x130] sm:$0xff] }
  0x2b   : > { %175 = vst [vmem:[%s7041_s23 + $0x18] sm:$0xff] %v174_v3  ;;  %v192_v12 = vld [vmem:[%s7036_s5 + $0x138] sm:$0xff]  ;;  %v194_v13 = vld [vmem:[%s7036_s5 + $0x140] sm:$0xff]  ;;  %v196_v14 = vld [vmem:[%s7036_s5 + $0x148] sm:$0xff] }
  0x2c   : > { %177 = vst [vmem:[%s7041_s23 + $0x20] sm:$0xff] %v176_v4  ;;  %v198_v15 = vld [vmem:[%s7036_s5 + $0x150] sm:$0xff]  ;;  %v200_v16 = vld [vmem:[%s7036_s5 + $0x158] sm:$0xff]  ;;  %v202_v17 = vld [vmem:[%s7036_s5 + $0x160] sm:$0xff] }
  0x2d   : > { %179 = vst [vmem:[%s7041_s23 + $0x28] sm:$0xff] %v178_v5 }
  0x2e   : > { %181 = vst [vmem:[%s7041_s23 + $0x30] sm:$0xff] %v180_v6 }
  0x2f   : > { %183 = vst [vmem:[%s7041_s23 + $0x38] sm:$0xff] %v182_v7 }
  0x30   : > { %185 = vst [vmem:[%s7041_s23 + $0x40] sm:$0xff] %v184_v8 }
  0x31   : > { %187 = vst [vmem:[%s7041_s23 + $0x48] sm:$0xff] %v186_v9 }
  0x32   : > { %189 = vst [vmem:[%s7041_s23 + $0x50] sm:$0xff] %v188_v10 }
  0x33   : > { %191 = vst [vmem:[%s7041_s23 + $0x58] sm:$0xff] %v190_v11 }
  0x34   : > { %193 = vst [vmem:[%s7041_s23 + $0x60] sm:$0xff] %v192_v12 }
  0x35   : > { %195 = vst [vmem:[%s7041_s23 + $0x68] sm:$0xff] %v194_v13 }
  0x36   : > { %197 = vst [vmem:[%s7041_s23 + $0x70] sm:$0xff] %v196_v14 }
  0x37   : > { %199 = vst [vmem:[%s7041_s23 + $0x78] sm:$0xff] %v198_v15 }
  0x38   : > { %201 = vst [vmem:[%s7041_s23 + $0x80] sm:$0xff] %v200_v16 }
  0x39   : > { %203 = vst [vmem:[%s7041_s23 + $0x88] sm:$0xff] %v202_v17 }
  0x3a PF: > { %209 = sbr.rel (!%p7011_p9) target bundleno = 356 (0x164), region = 43  ;;  %s211_s28 = sand.u32 (%p7011_p9), 1, %s6879_s15  }
  0x3b   : > { %s6729_s7 = smul.u32 (%p7011_p9), 2304, %s211_s28  ;;  %s5182_s11 = sshll.u32 (%p7011_p9), %s6903_s21, 1 }
  0x3c   : > { %s6420_s26 = smul.u32 (%p7011_p9), 1152, %s6899_s20  ;;  %s8489_s1 = sld [smem:[#allocation8_spill]] (%p7011_p9) }
  0x3d   : > { %s7089_s6 = scalar_lea.vmem (%p7011_p9), [#allocation4], %s6729_s7 }
  0x3e   : > { %s217_s27 = sadd.s32 (%p7011_p9), %s6420_s26, %s5182_s11 }
  0x3f   : > { %s5184_s29 = sshll.u32 %s217_s27, 2 }
  0x42   : > { %s7084_s5 = scalar_lea.vmem %s8489_s1, %s5184_s29 }
  0x43   : > { %v823_v18 = vld [vmem:[%s7084_s5] sm:$0xff]  ;;  %v825_v19 = vld [vmem:[%s7084_s5 + $0x10] sm:$0xff] }
  0x44   : > { %v827_v20 = vld [vmem:[%s7084_s5 + $0x20] sm:$0xff]  ;;  %824 = vst [vmem:[%s7089_s6] sm:$0xff] %v823_v18  ;;  %v829_v21 = vld [vmem:[%s7084_s5 + $0x30] sm:$0xff] }
  0x45   : > { %826 = vst [vmem:[%s7089_s6 + $0x8] sm:$0xff] %v825_v19  ;;  %v831_v22 = vld [vmem:[%s7084_s5 + $0x40] sm:$0xff]  ;;  %v833_v23 = vld [vmem:[%s7084_s5 + $0x50] sm:$0xff] }
  0x46   : > { %828 = vst [vmem:[%s7089_s6 + $0x10] sm:$0xff] %v827_v20  ;;  %v835_v24 = vld [vmem:[%s7084_s5 + $0x60] sm:$0xff]  ;;  %v837_v25 = vld [vmem:[%s7084_s5 + $0x70] sm:$0xff] }
  0x47   : > { %830 = vst [vmem:[%s7089_s6 + $0x18] sm:$0xff] %v829_v21  ;;  %v839_v26 = vld [vmem:[%s7084_s5 + $0x80] sm:$0xff]  ;;  %v841_v27 = vld [vmem:[%s7084_s5 + $0x90] sm:$0xff] }
  0x48   : > { %832 = vst [vmem:[%s7089_s6 + $0x20] sm:$0xff] %v831_v22  ;;  %v843_v28 = vld [vmem:[%s7084_s5 + $0xa0] sm:$0xff]  ;;  %v845_v29 = vld [vmem:[%s7084_s5 + $0xb0] sm:$0xff] }
  0x49   : > { %834 = vst [vmem:[%s7089_s6 + $0x28] sm:$0xff] %v833_v23  ;;  %v847_v30 = vld [vmem:[%s7084_s5 + $0xc0] sm:$0xff]  ;;  %v849_v31 = vld [vmem:[%s7084_s5 + $0xd0] sm:$0xff] }
  0x4a   : > { %836 = vst [vmem:[%s7089_s6 + $0x30] sm:$0xff] %v835_v24  ;;  %v851_v32 = vld [vmem:[%s7084_s5 + $0xe0] sm:$0xff]  ;;  %v853_v33 = vld [vmem:[%s7084_s5 + $0xf0] sm:$0xff] }
  0x4b   : > { %838 = vst [vmem:[%s7089_s6 + $0x38] sm:$0xff] %v837_v25  ;;  %v855_v34 = vld [vmem:[%s7084_s5 + $0x100] sm:$0xff]  ;;  %v857_v35 = vld [vmem:[%s7084_s5 + $0x110] sm:$0xff] }
  0x4c   : > { %840 = vst [vmem:[%s7089_s6 + $0x40] sm:$0xff] %v839_v26  ;;  %v859_v36 = vld [vmem:[%s7084_s5 + $0x120] sm:$0xff]  ;;  %v861_v37 = vld [vmem:[%s7084_s5 + $0x130] sm:$0xff] }
  0x4d   : > { %842 = vst [vmem:[%s7089_s6 + $0x48] sm:$0xff] %v841_v27  ;;  %v863_v38 = vld [vmem:[%s7084_s5 + $0x140] sm:$0xff]  ;;  %v865_v39 = vld [vmem:[%s7084_s5 + $0x150] sm:$0xff] }
  0x4e   : > { %844 = vst [vmem:[%s7089_s6 + $0x50] sm:$0xff] %v843_v28  ;;  %v867_v40 = vld [vmem:[%s7084_s5 + $0x160] sm:$0xff]  ;;  %v869_v41 = vld [vmem:[%s7084_s5 + $0x170] sm:$0xff] }
  0x4f   : > { %846 = vst [vmem:[%s7089_s6 + $0x58] sm:$0xff] %v845_v29  ;;  %v871_v42 = vld [vmem:[%s7084_s5 + $0x180] sm:$0xff]  ;;  %v873_v43 = vld [vmem:[%s7084_s5 + $0x190] sm:$0xff] }
  0x50   : > { %848 = vst [vmem:[%s7089_s6 + $0x60] sm:$0xff] %v847_v30  ;;  %v875_v44 = vld [vmem:[%s7084_s5 + $0x1a0] sm:$0xff]  ;;  %v877_v45 = vld [vmem:[%s7084_s5 + $0x1b0] sm:$0xff] }
  0x51   : > { %850 = vst [vmem:[%s7089_s6 + $0x68] sm:$0xff] %v849_v31  ;;  %v879_v46 = vld [vmem:[%s7084_s5 + $0x1c0] sm:$0xff]  ;;  %v881_v47 = vld [vmem:[%s7084_s5 + $0x1d0] sm:$0xff] }
  0x52   : > { %852 = vst [vmem:[%s7089_s6 + $0x70] sm:$0xff] %v851_v32  ;;  %v883_v48 = vld [vmem:[%s7084_s5 + $0x1e0] sm:$0xff]  ;;  %v885_v49 = vld [vmem:[%s7084_s5 + $0x1f0] sm:$0xff] }
  0x53   : > { %854 = vst [vmem:[%s7089_s6 + $0x78] sm:$0xff] %v853_v33  ;;  %v887_v50 = vld [vmem:[%s7084_s5 + $0x200] sm:$0xff]  ;;  %v889_v51 = vld [vmem:[%s7084_s5 + $0x210] sm:$0xff] }
  0x54   : > { %856 = vst [vmem:[%s7089_s6 + $0x80] sm:$0xff] %v855_v34  ;;  %v891_v52 = vld [vmem:[%s7084_s5 + $0x220] sm:$0xff]  ;;  %v893_v53 = vld [vmem:[%s7084_s5 + $0x230] sm:$0xff] }
  0x55   : > { %858 = vst [vmem:[%s7089_s6 + $0x88] sm:$0xff] %v857_v35  ;;  %v895_v54 = vld [vmem:[%s7084_s5 + $0x240] sm:$0xff]  ;;  %v897_v55 = vld [vmem:[%s7084_s5 + $0x250] sm:$0xff] }
  0x56   : > { %860 = vst [vmem:[%s7089_s6 + $0x90] sm:$0xff] %v859_v36  ;;  %v899_v56 = vld [vmem:[%s7084_s5 + $0x260] sm:$0xff]  ;;  %v901_v57 = vld [vmem:[%s7084_s5 + $0x270] sm:$0xff] }
  0x57   : > { %862 = vst [vmem:[%s7089_s6 + $0x98] sm:$0xff] %v861_v37  ;;  %v903_v58 = vld [vmem:[%s7084_s5 + $0x280] sm:$0xff]  ;;  %v905_v59 = vld [vmem:[%s7084_s5 + $0x290] sm:$0xff] }
  0x58   : > { %864 = vst [vmem:[%s7089_s6 + $0xa0] sm:$0xff] %v863_v38  ;;  %v907_v60 = vld [vmem:[%s7084_s5 + $0x2a0] sm:$0xff]  ;;  %v909_v61 = vld [vmem:[%s7084_s5 + $0x2b0] sm:$0xff] }
  0x59   : > { %866 = vst [vmem:[%s7089_s6 + $0xa8] sm:$0xff] %v865_v39  ;;  %v911_v62 = vld [vmem:[%s7084_s5 + $0x2c0] sm:$0xff]  ;;  %v913_v63 = vld [vmem:[%s7084_s5 + $0x2d0] sm:$0xff] }
  0x5a   : > { %868 = vst [vmem:[%s7089_s6 + $0xb0] sm:$0xff] %v867_v40  ;;  %v915_v0 = vld [vmem:[%s7084_s5 + $0x2e0] sm:$0xff]  ;;  %v917_v1 = vld [vmem:[%s7084_s5 + $0x2f0] sm:$0xff] }
  0x5b   : > { %870 = vst [vmem:[%s7089_s6 + $0xb8] sm:$0xff] %v869_v41  ;;  %v919_v2 = vld [vmem:[%s7084_s5 + $0x300] sm:$0xff]  ;;  %v921_v3 = vld [vmem:[%s7084_s5 + $0x310] sm:$0xff] }
  0x5c   : > { %872 = vst [vmem:[%s7089_s6 + $0xc0] sm:$0xff] %v871_v42  ;;  %v923_v4 = vld [vmem:[%s7084_s5 + $0x320] sm:$0xff]  ;;  %v925_v5 = vld [vmem:[%s7084_s5 + $0x330] sm:$0xff] }
  0x5d   : > { %874 = vst [vmem:[%s7089_s6 + $0xc8] sm:$0xff] %v873_v43  ;;  %v927_v6 = vld [vmem:[%s7084_s5 + $0x340] sm:$0xff]  ;;  %v929_v7 = vld [vmem:[%s7084_s5 + $0x350] sm:$0xff] }
  0x5e   : > { %876 = vst [vmem:[%s7089_s6 + $0xd0] sm:$0xff] %v875_v44  ;;  %v931_v8 = vld [vmem:[%s7084_s5 + $0x360] sm:$0xff]  ;;  %v933_v9 = vld [vmem:[%s7084_s5 + $0x370] sm:$0xff] }
  0x5f   : > { %878 = vst [vmem:[%s7089_s6 + $0xd8] sm:$0xff] %v877_v45  ;;  %v935_v10 = vld [vmem:[%s7084_s5 + $0x380] sm:$0xff]  ;;  %v937_v11 = vld [vmem:[%s7084_s5 + $0x390] sm:$0xff] }
  0x60   : > { %880 = vst [vmem:[%s7089_s6 + $0xe0] sm:$0xff] %v879_v46  ;;  %v939_v12 = vld [vmem:[%s7084_s5 + $0x3a0] sm:$0xff]  ;;  %v941_v13 = vld [vmem:[%s7084_s5 + $0x3b0] sm:$0xff] }
  0x61   : > { %882 = vst [vmem:[%s7089_s6 + $0xe8] sm:$0xff] %v881_v47  ;;  %v943_v14 = vld [vmem:[%s7084_s5 + $0x3c0] sm:$0xff]  ;;  %v945_v15 = vld [vmem:[%s7084_s5 + $0x3d0] sm:$0xff] }
  0x62   : > { %884 = vst [vmem:[%s7089_s6 + $0xf0] sm:$0xff] %v883_v48  ;;  %v947_v16 = vld [vmem:[%s7084_s5 + $0x3e0] sm:$0xff]  ;;  %v949_v17 = vld [vmem:[%s7084_s5 + $0x3f0] sm:$0xff] }
  0x63   : > { %886 = vst [vmem:[%s7089_s6 + $0xf8] sm:$0xff] %v885_v49  ;;  %v951_v18 = vld [vmem:[%s7084_s5 + $0x400] sm:$0xff]  ;;  %v953_v19 = vld [vmem:[%s7084_s5 + $0x410] sm:$0xff] }
  0x64   : > { %888 = vst [vmem:[%s7089_s6 + $0x100] sm:$0xff] %v887_v50  ;;  %v955_v20 = vld [vmem:[%s7084_s5 + $0x420] sm:$0xff]  ;;  %v957_v21 = vld [vmem:[%s7084_s5 + $0x430] sm:$0xff] }
  0x65   : > { %890 = vst [vmem:[%s7089_s6 + $0x108] sm:$0xff] %v889_v51  ;;  %v959_v22 = vld [vmem:[%s7084_s5 + $0x440] sm:$0xff]  ;;  %v961_v23 = vld [vmem:[%s7084_s5 + $0x450] sm:$0xff] }
  0x66   : > { %892 = vst [vmem:[%s7089_s6 + $0x110] sm:$0xff] %v891_v52  ;;  %v963_v24 = vld [vmem:[%s7084_s5 + $0x460] sm:$0xff]  ;;  %v965_v25 = vld [vmem:[%s7084_s5 + $0x470] sm:$0xff] }
  0x67   : > { %894 = vst [vmem:[%s7089_s6 + $0x118] sm:$0xff] %v893_v53  ;;  %v967_v26 = vld [vmem:[%s7084_s5 + $0x480] sm:$0xff]  ;;  %v969_v27 = vld [vmem:[%s7084_s5 + $0x490] sm:$0xff] }
  0x68   : > { %896 = vst [vmem:[%s7089_s6 + $0x120] sm:$0xff] %v895_v54  ;;  %v971_v28 = vld [vmem:[%s7084_s5 + $0x4a0] sm:$0xff]  ;;  %v973_v29 = vld [vmem:[%s7084_s5 + $0x4b0] sm:$0xff] }
  0x69   : > { %898 = vst [vmem:[%s7089_s6 + $0x128] sm:$0xff] %v897_v55  ;;  %v975_v30 = vld [vmem:[%s7084_s5 + $0x4c0] sm:$0xff]  ;;  %v977_v31 = vld [vmem:[%s7084_s5 + $0x4d0] sm:$0xff] }
  0x6a   : > { %900 = vst [vmem:[%s7089_s6 + $0x130] sm:$0xff] %v899_v56  ;;  %v979_v32 = vld [vmem:[%s7084_s5 + $0x4e0] sm:$0xff]  ;;  %v981_v33 = vld [vmem:[%s7084_s5 + $0x4f0] sm:$0xff] }
  0x6b   : > { %902 = vst [vmem:[%s7089_s6 + $0x138] sm:$0xff] %v901_v57  ;;  %v983_v34 = vld [vmem:[%s7084_s5 + $0x500] sm:$0xff]  ;;  %v985_v35 = vld [vmem:[%s7084_s5 + $0x510] sm:$0xff] }
  0x6c   : > { %904 = vst [vmem:[%s7089_s6 + $0x140] sm:$0xff] %v903_v58  ;;  %v987_v36 = vld [vmem:[%s7084_s5 + $0x520] sm:$0xff]  ;;  %v989_v37 = vld [vmem:[%s7084_s5 + $0x530] sm:$0xff] }
  0x6d   : > { %906 = vst [vmem:[%s7089_s6 + $0x148] sm:$0xff] %v905_v59  ;;  %v991_v38 = vld [vmem:[%s7084_s5 + $0x540] sm:$0xff]  ;;  %v993_v39 = vld [vmem:[%s7084_s5 + $0x550] sm:$0xff] }
  0x6e   : > { %908 = vst [vmem:[%s7089_s6 + $0x150] sm:$0xff] %v907_v60  ;;  %v995_v40 = vld [vmem:[%s7084_s5 + $0x560] sm:$0xff]  ;;  %v997_v41 = vld [vmem:[%s7084_s5 + $0x570] sm:$0xff] }
  0x6f   : > { %910 = vst [vmem:[%s7089_s6 + $0x158] sm:$0xff] %v909_v61  ;;  %v999_v42 = vld [vmem:[%s7084_s5 + $0x580] sm:$0xff]  ;;  %v1001_v43 = vld [vmem:[%s7084_s5 + $0x590] sm:$0xff] }
  0x70   : > { %912 = vst [vmem:[%s7089_s6 + $0x160] sm:$0xff] %v911_v62  ;;  %v1003_v44 = vld [vmem:[%s7084_s5 + $0x5a0] sm:$0xff]  ;;  %v1005_v45 = vld [vmem:[%s7084_s5 + $0x5b0] sm:$0xff] }
  0x71   : > { %914 = vst [vmem:[%s7089_s6 + $0x168] sm:$0xff] %v913_v63  ;;  %v1007_v46 = vld [vmem:[%s7084_s5 + $0x5c0] sm:$0xff]  ;;  %v1009_v47 = vld [vmem:[%s7084_s5 + $0x5d0] sm:$0xff] }
  0x72   : > { %916 = vst [vmem:[%s7089_s6 + $0x170] sm:$0xff] %v915_v0  ;;  %v1011_v48 = vld [vmem:[%s7084_s5 + $0x5e0] sm:$0xff]  ;;  %v1013_v49 = vld [vmem:[%s7084_s5 + $0x5f0] sm:$0xff] }
  0x73   : > { %918 = vst [vmem:[%s7089_s6 + $0x178] sm:$0xff] %v917_v1  ;;  %v1015_v50 = vld [vmem:[%s7084_s5 + $0x600] sm:$0xff]  ;;  %v1017_v51 = vld [vmem:[%s7084_s5 + $0x610] sm:$0xff] }
  0x74   : > { %920 = vst [vmem:[%s7089_s6 + $0x180] sm:$0xff] %v919_v2  ;;  %v1019_v52 = vld [vmem:[%s7084_s5 + $0x620] sm:$0xff]  ;;  %v1021_v53 = vld [vmem:[%s7084_s5 + $0x630] sm:$0xff] }
  0x75   : > { %922 = vst [vmem:[%s7089_s6 + $0x188] sm:$0xff] %v921_v3  ;;  %v1023_v54 = vld [vmem:[%s7084_s5 + $0x640] sm:$0xff]  ;;  %v1025_v55 = vld [vmem:[%s7084_s5 + $0x650] sm:$0xff] }
  0x76   : > { %924 = vst [vmem:[%s7089_s6 + $0x190] sm:$0xff] %v923_v4  ;;  %v1027_v56 = vld [vmem:[%s7084_s5 + $0x660] sm:$0xff]  ;;  %v1029_v57 = vld [vmem:[%s7084_s5 + $0x670] sm:$0xff] }
  0x77   : > { %926 = vst [vmem:[%s7089_s6 + $0x198] sm:$0xff] %v925_v5  ;;  %v1031_v58 = vld [vmem:[%s7084_s5 + $0x680] sm:$0xff]  ;;  %v1033_v59 = vld [vmem:[%s7084_s5 + $0x690] sm:$0xff] }
  0x78   : > { %928 = vst [vmem:[%s7089_s6 + $0x1a0] sm:$0xff] %v927_v6  ;;  %v1035_v60 = vld [vmem:[%s7084_s5 + $0x6a0] sm:$0xff]  ;;  %v1037_v61 = vld [vmem:[%s7084_s5 + $0x6b0] sm:$0xff] }
  0x79   : > { %930 = vst [vmem:[%s7089_s6 + $0x1a8] sm:$0xff] %v929_v7  ;;  %v1039_v62 = vld [vmem:[%s7084_s5 + $0x6c0] sm:$0xff]  ;;  %v1041_v63 = vld [vmem:[%s7084_s5 + $0x6d0] sm:$0xff] }
  0x7a   : > { %932 = vst [vmem:[%s7089_s6 + $0x1b0] sm:$0xff] %v931_v8  ;;  %v1043_v0 = vld [vmem:[%s7084_s5 + $0x6e0] sm:$0xff]  ;;  %v1045_v1 = vld [vmem:[%s7084_s5 + $0x6f0] sm:$0xff] }
  0x7b   : > { %934 = vst [vmem:[%s7089_s6 + $0x1b8] sm:$0xff] %v933_v9  ;;  %v1047_v2 = vld [vmem:[%s7084_s5 + $0x700] sm:$0xff]  ;;  %v1049_v3 = vld [vmem:[%s7084_s5 + $0x710] sm:$0xff] }
  0x7c   : > { %936 = vst [vmem:[%s7089_s6 + $0x1c0] sm:$0xff] %v935_v10  ;;  %v1051_v4 = vld [vmem:[%s7084_s5 + $0x720] sm:$0xff]  ;;  %v1053_v5 = vld [vmem:[%s7084_s5 + $0x730] sm:$0xff] }
  0x7d   : > { %938 = vst [vmem:[%s7089_s6 + $0x1c8] sm:$0xff] %v937_v11  ;;  %v1055_v6 = vld [vmem:[%s7084_s5 + $0x740] sm:$0xff]  ;;  %v1057_v7 = vld [vmem:[%s7084_s5 + $0x750] sm:$0xff] }
  0x7e   : > { %940 = vst [vmem:[%s7089_s6 + $0x1d0] sm:$0xff] %v939_v12  ;;  %v1059_v8 = vld [vmem:[%s7084_s5 + $0x760] sm:$0xff]  ;;  %v1061_v9 = vld [vmem:[%s7084_s5 + $0x770] sm:$0xff] }
  0x7f   : > { %942 = vst [vmem:[%s7089_s6 + $0x1d8] sm:$0xff] %v941_v13  ;;  %v1063_v10 = vld [vmem:[%s7084_s5 + $0x780] sm:$0xff]  ;;  %v1065_v11 = vld [vmem:[%s7084_s5 + $0x790] sm:$0xff] }
  0x80   : > { %944 = vst [vmem:[%s7089_s6 + $0x1e0] sm:$0xff] %v943_v14  ;;  %v1067_v12 = vld [vmem:[%s7084_s5 + $0x7a0] sm:$0xff]  ;;  %v1069_v13 = vld [vmem:[%s7084_s5 + $0x7b0] sm:$0xff] }
  0x81   : > { %946 = vst [vmem:[%s7089_s6 + $0x1e8] sm:$0xff] %v945_v15  ;;  %v1071_v14 = vld [vmem:[%s7084_s5 + $0x7c0] sm:$0xff]  ;;  %v1073_v15 = vld [vmem:[%s7084_s5 + $0x7d0] sm:$0xff] }
  0x82   : > { %948 = vst [vmem:[%s7089_s6 + $0x1f0] sm:$0xff] %v947_v16  ;;  %v1075_v16 = vld [vmem:[%s7084_s5 + $0x7e0] sm:$0xff] }
  0x83   : > { %950 = vst [vmem:[%s7089_s6 + $0x1f8] sm:$0xff] %v949_v17  ;;  %v1077_v17 = vld [vmem:[%s7084_s5 + $0x7f0] sm:$0xff] }
  0x84   : > { %952 = vst [vmem:[%s7089_s6 + $0x200] sm:$0xff] %v951_v18  ;;  %v1079_v18 = vld [vmem:[%s7084_s5 + $0x800] sm:$0xff] }
  0x85   : > { %954 = vst [vmem:[%s7089_s6 + $0x208] sm:$0xff] %v953_v19  ;;  %v1081_v19 = vld [vmem:[%s7084_s5 + $0x810] sm:$0xff] }
  0x86   : > { %956 = vst [vmem:[%s7089_s6 + $0x210] sm:$0xff] %v955_v20  ;;  %v1083_v20 = vld [vmem:[%s7084_s5 + $0x820] sm:$0xff] }
  0x87   : > { %958 = vst [vmem:[%s7089_s6 + $0x218] sm:$0xff] %v957_v21  ;;  %v1085_v21 = vld [vmem:[%s7084_s5 + $0x830] sm:$0xff] }
  0x88   : > { %960 = vst [vmem:[%s7089_s6 + $0x220] sm:$0xff] %v959_v22  ;;  %v1087_v22 = vld [vmem:[%s7084_s5 + $0x840] sm:$0xff] }
  0x89   : > { %962 = vst [vmem:[%s7089_s6 + $0x228] sm:$0xff] %v961_v23  ;;  %v1089_v23 = vld [vmem:[%s7084_s5 + $0x850] sm:$0xff] }
  0x8a   : > { %964 = vst [vmem:[%s7089_s6 + $0x230] sm:$0xff] %v963_v24  ;;  %v1091_v24 = vld [vmem:[%s7084_s5 + $0x860] sm:$0xff] }
  0x8b   : > { %966 = vst [vmem:[%s7089_s6 + $0x238] sm:$0xff] %v965_v25  ;;  %v1093_v25 = vld [vmem:[%s7084_s5 + $0x870] sm:$0xff] }
  0x8c   : > { %968 = vst [vmem:[%s7089_s6 + $0x240] sm:$0xff] %v967_v26  ;;  %v1095_v26 = vld [vmem:[%s7084_s5 + $0x880] sm:$0xff] }
  0x8d   : > { %970 = vst [vmem:[%s7089_s6 + $0x248] sm:$0xff] %v969_v27  ;;  %v1097_v27 = vld [vmem:[%s7084_s5 + $0x890] sm:$0xff] }
  0x8e   : > { %972 = vst [vmem:[%s7089_s6 + $0x250] sm:$0xff] %v971_v28  ;;  %v1099_v28 = vld [vmem:[%s7084_s5 + $0x8a0] sm:$0xff] }
  0x8f   : > { %974 = vst [vmem:[%s7089_s6 + $0x258] sm:$0xff] %v973_v29  ;;  %v1101_v29 = vld [vmem:[%s7084_s5 + $0x8b0] sm:$0xff] }
  0x90   : > { %976 = vst [vmem:[%s7089_s6 + $0x260] sm:$0xff] %v975_v30  ;;  %v1103_v30 = vld [vmem:[%s7084_s5 + $0x8c0] sm:$0xff] }
  0x91   : > { %978 = vst [vmem:[%s7089_s6 + $0x268] sm:$0xff] %v977_v31  ;;  %v1105_v31 = vld [vmem:[%s7084_s5 + $0x8d0] sm:$0xff] }
  0x92   : > { %980 = vst [vmem:[%s7089_s6 + $0x270] sm:$0xff] %v979_v32  ;;  %v1107_v32 = vld [vmem:[%s7084_s5 + $0x8e0] sm:$0xff] }
  0x93   : > { %982 = vst [vmem:[%s7089_s6 + $0x278] sm:$0xff] %v981_v33  ;;  %v1109_v33 = vld [vmem:[%s7084_s5 + $0x8f0] sm:$0xff] }
  0x94   : > { %984 = vst [vmem:[%s7089_s6 + $0x280] sm:$0xff] %v983_v34  ;;  %v1111_v34 = vld [vmem:[%s7084_s5 + $0x900] sm:$0xff] }
  0x95   : > { %986 = vst [vmem:[%s7089_s6 + $0x288] sm:$0xff] %v985_v35  ;;  %v1113_v35 = vld [vmem:[%s7084_s5 + $0x910] sm:$0xff] }
  0x96   : > { %988 = vst [vmem:[%s7089_s6 + $0x290] sm:$0xff] %v987_v36  ;;  %v1115_v36 = vld [vmem:[%s7084_s5 + $0x920] sm:$0xff] }
  0x97   : > { %990 = vst [vmem:[%s7089_s6 + $0x298] sm:$0xff] %v989_v37  ;;  %v1117_v37 = vld [vmem:[%s7084_s5 + $0x930] sm:$0xff] }
  0x98   : > { %992 = vst [vmem:[%s7089_s6 + $0x2a0] sm:$0xff] %v991_v38  ;;  %v1119_v38 = vld [vmem:[%s7084_s5 + $0x940] sm:$0xff] }
  0x99   : > { %994 = vst [vmem:[%s7089_s6 + $0x2a8] sm:$0xff] %v993_v39  ;;  %v1121_v39 = vld [vmem:[%s7084_s5 + $0x950] sm:$0xff] }
  0x9a   : > { %996 = vst [vmem:[%s7089_s6 + $0x2b0] sm:$0xff] %v995_v40  ;;  %v1123_v40 = vld [vmem:[%s7084_s5 + $0x960] sm:$0xff] }
  0x9b   : > { %998 = vst [vmem:[%s7089_s6 + $0x2b8] sm:$0xff] %v997_v41  ;;  %v1125_v41 = vld [vmem:[%s7084_s5 + $0x970] sm:$0xff] }
  0x9c   : > { %1000 = vst [vmem:[%s7089_s6 + $0x2c0] sm:$0xff] %v999_v42  ;;  %v1127_v42 = vld [vmem:[%s7084_s5 + $0x980] sm:$0xff] }
  0x9d   : > { %1002 = vst [vmem:[%s7089_s6 + $0x2c8] sm:$0xff] %v1001_v43  ;;  %v1129_v43 = vld [vmem:[%s7084_s5 + $0x990] sm:$0xff] }
  0x9e   : > { %1004 = vst [vmem:[%s7089_s6 + $0x2d0] sm:$0xff] %v1003_v44  ;;  %v1131_v44 = vld [vmem:[%s7084_s5 + $0x9a0] sm:$0xff] }
  0x9f   : > { %1006 = vst [vmem:[%s7089_s6 + $0x2d8] sm:$0xff] %v1005_v45  ;;  %v1133_v45 = vld [vmem:[%s7084_s5 + $0x9b0] sm:$0xff] }
  0xa0   : > { %1008 = vst [vmem:[%s7089_s6 + $0x2e0] sm:$0xff] %v1007_v46  ;;  %v1135_v46 = vld [vmem:[%s7084_s5 + $0x9c0] sm:$0xff] }
  0xa1   : > { %1010 = vst [vmem:[%s7089_s6 + $0x2e8] sm:$0xff] %v1009_v47  ;;  %v1137_v47 = vld [vmem:[%s7084_s5 + $0x9d0] sm:$0xff] }
  0xa2   : > { %1012 = vst [vmem:[%s7089_s6 + $0x2f0] sm:$0xff] %v1011_v48  ;;  %v1139_v48 = vld [vmem:[%s7084_s5 + $0x9e0] sm:$0xff] }
  0xa3   : > { %1014 = vst [vmem:[%s7089_s6 + $0x2f8] sm:$0xff] %v1013_v49  ;;  %v1141_v49 = vld [vmem:[%s7084_s5 + $0x9f0] sm:$0xff] }
  0xa4   : > { %1016 = vst [vmem:[%s7089_s6 + $0x300] sm:$0xff] %v1015_v50  ;;  %v1143_v50 = vld [vmem:[%s7084_s5 + $0xa00] sm:$0xff] }
  0xa5   : > { %1018 = vst [vmem:[%s7089_s6 + $0x308] sm:$0xff] %v1017_v51  ;;  %v1145_v51 = vld [vmem:[%s7084_s5 + $0xa10] sm:$0xff] }
  0xa6   : > { %1020 = vst [vmem:[%s7089_s6 + $0x310] sm:$0xff] %v1019_v52  ;;  %v1147_v52 = vld [vmem:[%s7084_s5 + $0xa20] sm:$0xff] }
  0xa7   : > { %1022 = vst [vmem:[%s7089_s6 + $0x318] sm:$0xff] %v1021_v53  ;;  %v1149_v53 = vld [vmem:[%s7084_s5 + $0xa30] sm:$0xff] }
  0xa8   : > { %1024 = vst [vmem:[%s7089_s6 + $0x320] sm:$0xff] %v1023_v54  ;;  %v1151_v54 = vld [vmem:[%s7084_s5 + $0xa40] sm:$0xff] }
  0xa9   : > { %1026 = vst [vmem:[%s7089_s6 + $0x328] sm:$0xff] %v1025_v55  ;;  %v1153_v55 = vld [vmem:[%s7084_s5 + $0xa50] sm:$0xff] }
  0xaa   : > { %1028 = vst [vmem:[%s7089_s6 + $0x330] sm:$0xff] %v1027_v56  ;;  %v1155_v56 = vld [vmem:[%s7084_s5 + $0xa60] sm:$0xff] }
  0xab   : > { %1030 = vst [vmem:[%s7089_s6 + $0x338] sm:$0xff] %v1029_v57  ;;  %v1157_v57 = vld [vmem:[%s7084_s5 + $0xa70] sm:$0xff] }
  0xac   : > { %1032 = vst [vmem:[%s7089_s6 + $0x340] sm:$0xff] %v1031_v58  ;;  %v1159_v58 = vld [vmem:[%s7084_s5 + $0xa80] sm:$0xff] }
  0xad   : > { %1034 = vst [vmem:[%s7089_s6 + $0x348] sm:$0xff] %v1033_v59  ;;  %v1161_v59 = vld [vmem:[%s7084_s5 + $0xa90] sm:$0xff] }
  0xae   : > { %1036 = vst [vmem:[%s7089_s6 + $0x350] sm:$0xff] %v1035_v60  ;;  %v1163_v60 = vld [vmem:[%s7084_s5 + $0xaa0] sm:$0xff] }
  0xaf   : > { %1038 = vst [vmem:[%s7089_s6 + $0x358] sm:$0xff] %v1037_v61  ;;  %v1165_v61 = vld [vmem:[%s7084_s5 + $0xab0] sm:$0xff] }
  0xb0   : > { %1040 = vst [vmem:[%s7089_s6 + $0x360] sm:$0xff] %v1039_v62  ;;  %v1167_v62 = vld [vmem:[%s7084_s5 + $0xac0] sm:$0xff] }
  0xb1   : > { %1042 = vst [vmem:[%s7089_s6 + $0x368] sm:$0xff] %v1041_v63  ;;  %v1169_v63 = vld [vmem:[%s7084_s5 + $0xad0] sm:$0xff] }
  0xb2   : > { %1044 = vst [vmem:[%s7089_s6 + $0x370] sm:$0xff] %v1043_v0  ;;  %v1171_v0 = vld [vmem:[%s7084_s5 + $0xae0] sm:$0xff] }
  0xb3   : > { %1046 = vst [vmem:[%s7089_s6 + $0x378] sm:$0xff] %v1045_v1  ;;  %v1173_v1 = vld [vmem:[%s7084_s5 + $0xaf0] sm:$0xff] }
  0xb4   : > { %1048 = vst [vmem:[%s7089_s6 + $0x380] sm:$0xff] %v1047_v2  ;;  %v1175_v2 = vld [vmem:[%s7084_s5 + $0xb00] sm:$0xff] }
  0xb5   : > { %1050 = vst [vmem:[%s7089_s6 + $0x388] sm:$0xff] %v1049_v3  ;;  %v1177_v3 = vld [vmem:[%s7084_s5 + $0xb10] sm:$0xff] }
  0xb6   : > { %1052 = vst [vmem:[%s7089_s6 + $0x390] sm:$0xff] %v1051_v4  ;;  %v1179_v4 = vld [vmem:[%s7084_s5 + $0xb20] sm:$0xff] }
  0xb7   : > { %1054 = vst [vmem:[%s7089_s6 + $0x398] sm:$0xff] %v1053_v5  ;;  %v1181_v5 = vld [vmem:[%s7084_s5 + $0xb30] sm:$0xff] }
  0xb8   : > { %1056 = vst [vmem:[%s7089_s6 + $0x3a0] sm:$0xff] %v1055_v6  ;;  %v1183_v6 = vld [vmem:[%s7084_s5 + $0xb40] sm:$0xff] }
  0xb9   : > { %1058 = vst [vmem:[%s7089_s6 + $0x3a8] sm:$0xff] %v1057_v7  ;;  %v1185_v7 = vld [vmem:[%s7084_s5 + $0xb50] sm:$0xff] }
  0xba   : > { %1060 = vst [vmem:[%s7089_s6 + $0x3b0] sm:$0xff] %v1059_v8  ;;  %v1187_v8 = vld [vmem:[%s7084_s5 + $0xb60] sm:$0xff] }
  0xbb   : > { %1062 = vst [vmem:[%s7089_s6 + $0x3b8] sm:$0xff] %v1061_v9  ;;  %v1189_v9 = vld [vmem:[%s7084_s5 + $0xb70] sm:$0xff] }
  0xbc   : > { %1064 = vst [vmem:[%s7089_s6 + $0x3c0] sm:$0xff] %v1063_v10  ;;  %v1191_v10 = vld [vmem:[%s7084_s5 + $0xb80] sm:$0xff] }
  0xbd   : > { %1066 = vst [vmem:[%s7089_s6 + $0x3c8] sm:$0xff] %v1065_v11  ;;  %v1193_v11 = vld [vmem:[%s7084_s5 + $0xb90] sm:$0xff] }
  0xbe   : > { %1068 = vst [vmem:[%s7089_s6 + $0x3d0] sm:$0xff] %v1067_v12  ;;  %v1195_v12 = vld [vmem:[%s7084_s5 + $0xba0] sm:$0xff] }
  0xbf   : > { %1070 = vst [vmem:[%s7089_s6 + $0x3d8] sm:$0xff] %v1069_v13  ;;  %v1197_v13 = vld [vmem:[%s7084_s5 + $0xbb0] sm:$0xff] }
  0xc0   : > { %1072 = vst [vmem:[%s7089_s6 + $0x3e0] sm:$0xff] %v1071_v14  ;;  %v1199_v14 = vld [vmem:[%s7084_s5 + $0xbc0] sm:$0xff] }
  0xc1   : > { %1074 = vst [vmem:[%s7089_s6 + $0x3e8] sm:$0xff] %v1073_v15  ;;  %v1201_v15 = vld [vmem:[%s7084_s5 + $0xbd0] sm:$0xff] }
  0xc2   : > { %1076 = vst [vmem:[%s7089_s6 + $0x3f0] sm:$0xff] %v1075_v16  ;;  %v1203_v16 = vld [vmem:[%s7084_s5 + $0xbe0] sm:$0xff] }
  0xc3   : > { %1078 = vst [vmem:[%s7089_s6 + $0x3f8] sm:$0xff] %v1077_v17  ;;  %v1205_v17 = vld [vmem:[%s7084_s5 + $0xbf0] sm:$0xff] }
  0xc4   : > { %1080 = vst [vmem:[%s7089_s6 + $0x400] sm:$0xff] %v1079_v18  ;;  %v1207_v18 = vld [vmem:[%s7084_s5 + $0xc00] sm:$0xff] }
  0xc5   : > { %1082 = vst [vmem:[%s7089_s6 + $0x408] sm:$0xff] %v1081_v19  ;;  %v1209_v19 = vld [vmem:[%s7084_s5 + $0xc10] sm:$0xff] }
  0xc6   : > { %1084 = vst [vmem:[%s7089_s6 + $0x410] sm:$0xff] %v1083_v20  ;;  %v1211_v20 = vld [vmem:[%s7084_s5 + $0xc20] sm:$0xff] }
  0xc7   : > { %1086 = vst [vmem:[%s7089_s6 + $0x418] sm:$0xff] %v1085_v21  ;;  %v1213_v21 = vld [vmem:[%s7084_s5 + $0xc30] sm:$0xff] }
  0xc8   : > { %1088 = vst [vmem:[%s7089_s6 + $0x420] sm:$0xff] %v1087_v22  ;;  %v1215_v22 = vld [vmem:[%s7084_s5 + $0xc40] sm:$0xff] }
  0xc9   : > { %1090 = vst [vmem:[%s7089_s6 + $0x428] sm:$0xff] %v1089_v23  ;;  %v1217_v23 = vld [vmem:[%s7084_s5 + $0xc50] sm:$0xff] }
  0xca   : > { %1092 = vst [vmem:[%s7089_s6 + $0x430] sm:$0xff] %v1091_v24  ;;  %v1219_v24 = vld [vmem:[%s7084_s5 + $0xc60] sm:$0xff] }
  0xcb   : > { %1094 = vst [vmem:[%s7089_s6 + $0x438] sm:$0xff] %v1093_v25  ;;  %v1221_v25 = vld [vmem:[%s7084_s5 + $0xc70] sm:$0xff] }
  0xcc   : > { %1096 = vst [vmem:[%s7089_s6 + $0x440] sm:$0xff] %v1095_v26  ;;  %v1223_v26 = vld [vmem:[%s7084_s5 + $0xc80] sm:$0xff] }
  0xcd   : > { %1098 = vst [vmem:[%s7089_s6 + $0x448] sm:$0xff] %v1097_v27  ;;  %v1225_v27 = vld [vmem:[%s7084_s5 + $0xc90] sm:$0xff] }
  0xce   : > { %1100 = vst [vmem:[%s7089_s6 + $0x450] sm:$0xff] %v1099_v28  ;;  %v1227_v28 = vld [vmem:[%s7084_s5 + $0xca0] sm:$0xff] }
  0xcf   : > { %1102 = vst [vmem:[%s7089_s6 + $0x458] sm:$0xff] %v1101_v29  ;;  %v1229_v29 = vld [vmem:[%s7084_s5 + $0xcb0] sm:$0xff] }
  0xd0   : > { %1104 = vst [vmem:[%s7089_s6 + $0x460] sm:$0xff] %v1103_v30  ;;  %v1231_v30 = vld [vmem:[%s7084_s5 + $0xcc0] sm:$0xff] }
  0xd1   : > { %1106 = vst [vmem:[%s7089_s6 + $0x468] sm:$0xff] %v1105_v31  ;;  %v1233_v31 = vld [vmem:[%s7084_s5 + $0xcd0] sm:$0xff] }
  0xd2   : > { %1108 = vst [vmem:[%s7089_s6 + $0x470] sm:$0xff] %v1107_v32  ;;  %v1235_v32 = vld [vmem:[%s7084_s5 + $0xce0] sm:$0xff] }
  0xd3   : > { %1110 = vst [vmem:[%s7089_s6 + $0x478] sm:$0xff] %v1109_v33  ;;  %v1237_v33 = vld [vmem:[%s7084_s5 + $0xcf0] sm:$0xff] }
  0xd4   : > { %1112 = vst [vmem:[%s7089_s6 + $0x480] sm:$0xff] %v1111_v34  ;;  %v1239_v34 = vld [vmem:[%s7084_s5 + $0xd00] sm:$0xff] }
  0xd5   : > { %1114 = vst [vmem:[%s7089_s6 + $0x488] sm:$0xff] %v1113_v35  ;;  %v1241_v35 = vld [vmem:[%s7084_s5 + $0xd10] sm:$0xff] }
  0xd6   : > { %1116 = vst [vmem:[%s7089_s6 + $0x490] sm:$0xff] %v1115_v36  ;;  %v1243_v36 = vld [vmem:[%s7084_s5 + $0xd20] sm:$0xff] }
  0xd7   : > { %1118 = vst [vmem:[%s7089_s6 + $0x498] sm:$0xff] %v1117_v37  ;;  %v1245_v37 = vld [vmem:[%s7084_s5 + $0xd30] sm:$0xff] }
  0xd8   : > { %1120 = vst [vmem:[%s7089_s6 + $0x4a0] sm:$0xff] %v1119_v38  ;;  %v1247_v38 = vld [vmem:[%s7084_s5 + $0xd40] sm:$0xff] }
  0xd9   : > { %1122 = vst [vmem:[%s7089_s6 + $0x4a8] sm:$0xff] %v1121_v39  ;;  %v1249_v39 = vld [vmem:[%s7084_s5 + $0xd50] sm:$0xff] }
  0xda   : > { %1124 = vst [vmem:[%s7089_s6 + $0x4b0] sm:$0xff] %v1123_v40  ;;  %v1251_v40 = vld [vmem:[%s7084_s5 + $0xd60] sm:$0xff] }
  0xdb   : > { %1126 = vst [vmem:[%s7089_s6 + $0x4b8] sm:$0xff] %v1125_v41  ;;  %v1253_v41 = vld [vmem:[%s7084_s5 + $0xd70] sm:$0xff] }
  0xdc   : > { %1128 = vst [vmem:[%s7089_s6 + $0x4c0] sm:$0xff] %v1127_v42  ;;  %v1255_v42 = vld [vmem:[%s7084_s5 + $0xd80] sm:$0xff] }
  0xdd   : > { %1130 = vst [vmem:[%s7089_s6 + $0x4c8] sm:$0xff] %v1129_v43  ;;  %v1257_v43 = vld [vmem:[%s7084_s5 + $0xd90] sm:$0xff] }
  0xde   : > { %1132 = vst [vmem:[%s7089_s6 + $0x4d0] sm:$0xff] %v1131_v44  ;;  %v1259_v44 = vld [vmem:[%s7084_s5 + $0xda0] sm:$0xff] }
  0xdf   : > { %1134 = vst [vmem:[%s7089_s6 + $0x4d8] sm:$0xff] %v1133_v45  ;;  %v1261_v45 = vld [vmem:[%s7084_s5 + $0xdb0] sm:$0xff] }
  0xe0   : > { %1136 = vst [vmem:[%s7089_s6 + $0x4e0] sm:$0xff] %v1135_v46  ;;  %v1263_v46 = vld [vmem:[%s7084_s5 + $0xdc0] sm:$0xff] }
  0xe1   : > { %1138 = vst [vmem:[%s7089_s6 + $0x4e8] sm:$0xff] %v1137_v47  ;;  %v1265_v47 = vld [vmem:[%s7084_s5 + $0xdd0] sm:$0xff] }
  0xe2   : > { %1140 = vst [vmem:[%s7089_s6 + $0x4f0] sm:$0xff] %v1139_v48  ;;  %v1267_v48 = vld [vmem:[%s7084_s5 + $0xde0] sm:$0xff] }
  0xe3   : > { %1142 = vst [vmem:[%s7089_s6 + $0x4f8] sm:$0xff] %v1141_v49  ;;  %v1269_v49 = vld [vmem:[%s7084_s5 + $0xdf0] sm:$0xff] }
  0xe4   : > { %1144 = vst [vmem:[%s7089_s6 + $0x500] sm:$0xff] %v1143_v50  ;;  %v1271_v50 = vld [vmem:[%s7084_s5 + $0xe00] sm:$0xff] }
  0xe5   : > { %1146 = vst [vmem:[%s7089_s6 + $0x508] sm:$0xff] %v1145_v51  ;;  %v1273_v51 = vld [vmem:[%s7084_s5 + $0xe10] sm:$0xff] }
  0xe6   : > { %1148 = vst [vmem:[%s7089_s6 + $0x510] sm:$0xff] %v1147_v52  ;;  %v1275_v52 = vld [vmem:[%s7084_s5 + $0xe20] sm:$0xff] }
  0xe7   : > { %1150 = vst [vmem:[%s7089_s6 + $0x518] sm:$0xff] %v1149_v53  ;;  %v1277_v53 = vld [vmem:[%s7084_s5 + $0xe30] sm:$0xff] }
  0xe8   : > { %1152 = vst [vmem:[%s7089_s6 + $0x520] sm:$0xff] %v1151_v54  ;;  %v1279_v54 = vld [vmem:[%s7084_s5 + $0xe40] sm:$0xff] }
  0xe9   : > { %1154 = vst [vmem:[%s7089_s6 + $0x528] sm:$0xff] %v1153_v55  ;;  %v1281_v55 = vld [vmem:[%s7084_s5 + $0xe50] sm:$0xff] }
  0xea   : > { %1156 = vst [vmem:[%s7089_s6 + $0x530] sm:$0xff] %v1155_v56  ;;  %v1283_v56 = vld [vmem:[%s7084_s5 + $0xe60] sm:$0xff] }
  0xeb   : > { %1158 = vst [vmem:[%s7089_s6 + $0x538] sm:$0xff] %v1157_v57  ;;  %v1285_v57 = vld [vmem:[%s7084_s5 + $0xe70] sm:$0xff] }
  0xec   : > { %1160 = vst [vmem:[%s7089_s6 + $0x540] sm:$0xff] %v1159_v58  ;;  %v1287_v58 = vld [vmem:[%s7084_s5 + $0xe80] sm:$0xff] }
  0xed   : > { %1162 = vst [vmem:[%s7089_s6 + $0x548] sm:$0xff] %v1161_v59  ;;  %v1289_v59 = vld [vmem:[%s7084_s5 + $0xe90] sm:$0xff] }
  0xee   : > { %1164 = vst [vmem:[%s7089_s6 + $0x550] sm:$0xff] %v1163_v60  ;;  %v1291_v60 = vld [vmem:[%s7084_s5 + $0xea0] sm:$0xff] }
  0xef   : > { %1166 = vst [vmem:[%s7089_s6 + $0x558] sm:$0xff] %v1165_v61  ;;  %v1293_v61 = vld [vmem:[%s7084_s5 + $0xeb0] sm:$0xff] }
  0xf0   : > { %1168 = vst [vmem:[%s7089_s6 + $0x560] sm:$0xff] %v1167_v62  ;;  %v1295_v62 = vld [vmem:[%s7084_s5 + $0xec0] sm:$0xff] }
  0xf1   : > { %1170 = vst [vmem:[%s7089_s6 + $0x568] sm:$0xff] %v1169_v63  ;;  %v1297_v63 = vld [vmem:[%s7084_s5 + $0xed0] sm:$0xff] }
  0xf2   : > { %1172 = vst [vmem:[%s7089_s6 + $0x570] sm:$0xff] %v1171_v0  ;;  %v1299_v0 = vld [vmem:[%s7084_s5 + $0xee0] sm:$0xff] }
  0xf3   : > { %1174 = vst [vmem:[%s7089_s6 + $0x578] sm:$0xff] %v1173_v1  ;;  %v1301_v1 = vld [vmem:[%s7084_s5 + $0xef0] sm:$0xff] }
  0xf4   : > { %1176 = vst [vmem:[%s7089_s6 + $0x580] sm:$0xff] %v1175_v2  ;;  %v1303_v2 = vld [vmem:[%s7084_s5 + $0xf00] sm:$0xff] }
  0xf5   : > { %1178 = vst [vmem:[%s7089_s6 + $0x588] sm:$0xff] %v1177_v3  ;;  %v1305_v3 = vld [vmem:[%s7084_s5 + $0xf10] sm:$0xff] }
  0xf6   : > { %1180 = vst [vmem:[%s7089_s6 + $0x590] sm:$0xff] %v1179_v4  ;;  %v1307_v4 = vld [vmem:[%s7084_s5 + $0xf20] sm:$0xff] }
  0xf7   : > { %1182 = vst [vmem:[%s7089_s6 + $0x598] sm:$0xff] %v1181_v5  ;;  %v1309_v5 = vld [vmem:[%s7084_s5 + $0xf30] sm:$0xff] }
  0xf8   : > { %1184 = vst [vmem:[%s7089_s6 + $0x5a0] sm:$0xff] %v1183_v6  ;;  %v1311_v6 = vld [vmem:[%s7084_s5 + $0xf40] sm:$0xff] }
  0xf9   : > { %1186 = vst [vmem:[%s7089_s6 + $0x5a8] sm:$0xff] %v1185_v7  ;;  %v1313_v7 = vld [vmem:[%s7084_s5 + $0xf50] sm:$0xff] }
  0xfa   : > { %1188 = vst [vmem:[%s7089_s6 + $0x5b0] sm:$0xff] %v1187_v8  ;;  %v1315_v8 = vld [vmem:[%s7084_s5 + $0xf60] sm:$0xff] }
  0xfb   : > { %1190 = vst [vmem:[%s7089_s6 + $0x5b8] sm:$0xff] %v1189_v9  ;;  %v1317_v9 = vld [vmem:[%s7084_s5 + $0xf70] sm:$0xff] }
  0xfc   : > { %1192 = vst [vmem:[%s7089_s6 + $0x5c0] sm:$0xff] %v1191_v10  ;;  %v1319_v10 = vld [vmem:[%s7084_s5 + $0xf80] sm:$0xff] }
  0xfd   : > { %1194 = vst [vmem:[%s7089_s6 + $0x5c8] sm:$0xff] %v1193_v11  ;;  %v1321_v11 = vld [vmem:[%s7084_s5 + $0xf90] sm:$0xff] }
  0xfe   : > { %1196 = vst [vmem:[%s7089_s6 + $0x5d0] sm:$0xff] %v1195_v12  ;;  %v1323_v12 = vld [vmem:[%s7084_s5 + $0xfa0] sm:$0xff] }
  0xff   : > { %1198 = vst [vmem:[%s7089_s6 + $0x5d8] sm:$0xff] %v1197_v13  ;;  %v1325_v13 = vld [vmem:[%s7084_s5 + $0xfb0] sm:$0xff] }
 0x100   : > { %1200 = vst [vmem:[%s7089_s6 + $0x5e0] sm:$0xff] %v1199_v14  ;;  %v1327_v14 = vld [vmem:[%s7084_s5 + $0xfc0] sm:$0xff] }
 0x101   : > { %1202 = vst [vmem:[%s7089_s6 + $0x5e8] sm:$0xff] %v1201_v15  ;;  %v1329_v15 = vld [vmem:[%s7084_s5 + $0xfd0] sm:$0xff] }
 0x102   : > { %1204 = vst [vmem:[%s7089_s6 + $0x5f0] sm:$0xff] %v1203_v16  ;;  %v1331_v16 = vld [vmem:[%s7084_s5 + $0xfe0] sm:$0xff] }
 0x103   : > { %1206 = vst [vmem:[%s7089_s6 + $0x5f8] sm:$0xff] %v1205_v17  ;;  %v1333_v17 = vld [vmem:[%s7084_s5 + $0xff0] sm:$0xff] }
 0x104   : > { %1208 = vst [vmem:[%s7089_s6 + $0x600] sm:$0xff] %v1207_v18  ;;  %v1335_v18 = vld [vmem:[%s7084_s5 + $0x1000] sm:$0xff] }
 0x105   : > { %1210 = vst [vmem:[%s7089_s6 + $0x608] sm:$0xff] %v1209_v19  ;;  %v1337_v19 = vld [vmem:[%s7084_s5 + $0x1010] sm:$0xff] }
 0x106   : > { %1212 = vst [vmem:[%s7089_s6 + $0x610] sm:$0xff] %v1211_v20  ;;  %v1339_v20 = vld [vmem:[%s7084_s5 + $0x1020] sm:$0xff] }
 0x107   : > { %1214 = vst [vmem:[%s7089_s6 + $0x618] sm:$0xff] %v1213_v21  ;;  %v1341_v21 = vld [vmem:[%s7084_s5 + $0x1030] sm:$0xff] }
 0x108   : > { %1216 = vst [vmem:[%s7089_s6 + $0x620] sm:$0xff] %v1215_v22  ;;  %v1343_v22 = vld [vmem:[%s7084_s5 + $0x1040] sm:$0xff] }
 0x109   : > { %1218 = vst [vmem:[%s7089_s6 + $0x628] sm:$0xff] %v1217_v23  ;;  %v1345_v23 = vld [vmem:[%s7084_s5 + $0x1050] sm:$0xff] }
 0x10a   : > { %1220 = vst [vmem:[%s7089_s6 + $0x630] sm:$0xff] %v1219_v24  ;;  %v1347_v24 = vld [vmem:[%s7084_s5 + $0x1060] sm:$0xff] }
 0x10b   : > { %1222 = vst [vmem:[%s7089_s6 + $0x638] sm:$0xff] %v1221_v25  ;;  %v1349_v25 = vld [vmem:[%s7084_s5 + $0x1070] sm:$0xff] }
 0x10c   : > { %1224 = vst [vmem:[%s7089_s6 + $0x640] sm:$0xff] %v1223_v26  ;;  %v1351_v26 = vld [vmem:[%s7084_s5 + $0x1080] sm:$0xff] }
 0x10d   : > { %1226 = vst [vmem:[%s7089_s6 + $0x648] sm:$0xff] %v1225_v27  ;;  %v1353_v27 = vld [vmem:[%s7084_s5 + $0x1090] sm:$0xff] }
 0x10e   : > { %1228 = vst [vmem:[%s7089_s6 + $0x650] sm:$0xff] %v1227_v28  ;;  %v1355_v28 = vld [vmem:[%s7084_s5 + $0x10a0] sm:$0xff] }
 0x10f   : > { %1230 = vst [vmem:[%s7089_s6 + $0x658] sm:$0xff] %v1229_v29  ;;  %v1357_v29 = vld [vmem:[%s7084_s5 + $0x10b0] sm:$0xff] }
 0x110   : > { %1232 = vst [vmem:[%s7089_s6 + $0x660] sm:$0xff] %v1231_v30  ;;  %v1359_v30 = vld [vmem:[%s7084_s5 + $0x10c0] sm:$0xff] }
 0x111   : > { %1234 = vst [vmem:[%s7089_s6 + $0x668] sm:$0xff] %v1233_v31  ;;  %v1361_v31 = vld [vmem:[%s7084_s5 + $0x10d0] sm:$0xff] }
 0x112   : > { %1236 = vst [vmem:[%s7089_s6 + $0x670] sm:$0xff] %v1235_v32  ;;  %v1363_v32 = vld [vmem:[%s7084_s5 + $0x10e0] sm:$0xff] }
 0x113   : > { %1238 = vst [vmem:[%s7089_s6 + $0x678] sm:$0xff] %v1237_v33  ;;  %v1365_v33 = vld [vmem:[%s7084_s5 + $0x10f0] sm:$0xff] }
 0x114   : > { %1240 = vst [vmem:[%s7089_s6 + $0x680] sm:$0xff] %v1239_v34  ;;  %v1367_v34 = vld [vmem:[%s7084_s5 + $0x1100] sm:$0xff] }
 0x115   : > { %1242 = vst [vmem:[%s7089_s6 + $0x688] sm:$0xff] %v1241_v35  ;;  %v1369_v35 = vld [vmem:[%s7084_s5 + $0x1110] sm:$0xff] }
 0x116   : > { %1244 = vst [vmem:[%s7089_s6 + $0x690] sm:$0xff] %v1243_v36  ;;  %v1371_v36 = vld [vmem:[%s7084_s5 + $0x1120] sm:$0xff] }
 0x117   : > { %1246 = vst [vmem:[%s7089_s6 + $0x698] sm:$0xff] %v1245_v37  ;;  %v1373_v37 = vld [vmem:[%s7084_s5 + $0x1130] sm:$0xff] }
 0x118   : > { %1248 = vst [vmem:[%s7089_s6 + $0x6a0] sm:$0xff] %v1247_v38  ;;  %v1375_v38 = vld [vmem:[%s7084_s5 + $0x1140] sm:$0xff] }
 0x119   : > { %1250 = vst [vmem:[%s7089_s6 + $0x6a8] sm:$0xff] %v1249_v39  ;;  %v1377_v39 = vld [vmem:[%s7084_s5 + $0x1150] sm:$0xff] }
 0x11a   : > { %1252 = vst [vmem:[%s7089_s6 + $0x6b0] sm:$0xff] %v1251_v40  ;;  %v1379_v40 = vld [vmem:[%s7084_s5 + $0x1160] sm:$0xff] }
 0x11b   : > { %1254 = vst [vmem:[%s7089_s6 + $0x6b8] sm:$0xff] %v1253_v41  ;;  %v1381_v41 = vld [vmem:[%s7084_s5 + $0x1170] sm:$0xff] }
 0x11c   : > { %1256 = vst [vmem:[%s7089_s6 + $0x6c0] sm:$0xff] %v1255_v42  ;;  %v1383_v42 = vld [vmem:[%s7084_s5 + $0x1180] sm:$0xff] }
 0x11d   : > { %1258 = vst [vmem:[%s7089_s6 + $0x6c8] sm:$0xff] %v1257_v43  ;;  %v1385_v43 = vld [vmem:[%s7084_s5 + $0x1190] sm:$0xff] }
 0x11e   : > { %1260 = vst [vmem:[%s7089_s6 + $0x6d0] sm:$0xff] %v1259_v44  ;;  %v1387_v44 = vld [vmem:[%s7084_s5 + $0x11a0] sm:$0xff] }
 0x11f   : > { %1262 = vst [vmem:[%s7089_s6 + $0x6d8] sm:$0xff] %v1261_v45  ;;  %v1389_v45 = vld [vmem:[%s7084_s5 + $0x11b0] sm:$0xff] }
 0x120   : > { %1264 = vst [vmem:[%s7089_s6 + $0x6e0] sm:$0xff] %v1263_v46  ;;  %v1391_v46 = vld [vmem:[%s7084_s5 + $0x11c0] sm:$0xff] }
 0x121   : > { %1266 = vst [vmem:[%s7089_s6 + $0x6e8] sm:$0xff] %v1265_v47  ;;  %v1393_v47 = vld [vmem:[%s7084_s5 + $0x11d0] sm:$0xff] }
 0x122   : > { %1268 = vst [vmem:[%s7089_s6 + $0x6f0] sm:$0xff] %v1267_v48  ;;  %v1395_v48 = vld [vmem:[%s7084_s5 + $0x11e0] sm:$0xff] }
 0x123   : > { %1270 = vst [vmem:[%s7089_s6 + $0x6f8] sm:$0xff] %v1269_v49  ;;  %v1397_v49 = vld [vmem:[%s7084_s5 + $0x11f0] sm:$0xff] }
 0x124   : > { %1272 = vst [vmem:[%s7089_s6 + $0x700] sm:$0xff] %v1271_v50 }
 0x125   : > { %1274 = vst [vmem:[%s7089_s6 + $0x708] sm:$0xff] %v1273_v51 }
 0x126   : > { %1276 = vst [vmem:[%s7089_s6 + $0x710] sm:$0xff] %v1275_v52 }
 0x127   : > { %1278 = vst [vmem:[%s7089_s6 + $0x718] sm:$0xff] %v1277_v53 }
 0x128   : > { %1280 = vst [vmem:[%s7089_s6 + $0x720] sm:$0xff] %v1279_v54 }
 0x129   : > { %1282 = vst [vmem:[%s7089_s6 + $0x728] sm:$0xff] %v1281_v55 }
 0x12a   : > { %1284 = vst [vmem:[%s7089_s6 + $0x730] sm:$0xff] %v1283_v56 }
 0x12b   : > { %1286 = vst [vmem:[%s7089_s6 + $0x738] sm:$0xff] %v1285_v57 }
 0x12c   : > { %1288 = vst [vmem:[%s7089_s6 + $0x740] sm:$0xff] %v1287_v58 }
 0x12d   : > { %1290 = vst [vmem:[%s7089_s6 + $0x748] sm:$0xff] %v1289_v59 }
 0x12e   : > { %1292 = vst [vmem:[%s7089_s6 + $0x750] sm:$0xff] %v1291_v60 }
 0x12f   : > { %1294 = vst [vmem:[%s7089_s6 + $0x758] sm:$0xff] %v1293_v61 }
 0x130   : > { %1296 = vst [vmem:[%s7089_s6 + $0x760] sm:$0xff] %v1295_v62 }
 0x131   : > { %1298 = vst [vmem:[%s7089_s6 + $0x768] sm:$0xff] %v1297_v63 }
 0x132   : > { %1300 = vst [vmem:[%s7089_s6 + $0x770] sm:$0xff] %v1299_v0 }
 0x133   : > { %1302 = vst [vmem:[%s7089_s6 + $0x778] sm:$0xff] %v1301_v1 }
 0x134   : > { %1304 = vst [vmem:[%s7089_s6 + $0x780] sm:$0xff] %v1303_v2 }
 0x135   : > { %1306 = vst [vmem:[%s7089_s6 + $0x788] sm:$0xff] %v1305_v3 }
 0x136   : > { %1308 = vst [vmem:[%s7089_s6 + $0x790] sm:$0xff] %v1307_v4 }
 0x137   : > { %1310 = vst [vmem:[%s7089_s6 + $0x798] sm:$0xff] %v1309_v5 }
 0x138   : > { %1312 = vst [vmem:[%s7089_s6 + $0x7a0] sm:$0xff] %v1311_v6 }
 0x139   : > { %1314 = vst [vmem:[%s7089_s6 + $0x7a8] sm:$0xff] %v1313_v7 }
 0x13a   : > { %1316 = vst [vmem:[%s7089_s6 + $0x7b0] sm:$0xff] %v1315_v8 }
 0x13b   : > { %1318 = vst [vmem:[%s7089_s6 + $0x7b8] sm:$0xff] %v1317_v9 }
 0x13c   : > { %1320 = vst [vmem:[%s7089_s6 + $0x7c0] sm:$0xff] %v1319_v10 }
 0x13d   : > { %1322 = vst [vmem:[%s7089_s6 + $0x7c8] sm:$0xff] %v1321_v11 }
 0x13e   : > { %1324 = vst [vmem:[%s7089_s6 + $0x7d0] sm:$0xff] %v1323_v12 }
 0x13f   : > { %1326 = vst [vmem:[%s7089_s6 + $0x7d8] sm:$0xff] %v1325_v13 }
 0x140   : > { %1328 = vst [vmem:[%s7089_s6 + $0x7e0] sm:$0xff] %v1327_v14 }
 0x141   : > { %1330 = vst [vmem:[%s7089_s6 + $0x7e8] sm:$0xff] %v1329_v15 }
 0x142   : > { %1332 = vst [vmem:[%s7089_s6 + $0x7f0] sm:$0xff] %v1331_v16 }
 0x143   : > { %1334 = vst [vmem:[%s7089_s6 + $0x7f8] sm:$0xff] %v1333_v17 }
 0x144   : > { %1336 = vst [vmem:[%s7089_s6 + $0x800] sm:$0xff] %v1335_v18 }
 0x145   : > { %1338 = vst [vmem:[%s7089_s6 + $0x808] sm:$0xff] %v1337_v19 }
 0x146   : > { %1340 = vst [vmem:[%s7089_s6 + $0x810] sm:$0xff] %v1339_v20 }
 0x147   : > { %1342 = vst [vmem:[%s7089_s6 + $0x818] sm:$0xff] %v1341_v21 }
 0x148   : > { %1344 = vst [vmem:[%s7089_s6 + $0x820] sm:$0xff] %v1343_v22 }
 0x149   : > { %1346 = vst [vmem:[%s7089_s6 + $0x828] sm:$0xff] %v1345_v23 }
 0x14a   : > { %1348 = vst [vmem:[%s7089_s6 + $0x830] sm:$0xff] %v1347_v24 }
 0x14b   : > { %1350 = vst [vmem:[%s7089_s6 + $0x838] sm:$0xff] %v1349_v25 }
 0x14c   : > { %1352 = vst [vmem:[%s7089_s6 + $0x840] sm:$0xff] %v1351_v26 }
 0x14d   : > { %1354 = vst [vmem:[%s7089_s6 + $0x848] sm:$0xff] %v1353_v27 }
 0x14e   : > { %1356 = vst [vmem:[%s7089_s6 + $0x850] sm:$0xff] %v1355_v28 }
 0x14f   : > { %1358 = vst [vmem:[%s7089_s6 + $0x858] sm:$0xff] %v1357_v29 }
 0x150   : > { %1360 = vst [vmem:[%s7089_s6 + $0x860] sm:$0xff] %v1359_v30 }
 0x151   : > { %1362 = vst [vmem:[%s7089_s6 + $0x868] sm:$0xff] %v1361_v31 }
 0x152   : > { %1364 = vst [vmem:[%s7089_s6 + $0x870] sm:$0xff] %v1363_v32 }
 0x153   : > { %1366 = vst [vmem:[%s7089_s6 + $0x878] sm:$0xff] %v1365_v33 }
 0x154   : > { %1368 = vst [vmem:[%s7089_s6 + $0x880] sm:$0xff] %v1367_v34 }
 0x155   : > { %1370 = vst [vmem:[%s7089_s6 + $0x888] sm:$0xff] %v1369_v35 }
 0x156   : > { %1372 = vst [vmem:[%s7089_s6 + $0x890] sm:$0xff] %v1371_v36 }
 0x157   : > { %1374 = vst [vmem:[%s7089_s6 + $0x898] sm:$0xff] %v1373_v37 }
 0x158   : > { %1376 = vst [vmem:[%s7089_s6 + $0x8a0] sm:$0xff] %v1375_v38 }
 0x159   : > { %1378 = vst [vmem:[%s7089_s6 + $0x8a8] sm:$0xff] %v1377_v39 }
 0x15a   : > { %1380 = vst [vmem:[%s7089_s6 + $0x8b0] sm:$0xff] %v1379_v40 }
 0x15b   : > { %1382 = vst [vmem:[%s7089_s6 + $0x8b8] sm:$0xff] %v1381_v41 }
 0x15c   : > { %1384 = vst [vmem:[%s7089_s6 + $0x8c0] sm:$0xff] %v1383_v42 }
 0x15d   : > { %1386 = vst [vmem:[%s7089_s6 + $0x8c8] sm:$0xff] %v1385_v43 }
 0x15e   : > { %1388 = vst [vmem:[%s7089_s6 + $0x8d0] sm:$0xff] %v1387_v44 }
 0x15f   : > { %1390 = vst [vmem:[%s7089_s6 + $0x8d8] sm:$0xff] %v1389_v45 }
 0x160   : > { %1392 = vst [vmem:[%s7089_s6 + $0x8e0] sm:$0xff] %v1391_v46 }
 0x161   : > { %1394 = vst [vmem:[%s7089_s6 + $0x8e8] sm:$0xff] %v1393_v47 }
 0x162   : > { %1396 = vst [vmem:[%s7089_s6 + $0x8f0] sm:$0xff] %v1395_v48 }
 0x163   : > { %1398 = vst [vmem:[%s7089_s6 + $0x8f8] sm:$0xff] %v1397_v49 }
 0x164 PF: > { %p5185_p0 = scmp.ge.s32.totalorder %s6907_s22, 1  ;;  %p2598_p1 = scmp.lt.s32.totalorder %s6907_s22, 9 }
 0x166   : > { %p2599_p2 = pnand %p5185_p0, %p2598_p1 }
 0x167   : > { %s2605_s0 = sand.u32 (!%p2599_p2), 1, %s6883_s16   ;;  %s2612_s23 = sand.u32 (!%p2599_p2), 1, %s6875_s14  }
 0x168   : > { %2602 = sbr.rel (%p2599_p2) target bundleno = 836 (0x344), region = 99  ;;  %s2639_s7 = sand.u32 (!%p2599_p2), 1, %s6867_s12  }
 0x169   : > { %s6730_s28 = smul.u32 (!%p2599_p2), 144, %s2605_s0  ;;  %s5186_s26 = sshll.u32 (!%p2599_p2), %s2639_s7, 5 }
 0x16a   : > { %s6731_s11 = smul.u32 (!%p2599_p2), 2304, %s2612_s23  ;;  %s5187_s27 = sshll.u32 (!%p2599_p2), %s6895_s19, 1 }
 0x16b   : > { %p2646_p3 = scmp.lt.s32.totalorder (!%p2599_p2), %s5187_s27, 3  ;;  %s7676_s6 = scalar_lea.vmem (!%p2599_p2), [#allocation3], %s6730_s28 }
 0x16c   : > { %s7678_s1 = scalar_lea.vmem (!%p2599_p2), [#allocation4], %s6731_s11  ;;  %s7680_s25 = scalar_lea.vmem (!%p2599_p2), [#allocation5], %s5186_s26 }
 0x16d   : > { %s8508_s27 = smov (!%p2646_p3, %s5187_s27), 3  ;;  %p5188_p4 = scmp.ne.s32.totalorder %s6891_s18, 0 }
 0x16e   : > { %s2648_s5 = scalar_lea.vmem %s8479_s2, %s8508_s27 }
 0x16f   : > { %2654 = sbr.rel (%p5188_p4) target bundleno = 377 (0x179), region = 111 }
 0x174   : > { %v6909_v50 = vmov 0.0  }
 0x175   : > { %2655 = vst [vmem:[#allocation2 + $0x10] sm:$0xff] %v6909_v50 }
 0x176   : > { %2656 = vst [vmem:[#allocation2] sm:$0xff] %v6909_v50 }
 0x177   : > { %2657 = vst [vmem:[#allocation2 + $0x18] sm:$0xff] %v6909_v50 }
 0x178   : > { %2658 = vst [vmem:[#allocation2 + $0x8] sm:$0xff] %v6909_v50 }
 0x179 PF: > { %v5319_v51 = vld [vmem:[%s7678_s1 + $0x70] sm:$0xf]  ;;  %v6454_v52 = vld [vmem:[%s7678_s1 + $0x74] sm:$0xf0]  ;;  %v5311_v62 = vld [vmem:[%s7678_s1 + $0x60] sm:$0xf] }
 0x17a   : > { %v5383_v53 = vld [vmem:[%s7678_s1 + $0xf0] sm:$0xf]  ;;  %v5320_v54 = vor.u32 %v6454_v52, %v5319_v51  ;;  %v6470_v55 = vld [vmem:[%s7678_s1 + $0xf4] sm:$0xf0]  ;;  %v6452_v0 = vld [vmem:[%s7678_s1 + $0x64] sm:$0xf0] }
 0x17b   : > { %v5447_v56 = vld [vmem:[%s7678_s1 + $0x170] sm:$0xf]  ;;  %v6486_v57 = vld [vmem:[%s7678_s1 + $0x174] sm:$0xf0]  ;;  %v5384_v58 = vor.u32 %v6470_v55, %v5383_v53  ;;  %v5375_v1 = vld [vmem:[%s7678_s1 + $0xe0] sm:$0xf]  ;;  %v5312_v3 = vor.u32 %v6452_v0, %v5311_v62 }
 0x17c   : > { %v5448_v59 = vor.u32 %v6486_v57, %v5447_v56  ;;  %v5511_v60 = vld [vmem:[%s7678_s1 + $0x1f0] sm:$0xf]  ;;  %v6502_v61 = vld [vmem:[%s7678_s1 + $0x1f4] sm:$0xf0]  ;;  %4499 = vmatpush.bf16.msra.mxu0 %v5320_v54  ;;  %v6468_v2 = vld [vmem:[%s7678_s1 + $0xe4] sm:$0xf0] }
 0x17d   : > { %v5512_v63 = vor.u32 %v6502_v61, %v5511_v60  ;;  %4513 = vmatpush.bf16.msra.mxu1 %v5384_v58  ;;  %v5376_v4 = vor.u32 %v6468_v2, %v5375_v1  ;;  %v5439_v5 = vld [vmem:[%s7678_s1 + $0x160] sm:$0xf]  ;;  %v6484_v6 = vld [vmem:[%s7678_s1 + $0x164] sm:$0xf0]  ;;  %v5303_v10 = vld [vmem:[%s7678_s1 + $0x50] sm:$0xf] }
 0x17e   : > { %4527 = vmatpush.bf16.msra.mxu2 %v5448_v59  ;;  %v5503_v7 = vld [vmem:[%s7678_s1 + $0x1e0] sm:$0xf]  ;;  %v5440_v8 = vor.u32 %v6484_v6, %v5439_v5  ;;  %v6500_v9 = vld [vmem:[%s7678_s1 + $0x1e4] sm:$0xf0]  ;;  %v6450_v11 = vld [vmem:[%s7678_s1 + $0x54] sm:$0xf0] }
 0x17f   : > { %4541 = vmatpush.bf16.msra.mxu3 %v5512_v63  ;;  %v5504_v12 = vor.u32 %v6500_v9, %v5503_v7  ;;  %v5367_v13 = vld [vmem:[%s7678_s1 + $0xd0] sm:$0xf]  ;;  %v6466_v14 = vld [vmem:[%s7678_s1 + $0xd4] sm:$0xf0]  ;;  %v5304_v16 = vor.u32 %v6450_v11, %v5303_v10  ;;  %v5295_v22 = vld [vmem:[%s7678_s1 + $0x40] sm:$0xf] }
 0x180   : > { %v5431_v15 = vld [vmem:[%s7678_s1 + $0x150] sm:$0xf]  ;;  %4500 = vmatpush.bf16.msra.mxu0 %v5312_v3  ;;  %v6482_v17 = vld [vmem:[%s7678_s1 + $0x154] sm:$0xf0]  ;;  %v5368_v20 = vor.u32 %v6466_v14, %v5367_v13  ;;  %v6448_v23 = vld [vmem:[%s7678_s1 + $0x44] sm:$0xf0] }
 0x181   : > { %v5495_v18 = vld [vmem:[%s7678_s1 + $0x1d0] sm:$0xf]  ;;  %v6498_v19 = vld [vmem:[%s7678_s1 + $0x1d4] sm:$0xf0]  ;;  %4514 = vmatpush.bf16.msra.mxu1 %v5376_v4  ;;  %v5432_v21 = vor.u32 %v6482_v17, %v5431_v15  ;;  %v5359_v24 = vld [vmem:[%s7678_s1 + $0xc0] sm:$0xf]  ;;  %v5296_v31 = vor.u32 %v6448_v23, %v5295_v22 }
 0x182   : > { %4528 = vmatpush.bf16.msra.mxu2 %v5440_v8  ;;  %v5496_v25 = vor.u32 %v6498_v19, %v5495_v18  ;;  %v6464_v26 = vld [vmem:[%s7678_s1 + $0xc4] sm:$0xf0]  ;;  %v5423_v27 = vld [vmem:[%s7678_s1 + $0x140] sm:$0xf]  ;;  %v5287_v34 = vld [vmem:[%s7678_s1 + $0x30] sm:$0xf] }
 0x183   : > { %4542 = vmatpush.bf16.msra.mxu3 %v5504_v12  ;;  %v6480_v28 = vld [vmem:[%s7678_s1 + $0x144] sm:$0xf0]  ;;  %v5487_v29 = vld [vmem:[%s7678_s1 + $0x1c0] sm:$0xf]  ;;  %v5360_v32 = vor.u32 %v6464_v26, %v5359_v24  ;;  %v6446_v35 = vld [vmem:[%s7678_s1 + $0x34] sm:$0xf0] }
 0x184   : > { %v6496_v30 = vld [vmem:[%s7678_s1 + $0x1c4] sm:$0xf0]  ;;  %4501 = vmatpush.bf16.msra.mxu0 %v5304_v16  ;;  %v5424_v33 = vor.u32 %v6480_v28, %v5423_v27  ;;  %v5351_v36 = vld [vmem:[%s7678_s1 + $0xb0] sm:$0xf]  ;;  %v6462_v38 = vld [vmem:[%s7678_s1 + $0xb4] sm:$0xf0]  ;;  %v5288_v43 = vor.u32 %v6446_v35, %v5287_v34 }
 0x185   : > { %4515 = vmatpush.bf16.msra.mxu1 %v5368_v20  ;;  %v5488_v37 = vor.u32 %v6496_v30, %v5487_v29  ;;  %v5415_v39 = vld [vmem:[%s7678_s1 + $0x130] sm:$0xf]  ;;  %v6478_v40 = vld [vmem:[%s7678_s1 + $0x134] sm:$0xf0]  ;;  %v5352_v44 = vor.u32 %v6462_v38, %v5351_v36  ;;  %v5279_v46 = vld [vmem:[%s7678_s1 + $0x20] sm:$0xf] }
 0x186   : > { %4529 = vmatpush.bf16.msra.mxu2 %v5432_v21  ;;  %v5479_v41 = vld [vmem:[%s7678_s1 + $0x1b0] sm:$0xf]  ;;  %v6494_v42 = vld [vmem:[%s7678_s1 + $0x1b4] sm:$0xf0]  ;;  %v5416_v45 = vor.u32 %v6478_v40, %v5415_v39  ;;  %v6444_v47 = vld [vmem:[%s7678_s1 + $0x24] sm:$0xf0] }
 0x187   : > { %4543 = vmatpush.bf16.msra.mxu3 %v5496_v25  ;;  %v5343_v48 = vld [vmem:[%s7678_s1 + $0xa0] sm:$0xf]  ;;  %v5480_v49 = vor.u32 %v6494_v42, %v5479_v41  ;;  %v6460_v50 = vld [vmem:[%s7678_s1 + $0xa4] sm:$0xf0]  ;;  %v5280_v55 = vor.u32 %v6444_v47, %v5279_v46  ;;  %v5271_v58 = vld [vmem:[%s7678_s1 + $0x10] sm:$0xf] }
 0x188   : > { %4502 = vmatpush.bf16.msra.mxu0 %v5296_v31  ;;  %v5407_v51 = vld [vmem:[%s7678_s1 + $0x120] sm:$0xf]  ;;  %v6476_v52 = vld [vmem:[%s7678_s1 + $0x124] sm:$0xf0]  ;;  %v5344_v56 = vor.u32 %v6460_v50, %v5343_v48  ;;  %v6442_v59 = vld [vmem:[%s7678_s1 + $0x14] sm:$0xf0] }
 0x189   : > { %4516 = vmatpush.bf16.msra.mxu1 %v5360_v32  ;;  %v5471_v53 = vld [vmem:[%s7678_s1 + $0x1a0] sm:$0xf]  ;;  %v6492_v54 = vld [vmem:[%s7678_s1 + $0x1a4] sm:$0xf0]  ;;  %v5408_v57 = vor.u32 %v6476_v52, %v5407_v51  ;;  %v5335_v60 = vld [vmem:[%s7678_s1 + $0x90] sm:$0xf]  ;;  %v5272_v3 = vor.u32 %v6442_v59, %v5271_v58 }
 0x18a   : > { %4530 = vmatpush.bf16.msra.mxu2 %v5424_v33  ;;  %v5472_v61 = vor.u32 %v6492_v54, %v5471_v53  ;;  %v6458_v62 = vld [vmem:[%s7678_s1 + $0x94] sm:$0xf0]  ;;  %v5399_v63 = vld [vmem:[%s7678_s1 + $0x110] sm:$0xf]  ;;  %v5263_v4 = vld [vmem:[%s7678_s1] sm:$0xf] }
 0x18b   : > { %4544 = vmatpush.bf16.msra.mxu3 %v5488_v37  ;;  %v6474_v0 = vld [vmem:[%s7678_s1 + $0x114] sm:$0xf0]  ;;  %v5463_v1 = vld [vmem:[%s7678_s1 + $0x190] sm:$0xf]  ;;  %v6440_v5 = vld [vmem:[%s7678_s1 + $0x4] sm:$0xf0]  ;;  %v5336_v6 = vor.u32 %v6458_v62, %v5335_v60 }
 0x18c   : > { %4503 = vmatpush.bf16.msra.mxu0 %v5288_v43  ;;  %v6490_v2 = vld [vmem:[%s7678_s1 + $0x194] sm:$0xf0]  ;;  %v5400_v7 = vor.u32 %v6474_v0, %v5399_v63  ;;  %v5327_v8 = vld [vmem:[%s7678_s1 + $0x80] sm:$0xf]  ;;  %v6456_v9 = vld [vmem:[%s7678_s1 + $0x84] sm:$0xf0]  ;;  %v5264_v18 = vor.u32 %v6440_v5, %v5263_v4 }
 0x18d   : > { %4517 = vmatpush.bf16.msra.mxu1 %v5352_v44  ;;  %v5391_v10 = vld [vmem:[%s7678_s1 + $0x100] sm:$0xf]  ;;  %v5464_v11 = vor.u32 %v6490_v2, %v5463_v1  ;;  %v6472_v12 = vld [vmem:[%s7678_s1 + $0x104] sm:$0xf0]  ;;  %v5575_v15 = vld [vmem:[%s7678_s1 + $0x270] sm:$0xf]  ;;  %v5328_v22 = vor.u32 %v6456_v9, %v5327_v8 }
 0x18e   : > { %4531 = vmatpush.bf16.msra.mxu2 %v5416_v45  ;;  %v5455_v13 = vld [vmem:[%s7678_s1 + $0x180] sm:$0xf]  ;;  %v6488_v14 = vld [vmem:[%s7678_s1 + $0x184] sm:$0xf0]  ;;  %v6518_v16 = vld [vmem:[%s7678_s1 + $0x274] sm:$0xf0]  ;;  %v5392_v23 = vor.u32 %v6472_v12, %v5391_v10 }
 0x18f   : > { %4545 = vmatpush.bf16.msra.mxu3 %v5480_v49  ;;  %v5639_v17 = vld [vmem:[%s7678_s1 + $0x2f0] sm:$0xf]  ;;  %v6534_v19 = vld [vmem:[%s7678_s1 + $0x2f4] sm:$0xf0]  ;;  %v5456_v26 = vor.u32 %v6488_v14, %v5455_v13  ;;  %v5576_v27 = vor.u32 %v6518_v16, %v5575_v15  ;;  %v5567_v28 = vld [vmem:[%s7678_s1 + $0x260] sm:$0xf] }
 0x190   : > { %4504 = vmatpush.bf16.msra.mxu0 %v5280_v55  ;;  %v5703_v20 = vld [vmem:[%s7678_s1 + $0x370] sm:$0xf]  ;;  %v6550_v21 = vld [vmem:[%s7678_s1 + $0x374] sm:$0xf0]  ;;  %v6516_v29 = vld [vmem:[%s7678_s1 + $0x264] sm:$0xf0]  ;;  %v5640_v30 = vor.u32 %v6534_v19, %v5639_v17 }
 0x191   : > { %4518 = vmatpush.bf16.msra.mxu1 %v5344_v56  ;;  %v5767_v24 = vld [vmem:[%s7678_s1 + $0x3f0] sm:$0xf]  ;;  %v6566_v25 = vld [vmem:[%s7678_s1 + $0x3f4] sm:$0xf0]  ;;  %v5704_v31 = vor.u32 %v6550_v21, %v5703_v20  ;;  %v5631_v32 = vld [vmem:[%s7678_s1 + $0x2e0] sm:$0xf]  ;;  %v5568_v42 = vor.u32 %v6516_v29, %v5567_v28 }
 0x192   : > { %4532 = vmatpush.bf16.msra.mxu2 %v5408_v57  ;;  %v6532_v33 = vld [vmem:[%s7678_s1 + $0x2e4] sm:$0xf0]  ;;  %v5695_v34 = vld [vmem:[%s7678_s1 + $0x360] sm:$0xf]  ;;  %v5768_v35 = vor.u32 %v6566_v25, %v5767_v24  ;;  %v5559_v43 = vld [vmem:[%s7678_s1 + $0x250] sm:$0xf] }
 0x193   : > { %4546 = vmatpush.bf16.msra.mxu3 %v5472_v61  ;;  %v6548_v36 = vld [vmem:[%s7678_s1 + $0x364] sm:$0xf0]  ;;  %v5759_v37 = vld [vmem:[%s7678_s1 + $0x3e0] sm:$0xf]  ;;  %v6514_v44 = vld [vmem:[%s7678_s1 + $0x254] sm:$0xf0]  ;;  %v5632_v47 = vor.u32 %v6532_v33, %v5631_v32 }
 0x194   : > { %4505 = vmatpush.bf16.msra.mxu0 %v5272_v3  ;;  %v6564_v38 = vld [vmem:[%s7678_s1 + $0x3e4] sm:$0xf0]  ;;  %v5191_v39 = vld [vmem:[%s7676_s6] sm:$0xf]  ;;  %v6431_v46 = vld [vmem:[%s7676_s6 + $0x4c] sm:$0xf0]  ;;  %v5696_v48 = vor.u32 %v6548_v36, %v5695_v34  ;;  %v5560_v60 = vor.u32 %v6514_v44, %v5559_v43 }
 0x195   : > { %4519 = vmatpush.bf16.msra.mxu1 %v5336_v6  ;;  %v6430_v40 = vld [vmem:[%s7676_s6 + $0x44] sm:$0xf0]  ;;  %v5623_v49 = vld [vmem:[%s7678_s1 + $0x2d0] sm:$0xf]  ;;  %v5760_v53 = vor.u32 %v6564_v38, %v5759_v37  ;;  %v6421_v57 = vld [vmem:[%s7676_s6 + $0x4] sm:$0xf] }
 0x196   : > { %4533 = vmatpush.bf16.msra.mxu2 %v5400_v7  ;;  %v5199_v41 = vld [vmem:[%s7676_s6 + $0x8] sm:$0xf]  ;;  %v7768_v45 = vor.u32 %v6430_v40, %v5191_v39  ;;  %v5687_v51 = vld [vmem:[%s7678_s1 + $0x350] sm:$0xf]  ;;  %v5193_v58 = vld [vmem:[%s7676_s6 + $0x48] sm:$0xf0] }
 0x197   : > { %4547 = vmatpush.bf16.msra.mxu3 %v5464_v11  ;;  %v6530_v50 = vld [vmem:[%s7678_s1 + $0x2d4] sm:$0xf0]  ;;  %v7774_v52 = vor.u32 %v6431_v46, %v5199_v41  ;;  %v5751_v55 = vld [vmem:[%s7678_s1 + $0x3d0] sm:$0xf]  ;;  %v6422_v59 = vld [vmem:[%s7676_s6 + $0xc] sm:$0xf]  ;;  %v7784_v61 = vor.u32 %v6421_v57, %v5193_v58 }
 0x198   : > { %4506 = vmatpush.bf16.msra.mxu0 %v5264_v18  ;;  %v6546_v54 = vld [vmem:[%s7678_s1 + $0x354] sm:$0xf0]  ;;  %v5201_v62 = vld [vmem:[%s7676_s6 + $0x50] sm:$0xf0]  ;;  %v5624_v63 = vor.u32 %v6530_v50, %v5623_v49  ;;  %v5551_v1 = vld [vmem:[%s7678_s1 + $0x240] sm:$0xf] }
 0x199   : > { %4520 = vmatpush.bf16.msra.mxu1 %v5328_v22  ;;  %v6562_v56 = vld [vmem:[%s7678_s1 + $0x3d4] sm:$0xf0]  ;;  %v5688_v0 = vor.u32 %v6546_v54, %v5687_v51  ;;  %v6512_v2 = vld [vmem:[%s7678_s1 + $0x244] sm:$0xf0]  ;;  %v5615_v3 = vld [vmem:[%s7678_s1 + $0x2c0] sm:$0xf]  ;;  %v7790_v4 = vor.u32 %v6422_v59, %v5201_v62 }
 0x19a   : > { %4534 = vmatpush.bf16.msra.mxu2 %v5392_v23  ;;  %v5752_v5 = vor.u32 %v6562_v56, %v5751_v55  ;;  %v6528_v6 = vld [vmem:[%s7678_s1 + $0x2c4] sm:$0xf0]  ;;  %v5679_v7 = vld [vmem:[%s7678_s1 + $0x340] sm:$0xf]  ;;  %v5552_v11 = vor.u32 %v6512_v2, %v5551_v1  ;;  %v5543_v14 = vld [vmem:[%s7678_s1 + $0x230] sm:$0xf] }
 0x19b   : > { %4548 = vmatpush.bf16.msra.mxu3 %v5456_v26  ;;  %4507 = vmatmul.bf16.vlgmr.msra.gmra.mxu0 %v7768_v45  ;;  %v6544_v8 = vld [vmem:[%s7678_s1 + $0x344] sm:$0xf0]  ;;  %v5743_v9 = vld [vmem:[%s7678_s1 + $0x3c0] sm:$0xf]  ;;  %v5616_v12 = vor.u32 %v6528_v6, %v5615_v3  ;;  %v6510_v15 = vld [vmem:[%s7678_s1 + $0x234] sm:$0xf0] }
 0x19c   : > { %4555 = vmatpush.bf16.msrb.mxu0 %v5576_v27  ;;  %4521 = vmatmul.bf16.vlgmr.msra.gmra.mxu1 %v7784_v61  ;;  %v6560_v10 = vld [vmem:[%s7678_s1 + $0x3c4] sm:$0xf0]  ;;  %v5680_v13 = vor.u32 %v6544_v8, %v5679_v7  ;;  %v5607_v16 = vld [vmem:[%s7678_s1 + $0x2b0] sm:$0xf]  ;;  %v6526_v18 = vld [vmem:[%s7678_s1 + $0x2b4] sm:$0xf0]  ;;  %v5544_v23 = vor.u32 %v6510_v15, %v5543_v14 }
 0x19d   : > { %4569 = vmatpush.bf16.msrb.mxu1 %v5640_v30  ;;  %4535 = vmatmul.bf16.vlgmr.msra.gmra.mxu2 %v7774_v52  ;;  %v5744_v17 = vor.u32 %v6560_v10, %v5743_v9  ;;  %v5671_v19 = vld [vmem:[%s7678_s1 + $0x330] sm:$0xf]  ;;  %v6542_v20 = vld [vmem:[%s7678_s1 + $0x334] sm:$0xf0]  ;;  %v5608_v24 = vor.u32 %v6526_v18, %v5607_v16  ;;  %v5535_v26 = vld [vmem:[%s7678_s1 + $0x220] sm:$0xf] }
 0x19e   : > { %4583 = vmatpush.bf16.msrb.mxu2 %v5704_v31  ;;  %4549 = vmatmul.bf16.vlgmr.msra.gmra.mxu3 %v7790_v4  ;;  %v5735_v21 = vld [vmem:[%s7678_s1 + $0x3b0] sm:$0xf]  ;;  %v6558_v22 = vld [vmem:[%s7678_s1 + $0x3b4] sm:$0xf0]  ;;  %v5672_v25 = vor.u32 %v6542_v20, %v5671_v19  ;;  %v6508_v27 = vld [vmem:[%s7678_s1 + $0x224] sm:$0xf0] }
 0x19f   : > { %4597 = vmatpush.bf16.msrb.mxu3 %v5768_v35  ;;  %v5599_v28 = vld [vmem:[%s7678_s1 + $0x2a0] sm:$0xf]  ;;  %v5736_v29 = vor.u32 %v6558_v22, %v5735_v21  ;;  %v6524_v30 = vld [vmem:[%s7678_s1 + $0x2a4] sm:$0xf0]  ;;  %v5536_v35 = vor.u32 %v6508_v27, %v5535_v26  ;;  %v5527_v36 = vld [vmem:[%s7678_s1 + $0x210] sm:$0xf] }
 0x1a0   : > { %4556 = vmatpush.bf16.msrb.mxu0 %v5568_v42  ;;  %v5663_v31 = vld [vmem:[%s7678_s1 + $0x320] sm:$0xf]  ;;  %v6540_v32 = vld [vmem:[%s7678_s1 + $0x324] sm:$0xf0]  ;;  %v5600_v37 = vor.u32 %v6524_v30, %v5599_v28  ;;  %v6506_v39 = vld [vmem:[%s7678_s1 + $0x214] sm:$0xf0] }
 0x1a1   : > { %4570 = vmatpush.bf16.msrb.mxu1 %v5632_v47  ;;  %v5727_v33 = vld [vmem:[%s7678_s1 + $0x3a0] sm:$0xf]  ;;  %v6556_v34 = vld [vmem:[%s7678_s1 + $0x3a4] sm:$0xf0]  ;;  %v5664_v38 = vor.u32 %v6540_v32, %v5663_v31  ;;  %v5591_v40 = vld [vmem:[%s7678_s1 + $0x290] sm:$0xf]  ;;  %v5528_v50 = vor.u32 %v6506_v39, %v5527_v36 }
 0x1a2   : > { %4584 = vmatpush.bf16.msrb.mxu2 %v5696_v48  ;;  %v6522_v41 = vld [vmem:[%s7678_s1 + $0x294] sm:$0xf0]  ;;  %v5728_v42 = vor.u32 %v6556_v34, %v5727_v33  ;;  %v5655_v43 = vld [vmem:[%s7678_s1 + $0x310] sm:$0xf]  ;;  %v5519_v48 = vld [vmem:[%s7678_s1 + $0x200] sm:$0xf] }
 0x1a3   : > { %4598 = vmatpush.bf16.msrb.mxu3 %v5760_v53  ;;  %v6538_v44 = vld [vmem:[%s7678_s1 + $0x314] sm:$0xf0]  ;;  %v5719_v46 = vld [vmem:[%s7678_s1 + $0x390] sm:$0xf]  ;;  %v6504_v49 = vld [vmem:[%s7678_s1 + $0x204] sm:$0xf0]  ;;  %v5592_v56 = vor.u32 %v6522_v41, %v5591_v40 }
 0x1a4   : > { %4557 = vmatpush.bf16.msrb.mxu0 %v5560_v60  ;;  %v6554_v47 = vld [vmem:[%s7678_s1 + $0x394] sm:$0xf0]  ;;  %v5583_v51 = vld [vmem:[%s7678_s1 + $0x280] sm:$0xf]  ;;  %v6520_v53 = vld [vmem:[%s7678_s1 + $0x284] sm:$0xf0]  ;;  %v5656_v57 = vor.u32 %v6538_v44, %v5655_v43  ;;  %v5520_v6 = vor.u32 %v6504_v49, %v5519_v48 }
 0x1a5   : > { %4571 = vmatpush.bf16.msrb.mxu1 %v5624_v63  ;;  %v5647_v54 = vld [vmem:[%s7678_s1 + $0x300] sm:$0xf]  ;;  %v6536_v55 = vld [vmem:[%s7678_s1 + $0x304] sm:$0xf0]  ;;  %v5831_v60 = vld [vmem:[%s7678_s1 + $0x470] sm:$0xf]  ;;  %v5720_v62 = vor.u32 %v6554_v47, %v5719_v46  ;;  %v5584_v10 = vor.u32 %v6520_v53, %v5583_v51 }
 0x1a6   : > { %4585 = vmatpush.bf16.msrb.mxu2 %v5688_v0  ;;  %v5711_v58 = vld [vmem:[%s7678_s1 + $0x380] sm:$0xf]  ;;  %v6552_v59 = vld [vmem:[%s7678_s1 + $0x384] sm:$0xf0]  ;;  %v6582_v63 = vld [vmem:[%s7678_s1 + $0x474] sm:$0xf0] }
 0x1a7   : > { %4599 = vmatpush.bf16.msrb.mxu3 %v5752_v5  ;;  %v5895_v0 = vld [vmem:[%s7678_s1 + $0x4f0] sm:$0xf]  ;;  %v6598_v1 = vld [vmem:[%s7678_s1 + $0x4f4] sm:$0xf0]  ;;  %v6423_v14 = vld [vmem:[%s7676_s6 + $0x14] sm:$0xf]  ;;  %v5712_v15 = vor.u32 %v6552_v59, %v5711_v58  ;;  %v5832_v16 = vor.u32 %v6582_v63, %v5831_v60 }
 0x1a8   : > { %4558 = vmatpush.bf16.msrb.mxu0 %v5552_v11  ;;  %v5959_v2 = vld [vmem:[%s7678_s1 + $0x570] sm:$0xf]  ;;  %v6614_v3 = vld [vmem:[%s7678_s1 + $0x574] sm:$0xf0]  ;;  %v5648_v11 = vor.u32 %v6536_v55, %v5647_v54  ;;  %v6424_v18 = vld [vmem:[%s7676_s6 + $0x1c] sm:$0xf]  ;;  %v5896_v20 = vor.u32 %v6598_v1, %v5895_v0 }
 0x1a9   : > { %4572 = vmatpush.bf16.msrb.mxu1 %v5616_v12  ;;  %v6023_v5 = vld [vmem:[%s7678_s1 + $0x5f0] sm:$0xf]  ;;  %v6630_v7 = vld [vmem:[%s7678_s1 + $0x5f4] sm:$0xf0]  ;;  %v5217_v19 = vld [vmem:[%s7676_s6 + $0x60] sm:$0xf0]  ;;  %v5960_v21 = vor.u32 %v6614_v3, %v5959_v2 }
 0x1aa   : > { %4586 = vmatpush.bf16.msrb.mxu2 %v5680_v13  ;;  %v5207_v8 = vld [vmem:[%s7676_s6 + $0x10] sm:$0xf]  ;;  %v6432_v9 = vld [vmem:[%s7676_s6 + $0x54] sm:$0xf0]  ;;  %v6433_v13 = vld [vmem:[%s7676_s6 + $0x5c] sm:$0xf0]  ;;  %v7861_v34 = vor.u32 %v6424_v18, %v5217_v19 }
 0x1ab   : > { %4600 = vmatpush.bf16.msrb.mxu3 %v5744_v17  ;;  %v5215_v12 = vld [vmem:[%s7676_s6 + $0x18] sm:$0xf]  ;;  %v5209_v17 = vld [vmem:[%s7676_s6 + $0x58] sm:$0xf0]  ;;  %v5823_v22 = vld [vmem:[%s7678_s1 + $0x460] sm:$0xf]  ;;  %v7850_v26 = vor.u32 %v6432_v9, %v5207_v8 }
 0x1ac   : > { %4559 = vmatpush.bf16.msrb.mxu0 %v5544_v23  ;;  %v6580_v23 = vld [vmem:[%s7678_s1 + $0x464] sm:$0xf0]  ;;  %v5951_v28 = vld [vmem:[%s7678_s1 + $0x560] sm:$0xf]  ;;  %v7855_v30 = vor.u32 %v6433_v13, %v5215_v12  ;;  %v7857_v31 = vor.u32 %v6423_v14, %v5209_v17  ;;  %v6578_v39 = vld [vmem:[%s7678_s1 + $0x454] sm:$0xf0] }
 0x1ad   : > { %4573 = vmatpush.bf16.msrb.mxu1 %v5608_v24  ;;  %v5887_v24 = vld [vmem:[%s7678_s1 + $0x4e0] sm:$0xf]  ;;  %v6596_v27 = vld [vmem:[%s7678_s1 + $0x4e4] sm:$0xf0]  ;;  %v5879_v40 = vld [vmem:[%s7678_s1 + $0x4d0] sm:$0xf] }
 0x1ae   : > { %4587 = vmatpush.bf16.msrb.mxu2 %v5672_v25  ;;  %v6024_v25 = vor.u32 %v6630_v7, %v6023_v5  ;;  %v6015_v32 = vld [vmem:[%s7678_s1 + $0x5e0] sm:$0xf]  ;;  %v6628_v33 = vld [vmem:[%s7678_s1 + $0x5e4] sm:$0xf0]  ;;  %v5888_v36 = vor.u32 %v6596_v27, %v5887_v24  ;;  %v5943_v43 = vld [vmem:[%s7678_s1 + $0x550] sm:$0xf] }
 0x1af   : > { %4601 = vmatpush.bf16.msrb.mxu3 %v5736_v29  ;;  %v6612_v29 = vld [vmem:[%s7678_s1 + $0x564] sm:$0xf0]  ;;  %v6016_v41 = vor.u32 %v6628_v33, %v6015_v32  ;;  %v6610_v44 = vld [vmem:[%s7678_s1 + $0x554] sm:$0xf0]  ;;  %v6007_v46 = vld [vmem:[%s7678_s1 + $0x5d0] sm:$0xf] }
 0x1b0   : > { %4560 = vmatpush.bf16.msrb.mxu0 %v5536_v35  ;;  %v5824_v35 = vor.u32 %v6580_v23, %v5823_v22  ;;  %v6626_v47 = vld [vmem:[%s7678_s1 + $0x5d4] sm:$0xf0]  ;;  %v5807_v51 = vld [vmem:[%s7678_s1 + $0x440] sm:$0xf]  ;;  %v6576_v53 = vld [vmem:[%s7678_s1 + $0x444] sm:$0xf0] }
 0x1b1   : > { %4574 = vmatpush.bf16.msrb.mxu1 %v5600_v37  ;;  %v5952_v37 = vor.u32 %v6612_v29, %v5951_v28  ;;  %v5871_v54 = vld [vmem:[%s7678_s1 + $0x4c0] sm:$0xf]  ;;  %v6008_v55 = vor.u32 %v6626_v47, %v6007_v46  ;;  %v6608_v58 = vld [vmem:[%s7678_s1 + $0x544] sm:$0xf0]  ;;  %v5799_v1 = vld [vmem:[%s7678_s1 + $0x430] sm:$0xf] }
 0x1b2   : > { %4588 = vmatpush.bf16.msrb.mxu2 %v5664_v38  ;;  %v5815_v38 = vld [vmem:[%s7678_s1 + $0x450] sm:$0xf]  ;;  %v5999_v59 = vld [vmem:[%s7678_s1 + $0x5c0] sm:$0xf]  ;;  %v6624_v60 = vld [vmem:[%s7678_s1 + $0x5c4] sm:$0xf0] }
 0x1b3   : > { %4602 = vmatpush.bf16.msrb.mxu3 %v5728_v42  ;;  %v6594_v42 = vld [vmem:[%s7678_s1 + $0x4d4] sm:$0xf0]  ;;  %v5816_v48 = vor.u32 %v6578_v39, %v5815_v38  ;;  %v5863_v3 = vld [vmem:[%s7678_s1 + $0x4b0] sm:$0xf]  ;;  %v6000_v5 = vor.u32 %v6624_v60, %v5999_v59  ;;  %v5791_v14 = vld [vmem:[%s7678_s1 + $0x420] sm:$0xf] }
 0x1b4   : > { %4561 = vmatpush.bf16.msrb.mxu0 %v5528_v50  ;;  %v5880_v49 = vor.u32 %v6594_v42, %v5879_v40  ;;  %v5944_v50 = vor.u32 %v6610_v44, %v5943_v43  ;;  %v6574_v2 = vld [vmem:[%s7678_s1 + $0x434] sm:$0xf0]  ;;  %v5927_v7 = vld [vmem:[%s7678_s1 + $0x530] sm:$0xf]  ;;  %v6588_v18 = vld [vmem:[%s7678_s1 + $0x4a4] sm:$0xf0] }
 0x1b5   : > { %4575 = vmatpush.bf16.msrb.mxu1 %v5592_v56  ;;  %v6592_v56 = vld [vmem:[%s7678_s1 + $0x4c4] sm:$0xf0]  ;;  %v6606_v8 = vld [vmem:[%s7678_s1 + $0x534] sm:$0xf0]  ;;  %v5991_v9 = vld [vmem:[%s7678_s1 + $0x5b0] sm:$0xf] }
 0x1b6   : > { %4589 = vmatpush.bf16.msrb.mxu2 %v5656_v57  ;;  %v5935_v57 = vld [vmem:[%s7678_s1 + $0x540] sm:$0xf]  ;;  %v5872_v63 = vor.u32 %v6592_v56, %v5871_v54  ;;  %v5928_v13 = vor.u32 %v6606_v8, %v5927_v7  ;;  %v6620_v22 = vld [vmem:[%s7678_s1 + $0x5a4] sm:$0xf0]  ;;  %v5783_v24 = vld [vmem:[%s7678_s1 + $0x410] sm:$0xf] }
 0x1b7   : > { %4603 = vmatpush.bf16.msrb.mxu3 %v5720_v62  ;;  %v5808_v62 = vor.u32 %v6576_v53, %v5807_v51  ;;  %v5936_v0 = vor.u32 %v6608_v58, %v5935_v57  ;;  %v5919_v19 = vld [vmem:[%s7678_s1 + $0x520] sm:$0xf]  ;;  %v6570_v28 = vld [vmem:[%s7678_s1 + $0x414] sm:$0xf0]  ;;  %v5847_v29 = vld [vmem:[%s7678_s1 + $0x490] sm:$0xf] }
 0x1b8   : > { %4562 = vmatpush.bf16.msrb.mxu0 %v5520_v6  ;;  %v6590_v6 = vld [vmem:[%s7678_s1 + $0x4b4] sm:$0xf0]  ;;  %v5775_v39 = vld [vmem:[%s7678_s1 + $0x400] sm:$0xf]  ;;  %v6568_v40 = vld [vmem:[%s7678_s1 + $0x404] sm:$0xf0] }
 0x1b9   : > { %4576 = vmatpush.bf16.msrb.mxu1 %v5584_v10  ;;  %v6622_v10 = vld [vmem:[%s7678_s1 + $0x5b4] sm:$0xf0]  ;;  %v5864_v12 = vor.u32 %v6590_v6, %v5863_v3  ;;  %v5839_v42 = vld [vmem:[%s7678_s1 + $0x480] sm:$0xf]  ;;  %v6584_v43 = vld [vmem:[%s7678_s1 + $0x484] sm:$0xf0]  ;;  %v5776_v60 = vor.u32 %v6568_v40, %v5775_v39 }
 0x1ba   : > { %4590 = vmatpush.bf16.msrb.mxu2 %v5648_v11  ;;  %v5800_v11 = vor.u32 %v6574_v2, %v5799_v1  ;;  %v5992_v17 = vor.u32 %v6622_v10, %v5991_v9  ;;  %v6586_v32 = vld [vmem:[%s7678_s1 + $0x494] sm:$0xf0]  ;;  %v5903_v44 = vld [vmem:[%s7678_s1 + $0x500] sm:$0xf]  ;;  %v6600_v46 = vld [vmem:[%s7678_s1 + $0x504] sm:$0xf0]  ;;  %v5840_v1 = vor.u32 %v6584_v43, %v5839_v42 }
 0x1bb   : > { %4604 = vmatpush.bf16.msrb.mxu3 %v5712_v15  ;;  %4563 = vmatmul.bf16.vlgmr.msrb.gmra.mxu0 %v7850_v26  ;;  %v6572_v15 = vld [vmem:[%s7678_s1 + $0x424] sm:$0xf0]  ;;  %v6618_v38 = vld [vmem:[%s7678_s1 + $0x594] sm:$0xf0]  ;;  %v5848_v47 = vor.u32 %v6586_v32, %v5847_v29  ;;  %v6087_v51 = vld [vmem:[%s7678_s1 + $0x670] sm:$0xf]  ;;  %v5904_v2 = vor.u32 %v6600_v46, %v5903_v44 }
 0x1bc   : > { %4611 = vmatpush.bf16.msra.mxu0 %v5832_v16  ;;  %4577 = vmatmul.bf16.vlgmr.msrb.gmra.mxu1 %v7857_v31  ;;  %v5855_v16 = vld [vmem:[%s7678_s1 + $0x4a0] sm:$0xf]  ;;  %v5792_v23 = vor.u32 %v6572_v15, %v5791_v14  ;;  %v6646_v54 = vld [vmem:[%s7678_s1 + $0x674] sm:$0xf0]  ;;  %v6215_v57 = vld [vmem:[%s7678_s1 + $0x770] sm:$0xf] }
 0x1bd   : > { %4625 = vmatpush.bf16.msra.mxu1 %v5896_v20  ;;  %4591 = vmatmul.bf16.vlgmr.msrb.gmra.mxu2 %v7855_v30  ;;  %v6604_v20 = vld [vmem:[%s7678_s1 + $0x524] sm:$0xf0]  ;;  %v6662_v56 = vld [vmem:[%s7678_s1 + $0x6f4] sm:$0xf0]  ;;  %v6279_v59 = vld [vmem:[%s7678_s1 + $0x7f0] sm:$0xf]  ;;  %v6088_v8 = vor.u32 %v6646_v54, %v6087_v51 }
 0x1be   : > { %4639 = vmatpush.bf16.msra.mxu2 %v5960_v21  ;;  %4605 = vmatmul.bf16.vlgmr.msrb.gmra.mxu3 %v7861_v34  ;;  %v5983_v21 = vld [vmem:[%s7678_s1 + $0x5a0] sm:$0xf]  ;;  %v5920_v27 = vor.u32 %v6604_v20, %v5919_v19  ;;  %v6678_v58 = vld [vmem:[%s7678_s1 + $0x774] sm:$0xf0]  ;;  %v6425_v6 = vld [vmem:[%s7676_s6 + $0x24] sm:$0xf] }
 0x1bf   : > { %4653 = vmatpush.bf16.msra.mxu3 %v6024_v25  ;;  %v5856_v25 = vor.u32 %v6588_v18, %v5855_v16  ;;  %v5984_v33 = vor.u32 %v6620_v22, %v5983_v21  ;;  %v5231_v3 = vld [vmem:[%s7676_s6 + $0x28] sm:$0xf]  ;;  %v5225_v9 = vld [vmem:[%s7676_s6 + $0x68] sm:$0xf0]  ;;  %v6079_v14 = vld [vmem:[%s7678_s1 + $0x660] sm:$0xf] }
 0x1c0   : > { %4612 = vmatpush.bf16.msra.mxu0 %v5824_v35  ;;  %v5911_v35 = vld [vmem:[%s7678_s1 + $0x510] sm:$0xf]  ;;  %v6426_v10 = vld [vmem:[%s7676_s6 + $0x2c] sm:$0xf]  ;;  %v6644_v15 = vld [vmem:[%s7678_s1 + $0x664] sm:$0xf0] }
 0x1c1   : > { %4626 = vmatpush.bf16.msra.mxu1 %v5888_v36  ;;  %v6602_v36 = vld [vmem:[%s7678_s1 + $0x514] sm:$0xf0]  ;;  %v6143_v16 = vld [vmem:[%s7678_s1 + $0x6e0] sm:$0xf]  ;;  %v6660_v19 = vld [vmem:[%s7678_s1 + $0x6e4] sm:$0xf0] }
 0x1c2   : > { %4640 = vmatpush.bf16.msra.mxu2 %v5952_v37  ;;  %v5975_v37 = vld [vmem:[%s7678_s1 + $0x590] sm:$0xf]  ;;  %v6207_v20 = vld [vmem:[%s7678_s1 + $0x760] sm:$0xf]  ;;  %v6676_v21 = vld [vmem:[%s7678_s1 + $0x764] sm:$0xf0]  ;;  %v6144_v29 = vor.u32 %v6660_v19, %v6143_v16 }
 0x1c3   : > { %4654 = vmatpush.bf16.msra.mxu3 %v6016_v41  ;;  %v5784_v41 = vor.u32 %v6570_v28, %v5783_v24  ;;  %v5976_v53 = vor.u32 %v6618_v38, %v5975_v37  ;;  %v6271_v24 = vld [vmem:[%s7678_s1 + $0x7e0] sm:$0xf]  ;;  %v6080_v28 = vor.u32 %v6644_v15, %v6079_v14  ;;  %v6208_v32 = vor.u32 %v6676_v21, %v6207_v20  ;;  %v6658_v38 = vld [vmem:[%s7678_s1 + $0x6d4] sm:$0xf0]  ;;  %v6199_v39 = vld [vmem:[%s7678_s1 + $0x750] sm:$0xf] }
 0x1c4   : > { %4613 = vmatpush.bf16.msra.mxu0 %v5816_v48  ;;  %v5912_v48 = vor.u32 %v6602_v36, %v5911_v35  ;;  %v6642_v35 = vld [vmem:[%s7678_s1 + $0x654] sm:$0xf0]  ;;  %v6135_v36 = vld [vmem:[%s7678_s1 + $0x6d0] sm:$0xf]  ;;  %v6656_v51 = vld [vmem:[%s7678_s1 + $0x6c4] sm:$0xf0] }
 0x1c5   : > { %4627 = vmatpush.bf16.msra.mxu1 %v5880_v49  ;;  %v5967_v49 = vld [vmem:[%s7678_s1 + $0x580] sm:$0xf]  ;;  %v6674_v40 = vld [vmem:[%s7678_s1 + $0x754] sm:$0xf0]  ;;  %v6136_v44 = vor.u32 %v6658_v38, %v6135_v36  ;;  %v6672_v54 = vld [vmem:[%s7678_s1 + $0x744] sm:$0xf0] }
 0x1c6   : > { %4641 = vmatpush.bf16.msra.mxu2 %v5944_v50  ;;  %v6616_v50 = vld [vmem:[%s7678_s1 + $0x584] sm:$0xf0]  ;;  %v6690_v42 = vld [vmem:[%s7678_s1 + $0x7d4] sm:$0xf0]  ;;  %v6200_v46 = vor.u32 %v6674_v40, %v6199_v39  ;;  %v6175_v15 = vld [vmem:[%s7678_s1 + $0x720] sm:$0xf] }
 0x1c7   : > { %4655 = vmatpush.bf16.msra.mxu3 %v6008_v55  ;;  %v6151_v55 = vld [vmem:[%s7678_s1 + $0x6f0] sm:$0xf]  ;;  %v5968_v7 = vor.u32 %v6616_v50, %v5967_v49  ;;  %v6127_v49 = vld [vmem:[%s7678_s1 + $0x6c0] sm:$0xf]  ;;  %v6652_v14 = vld [vmem:[%s7678_s1 + $0x6a4] sm:$0xf0] }
 0x1c8   : > { %4614 = vmatpush.bf16.msra.mxu0 %v5808_v62  ;;  %v6694_v62 = vld [vmem:[%s7678_s1 + $0x7f4] sm:$0xf0]  ;;  %v6668_v16 = vld [vmem:[%s7678_s1 + $0x724] sm:$0xf0]  ;;  %v6039_v21 = vld [vmem:[%s7678_s1 + $0x610] sm:$0xf] }
 0x1c9   : > { %4628 = vmatpush.bf16.msra.mxu1 %v5872_v63  ;;  %v5223_v63 = vld [vmem:[%s7676_s6 + $0x20] sm:$0xf]  ;;  %v6684_v19 = vld [vmem:[%s7678_s1 + $0x7a4] sm:$0xf0]  ;;  %v6666_v36 = vld [vmem:[%s7678_s1 + $0x714] sm:$0xf0] }
 0x1ca   : > { %4642 = vmatpush.bf16.msra.mxu2 %v5936_v0  ;;  %v6434_v0 = vld [vmem:[%s7676_s6 + $0x64] sm:$0xf0]  ;;  %v6031_v39 = vld [vmem:[%s7678_s1 + $0x600] sm:$0xf]  ;;  %p6413_p5 = scmp.ne.s32.totalorder %s6891_s18, 3 }
 0x1cb   : > { %4656 = vmatpush.bf16.msra.mxu3 %v6000_v5  ;;  %v6435_v5 = vld [vmem:[%s7676_s6 + $0x6c] sm:$0xf0]  ;;  %v7934_v18 = vor.u32 %v6434_v0, %v5223_v63  ;;  %v6682_v38 = vld [vmem:[%s7678_s1 + $0x794] sm:$0xf0]  ;;  %v6632_v40 = vld [vmem:[%s7678_s1 + $0x604] sm:$0xf0] }
 0x1cc   : > { %4615 = vmatpush.bf16.msra.mxu0 %v5800_v11  ;;  %v5233_v11 = vld [vmem:[%s7676_s6 + $0x70] sm:$0xf0]  ;;  %v7939_v22 = vor.u32 %v6435_v5, %v5231_v3  ;;  %v6119_v63 = vld [vmem:[%s7678_s1 + $0x6b0] sm:$0xf]  ;;  %v6670_v3 = vld [vmem:[%s7678_s1 + $0x734] sm:$0xf0] }
 0x1cd   : > { %4629 = vmatpush.bf16.msra.mxu1 %v5864_v12  ;;  %v6152_v12 = vor.u32 %v6662_v56, %v6151_v55  ;;  %v6255_v55 = vld [vmem:[%s7678_s1 + $0x7c0] sm:$0xf]  ;;  %v6688_v56 = vld [vmem:[%s7678_s1 + $0x7c4] sm:$0xf0]  ;;  %v6247_v5 = vld [vmem:[%s7678_s1 + $0x7b0] sm:$0xf] }
 0x1ce   : > { %4643 = vmatpush.bf16.msra.mxu2 %v5928_v13  ;;  %v6216_v13 = vor.u32 %v6678_v58, %v6215_v57  ;;  %v6128_v58 = vor.u32 %v6656_v51, %v6127_v49  ;;  %v6256_v0 = vor.u32 %v6688_v56, %v6255_v55  ;;  %v6223_v49 = vld [vmem:[%s7678_s1 + $0x780] sm:$0xf]  ;;  %v6343_v51 = vld [vmem:[%s7678_s1 + $0x870] sm:$0xf]  ;;  %v6726_v56 = vld [vmem:[%s7678_s1 + $0x8f4] sm:$0xf0] }
 0x1cf   : > { %4657 = vmatpush.bf16.msra.mxu3 %v5992_v17  ;;  %v6280_v17 = vor.u32 %v6694_v62, %v6279_v59  ;;  %v6638_v62 = vld [vmem:[%s7678_s1 + $0x634] sm:$0xf0]  ;;  %v6407_v55 = vld [vmem:[%s7678_s1 + $0x8f0] sm:$0xf] }
 0x1d0   : > { %4616 = vmatpush.bf16.msra.mxu0 %v5792_v23  ;;  %v7941_v23 = vor.u32 %v6425_v6, %v5225_v9  ;;  %v6686_v6 = vld [vmem:[%s7678_s1 + $0x7b4] sm:$0xf0] }
 0x1d1   : > { %4630 = vmatpush.bf16.msra.mxu1 %v5856_v25  ;;  %v6692_v25 = vld [vmem:[%s7678_s1 + $0x7e4] sm:$0xf0] }
 0x1d2   : > { %4644 = vmatpush.bf16.msra.mxu2 %v5920_v27  ;;  %v7945_v27 = vor.u32 %v6426_v10, %v5233_v11  ;;  %v6272_v37 = vor.u32 %v6692_v25, %v6271_v24  ;;  %v6047_v10 = vld [vmem:[%s7678_s1 + $0x620] sm:$0xf]  ;;  %v6636_v11 = vld [vmem:[%s7678_s1 + $0x624] sm:$0xf0]  ;;  %v6176_v25 = vor.u32 %v6668_v16, %v6175_v15 }
 0x1d3   : > { %4658 = vmatpush.bf16.msra.mxu3 %v5984_v33  ;;  %v6071_v33 = vld [vmem:[%s7678_s1 + $0x650] sm:$0xf]  ;;  %v6048_v20 = vor.u32 %v6636_v11, %v6047_v10  ;;  %v6428_v10 = vld [vmem:[%s7676_s6 + $0x3c] sm:$0xf]  ;;  %v5249_v11 = vld [vmem:[%s7676_s6 + $0x80] sm:$0xf0] }
 0x1d4   : > { %4617 = vmatpush.bf16.msra.mxu0 %v5784_v41  ;;  %v6263_v41 = vld [vmem:[%s7678_s1 + $0x7d0] sm:$0xf]  ;;  %v6072_v43 = vor.u32 %v6642_v35, %v6071_v33  ;;  %v6708_v15 = vld [vmem:[%s7678_s1 + $0x864] sm:$0xf0]  ;;  %v6399_v16 = vld [vmem:[%s7678_s1 + $0x8e0] sm:$0xf] }
 0x1d5   : > { %4631 = vmatpush.bf16.msra.mxu1 %v5848_v47  ;;  %v6063_v47 = vld [vmem:[%s7678_s1 + $0x640] sm:$0xf]  ;;  %v6264_v50 = vor.u32 %v6690_v42, %v6263_v41  ;;  %v6167_v35 = vld [vmem:[%s7678_s1 + $0x710] sm:$0xf] }
 0x1d6   : > { %4645 = vmatpush.bf16.msra.mxu2 %v5912_v48  ;;  %v6640_v48 = vld [vmem:[%s7678_s1 + $0x644] sm:$0xf0]  ;;  %v6095_v42 = vld [vmem:[%s7678_s1 + $0x680] sm:$0xf] }
 0x1d7   : > { %4659 = vmatpush.bf16.msra.mxu3 %v5976_v53  ;;  %v6191_v53 = vld [vmem:[%s7678_s1 + $0x740] sm:$0xf]  ;;  %v6064_v57 = vor.u32 %v6640_v48, %v6063_v47  ;;  %v6168_v48 = vor.u32 %v6666_v36, %v6167_v35 }
 0x1d8   : > { %4618 = vmatpush.bf16.msra.mxu0 %v5776_v60  ;;  %v6192_v59 = vor.u32 %v6672_v54, %v6191_v53  ;;  %v6055_v60 = vld [vmem:[%s7678_s1 + $0x630] sm:$0xf]  ;;  %v6710_v54 = vld [vmem:[%s7678_s1 + $0x874] sm:$0xf0] }
 0x1d9   : > { %4632 = vmatpush.bf16.msra.mxu1 %v5840_v1  ;;  %v6654_v1 = vld [vmem:[%s7678_s1 + $0x6b4] sm:$0xf0] }
 0x1da   : > { %4646 = vmatpush.bf16.msra.mxu2 %v5904_v2  ;;  %v6183_v2 = vld [vmem:[%s7678_s1 + $0x730] sm:$0xf] }
 0x1db   : > { %4660 = vmatpush.bf16.msra.mxu3 %v5968_v7  ;;  %4619 = vmatmul.bf16.vlgmr.msra.gmra.mxu0 %v7934_v18  ;;  %v6056_v7 = vor.u32 %v6638_v62, %v6055_v60  ;;  %v6184_v9 = vor.u32 %v6670_v3, %v6183_v2  ;;  %v6032_v60 = vor.u32 %v6632_v40, %v6031_v39  ;;  %v5385_v62 = vld [vmem:[%s7678_s1 + $0xf8] sm:$0xf0]  ;;  %v5247_v3 = vld [vmem:[%s7676_s6 + $0x38] sm:$0xf]  ;;  %v6391_v40 = vld [vmem:[%s7678_s1 + $0x8d0] sm:$0xf] }
 0x1dc   : > { %4667 = vmatpush.bf16.msrb.mxu0 %v6088_v8  ;;  %4633 = vmatmul.bf16.vlgmr.msra.gmra.mxu1 %v7941_v23  ;;  %v6120_v8 = vor.u32 %v6654_v1, %v6119_v63  ;;  %v5239_v63 = vld [vmem:[%s7676_s6 + $0x30] sm:$0xf]  ;;  %v6706_v39 = vld [vmem:[%s7678_s1 + $0x854] sm:$0xf0] }
 0x1dd   : > { %4681 = vmatpush.bf16.msrb.mxu1 %v6152_v12  ;;  %4647 = vmatmul.bf16.vlgmr.msra.gmra.mxu2 %v7939_v22  ;;  %v6111_v12 = vld [vmem:[%s7678_s1 + $0x6a0] sm:$0xf] }
 0x1de   : > { %4695 = vmatpush.bf16.msrb.mxu2 %v6216_v13  ;;  %4661 = vmatmul.bf16.vlgmr.msra.gmra.mxu3 %v7945_v27  ;;  %v6248_v13 = vor.u32 %v6686_v6, %v6247_v5  ;;  %v6112_v24 = vor.u32 %v6652_v14, %v6111_v12  ;;  %v6437_v5 = vld [vmem:[%s7676_s6 + $0x7c] sm:$0xf0]  ;;  %v6427_v6 = vld [vmem:[%s7676_s6 + $0x34] sm:$0xf]  ;;  %v6408_v12 = vor.u32 %v6726_v56, %v6407_v55  ;;  %v6720_v56 = vld [vmem:[%s7678_s1 + $0x8c4] sm:$0xf0] }
 0x1df   : > { %4709 = vmatpush.bf16.msrb.mxu3 %v6280_v17  ;;  %v6239_v17 = vld [vmem:[%s7678_s1 + $0x7a0] sm:$0xf] }
 0x1e0   : > { %4668 = vmatpush.bf16.msrb.mxu0 %v6080_v28  ;;  %v6634_v28 = vld [vmem:[%s7678_s1 + $0x614] sm:$0xf0]  ;;  %v6240_v33 = vor.u32 %v6684_v19, %v6239_v17  ;;  %v6335_v14 = vld [vmem:[%s7678_s1 + $0x860] sm:$0xf] }
 0x1e1   : > { %4682 = vmatpush.bf16.msrb.mxu1 %v6144_v29  ;;  %v6103_v29 = vld [vmem:[%s7678_s1 + $0x690] sm:$0xf]  ;;  %v6040_v41 = vor.u32 %v6634_v28, %v6039_v21  ;;  %v6451_v21 = vld [vmem:[%s7678_s1 + $0x64] sm:$0xf]  ;;  %v6336_v35 = vor.u32 %v6708_v15, %v6335_v14  ;;  %v6303_v14 = vld [vmem:[%s7678_s1 + $0x820] sm:$0xf] }
 0x1e2   : > { %4696 = vmatpush.bf16.msrb.mxu2 %v6208_v32  ;;  %v6650_v32 = vld [vmem:[%s7678_s1 + $0x694] sm:$0xf0]  ;;  %v6700_v15 = vld [vmem:[%s7678_s1 + $0x824] sm:$0xf0] }
 0x1e3   : > { %4710 = vmatpush.bf16.msrb.mxu3 %v6272_v37  ;;  %v6231_v37 = vld [vmem:[%s7678_s1 + $0x790] sm:$0xf]  ;;  %v6104_v47 = vor.u32 %v6650_v32, %v6103_v29  ;;  %v6467_v29 = vld [vmem:[%s7678_s1 + $0xe4] sm:$0xf]  ;;  %v5377_v32 = vld [vmem:[%s7678_s1 + $0xe8] sm:$0xf0] }
 0x1e4   : > { %4669 = vmatpush.bf16.msrb.mxu0 %v6072_v43  ;;  %v6648_v43 = vld [vmem:[%s7678_s1 + $0x684] sm:$0xf0]  ;;  %v6232_v53 = vor.u32 %v6682_v38, %v6231_v37  ;;  %v6327_v38 = vld [vmem:[%s7678_s1 + $0x850] sm:$0xf] }
 0x1e5   : > { %4683 = vmatpush.bf16.msrb.mxu1 %v6136_v44  ;;  %v6159_v44 = vld [vmem:[%s7678_s1 + $0x700] sm:$0xf]  ;;  %v6096_v1 = vor.u32 %v6648_v43, %v6095_v42  ;;  %v6722_v42 = vld [vmem:[%s7678_s1 + $0x8d4] sm:$0xf0]  ;;  %v6449_v43 = vld [vmem:[%s7678_s1 + $0x54] sm:$0xf] }
 0x1e6   : > { %4697 = vmatpush.bf16.msrb.mxu2 %v6200_v46  ;;  %v6664_v46 = vld [vmem:[%s7678_s1 + $0x704] sm:$0xf0] }
 0x1e7   : > { %4711 = vmatpush.bf16.msrb.mxu3 %v6264_v50  ;;  %v6680_v50 = vld [vmem:[%s7678_s1 + $0x784] sm:$0xf0]  ;;  %v6160_v2 = vor.u32 %v6664_v46, %v6159_v44  ;;  %v5305_v44 = vld [vmem:[%s7678_s1 + $0x58] sm:$0xf0]  ;;  %v6465_v46 = vld [vmem:[%s7678_s1 + $0xd4] sm:$0xf] }
 0x1e8   : > { %4670 = vmatpush.bf16.msrb.mxu0 %v6064_v57  ;;  %v6453_v57 = vld [vmem:[%s7678_s1 + $0x74] sm:$0xf] }
 0x1e9   : > { %4684 = vmatpush.bf16.msrb.mxu1 %v6128_v58  ;;  %v5321_v58 = vld [vmem:[%s7678_s1 + $0x78] sm:$0xf0] }
 0x1ea   : > { %4698 = vmatpush.bf16.msrb.mxu2 %v6192_v59  ;;  %v6469_v59 = vld [vmem:[%s7678_s1 + $0xf4] sm:$0xf] }
 0x1eb   : > { %4712 = vmatpush.bf16.msrb.mxu3 %v6256_v0  ;;  %v6436_v0 = vld [vmem:[%s7676_s6 + $0x74] sm:$0xf0]  ;;  %v5388_v17 = vor.u32 %v6469_v59, %v5385_v62  ;;  %v6463_v59 = vld [vmem:[%s7678_s1 + $0xc4] sm:$0xf] }
 0x1ec   : > { %4671 = vmatpush.bf16.msrb.mxu0 %v6056_v7  ;;  %v6224_v7 = vor.u32 %v6680_v50, %v6223_v49  ;;  %v8018_v19 = vor.u32 %v6436_v0, %v5239_v63  ;;  %v6392_v49 = vor.u32 %v6722_v42, %v6391_v40  ;;  %v5308_v50 = vor.u32 %v6449_v43, %v5305_v44  ;;  %v6359_v40 = vld [vmem:[%s7678_s1 + $0x890] sm:$0xf]  ;;  %v6714_v42 = vld [vmem:[%s7678_s1 + $0x894] sm:$0xf0]  ;;  %v6441_v43 = vld [vmem:[%s7678_s1 + $0x14] sm:$0xf] }
 0x1ed   : > { %4685 = vmatpush.bf16.msrb.mxu1 %v6120_v8  ;;  %v6344_v8 = vor.u32 %v6710_v54, %v6343_v51  ;;  %v6319_v51 = vld [vmem:[%s7678_s1 + $0x840] sm:$0xf]  ;;  %v5273_v44 = vld [vmem:[%s7678_s1 + $0x18] sm:$0xf0] }
 0x1ee   : > { %4699 = vmatpush.bf16.msrb.mxu2 %v6184_v9  ;;  %v5241_v9 = vld [vmem:[%s7676_s6 + $0x78] sm:$0xf0]  ;;  %v6383_v54 = vld [vmem:[%s7678_s1 + $0x8c0] sm:$0xf] }
 0x1ef   : > { %4713 = vmatpush.bf16.msrb.mxu3 %v6248_v13  ;;  %v5324_v13 = vor.u32 %v6453_v57, %v5321_v58  ;;  %v8025_v28 = vor.u32 %v6427_v6, %v5241_v9  ;;  %v6447_v57 = vld [vmem:[%s7678_s1 + $0x44] sm:$0xf]  ;;  %v5297_v58 = vld [vmem:[%s7678_s1 + $0x48] sm:$0xf0]  ;;  %v6384_v63 = vor.u32 %v6720_v56, %v6383_v54  ;;  %v6718_v6 = vld [vmem:[%s7678_s1 + $0x8b4] sm:$0xf0]  ;;  %v5276_v54 = vor.u32 %v6441_v43, %v5273_v44 }
 0x1f0   : > { %4672 = vmatpush.bf16.msrb.mxu0 %v6048_v20  ;;  %v6724_v20 = vld [vmem:[%s7678_s1 + $0x8e4] sm:$0xf0]  ;;  %v5300_v0 = vor.u32 %v6447_v57, %v5297_v58  ;;  %v6461_v9 = vld [vmem:[%s7678_s1 + $0xb4] sm:$0xf]  ;;  %v6439_v56 = vld [vmem:[%s7678_s1 + $0x4] sm:$0xf] }
 0x1f1   : > { %4686 = vmatpush.bf16.msrb.mxu1 %v6112_v24  ;;  %v5313_v24 = vld [vmem:[%s7678_s1 + $0x68] sm:$0xf0]  ;;  %v6400_v36 = vor.u32 %v6724_v20, %v6399_v16  ;;  %v6367_v16 = vld [vmem:[%s7678_s1 + $0x8a0] sm:$0xf]  ;;  %v6716_v20 = vld [vmem:[%s7678_s1 + $0x8a4] sm:$0xf0] }
 0x1f2   : > { %4700 = vmatpush.bf16.msrb.mxu2 %v6176_v25  ;;  %v8023_v25 = vor.u32 %v6437_v5, %v5247_v3  ;;  %v5316_v37 = vor.u32 %v6451_v21, %v5313_v24  ;;  %v6375_v3 = vld [vmem:[%s7678_s1 + $0x8b0] sm:$0xf]  ;;  %v6443_v21 = vld [vmem:[%s7678_s1 + $0x24] sm:$0xf]  ;;  %v5281_v24 = vld [vmem:[%s7678_s1 + $0x28] sm:$0xf0] }
 0x1f3   : > { %4714 = vmatpush.bf16.msrb.mxu3 %v6240_v33  ;;  %v8029_v33 = vor.u32 %v6428_v10, %v5249_v11  ;;  %v5353_v10 = vld [vmem:[%s7678_s1 + $0xb8] sm:$0xf0]  ;;  %v5265_v57 = vld [vmem:[%s7678_s1 + $0x8] sm:$0xf0]  ;;  %v6481_v44 = vld [vmem:[%s7678_s1 + $0x154] sm:$0xf] }
 0x1f4   : > { %4673 = vmatpush.bf16.msrb.mxu0 %v6040_v41  ;;  %v5380_v41 = vor.u32 %v6467_v29, %v5377_v32  ;;  %v6459_v29 = vld [vmem:[%s7678_s1 + $0xa4] sm:$0xf]  ;;  %v5345_v32 = vld [vmem:[%s7678_s1 + $0xa8] sm:$0xf0] }
 0x1f5   : > { %4687 = vmatpush.bf16.msrb.mxu1 %v6104_v47  ;;  %v5369_v47 = vld [vmem:[%s7678_s1 + $0xd8] sm:$0xf0] }
 0x1f6   : > { %4701 = vmatpush.bf16.msrb.mxu2 %v6168_v48  ;;  %v6328_v48 = vor.u32 %v6706_v39, %v6327_v38  ;;  %v5372_v55 = vor.u32 %v6465_v46, %v5369_v47  ;;  %v6295_v38 = vld [vmem:[%s7678_s1 + $0x810] sm:$0xf]  ;;  %v6698_v39 = vld [vmem:[%s7678_s1 + $0x814] sm:$0xf0]  ;;  %v6457_v46 = vld [vmem:[%s7678_s1 + $0x94] sm:$0xf] }
 0x1f7   : > { %4715 = vmatpush.bf16.msrb.mxu3 %v6232_v53  ;;  %v6704_v53 = vld [vmem:[%s7678_s1 + $0x844] sm:$0xf0]  ;;  %v5337_v47 = vld [vmem:[%s7678_s1 + $0x98] sm:$0xf0] }
 0x1f8   : > { %4674 = vmatpush.bf16.msrb.mxu0 %v6032_v60  ;;  %v5361_v60 = vld [vmem:[%s7678_s1 + $0xc8] sm:$0xf0]  ;;  %v6320_v62 = vor.u32 %v6704_v53, %v6319_v51  ;;  %v6351_v51 = vld [vmem:[%s7678_s1 + $0x880] sm:$0xf]  ;;  %v6360_v53 = vor.u32 %v6714_v42, %v6359_v40  ;;  %v5340_v58 = vor.u32 %v6457_v46, %v5337_v47  ;;  %v5433_v46 = vld [vmem:[%s7678_s1 + $0x158] sm:$0xf0] }
 0x1f9   : > { %4688 = vmatpush.bf16.msrb.mxu1 %v6096_v1  ;;  %v6311_v1 = vld [vmem:[%s7678_s1 + $0x830] sm:$0xf]  ;;  %v5364_v5 = vor.u32 %v6463_v59, %v5361_v60  ;;  %v6455_v59 = vld [vmem:[%s7678_s1 + $0x84] sm:$0xf]  ;;  %v5329_v60 = vld [vmem:[%s7678_s1 + $0x88] sm:$0xf0] }
 0x1fa   : > { %4702 = vmatpush.bf16.msrb.mxu2 %v6160_v2  ;;  %v6702_v2 = vld [vmem:[%s7678_s1 + $0x834] sm:$0xf0]  ;;  %v5633_v40 = vld [vmem:[%s7678_s1 + $0x2e8] sm:$0xf0]  ;;  %v6497_v47 = vld [vmem:[%s7678_s1 + $0x1d4] sm:$0xf] }
 0x1fb   : > { %4716 = vmatpush.bf16.msrb.mxu3 %v6224_v7  ;;  %4675 = vmatmul.bf16.vlgmr.msrb.gmra.mxu0 %v8018_v19  ;;  %v6445_v7 = vld [vmem:[%s7678_s1 + $0x34] sm:$0xf]  ;;  %v6312_v11 = vor.u32 %v6702_v2, %v6311_v1  ;;  %v5513_v1 = vld [vmem:[%s7678_s1 + $0x1f8] sm:$0xf0] }
 0x1fc   : > { %4723 = vmatpush.bf16.msra.mxu0 %v6344_v8  ;;  %4689 = vmatmul.bf16.vlgmr.msrb.gmra.mxu1 %v8025_v28  ;;  %v5289_v8 = vld [vmem:[%s7678_s1 + $0x38] sm:$0xf0] }
 0x1fd   : > { %4737 = vmatpush.bf16.msra.mxu1 %v6408_v12  ;;  %4703 = vmatmul.bf16.vlgmr.msrb.gmra.mxu2 %v8023_v25  ;;  %v6376_v12 = vor.u32 %v6718_v6, %v6375_v3  ;;  %v6517_v3 = vld [vmem:[%s7678_s1 + $0x274] sm:$0xf] }
 0x1fe   : > { %4751 = vmatpush.bf16.msra.mxu2 %v5324_v13  ;;  %4717 = vmatmul.bf16.vlgmr.msrb.gmra.mxu3 %v8029_v33  ;;  %v5292_v13 = vor.u32 %v6445_v7, %v5289_v8  ;;  %v6533_v6 = vld [vmem:[%s7678_s1 + $0x2f4] sm:$0xf]  ;;  %v5268_v8 = vor.u32 %v6439_v56, %v5265_v57 }
 0x1ff   : > { %4765 = vmatpush.bf16.msra.mxu3 %v5388_v17  ;;  %v5356_v17 = vor.u32 %v6461_v9, %v5353_v10  ;;  %v5641_v9 = vld [vmem:[%s7678_s1 + $0x2f8] sm:$0xf0]  ;;  %v5255_v10 = vld [vmem:[%s7676_s6 + $0x40] sm:$0xf] }
 0x200   : > { %4724 = vmatpush.bf16.msra.mxu0 %v6336_v35  ;;  %v6304_v35 = vor.u32 %v6700_v15, %v6303_v14  ;;  %v6429_v14 = vld [vmem:[%s7676_s6 + $0x44] sm:$0xf]  ;;  %v5257_v15 = vld [vmem:[%s7676_s6 + $0x88] sm:$0xf0] }
 0x201   : > { %4738 = vmatpush.bf16.msra.mxu1 %v6400_v36  ;;  %v6368_v36 = vor.u32 %v6716_v20, %v6367_v16  ;;  %v6483_v20 = vld [vmem:[%s7678_s1 + $0x164] sm:$0xf] }
 0x202   : > { %4752 = vmatpush.bf16.msra.mxu2 %v5316_v37  ;;  %v5284_v37 = vor.u32 %v6443_v21, %v5281_v24  ;;  %v5441_v21 = vld [vmem:[%s7678_s1 + $0x168] sm:$0xf0]  ;;  %v6499_v24 = vld [vmem:[%s7678_s1 + $0x1e4] sm:$0xf] }
 0x203   : > { %4766 = vmatpush.bf16.msra.mxu3 %v5380_v41  ;;  %v5348_v41 = vor.u32 %v6459_v29, %v5345_v32  ;;  %v5644_v29 = vor.u32 %v6533_v6, %v5641_v9  ;;  %v6477_v6 = vld [vmem:[%s7678_s1 + $0x134] sm:$0xf] }
 0x204   : > { %4725 = vmatpush.bf16.msra.mxu0 %v6328_v48  ;;  %v6296_v48 = vor.u32 %v6698_v39, %v6295_v38  ;;  %v8103_v38 = vor.u32 %v6429_v14, %v5257_v15  ;;  %v6531_v39 = vld [vmem:[%s7678_s1 + $0x2e4] sm:$0xf]  ;;  %v5609_v14 = vld [vmem:[%s7678_s1 + $0x2b8] sm:$0xf0] }
 0x205   : > { %4739 = vmatpush.bf16.msra.mxu1 %v6392_v49  ;;  %v6287_v49 = vld [vmem:[%s7678_s1 + $0x800] sm:$0xf] }
 0x206   : > { %4753 = vmatpush.bf16.msra.mxu2 %v5308_v50  ;;  %v6696_v50 = vld [vmem:[%s7678_s1 + $0x804] sm:$0xf0] }
 0x207   : > { %4767 = vmatpush.bf16.msra.mxu3 %v5372_v55  ;;  %v6712_v55 = vld [vmem:[%s7678_s1 + $0x884] sm:$0xf0]  ;;  %v6288_v2 = vor.u32 %v6696_v50, %v6287_v49  ;;  %v5497_v49 = vld [vmem:[%s7678_s1 + $0x1d8] sm:$0xf0]  ;;  %v6513_v50 = vld [vmem:[%s7678_s1 + $0x254] sm:$0xf] }
 0x208   : > { %4726 = vmatpush.bf16.msra.mxu0 %v6320_v62  ;;  %v6485_v62 = vld [vmem:[%s7678_s1 + $0x174] sm:$0xf]  ;;  %v6352_v7 = vor.u32 %v6712_v55, %v6351_v51  ;;  %v5561_v51 = vld [vmem:[%s7678_s1 + $0x258] sm:$0xf0]  ;;  %v5436_v55 = vor.u32 %v6481_v44, %v5433_v46  ;;  %v5500_v56 = vor.u32 %v6497_v47, %v5497_v49 }
 0x209   : > { %4740 = vmatpush.bf16.msra.mxu1 %v6384_v63  ;;  %v5449_v63 = vld [vmem:[%s7678_s1 + $0x178] sm:$0xf0]  ;;  %v5564_v57 = vor.u32 %v6513_v50, %v5561_v51  ;;  %v6473_v44 = vld [vmem:[%s7678_s1 + $0x114] sm:$0xf] }
 0x20a   : > { %4754 = vmatpush.bf16.msra.mxu2 %v5300_v0  ;;  %v6501_v0 = vld [vmem:[%s7678_s1 + $0x1f4] sm:$0xf]  ;;  %v5401_v46 = vld [vmem:[%s7678_s1 + $0x118] sm:$0xf0] }
 0x20b   : > { %4768 = vmatpush.bf16.msra.mxu3 %v5364_v5  ;;  %v5577_v5 = vld [vmem:[%s7678_s1 + $0x278] sm:$0xf0]  ;;  %v5516_v16 = vor.u32 %v6501_v0, %v5513_v1  ;;  %v5553_v0 = vld [vmem:[%s7678_s1 + $0x248] sm:$0xf0]  ;;  %v6527_v1 = vld [vmem:[%s7678_s1 + $0x2c4] sm:$0xf] }
 0x20c   : > { %4727 = vmatpush.bf16.msra.mxu0 %v6312_v11  ;;  %v6438_v11 = vld [vmem:[%s7676_s6 + $0x84] sm:$0xf0]  ;;  %v6489_v47 = vld [vmem:[%s7678_s1 + $0x194] sm:$0xf]  ;;  %v5465_v49 = vld [vmem:[%s7678_s1 + $0x198] sm:$0xf0] }
 0x20d   : > { %4741 = vmatpush.bf16.msra.mxu1 %v6376_v12  ;;  %v5332_v12 = vor.u32 %v6455_v59, %v5329_v60  ;;  %v8098_v32 = vor.u32 %v6438_v11, %v5255_v10  ;;  %v5425_v59 = vld [vmem:[%s7678_s1 + $0x148] sm:$0xf0]  ;;  %v6495_v60 = vld [vmem:[%s7678_s1 + $0x1c4] sm:$0xf]  ;;  %v5481_v10 = vld [vmem:[%s7678_s1 + $0x1b8] sm:$0xf0] }
 0x20e   : > { %4755 = vmatpush.bf16.msra.mxu2 %v5292_v13  ;;  %v5452_v13 = vor.u32 %v6485_v62, %v5449_v63  ;;  %v5489_v63 = vld [vmem:[%s7678_s1 + $0x1c8] sm:$0xf0]  ;;  %v6509_v11 = vld [vmem:[%s7678_s1 + $0x234] sm:$0xf]  ;;  %v5529_v51 = vld [vmem:[%s7678_s1 + $0x218] sm:$0xf0] }
 0x20f   : > { %4769 = vmatpush.bf16.msra.mxu3 %v5356_v17  ;;  %v5580_v17 = vor.u32 %v6517_v3, %v5577_v5  ;;  %v5492_v3 = vor.u32 %v6495_v60, %v5489_v63  ;;  %v6505_v50 = vld [vmem:[%s7678_s1 + $0x214] sm:$0xf]  ;;  %v6487_v60 = vld [vmem:[%s7678_s1 + $0x184] sm:$0xf] }
 0x210   : > { %4728 = vmatpush.bf16.msra.mxu0 %v6304_v35  ;;  %v5505_v35 = vld [vmem:[%s7678_s1 + $0x1e8] sm:$0xf0]  ;;  %v6503_v63 = vld [vmem:[%s7678_s1 + $0x204] sm:$0xf] }
 0x211   : > { %4742 = vmatpush.bf16.msra.mxu1 %v6368_v36  ;;  %v6515_v36 = vld [vmem:[%s7678_s1 + $0x264] sm:$0xf]  ;;  %v5508_v42 = vor.u32 %v6499_v24, %v5505_v35  ;;  %v5473_v35 = vld [vmem:[%s7678_s1 + $0x1a8] sm:$0xf0] }
 0x212   : > { %4756 = vmatpush.bf16.msra.mxu2 %v5284_v37  ;;  %v5569_v37 = vld [vmem:[%s7678_s1 + $0x268] sm:$0xf0]  ;;  %v6491_v24 = vld [vmem:[%s7678_s1 + $0x1a4] sm:$0xf] }
 0x213   : > { %4770 = vmatpush.bf16.msra.mxu3 %v5348_v41  ;;  %v5444_v41 = vor.u32 %v6483_v20, %v5441_v21  ;;  %v5572_v43 = vor.u32 %v6515_v36, %v5569_v37  ;;  %v6475_v20 = vld [vmem:[%s7678_s1 + $0x124] sm:$0xf]  ;;  %v5409_v21 = vld [vmem:[%s7678_s1 + $0x128] sm:$0xf0] }
 0x214   : > { %4729 = vmatpush.bf16.msra.mxu0 %v6296_v48  ;;  %v5636_v48 = vor.u32 %v6531_v39, %v5633_v40  ;;  %v6507_v36 = vld [vmem:[%s7678_s1 + $0x224] sm:$0xf]  ;;  %v5537_v37 = vld [vmem:[%s7678_s1 + $0x228] sm:$0xf0] }
 0x215   : > { %4743 = vmatpush.bf16.msra.mxu1 %v6360_v53  ;;  %v6529_v53 = vld [vmem:[%s7678_s1 + $0x2d4] sm:$0xf]  ;;  %v6523_v39 = vld [vmem:[%s7678_s1 + $0x2a4] sm:$0xf]  ;;  %v5601_v40 = vld [vmem:[%s7678_s1 + $0x2a8] sm:$0xf0] }
 0x216   : > { %4757 = vmatpush.bf16.msra.mxu2 %v5276_v54  ;;  %v5625_v54 = vld [vmem:[%s7678_s1 + $0x2d8] sm:$0xf0] }
 0x217   : > { %4771 = vmatpush.bf16.msra.mxu3 %v5340_v58  ;;  %v6479_v58 = vld [vmem:[%s7678_s1 + $0x144] sm:$0xf]  ;;  %v5628_v62 = vor.u32 %v6529_v53, %v5625_v54  ;;  %v6521_v53 = vld [vmem:[%s7678_s1 + $0x294] sm:$0xf]  ;;  %v5593_v54 = vld [vmem:[%s7678_s1 + $0x298] sm:$0xf0] }
 0x218   : > { %4730 = vmatpush.bf16.msra.mxu0 %v6288_v2  ;;  %v5428_v2 = vor.u32 %v6479_v58, %v5425_v59  ;;  %v5468_v58 = vor.u32 %v6489_v47, %v5465_v49  ;;  %v5532_v59 = vor.u32 %v6505_v50, %v5529_v51  ;;  %v6561_v47 = vld [vmem:[%s7678_s1 + $0x3d4] sm:$0xf]  ;;  %v5753_v49 = vld [vmem:[%s7678_s1 + $0x3d8] sm:$0xf0] }
 0x219   : > { %4744 = vmatpush.bf16.msra.mxu1 %v6352_v7  ;;  %v5417_v7 = vld [vmem:[%s7678_s1 + $0x138] sm:$0xf0]  ;;  %v6577_v50 = vld [vmem:[%s7678_s1 + $0x454] sm:$0xf] }
 0x21a   : > { %4758 = vmatpush.bf16.msra.mxu2 %v5268_v8  ;;  %v6493_v8 = vld [vmem:[%s7678_s1 + $0x1b4] sm:$0xf]  ;;  %v5420_v15 = vor.u32 %v6477_v6, %v5417_v7  ;;  %v5769_v7 = vld [vmem:[%s7678_s1 + $0x3f8] sm:$0xf0] }
 0x21b   : > { %4772 = vmatpush.bf16.msra.mxu3 %v5332_v12  ;;  %4731 = vmatmul.bf16.vlgmr.msra.gmra.mxu0 %v8098_v32  ;;  %v5545_v12 = vld [vmem:[%s7678_s1 + $0x238] sm:$0xf0] }
 0x21c   : > { %4779 = vmatpush.bf16.msrb.mxu0 %v5452_v13  ;;  %4745 = vmatmul.bf16.vlgmr.msra.gmra.mxu1 %v8103_v38  ;;  %v6525_v13 = vld [vmem:[%s7678_s1 + $0x2b4] sm:$0xf]  ;;  %v5817_v51 = vld [vmem:[%s7678_s1 + $0x458] sm:$0xf0] }
 0x21d   : > { %4793 = vmatpush.bf16.msrb.mxu1 %v5516_v16  ;;  %4759 = vmatmul.bf16.vlgmr.msra.gmra.mxu2 %v7768_v45  ;;  %v6511_v45 = vld [vmem:[%s7678_s1 + $0x244] sm:$0xf]  ;;  %v5484_v16 = vor.u32 %v6493_v8, %v5481_v10  ;;  %v6581_v8 = vld [vmem:[%s7678_s1 + $0x474] sm:$0xf] }
 0x21e   : > { %4807 = vmatpush.bf16.msrb.mxu2 %v5580_v17  ;;  %4773 = vmatmul.bf16.vlgmr.msra.gmra.mxu3 %v7784_v61  ;;  %v5617_v61 = vld [vmem:[%s7678_s1 + $0x2c8] sm:$0xf0]  ;;  %v5556_v5 = vor.u32 %v6511_v45, %v5553_v0  ;;  %v5548_v17 = vor.u32 %v6509_v11, %v5545_v12  ;;  %v5596_v45 = vor.u32 %v6521_v53, %v5593_v54  ;;  %v6597_v12 = vld [vmem:[%s7678_s1 + $0x4f4] sm:$0xf]  ;;  %v5881_v54 = vld [vmem:[%s7678_s1 + $0x4d8] sm:$0xf0] }
 0x21f   : > { %4821 = vmatpush.bf16.msrb.mxu3 %v5644_v29  ;;  %v5620_v9 = vor.u32 %v6527_v1, %v5617_v61  ;;  %v5612_v29 = vor.u32 %v6525_v13, %v5609_v14  ;;  %v5521_v0 = vld [vmem:[%s7678_s1 + $0x208] sm:$0xf0]  ;;  %v6519_v1 = vld [vmem:[%s7678_s1 + $0x284] sm:$0xf]  ;;  %v5897_v13 = vld [vmem:[%s7678_s1 + $0x4f8] sm:$0xf0] }
 0x220   : > { %4780 = vmatpush.bf16.msrb.mxu0 %v5444_v41  ;;  %v5412_v41 = vor.u32 %v6475_v20, %v5409_v21  ;;  %v5585_v61 = vld [vmem:[%s7678_s1 + $0x288] sm:$0xf0]  ;;  %v5524_v11 = vor.u32 %v6503_v63, %v5521_v0  ;;  %v6547_v20 = vld [vmem:[%s7678_s1 + $0x364] sm:$0xf]  ;;  %v6593_v53 = vld [vmem:[%s7678_s1 + $0x4d4] sm:$0xf] }
 0x221   : > { %4794 = vmatpush.bf16.msrb.mxu1 %v5508_v42  ;;  %v5476_v42 = vor.u32 %v6491_v24, %v5473_v35  ;;  %v5588_v14 = vor.u32 %v6519_v1, %v5585_v61  ;;  %v5697_v21 = vld [vmem:[%s7678_s1 + $0x368] sm:$0xf0]  ;;  %v6563_v24 = vld [vmem:[%s7678_s1 + $0x3e4] sm:$0xf]  ;;  %v6541_v61 = vld [vmem:[%s7678_s1 + $0x334] sm:$0xf] }
 0x222   : > { %4808 = vmatpush.bf16.msrb.mxu2 %v5572_v43  ;;  %v5540_v43 = vor.u32 %v6507_v36, %v5537_v37  ;;  %v5761_v35 = vld [vmem:[%s7678_s1 + $0x3e8] sm:$0xf0]  ;;  %v6579_v36 = vld [vmem:[%s7678_s1 + $0x464] sm:$0xf] }
 0x223   : > { %4822 = vmatpush.bf16.msrb.mxu3 %v5636_v48  ;;  %v5604_v48 = vor.u32 %v6523_v39, %v5601_v40  ;;  %v5825_v37 = vld [vmem:[%s7678_s1 + $0x468] sm:$0xf0]  ;;  %v6595_v39 = vld [vmem:[%s7678_s1 + $0x4e4] sm:$0xf] }
 0x224   : > { %4781 = vmatpush.bf16.msrb.mxu0 %v5436_v55  ;;  %v5404_v55 = vor.u32 %v6473_v44, %v5401_v46  ;;  %v5889_v40 = vld [vmem:[%s7678_s1 + $0x4e8] sm:$0xf0]  ;;  %v6545_v44 = vld [vmem:[%s7678_s1 + $0x354] sm:$0xf]  ;;  %v5689_v46 = vld [vmem:[%s7678_s1 + $0x358] sm:$0xf0] }
 0x225   : > { %4795 = vmatpush.bf16.msrb.mxu1 %v5500_v56  ;;  %v6471_v56 = vld [vmem:[%s7678_s1 + $0x104] sm:$0xf]  ;;  %v5873_v63 = vld [vmem:[%s7678_s1 + $0x4c8] sm:$0xf0] }
 0x226   : > { %4809 = vmatpush.bf16.msrb.mxu2 %v5564_v57  ;;  %v5393_v57 = vld [vmem:[%s7678_s1 + $0x108] sm:$0xf0] }
 0x227   : > { %4823 = vmatpush.bf16.msrb.mxu3 %v5628_v62  ;;  %v5457_v62 = vld [vmem:[%s7678_s1 + $0x188] sm:$0xf0]  ;;  %v5396_v6 = vor.u32 %v6471_v56, %v5393_v57  ;;  %v5820_v56 = vor.u32 %v6577_v50, %v5817_v51  ;;  %v6543_v57 = vld [vmem:[%s7678_s1 + $0x344] sm:$0xf] }
 0x228   : > { %4782 = vmatpush.bf16.msrb.mxu0 %v5428_v2  ;;  %v6549_v2 = vld [vmem:[%s7678_s1 + $0x374] sm:$0xf]  ;;  %v5460_v10 = vor.u32 %v6487_v60, %v5457_v62  ;;  %v6575_v60 = vld [vmem:[%s7678_s1 + $0x444] sm:$0xf] }
 0x229   : > { %4796 = vmatpush.bf16.msrb.mxu1 %v5492_v3  ;;  %v5705_v3 = vld [vmem:[%s7678_s1 + $0x378] sm:$0xf0]  ;;  %v6591_v62 = vld [vmem:[%s7678_s1 + $0x4c4] sm:$0xf] }
 0x22a   : > { %4810 = vmatpush.bf16.msrb.mxu2 %v5556_v5  ;;  %v6565_v5 = vld [vmem:[%s7678_s1 + $0x3f4] sm:$0xf]  ;;  %v6535_v51 = vld [vmem:[%s7678_s1 + $0x304] sm:$0xf] }
 0x22b   : > { %4824 = vmatpush.bf16.msrb.mxu3 %v5620_v9  ;;  %v5833_v9 = vld [vmem:[%s7678_s1 + $0x478] sm:$0xf0] }
 0x22c   : > { %4783 = vmatpush.bf16.msrb.mxu0 %v5420_v15  ;;  %v5708_v15 = vor.u32 %v6549_v2, %v5705_v3  ;;  %v5673_v2 = vld [vmem:[%s7678_s1 + $0x338] sm:$0xf0]  ;;  %v6557_v3 = vld [vmem:[%s7678_s1 + $0x3b4] sm:$0xf] }
 0x22d   : > { %4797 = vmatpush.bf16.msrb.mxu1 %v5484_v16  ;;  %v5772_v16 = vor.u32 %v6565_v5, %v5769_v7  ;;  %v5876_v5 = vor.u32 %v6591_v62, %v5873_v63  ;;  %v6573_v7 = vld [vmem:[%s7678_s1 + $0x434] sm:$0xf]  ;;  %v5961_v62 = vld [vmem:[%s7678_s1 + $0x578] sm:$0xf0] }
 0x22e   : > { %4811 = vmatpush.bf16.msrb.mxu2 %v5548_v17  ;;  %v5836_v17 = vor.u32 %v6581_v8, %v5833_v9  ;;  %v5801_v8 = vld [vmem:[%s7678_s1 + $0x438] sm:$0xf0]  ;;  %v6589_v9 = vld [vmem:[%s7678_s1 + $0x4b4] sm:$0xf] }
 0x22f   : > { %4825 = vmatpush.bf16.msrb.mxu3 %v5612_v29  ;;  %v5900_v29 = vor.u32 %v6597_v12, %v5897_v13  ;;  %v5804_v13 = vor.u32 %v6573_v7, %v5801_v8  ;;  %v6629_v63 = vld [vmem:[%s7678_s1 + $0x5f4] sm:$0xf]  ;;  %v6153_v7 = vld [vmem:[%s7678_s1 + $0x6f8] sm:$0xf0] }
 0x230   : > { %4784 = vmatpush.bf16.msrb.mxu0 %v5412_v41  ;;  %v5700_v41 = vor.u32 %v6547_v20, %v5697_v21  ;;  %v5729_v20 = vld [vmem:[%s7678_s1 + $0x3a8] sm:$0xf0]  ;;  %v6571_v21 = vld [vmem:[%s7678_s1 + $0x424] sm:$0xf] }
 0x231   : > { %4798 = vmatpush.bf16.msrb.mxu1 %v5476_v42  ;;  %v5764_v42 = vor.u32 %v6563_v24, %v5761_v35  ;;  %v5793_v24 = vld [vmem:[%s7678_s1 + $0x428] sm:$0xf0] }
 0x232   : > { %4812 = vmatpush.bf16.msrb.mxu2 %v5540_v43  ;;  %v5828_v43 = vor.u32 %v6579_v36, %v5825_v37  ;;  %v5857_v35 = vld [vmem:[%s7678_s1 + $0x4a8] sm:$0xf0] }
 0x233   : > { %4826 = vmatpush.bf16.msrb.mxu3 %v5604_v48  ;;  %v5892_v48 = vor.u32 %v6595_v39, %v5889_v40  ;;  %v5796_v39 = vor.u32 %v6571_v21, %v5793_v24  ;;  %v6537_v40 = vld [vmem:[%s7678_s1 + $0x314] sm:$0xf]  ;;  %v6659_v21 = vld [vmem:[%s7678_s1 + $0x6e4] sm:$0xf]  ;;  %v6145_v24 = vld [vmem:[%s7678_s1 + $0x6e8] sm:$0xf0] }
 0x234   : > { %4785 = vmatpush.bf16.msrb.mxu0 %v5404_v55  ;;  %v5756_v55 = vor.u32 %v6561_v47, %v5753_v49  ;;  %v5785_v47 = vld [vmem:[%s7678_s1 + $0x418] sm:$0xf0] }
 0x235   : > { %4799 = vmatpush.bf16.msrb.mxu1 %v5468_v58  ;;  %v6559_v58 = vld [vmem:[%s7678_s1 + $0x3c4] sm:$0xf]  ;;  %v5849_v49 = vld [vmem:[%s7678_s1 + $0x498] sm:$0xf0] }
 0x236   : > { %4813 = vmatpush.bf16.msrb.mxu2 %v5532_v59  ;;  %v5745_v59 = vld [vmem:[%s7678_s1 + $0x3c8] sm:$0xf0] }
 0x237   : > { %4827 = vmatpush.bf16.msrb.mxu3 %v5596_v45  ;;  %v5748_v0 = vor.u32 %v6559_v58, %v5745_v59  ;;  %v5777_v58 = vld [vmem:[%s7678_s1 + $0x408] sm:$0xf0] }
 0x238   : > { %4786 = vmatpush.bf16.msrb.mxu0 %v5396_v6  ;;  %v5737_v6 = vld [vmem:[%s7678_s1 + $0x3b8] sm:$0xf0]  ;;  %v5841_v59 = vld [vmem:[%s7678_s1 + $0x488] sm:$0xf0] }
 0x239   : > { %4800 = vmatpush.bf16.msrb.mxu1 %v5460_v10  ;;  %v5865_v10 = vld [vmem:[%s7678_s1 + $0x4b8] sm:$0xf0]  ;;  %v5740_v12 = vor.u32 %v6557_v3, %v5737_v6  ;;  %v6661_v6 = vld [vmem:[%s7678_s1 + $0x6f4] sm:$0xf] }
 0x23a   : > { %4814 = vmatpush.bf16.msrb.mxu2 %v5524_v11  ;;  %v5676_v11 = vor.u32 %v6541_v61, %v5673_v2  ;;  %v6645_v61 = vld [vmem:[%s7678_s1 + $0x674] sm:$0xf]  ;;  %v6089_v2 = vld [vmem:[%s7678_s1 + $0x678] sm:$0xf0] }
 0x23b   : > { %4828 = vmatpush.bf16.msrb.mxu3 %v5588_v14  ;;  %4787 = vmatmul.bf16.vlgmr.msrb.gmra.mxu0 %v7774_v52  ;;  %v5692_v52 = vor.u32 %v6545_v44, %v5689_v46  ;;  %v6539_v14 = vld [vmem:[%s7678_s1 + $0x324] sm:$0xf]  ;;  %v5721_v44 = vld [vmem:[%s7678_s1 + $0x398] sm:$0xf0]  ;;  %v6569_v46 = vld [vmem:[%s7678_s1 + $0x414] sm:$0xf] }
 0x23c   : > { %4835 = vmatpush.bf16.msra.mxu0 %v5708_v15  ;;  %4801 = vmatmul.bf16.vlgmr.msrb.gmra.mxu1 %v7790_v4  ;;  %v5884_v4 = vor.u32 %v6593_v53, %v5881_v54  ;;  %v5665_v15 = vld [vmem:[%s7678_s1 + $0x328] sm:$0xf0] }
 0x23d   : > { %4849 = vmatpush.bf16.msra.mxu1 %v5772_v16  ;;  %4815 = vmatmul.bf16.vlgmr.msrb.gmra.mxu2 %v7850_v26  ;;  %v5681_v26 = vld [vmem:[%s7678_s1 + $0x348] sm:$0xf0]  ;;  %v6555_v16 = vld [vmem:[%s7678_s1 + $0x3a4] sm:$0xf]  ;;  %v5668_v36 = vor.u32 %v6539_v14, %v5665_v15  ;;  %v6156_v15 = vor.u32 %v6661_v6, %v6153_v7  ;;  %v6653_v6 = vld [vmem:[%s7678_s1 + $0x6b4] sm:$0xf] }
 0x23e   : > { %4863 = vmatpush.bf16.msra.mxu2 %v5836_v17  ;;  %4829 = vmatmul.bf16.vlgmr.msrb.gmra.mxu3 %v7857_v31  ;;  %v5809_v31 = vld [vmem:[%s7678_s1 + $0x448] sm:$0xf0]  ;;  %v5684_v45 = vor.u32 %v6543_v57, %v5681_v26  ;;  %v5868_v17 = vor.u32 %v6589_v9, %v5865_v10  ;;  %v5732_v37 = vor.u32 %v6555_v16, %v5729_v20  ;;  %v6567_v57 = vld [vmem:[%s7678_s1 + $0x404] sm:$0xf]  ;;  %v6121_v7 = vld [vmem:[%s7678_s1 + $0x6b8] sm:$0xf0] }
 0x23f   : > { %4877 = vmatpush.bf16.msra.mxu3 %v5900_v29  ;;  %v5812_v1 = vor.u32 %v6575_v60, %v5809_v31  ;;  %v6587_v29 = vld [vmem:[%s7678_s1 + $0x4a4] sm:$0xf]  ;;  %v5649_v53 = vld [vmem:[%s7678_s1 + $0x308] sm:$0xf0]  ;;  %v8227_v60 = vpop.f32.mrf.mxu0  ;;  %v6613_v31 = vld [vmem:[%s7678_s1 + $0x574] sm:$0xf] }
 0x240   : > { %4836 = vmatpush.bf16.msra.mxu0 %v5700_v41  ;;  %v5657_v41 = vld [vmem:[%s7678_s1 + $0x318] sm:$0xf0]  ;;  %v5964_v9 = vor.u32 %v6613_v31, %v5961_v62  ;;  %v6627_v14 = vld [vmem:[%s7678_s1 + $0x5e4] sm:$0xf]  ;;  %v6017_v16 = vld [vmem:[%s7678_s1 + $0x5e8] sm:$0xf0] }
 0x241   : > { %4850 = vmatpush.bf16.msra.mxu1 %v5764_v42  ;;  %v6553_v42 = vld [vmem:[%s7678_s1 + $0x394] sm:$0xf]  ;;  %v5660_v50 = vor.u32 %v6537_v40, %v5657_v41  ;;  %v6081_v20 = vld [vmem:[%s7678_s1 + $0x668] sm:$0xf0]  ;;  %v5945_v40 = vld [vmem:[%s7678_s1 + $0x558] sm:$0xf0] }
 0x242   : > { %4864 = vmatpush.bf16.msra.mxu2 %v5828_v43  ;;  %v5860_v43 = vor.u32 %v6587_v29, %v5857_v35  ;;  %v5724_v54 = vor.u32 %v6553_v42, %v5721_v44  ;;  %v8247_v35 = vpop.f32.mrf.mxu2  ;;  %v6625_v41 = vld [vmem:[%s7678_s1 + $0x5d4] sm:$0xf]  ;;  %v6148_v42 = vor.u32 %v6659_v21, %v6145_v24  ;;  %v6049_v21 = vld [vmem:[%s7678_s1 + $0x628] sm:$0xf0] }
 0x243   : > { %4878 = vmatpush.bf16.msra.mxu3 %v5892_v48  ;;  %v6585_v48 = vld [vmem:[%s7678_s1 + $0x494] sm:$0xf] }
 0x244   : > { %4837 = vmatpush.bf16.msra.mxu0 %v5692_v52  ;;  %v5788_v52 = vor.u32 %v6569_v46, %v5785_v47  ;;  %v5852_v26 = vor.u32 %v6585_v48, %v5849_v49  ;;  %v6641_v44 = vld [vmem:[%s7678_s1 + $0x654] sm:$0xf]  ;;  %v6073_v46 = vld [vmem:[%s7678_s1 + $0x658] sm:$0xf0] }
 0x245   : > { %4851 = vmatpush.bf16.msra.mxu1 %v5756_v55  ;;  %v6551_v55 = vld [vmem:[%s7678_s1 + $0x384] sm:$0xf]  ;;  %v6657_v48 = vld [vmem:[%s7678_s1 + $0x6d4] sm:$0xf]  ;;  %v6137_v49 = vld [vmem:[%s7678_s1 + $0x6d8] sm:$0xf0] }
 0x246   : > { %4865 = vmatpush.bf16.msra.mxu2 %v5820_v56  ;;  %v5713_v56 = vld [vmem:[%s7678_s1 + $0x388] sm:$0xf0]  ;;  %v6605_v62 = vld [vmem:[%s7678_s1 + $0x534] sm:$0xf] }
 0x247   : > { %4879 = vmatpush.bf16.msra.mxu3 %v5884_v4  ;;  %v6583_v4 = vld [vmem:[%s7678_s1 + $0x484] sm:$0xf]  ;;  %v5716_v3 = vor.u32 %v6551_v55, %v5713_v56  ;;  %v8256_v47 = vpop.f32.mrf.mxu0  ;;  %v6140_v55 = vor.u32 %v6657_v48, %v6137_v49  ;;  %v6001_v56 = vld [vmem:[%s7678_s1 + $0x5c8] sm:$0xf0]  ;;  %v5977_v48 = vld [vmem:[%s7678_s1 + $0x598] sm:$0xf0] }
 0x248   : > { %4838 = vmatpush.bf16.msra.mxu0 %v5684_v45  ;;  %v8232_v45 = vpop.f32.mrf.mxu1  ;;  %v5844_v8 = vor.u32 %v6583_v4, %v5841_v59  ;;  %v6633_v49 = vld [vmem:[%s7678_s1 + $0x614] sm:$0xf] }
 0x249   : > { %4852 = vmatpush.bf16.msra.mxu1 %v5748_v0  ;;  %v5652_v0 = vor.u32 %v6535_v51, %v5649_v53  ;;  %v8265_v51 = vpop.f32.mrf.mxu3  ;;  %v6076_v53 = vor.u32 %v6641_v44, %v6073_v46  ;;  %v4523_v44 = vadd.f32 %v8232_v45, %v8227_v60 }
 0x24a   : > { %4866 = vmatpush.bf16.msra.mxu2 %v5812_v1  ;;  %v6025_v1 = vld [vmem:[%s7678_s1 + $0x5f8] sm:$0xf0] }
 0x24b   : > { %4880 = vmatpush.bf16.msra.mxu3 %v5876_v5  ;;  %v5780_v5 = vor.u32 %v6567_v57, %v5777_v58  ;;  %v6028_v10 = vor.u32 %v6629_v63, %v6025_v1  ;;  %v6065_v57 = vld [vmem:[%s7678_s1 + $0x648] sm:$0xf0]  ;;  %v5929_v63 = vld [vmem:[%s7678_s1 + $0x538] sm:$0xf0] }
 0x24c   : > { %4839 = vmatpush.bf16.msra.mxu0 %v5676_v11  ;;  %v6092_v11 = vor.u32 %v6645_v61, %v6089_v2  ;;  %v6129_v58 = vld [vmem:[%s7678_s1 + $0x6c8] sm:$0xf0]  ;;  %v5993_v61 = vld [vmem:[%s7678_s1 + $0x5b8] sm:$0xf0]  ;;  %v6637_v2 = vld [vmem:[%s7678_s1 + $0x634] sm:$0xf] }
 0x24d   : > { %4853 = vmatpush.bf16.msra.mxu1 %v5740_v12  ;;  %v6611_v12 = vld [vmem:[%s7678_s1 + $0x564] sm:$0xf] }
 0x24e   : > { %4867 = vmatpush.bf16.msra.mxu2 %v5804_v13  ;;  %v5953_v13 = vld [vmem:[%s7678_s1 + $0x568] sm:$0xf0] }
 0x24f   : > { %4881 = vmatpush.bf16.msra.mxu3 %v5868_v17  ;;  %v6643_v17 = vld [vmem:[%s7678_s1 + $0x664] sm:$0xf]  ;;  %v5956_v29 = vor.u32 %v6611_v12, %v5953_v13  ;;  %v5921_v13 = vld [vmem:[%s7678_s1 + $0x528] sm:$0xf0] }
 0x250   : > { %4840 = vmatpush.bf16.msra.mxu0 %v5668_v36  ;;  %v6020_v36 = vor.u32 %v6627_v14, %v6017_v16  ;;  %v6603_v12 = vld [vmem:[%s7678_s1 + $0x524] sm:$0xf]  ;;  %v6124_v16 = vor.u32 %v6653_v6, %v6121_v7  ;;  %v6709_v6 = vld [vmem:[%s7678_s1 + $0x874] sm:$0xf] }
 0x251   : > { %4854 = vmatpush.bf16.msra.mxu1 %v5732_v37  ;;  %v6084_v37 = vor.u32 %v6643_v17, %v6081_v20  ;;  %v6619_v14 = vld [vmem:[%s7678_s1 + $0x5a4] sm:$0xf]  ;;  %v5985_v17 = vld [vmem:[%s7678_s1 + $0x5a8] sm:$0xf0]  ;;  %v8295_v24 = vpop.f32.mrf.mxu3 }
 0x252   : > { %4868 = vmatpush.bf16.msra.mxu2 %v5796_v39  ;;  %v6609_v39 = vld [vmem:[%s7678_s1 + $0x554] sm:$0xf]  ;;  %v6635_v20 = vld [vmem:[%s7678_s1 + $0x624] sm:$0xf] }
 0x253   : > { %4882 = vmatpush.bf16.msra.mxu3 %v5860_v43  ;;  %v6009_v43 = vld [vmem:[%s7678_s1 + $0x5d8] sm:$0xf0] }
 0x254   : > { %4841 = vmatpush.bf16.msra.mxu0 %v5660_v50  ;;  %v8262_v50 = vpop.f32.mrf.mxu1 }
 0x255   : > { %4855 = vmatpush.bf16.msra.mxu1 %v5724_v54  ;;  %v5937_v54 = vld [vmem:[%s7678_s1 + $0x548] sm:$0xf0] }
 0x256   : > { %4869 = vmatpush.bf16.msra.mxu2 %v5788_v52  ;;  %v6623_v52 = vld [vmem:[%s7678_s1 + $0x5c4] sm:$0xf] }
 0x257   : > { %4883 = vmatpush.bf16.msra.mxu3 %v5852_v26  ;;  %v6655_v26 = vld [vmem:[%s7678_s1 + $0x6c4] sm:$0xf]  ;;  %v6004_v59 = vor.u32 %v6623_v52, %v6001_v56  ;;  %v5905_v52 = vld [vmem:[%s7678_s1 + $0x508] sm:$0xf0] }
 0x258   : > { %4842 = vmatpush.bf16.msra.mxu0 %v5652_v0  ;;  %v6621_v0 = vld [vmem:[%s7678_s1 + $0x5b4] sm:$0xf]  ;;  %v6132_v1 = vor.u32 %v6655_v26, %v6129_v58  ;;  %v6615_v56 = vld [vmem:[%s7678_s1 + $0x584] sm:$0xf]  ;;  %v4537_v26 = vadd.f32 %v8247_v35, %v4523_v44  ;;  %v6345_v35 = vld [vmem:[%s7678_s1 + $0x878] sm:$0xf0] }
 0x259   : > { %4856 = vmatpush.bf16.msra.mxu1 %v5716_v3  ;;  %v6057_v3 = vld [vmem:[%s7678_s1 + $0x638] sm:$0xf0]  ;;  %v8330_v7 = vpop.f32.mrf.mxu3 }
 0x25a   : > { %4870 = vmatpush.bf16.msra.mxu2 %v5780_v5  ;;  %v8281_v5 = vpop.f32.mrf.mxu2 }
 0x25b   : > { %4884 = vmatpush.bf16.msra.mxu3 %v5844_v8  ;;  %4843 = vmatmul.bf16.vlgmr.msra.gmra.mxu0 %v7855_v30  ;;  %v5948_v30 = vor.u32 %v6609_v39, %v5945_v40  ;;  %v5932_v8 = vor.u32 %v6605_v62, %v5929_v63  ;;  %v5988_v39 = vor.u32 %v6619_v14, %v5985_v17  ;;  %v6677_v63 = vld [vmem:[%s7678_s1 + $0x774] sm:$0xf] }
 0x25c   : > { %4891 = vmatpush.bf16.msrb.mxu0 %v5964_v9  ;;  %4857 = vmatmul.bf16.vlgmr.msra.gmra.mxu1 %v7861_v34  ;;  %v6607_v34 = vld [vmem:[%s7678_s1 + $0x544] sm:$0xf]  ;;  %v8285_v9 = vpop.f32.mrf.mxu0  ;;  %v6052_v40 = vor.u32 %v6635_v20, %v6049_v21  ;;  %v6348_v20 = vor.u32 %v6709_v6, %v6345_v35 }
 0x25d   : > { %4905 = vmatpush.bf16.msrb.mxu1 %v6028_v10  ;;  %4871 = vmatmul.bf16.vlgmr.msra.gmra.mxu2 %v7934_v18  ;;  %v6012_v18 = vor.u32 %v6625_v41, %v6009_v43  ;;  %v5940_v4 = vor.u32 %v6607_v34, %v5937_v54  ;;  %v5996_v10 = vor.u32 %v6621_v0, %v5993_v61  ;;  %v6601_v41 = vld [vmem:[%s7678_s1 + $0x514] sm:$0xf]  ;;  %v6599_v54 = vld [vmem:[%s7678_s1 + $0x504] sm:$0xf]  ;;  %v6217_v0 = vld [vmem:[%s7678_s1 + $0x778] sm:$0xf0] }
 0x25e   : > { %4919 = vmatpush.bf16.msrb.mxu2 %v6092_v11  ;;  %4885 = vmatmul.bf16.vlgmr.msra.gmra.mxu3 %v7941_v23  ;;  %v6639_v23 = vld [vmem:[%s7678_s1 + $0x644] sm:$0xf]  ;;  %v6060_v11 = vor.u32 %v6637_v2, %v6057_v3  ;;  %v6617_v43 = vld [vmem:[%s7678_s1 + $0x594] sm:$0xf]  ;;  %v5908_v2 = vor.u32 %v6599_v54, %v5905_v52  ;;  %v6281_v3 = vld [vmem:[%s7678_s1 + $0x7f8] sm:$0xf0] }
 0x25f   : > { %4933 = vmatpush.bf16.msrb.mxu3 %v6156_v15  ;;  %v6068_v31 = vor.u32 %v6639_v23, %v6065_v57  ;;  %v8290_v15 = vpop.f32.mrf.mxu1  ;;  %v5980_v60 = vor.u32 %v6617_v43, %v5977_v48  ;;  %v5969_v23 = vld [vmem:[%s7678_s1 + $0x588] sm:$0xf0]  ;;  %v6631_v57 = vld [vmem:[%s7678_s1 + $0x604] sm:$0xf]  ;;  %v4525_v43 = vadd.f32 %v8262_v50, %v8256_v47  ;;  %v6201_v47 = vld [vmem:[%s7678_s1 + $0x758] sm:$0xf0] }
 0x260   : > { %4892 = vmatpush.bf16.msrb.mxu0 %v5956_v29  ;;  %v6651_v29 = vld [vmem:[%s7678_s1 + $0x6a4] sm:$0xf]  ;;  %v6689_v50 = vld [vmem:[%s7678_s1 + $0x7d4] sm:$0xf]  ;;  %v6265_v54 = vld [vmem:[%s7678_s1 + $0x7d8] sm:$0xf0] }
 0x261   : > { %4906 = vmatpush.bf16.msrb.mxu1 %v6020_v36  ;;  %v6113_v36 = vld [vmem:[%s7678_s1 + $0x6a8] sm:$0xf0]  ;;  %v6675_v21 = vld [vmem:[%s7678_s1 + $0x764] sm:$0xf]  ;;  %v6705_v52 = vld [vmem:[%s7678_s1 + $0x854] sm:$0xf] }
 0x262   : > { %4920 = vmatpush.bf16.msrb.mxu2 %v6084_v37  ;;  %v5924_v37 = vor.u32 %v6603_v12, %v5921_v13  ;;  %v6116_v46 = vor.u32 %v6651_v29, %v6113_v36  ;;  %v6409_v12 = vld [vmem:[%s7678_s1 + $0x8f8] sm:$0xf0]  ;;  %v4551_v13 = vadd.f32 %v8265_v51, %v4537_v26  ;;  %v6209_v29 = vld [vmem:[%s7678_s1 + $0x768] sm:$0xf0]  ;;  %v6691_v36 = vld [vmem:[%s7678_s1 + $0x7e4] sm:$0xf]  ;;  %v8366_v26 = vpop.f32.mrf.mxu3 }
 0x263   : > { %4934 = vmatpush.bf16.msrb.mxu3 %v6148_v42  ;;  %v5913_v42 = vld [vmem:[%s7678_s1 + $0x518] sm:$0xf0]  ;;  %v6723_v51 = vld [vmem:[%s7678_s1 + $0x8e4] sm:$0xf] }
 0x264   : > { %4893 = vmatpush.bf16.msrb.mxu0 %v5948_v30  ;;  %v6041_v30 = vld [vmem:[%s7678_s1 + $0x618] sm:$0xf0]  ;;  %v5916_v34 = vor.u32 %v6601_v41, %v5913_v42  ;;  %v8320_v62 = vpop.f32.mrf.mxu0  ;;  %v6337_v41 = vld [vmem:[%s7678_s1 + $0x868] sm:$0xf0]  ;;  %v4565_v44 = vadd.f32 %v8285_v9, %v4551_v13 }
 0x265   : > { %4907 = vmatpush.bf16.msrb.mxu1 %v6012_v18  ;;  %v6649_v18 = vld [vmem:[%s7678_s1 + $0x694] sm:$0xf]  ;;  %v6044_v45 = vor.u32 %v6633_v49, %v6041_v30  ;;  %v6401_v42 = vld [vmem:[%s7678_s1 + $0x8e8] sm:$0xf0] }
 0x266   : > { %4921 = vmatpush.bf16.msrb.mxu2 %v6076_v53  ;;  %v6105_v53 = vld [vmem:[%s7678_s1 + $0x698] sm:$0xf0] }
 0x267   : > { %4935 = vmatpush.bf16.msrb.mxu3 %v6140_v55  ;;  %v8311_v55 = vpop.f32.mrf.mxu2  ;;  %v6108_v58 = vor.u32 %v6649_v18, %v6105_v53  ;;  %v8325_v61 = vpop.f32.mrf.mxu1  ;;  %v6673_v53 = vld [vmem:[%s7678_s1 + $0x754] sm:$0xf] }
 0x268   : > { %4894 = vmatpush.bf16.msrb.mxu0 %v5940_v4  ;;  %v6033_v4 = vld [vmem:[%s7678_s1 + $0x608] sm:$0xf0] }
 0x269   : > { %4908 = vmatpush.bf16.msrb.mxu1 %v6004_v59  ;;  %v6647_v59 = vld [vmem:[%s7678_s1 + $0x684] sm:$0xf] }
 0x26a   : > { %4922 = vmatpush.bf16.msrb.mxu2 %v6068_v31  ;;  %v6097_v31 = vld [vmem:[%s7678_s1 + $0x688] sm:$0xf0] }
 0x26b   : > { %4936 = vmatpush.bf16.msrb.mxu3 %v6132_v1  ;;  %v6693_v1 = vld [vmem:[%s7678_s1 + $0x7f4] sm:$0xf]  ;;  %v6100_v14 = vor.u32 %v6647_v59, %v6097_v31  ;;  %v6687_v59 = vld [vmem:[%s7678_s1 + $0x7c4] sm:$0xf]  ;;  %v6321_v31 = vld [vmem:[%s7678_s1 + $0x848] sm:$0xf0] }
 0x26c   : > { %4895 = vmatpush.bf16.msrb.mxu0 %v5932_v8  ;;  %v5972_v8 = vor.u32 %v6615_v56, %v5969_v23  ;;  %v6284_v17 = vor.u32 %v6693_v1, %v6281_v3  ;;  %v8348_v49 = vpop.f32.mrf.mxu0  ;;  %v6393_v56 = vld [vmem:[%s7678_s1 + $0x8d8] sm:$0xf0]  ;;  %v4539_v23 = vadd.f32 %v8281_v5, %v4525_v43 }
 0x26d   : > { %4909 = vmatpush.bf16.msrb.mxu1 %v5996_v10  ;;  %v6036_v10 = vor.u32 %v6631_v57, %v6033_v4  ;;  %v4579_v57 = vadd.f32 %v8290_v15, %v4565_v44  ;;  %v6193_v4 = vld [vmem:[%s7678_s1 + $0x748] sm:$0xf0] }
 0x26e   : > { %4923 = vmatpush.bf16.msrb.mxu2 %v6060_v11  ;;  %v6725_v11 = vld [vmem:[%s7678_s1 + $0x8f4] sm:$0xf]  ;;  %v6257_v15 = vld [vmem:[%s7678_s1 + $0x7c8] sm:$0xf0]  ;;  %v4553_v1 = vadd.f32 %v8295_v24, %v4539_v23  ;;  %v6233_v23 = vld [vmem:[%s7678_s1 + $0x798] sm:$0xf0] }
 0x26f   : > { %4937 = vmatpush.bf16.msrb.mxu3 %v6124_v16  ;;  %v6220_v16 = vor.u32 %v6677_v63, %v6217_v0  ;;  %v8346_v48 = vpop.f32.mrf.mxu2  ;;  %v8353_v9 = vpop.f32.mrf.mxu1  ;;  %v6719_v63 = vld [vmem:[%s7678_s1 + $0x8c4] sm:$0xf]  ;;  %v6385_v0 = vld [vmem:[%s7678_s1 + $0x8c8] sm:$0xf0]  ;;  %v6260_v35 = vor.u32 %v6687_v59, %v6257_v15 }
 0x270   : > { %4896 = vmatpush.bf16.msrb.mxu0 %v5924_v37  ;;  %v6412_v37 = vor.u32 %v6725_v11, %v6409_v12  ;;  %v6185_v11 = vld [vmem:[%s7678_s1 + $0x738] sm:$0xf0]  ;;  %v6685_v12 = vld [vmem:[%s7678_s1 + $0x7b4] sm:$0xf]  ;;  %v4567_v13 = vadd.f32 %v8320_v62, %v4553_v1  ;;  %v6388_v24 = vor.u32 %v6719_v63, %v6385_v0  ;;  %v6161_v63 = vld [vmem:[%s7678_s1 + $0x708] sm:$0xf0] }
 0x271   : > { %4910 = vmatpush.bf16.msrb.mxu1 %v5988_v39  ;;  %v6273_v39 = vld [vmem:[%s7678_s1 + $0x7e8] sm:$0xf0]  ;;  %v6679_v0 = vld [vmem:[%s7678_s1 + $0x784] sm:$0xf] }
 0x272   : > { %4924 = vmatpush.bf16.msrb.mxu2 %v6052_v40  ;;  %v6707_v40 = vld [vmem:[%s7678_s1 + $0x864] sm:$0xf]  ;;  %v6276_v30 = vor.u32 %v6691_v36, %v6273_v39  ;;  %v4581_v43 = vadd.f32 %v8325_v61, %v4567_v13 }
 0x273   : > { %4938 = vmatpush.bf16.msrb.mxu3 %v6116_v46  ;;  %v6212_v46 = vor.u32 %v6675_v21, %v6209_v29  ;;  %v6340_v18 = vor.u32 %v6707_v40, %v6337_v41  ;;  %v6377_v21 = vld [vmem:[%s7678_s1 + $0x8b8] sm:$0xf0]  ;;  %v6667_v41 = vld [vmem:[%s7678_s1 + $0x724] sm:$0xf] }
 0x274   : > { %4897 = vmatpush.bf16.msrb.mxu0 %v5916_v34  ;;  %v6404_v34 = vor.u32 %v6723_v51, %v6401_v42  ;;  %v6177_v51 = vld [vmem:[%s7678_s1 + $0x728] sm:$0xf0]  ;;  %v6683_v42 = vld [vmem:[%s7678_s1 + $0x7a4] sm:$0xf] }
 0x275   : > { %4911 = vmatpush.bf16.msrb.mxu1 %v5980_v60  ;;  %v6329_v60 = vld [vmem:[%s7678_s1 + $0x858] sm:$0xf0] }
 0x276   : > { %4925 = vmatpush.bf16.msrb.mxu2 %v6044_v45  ;;  %v6721_v45 = vld [vmem:[%s7678_s1 + $0x8d4] sm:$0xf] }
 0x277   : > { %4939 = vmatpush.bf16.msrb.mxu3 %v6108_v58  ;;  %v6671_v58 = vld [vmem:[%s7678_s1 + $0x744] sm:$0xf]  ;;  %v6396_v5 = vor.u32 %v6721_v45, %v6393_v56  ;;  %v4648_v6 = vpop.f32.mrf.mxu2  ;;  %v8388_v36 = vpop.f32.mrf.mxu1 }
 0x278   : > { %4898 = vmatpush.bf16.msrb.mxu0 %v5908_v2  ;;  %v4593_v2 = vadd.f32 %v8311_v55, %v4579_v57  ;;  %v6196_v3 = vor.u32 %v6671_v58, %v6193_v4  ;;  %v6701_v55 = vld [vmem:[%s7678_s1 + $0x834] sm:$0xf]  ;;  %v6361_v58 = vld [vmem:[%s7678_s1 + $0x898] sm:$0xf0] }
 0x279   : > { %4912 = vmatpush.bf16.msrb.mxu1 %v5972_v8  ;;  %v6697_v57 = vld [vmem:[%s7678_s1 + $0x814] sm:$0xf] }
 0x27a   : > { %4926 = vmatpush.bf16.msrb.mxu2 %v6036_v10  ;;  %v6669_v10 = vld [vmem:[%s7678_s1 + $0x734] sm:$0xf]  ;;  %v4607_v29 = vadd.f32 %v8330_v7, %v4593_v2 }
 0x27b   : > { %4940 = vmatpush.bf16.msrb.mxu3 %v6100_v14  ;;  %4899 = vmatmul.bf16.vlgmr.msrb.gmra.mxu0 %v7939_v22  ;;  %v6204_v22 = vor.u32 %v6673_v53, %v6201_v47  ;;  %v6249_v14 = vld [vmem:[%s7678_s1 + $0x7b8] sm:$0xf0]  ;;  %v6188_v62 = vor.u32 %v6669_v10, %v6185_v11  ;;  %v6715_v53 = vld [vmem:[%s7678_s1 + $0x8a4] sm:$0xf]  ;;  %v6369_v47 = vld [vmem:[%s7678_s1 + $0x8a8] sm:$0xf0] }
 0x27c   : > { %4947 = vmatpush.bf16.msra.mxu0 %v6220_v16  ;;  %4913 = vmatmul.bf16.vlgmr.msrb.gmra.mxu1 %v7945_v27  ;;  %v6268_v27 = vor.u32 %v6689_v50, %v6265_v54  ;;  %v6313_v16 = vld [vmem:[%s7678_s1 + $0x838] sm:$0xf0]  ;;  %v6252_v39 = vor.u32 %v6685_v12, %v6249_v14  ;;  %v4621_v7 = vadd.f32 %v8348_v49, %v4607_v29  ;;  %v6665_v54 = vld [vmem:[%s7678_s1 + $0x714] sm:$0xf]  ;;  %v6353_v10 = vld [vmem:[%s7678_s1 + $0x888] sm:$0xf0] }
 0x27d   : > { %4961 = vmatpush.bf16.msra.mxu1 %v6284_v17  ;;  %4927 = vmatmul.bf16.vlgmr.msrb.gmra.mxu2 %v8018_v19  ;;  %v6332_v19 = vor.u32 %v6705_v52, %v6329_v60  ;;  %v4622_v17 = vpop.f32.mrf.mxu0  ;;  %v6316_v40 = vor.u32 %v6701_v55, %v6313_v16  ;;  %v4595_v50 = vadd.f32 %v8346_v48, %v4581_v43  ;;  %v6169_v52 = vld [vmem:[%s7678_s1 + $0x718] sm:$0xf0]  ;;  %v6681_v60 = vld [vmem:[%s7678_s1 + $0x794] sm:$0xf] }
 0x27e   : > { %4975 = vmatpush.bf16.msra.mxu2 %v6348_v20  ;;  %4941 = vmatmul.bf16.vlgmr.msrb.gmra.mxu3 %v8025_v28  ;;  %v6703_v28 = vld [vmem:[%s7678_s1 + $0x844] sm:$0xf]  ;;  %v6717_v20 = vld [vmem:[%s7678_s1 + $0x8b4] sm:$0xf]  ;;  %v4635_v45 = vadd.f32 %v8353_v9, %v4621_v7  ;;  %v6372_v56 = vor.u32 %v6715_v53, %v6369_v47  ;;  %v6297_v48 = vld [vmem:[%s7678_s1 + $0x818] sm:$0xf0]  ;;  %v6172_v9 = vor.u32 %v6665_v54, %v6169_v52 }
 0x27f   : > { %4989 = vmatpush.bf16.msra.mxu3 %v6412_v37  ;;  %v6324_v8 = vor.u32 %v6703_v28, %v6321_v31  ;;  %v4662_v37 = vpop.f32.mrf.mxu3  ;;  %v6380_v44 = vor.u32 %v6717_v20, %v6377_v21  ;;  %v4609_v4 = vadd.f32 %v8366_v26, %v4595_v50  ;;  %v6236_v15 = vor.u32 %v6681_v60, %v6233_v23  ;;  %v6663_v31 = vld [vmem:[%s7678_s1 + $0x704] sm:$0xf] }
 0x280   : > { %4948 = vmatpush.bf16.msra.mxu0 %v6212_v46  ;;  %v6241_v46 = vld [vmem:[%s7678_s1 + $0x7a8] sm:$0xf0]  ;;  %v4649_v59 = vadd.f32 %v4648_v6, %v4635_v45  ;;  %v6300_v28 = vor.u32 %v6697_v57, %v6297_v48  ;;  %v6695_v26 = vld [vmem:[%s7678_s1 + $0x804] sm:$0xf]  ;;  %v6164_v12 = vor.u32 %v6663_v31, %v6161_v63 }
 0x281   : > { %4962 = vmatpush.bf16.msra.mxu1 %v6276_v30  ;;  %v6699_v30 = vld [vmem:[%s7678_s1 + $0x824] sm:$0xf]  ;;  %v6244_v61 = vor.u32 %v6683_v42, %v6241_v46  ;;  %v4623_v1 = vadd.f32 %v4622_v17, %v4609_v4  ;;  %v2659_v46 = vld [vmem:[#allocation2 + $0x10] sm:$0xff] }
 0x282   : > { %4976 = vmatpush.bf16.msra.mxu2 %v6340_v18  ;;  %v6305_v18 = vld [vmem:[%s7678_s1 + $0x828] sm:$0xf0]  ;;  %v4663_v11 = vadd.f32 %v4662_v37, %v4649_v59 }
 0x283   : > { %4990 = vmatpush.bf16.msra.mxu3 %v6404_v34  ;;  %v6180_v34 = vor.u32 %v6667_v41, %v6177_v51  ;;  %v6308_v49 = vor.u32 %v6699_v30, %v6305_v18  ;;  %v4637_v14 = vadd.f32 %v8388_v36, %v4623_v1 }
 0x284   : > { %4949 = vmatpush.bf16.msra.mxu0 %v6204_v22  ;;  %v4650_v22 = vpop.f32.mrf.mxu2 }
 0x285   : > { %4963 = vmatpush.bf16.msra.mxu1 %v6268_v27  ;;  %v4676_v27 = vpop.f32.mrf.mxu0  ;;  %v4651_v20 = vadd.f32 %v4650_v22, %v4637_v14 }
 0x286   : > { %4977 = vmatpush.bf16.msra.mxu2 %v6332_v19  ;;  %v6713_v19 = vld [vmem:[%s7678_s1 + $0x894] sm:$0xf]  ;;  %v4677_v55 = vadd.f32 %v4676_v27, %v4663_v11 }
 0x287   : > { %4991 = vmatpush.bf16.msra.mxu3 %v6396_v5  ;;  %v4690_v5 = vpop.f32.mrf.mxu1  ;;  %v6364_v2 = vor.u32 %v6713_v19, %v6361_v58  ;;  %v4664_v6 = vpop.f32.mrf.mxu3 }
 0x288   : > { %4950 = vmatpush.bf16.msra.mxu0 %v6196_v3  ;;  %v6225_v3 = vld [vmem:[%s7678_s1 + $0x788] sm:$0xf0]  ;;  %v4691_v29 = vadd.f32 %v4690_v5, %v4677_v55 }
 0x289   : > { %4964 = vmatpush.bf16.msra.mxu1 %v6260_v35  ;;  %v6289_v35 = vld [vmem:[%s7678_s1 + $0x808] sm:$0xf0]  ;;  %v6228_v13 = vor.u32 %v6679_v0, %v6225_v3 }
 0x28a   : > { %4978 = vmatpush.bf16.msra.mxu2 %v6324_v8  ;;  %v6711_v8 = vld [vmem:[%s7678_s1 + $0x884] sm:$0xf] }
 0x28b   : > { %4992 = vmatpush.bf16.msra.mxu3 %v6388_v24  ;;  %v6292_v24 = vor.u32 %v6695_v26, %v6289_v35  ;;  %v6356_v16 = vor.u32 %v6711_v8, %v6353_v10 }
 0x28c   : > { %4951 = vmatpush.bf16.msra.mxu0 %v6188_v62  ;;  %v4704_v17 = vpop.f32.mrf.mxu2 }
 0x28d   : > { %4965 = vmatpush.bf16.msra.mxu1 %v6252_v39  ;;  %v4678_v21 = vpop.f32.mrf.mxu0  ;;  %v4665_v39 = vadd.f32 %v4664_v6, %v4651_v20 }
 0x28e   : > { %4979 = vmatpush.bf16.msra.mxu2 %v6316_v40  ;;  %v4705_v40 = vadd.f32 %v4704_v17, %v4691_v29 }
 0x28f   : > { %4993 = vmatpush.bf16.msra.mxu3 %v6380_v44  ;;  %v4692_v62 = vpop.f32.mrf.mxu1  ;;  %v4718_v37 = vpop.f32.mrf.mxu3  ;;  %v4679_v36 = vadd.f32 %v4678_v21, %v4665_v39 }
 0x290   : > { %4952 = vmatpush.bf16.msra.mxu0 %v6180_v34  ;;  %v4719_v41 = vadd.f32 %v4718_v37, %v4705_v40 }
 0x291   : > { %4966 = vmatpush.bf16.msra.mxu1 %v6244_v61  ;;  %v4693_v43 = vadd.f32 %v4692_v62, %v4679_v36 }
 0x292   : > { %4980 = vmatpush.bf16.msra.mxu2 %v6308_v49 }
 0x293   : > { %4994 = vmatpush.bf16.msra.mxu3 %v6372_v56 }
 0x294   : > { %4953 = vmatpush.bf16.msra.mxu0 %v6172_v9  ;;  %v4706_v51 = vpop.f32.mrf.mxu2 }
 0x295   : > { %4967 = vmatpush.bf16.msra.mxu1 %v6236_v15  ;;  %v4707_v30 = vadd.f32 %v4706_v51, %v4693_v43 }
 0x296   : > { %4981 = vmatpush.bf16.msra.mxu2 %v6300_v28 }
 0x297   : > { %4995 = vmatpush.bf16.msra.mxu3 %v6364_v2  ;;  %v4720_v53 = vpop.f32.mrf.mxu3 }
 0x298   : > { %4954 = vmatpush.bf16.msra.mxu0 %v6164_v12  ;;  %v4732_v42 = vpop.f32.mrf.mxu0  ;;  %v4721_v47 = vadd.f32 %v4720_v53, %v4707_v30 }
 0x299   : > { %4968 = vmatpush.bf16.msra.mxu1 %v6228_v13  ;;  %v4733_v7 = vadd.f32 %v4732_v42, %v4719_v41  ;;  %v4746_v44 = vpop.f32.mrf.mxu1 }
 0x29a   : > { %4982 = vmatpush.bf16.msra.mxu2 %v6292_v24 }
 0x29b   : > { %4996 = vmatpush.bf16.msra.mxu3 %v6356_v16  ;;  %4955 = vmatmul.bf16.vlgmr.msra.gmra.mxu0 %v8023_v25  ;;  %v4747_v18 = vadd.f32 %v4746_v44, %v4733_v7 }
 0x29c   : > { %4969 = vmatmul.bf16.vlgmr.msra.gmra.mxu1 %v8029_v33 }
 0x29d   : > { %4983 = vmatmul.bf16.vlgmr.msra.gmra.mxu2 %v8098_v32  ;;  %v5003_v25 = vadd.f32 %v4747_v18, %v2659_v46  ;;  %v2661_v32 = vld [vmem:[#allocation2 + $0x18] sm:$0xff] }
 0x29e   : > { %4997 = vmatmul.bf16.vlgmr.msra.gmra.mxu3 %v8103_v38 }
 0x29f   : > { %5007 = vst [vmem:[#allocation2 + $0x10] sm:$0xff] %v5003_v25 }
 0x2a0   : > { %v4734_v50 = vpop.f32.mrf.mxu0  ;;  %v4760_v49 = vpop.f32.mrf.mxu2 }
 0x2a1   : > { %v4735_v33 = vadd.f32 %v4734_v50, %v4721_v47  ;;  %v4748_v34 = vpop.f32.mrf.mxu1  ;;  %v4774_v54 = vpop.f32.mrf.mxu3 }
 0x2a2   : > { %v4775_v27 = vadd.f32 %v4774_v54, %v4760_v49 }
 0x2a3   : > { %v4749_v61 = vadd.f32 %v4748_v34, %v4735_v33 }
 0x2a5   : > { %v5005_v38 = vadd.f32 %v4749_v61, %v2661_v32  ;;  %v2660_v61 = vld [vmem:[#allocation2] sm:$0xff] }
 0x2a7   : > { %5009 = vst [vmem:[#allocation2 + $0x18] sm:$0xff] %v5005_v38 }
 0x2a8   : > { %v4762_v52 = vpop.f32.mrf.mxu2 }
 0x2a9   : > { %v4776_v60 = vpop.f32.mrf.mxu3 }
 0x2aa   : > { %v4777_v28 = vadd.f32 %v4776_v60, %v4762_v52 }
 0x2b8   : > { %v4788_v45 = vpop.f32.mrf.mxu0 }
 0x2b9   : > { %v4802_v56 = vpop.f32.mrf.mxu1  ;;  %v4789_v58 = vadd.f32 %v4788_v45, %v4775_v27 }
 0x2bb   : > { %v4803_v9 = vadd.f32 %v4802_v56, %v4789_v58 }
 0x2c0   : > { %v4816_v23 = vpop.f32.mrf.mxu2  ;;  %v4790_v48 = vpop.f32.mrf.mxu0 }
 0x2c1   : > { %v4830_v57 = vpop.f32.mrf.mxu3  ;;  %v4804_v22 = vpop.f32.mrf.mxu1  ;;  %v4817_v31 = vadd.f32 %v4816_v23, %v4803_v9  ;;  %v4791_v0 = vadd.f32 %v4790_v48, %v4777_v28  ;;  %v2662_v23 = vld [vmem:[#allocation2 + $0x8] sm:$0xff] }
 0x2c3   : > { %v4831_v2 = vadd.f32 %v4830_v57, %v4817_v31  ;;  %v4805_v26 = vadd.f32 %v4804_v22, %v4791_v0 }
 0x2c8   : > { %v4818_v19 = vpop.f32.mrf.mxu2 }
 0x2c9   : > { %v4832_v4 = vpop.f32.mrf.mxu3  ;;  %v4819_v6 = vadd.f32 %v4818_v19, %v4805_v26 }
 0x2cb   : > { %v4833_v13 = vadd.f32 %v4832_v4, %v4819_v6 }
 0x2d8   : > { %v4844_v59 = vpop.f32.mrf.mxu0 }
 0x2d9   : > { %v4858_v5 = vpop.f32.mrf.mxu1  ;;  %v4845_v35 = vadd.f32 %v4844_v59, %v4831_v2 }
 0x2db   : > { %v4859_v10 = vadd.f32 %v4858_v5, %v4845_v35 }
 0x2e0   : > { %v4872_v15 = vpop.f32.mrf.mxu2  ;;  %v4846_v1 = vpop.f32.mrf.mxu0 }
 0x2e1   : > { %v4886_v63 = vpop.f32.mrf.mxu3  ;;  %v4860_v3 = vpop.f32.mrf.mxu1  ;;  %v4873_v24 = vadd.f32 %v4872_v15, %v4859_v10  ;;  %v4847_v55 = vadd.f32 %v4846_v1, %v4833_v13 }
 0x2e3   : > { %v4887_v16 = vadd.f32 %v4886_v63, %v4873_v24  ;;  %v4861_v20 = vadd.f32 %v4860_v3, %v4847_v55 }
 0x2e8   : > { %v4874_v8 = vpop.f32.mrf.mxu2 }
 0x2e9   : > { %v4888_v11 = vpop.f32.mrf.mxu3  ;;  %v4875_v62 = vadd.f32 %v4874_v8, %v4861_v20 }
 0x2eb   : > { %v4889_v36 = vadd.f32 %v4888_v11, %v4875_v62 }
 0x2f8   : > { %v4900_v12 = vpop.f32.mrf.mxu0 }
 0x2f9   : > { %v4914_v14 = vpop.f32.mrf.mxu1  ;;  %v4901_v21 = vadd.f32 %v4900_v12, %v4887_v16 }
 0x2fb   : > { %v4915_v39 = vadd.f32 %v4914_v14, %v4901_v21 }
 0x300   : > { %v4928_v17 = vpop.f32.mrf.mxu2  ;;  %v4902_v37 = vpop.f32.mrf.mxu0 }
 0x301   : > { %v4942_v29 = vpop.f32.mrf.mxu3  ;;  %v4916_v40 = vpop.f32.mrf.mxu1  ;;  %v4929_v41 = vadd.f32 %v4928_v17, %v4915_v39  ;;  %v4903_v51 = vadd.f32 %v4902_v37, %v4889_v36 }
 0x303   : > { %v4943_v43 = vadd.f32 %v4942_v29, %v4929_v41  ;;  %v4917_v46 = vadd.f32 %v4916_v40, %v4903_v51 }
 0x308   : > { %v4930_v42 = vpop.f32.mrf.mxu2 }
 0x309   : > { %v4944_v7 = vpop.f32.mrf.mxu3  ;;  %v4931_v53 = vadd.f32 %v4930_v42, %v4917_v46 }
 0x30b   : > { %v4945_v50 = vadd.f32 %v4944_v7, %v4931_v53 }
 0x318   : > { %v4956_v44 = vpop.f32.mrf.mxu0 }
 0x319   : > { %v4957_v30 = vadd.f32 %v4956_v44, %v4943_v43  ;;  %v4970_v18 = vpop.f32.mrf.mxu1 }
 0x31b   : > { %v4971_v25 = vadd.f32 %v4970_v18, %v4957_v30 }
 0x320   : > { %v4984_v47 = vpop.f32.mrf.mxu2  ;;  %v4958_v32 = vpop.f32.mrf.mxu0 }
 0x321   : > { %v4985_v33 = vadd.f32 %v4984_v47, %v4971_v25  ;;  %v4998_v34 = vpop.f32.mrf.mxu3  ;;  %v4959_v49 = vadd.f32 %v4958_v32, %v4945_v50  ;;  %v4972_v52 = vpop.f32.mrf.mxu1 }
 0x323   : > { %v4999_v38 = vadd.f32 %v4998_v34, %v4985_v33  ;;  %v4973_v60 = vadd.f32 %v4972_v52, %v4959_v49 }
 0x325   : > { %v5004_v54 = vadd.f32 %v4999_v38, %v2660_v61 }
 0x327   : > { %5008 = vst [vmem:[#allocation2] sm:$0xff] %v5004_v54 }
 0x328   : > { %v4986_v45 = vpop.f32.mrf.mxu2 }
 0x329   : > { %v4987_v56 = vadd.f32 %v4986_v45, %v4973_v60  ;;  %v5000_v57 = vpop.f32.mrf.mxu3 }
 0x32b   : > { %v5001_v48 = vadd.f32 %v5000_v57, %v4987_v56  ;;  %5014 = sbr.rel (%p6413_p5) target bundleno = 828 (0x33c), region = 115 }
 0x32d   : > { %v5006_v22 = vadd.f32 %v5001_v48, %v2662_v23 }
 0x32f   : > { %5010 = vst [vmem:[#allocation2 + $0x8] sm:$0xff] %v5006_v22 }
 0x330   : > { %v5015_v27 = vld [vmem:[#allocation2 + $0x10] sm:$0xff]  ;;  %v5019_v19 = vld [vmem:[%s2648_s5] sm:$0x3]  ;;  %v5017_v5 = vld [vmem:[#allocation2 + $0x18] sm:$0xff] }
 0x331   : > { %v5016_v58 = vld [vmem:[#allocation2] sm:$0xff]  ;;  %v5021_v4 = vperm.slane %v5019_v19, 0  ;;  %v5022_v59 = vperm.slane %v5019_v19, 1 }
 0x333   : > { %v5025_v15 = vadd.f32 %v5021_v4, %v5015_v27  ;;  %v5026_v28 = vadd.f32 %v5022_v59, %v5016_v58  ;;  %v5027_v31 = vadd.f32 %v5021_v4, %v5017_v5 }
 0x335   : > { %v5029_v0 = vmax.f32 %v5025_v15, 0.0  ;;  %v5030_v1 = vmax.f32 %v5026_v28, 0.0  ;;  %v5031_v2 = vmax.f32 %v5027_v31, 0.0 }
 0x336   : > { %v5018_v9 = vld [vmem:[#allocation2 + $0x8] sm:$0xff] }
 0x337   : > { %v5028_v63 = vadd.f32 %v5022_v59, %v5018_v9  ;;  %5033 = vst [vmem:[%s7680_s25] sm:$0xff] %v5029_v0 }
 0x338   : > { %5034 = vst [vmem:[%s7680_s25 + $0x8] sm:$0xff] %v5030_v1 }
 0x339   : > { %v5032_v3 = vmax.f32 %v5028_v63, 0.0  ;;  %5035 = vst [vmem:[%s7680_s25 + $0x10] sm:$0xff] %v5031_v2 }
 0x33b   : > { %5036 = vst [vmem:[%s7680_s25 + $0x18] sm:$0xff] %v5032_v3 }
 0x33c PF: > { %5043 = sbr.rel (!%p7024_p12) target bundleno = 836 (0x344), region = 119  ;;  %s6727_s14 = sshll.u32 (%p7024_p12), %s6895_s19, 4 }
 0x33d   : > { %s5046_s0 = scalar_lea.vmem (%p7024_p12), %s8480_s3, %s6727_s14 }
 0x33e   : > { %v5059_v26 = vld [vmem:[%s7680_s25] sm:$0xff] (%p7024_p12) }
 0x33f   : > { %v5061_v35 = vld [vmem:[%s7680_s25 + $0x8] sm:$0xff] (%p7024_p12)  ;;  %5060 = vst [vmem:[%s5046_s0] sm:$0xff] (%p7024_p12), %v5059_v26 }
 0x340   : > { %v5063_v6 = vld [vmem:[%s7680_s25 + $0x10] sm:$0xff] (%p7024_p12)  ;;  %5062 = vst [vmem:[%s5046_s0 + $0x8] sm:$0xff] (%p7024_p12), %v5061_v35 }
 0x341   : > { %5064 = vst [vmem:[%s5046_s0 + $0x20] sm:$0xff] %v5063_v6 }
 0x342   : > { %v5065_v8 = vld [vmem:[%s7680_s25 + $0x18] sm:$0xff] }
 0x343   : > { %5066 = vst [vmem:[%s5046_s0 + $0x28] sm:$0xff] %v5065_v8 }
 0x344 PF: > { %s13_s22 = sadd.s32 1, %s6907_s22   ;;  %s8490_s10 = sld [smem:[#allocation6_spill]] }
 0x345   : > { %p10_p6 = scmp.ge.s32.totalorder %s13_s22, 10   ;;  %s8491_s12 = smov %s6871_s13 }
 0x346   : > { %s8492_s13 = smov %s7022_s9  ;;  %s8493_s14 = smov %s6879_s15 }
 0x347   : > { %s8494_s15 = smov %s7019_s8  ;;  %s8495_s16 = smov %s6887_s17 }
 0x348   : > { %s8496_s17 = smov %s7005_s30  ;;  %s8497_s18 = smov %s6899_s20 }
 0x349   : > { %s8498_s19 = smov %s6903_s21  ;;  %s8499_s20 = smov %s8502_s24 }
 0x34a   : > { %s8500_s21 = smov %s8490_s10  ;;  %12 = sbr.rel (!%p10_p6) target bundleno = 9 (0x9), region = 190 }

// kernel: teacher_forward.9
= control target key start
LH: loop header
LB: loop body
LE: loop exit
PB: predicated region body
PF: predicated region fallthrough
CT: control target
= control target key end

     0   :  { %s1700_s2 = inlined_call_operand.vmem [shape: bf16[512,256], index: 2, kind: input, shape index: {}]   ;;  %s1701_s0 = inlined_call_operand.vmem [shape: f32[16,512], index: 0, kind: input, shape index: {}]   ;;  %s1702_s1 = inlined_call_operand.vmem [shape: f32[16,512], index: 1, kind: input, shape index: {}]   ;;  %s1703_s4 = inlined_call_operand.vmem [shape: bf16[256,128], index: 4, kind: input, shape index: {}]   ;;  %s1704_s5 = inlined_call_operand.vmem [shape: f32[1,128], index: 5, kind: input, shape index: {}]   ;;  %s1705_s3 = inlined_call_operand.vmem [shape: f32[1,256], index: 3, kind: input, shape index: {}]   ;;  %s1706_s6 = inlined_call_operand.vmem [shape: f32[16,128], index: 6, kind: output, shape index: {}]  }
   0x1   :  { %v803_v0 = vld [vmem:[%s1700_s2 + $0x70] sm:$0xf]  ;;  %v1080_v1 = vld [vmem:[%s1700_s2 + $0x74] sm:$0xf0]  ;;  %v795_v11 = vld [vmem:[%s1700_s2 + $0x60] sm:$0xf] }
   0x2   :  { %v867_v2 = vld [vmem:[%s1700_s2 + $0xf0] sm:$0xf]  ;;  %v804_v3 = vor.u32 %v1080_v1, %v803_v0  ;;  %v1096_v4 = vld [vmem:[%s1700_s2 + $0xf4] sm:$0xf0]  ;;  %v1078_v13 = vld [vmem:[%s1700_s2 + $0x64] sm:$0xf0] }
   0x3   :  { %v931_v5 = vld [vmem:[%s1700_s2 + $0x170] sm:$0xf]  ;;  %v1112_v6 = vld [vmem:[%s1700_s2 + $0x174] sm:$0xf0]  ;;  %v868_v7 = vor.u32 %v1096_v4, %v867_v2  ;;  %v859_v14 = vld [vmem:[%s1700_s2 + $0xe0] sm:$0xf]  ;;  %v796_v16 = vor.u32 %v1078_v13, %v795_v11 }
   0x4   :  { %v932_v8 = vor.u32 %v1112_v6, %v931_v5  ;;  %v995_v9 = vld [vmem:[%s1700_s2 + $0x1f0] sm:$0xf]  ;;  %v1128_v10 = vld [vmem:[%s1700_s2 + $0x1f4] sm:$0xf0]  ;;  %441 = vmatpush.bf16.msra.mxu0 %v804_v3  ;;  %v1094_v15 = vld [vmem:[%s1700_s2 + $0xe4] sm:$0xf0] }
   0x5   :  { %v996_v12 = vor.u32 %v1128_v10, %v995_v9  ;;  %455 = vmatpush.bf16.msra.mxu1 %v868_v7  ;;  %v860_v17 = vor.u32 %v1094_v15, %v859_v14  ;;  %v923_v18 = vld [vmem:[%s1700_s2 + $0x160] sm:$0xf]  ;;  %v1110_v19 = vld [vmem:[%s1700_s2 + $0x164] sm:$0xf0]  ;;  %v787_v23 = vld [vmem:[%s1700_s2 + $0x50] sm:$0xf] }
   0x6   :  { %469 = vmatpush.bf16.msra.mxu2 %v932_v8  ;;  %v987_v20 = vld [vmem:[%s1700_s2 + $0x1e0] sm:$0xf]  ;;  %v924_v21 = vor.u32 %v1110_v19, %v923_v18  ;;  %v1126_v22 = vld [vmem:[%s1700_s2 + $0x1e4] sm:$0xf0]  ;;  %v1076_v24 = vld [vmem:[%s1700_s2 + $0x54] sm:$0xf0] }
   0x7   :  { %483 = vmatpush.bf16.msra.mxu3 %v996_v12  ;;  %v988_v25 = vor.u32 %v1126_v22, %v987_v20  ;;  %v851_v26 = vld [vmem:[%s1700_s2 + $0xd0] sm:$0xf]  ;;  %v1092_v27 = vld [vmem:[%s1700_s2 + $0xd4] sm:$0xf0]  ;;  %v788_v29 = vor.u32 %v1076_v24, %v787_v23  ;;  %v779_v35 = vld [vmem:[%s1700_s2 + $0x40] sm:$0xf] }
   0x8   :  { %v915_v28 = vld [vmem:[%s1700_s2 + $0x150] sm:$0xf]  ;;  %442 = vmatpush.bf16.msra.mxu0 %v796_v16  ;;  %v1108_v30 = vld [vmem:[%s1700_s2 + $0x154] sm:$0xf0]  ;;  %v852_v33 = vor.u32 %v1092_v27, %v851_v26  ;;  %v1074_v36 = vld [vmem:[%s1700_s2 + $0x44] sm:$0xf0] }
   0x9   :  { %v979_v31 = vld [vmem:[%s1700_s2 + $0x1d0] sm:$0xf]  ;;  %v1124_v32 = vld [vmem:[%s1700_s2 + $0x1d4] sm:$0xf0]  ;;  %456 = vmatpush.bf16.msra.mxu1 %v860_v17  ;;  %v916_v34 = vor.u32 %v1108_v30, %v915_v28  ;;  %v843_v37 = vld [vmem:[%s1700_s2 + $0xc0] sm:$0xf]  ;;  %v780_v44 = vor.u32 %v1074_v36, %v779_v35 }
   0xa   :  { %470 = vmatpush.bf16.msra.mxu2 %v924_v21  ;;  %v980_v38 = vor.u32 %v1124_v32, %v979_v31  ;;  %v1090_v39 = vld [vmem:[%s1700_s2 + $0xc4] sm:$0xf0]  ;;  %v907_v40 = vld [vmem:[%s1700_s2 + $0x140] sm:$0xf]  ;;  %v771_v47 = vld [vmem:[%s1700_s2 + $0x30] sm:$0xf] }
   0xb   :  { %484 = vmatpush.bf16.msra.mxu3 %v988_v25  ;;  %v1106_v41 = vld [vmem:[%s1700_s2 + $0x144] sm:$0xf0]  ;;  %v971_v42 = vld [vmem:[%s1700_s2 + $0x1c0] sm:$0xf]  ;;  %v844_v45 = vor.u32 %v1090_v39, %v843_v37  ;;  %v1072_v48 = vld [vmem:[%s1700_s2 + $0x34] sm:$0xf0] }
   0xc   :  { %v1122_v43 = vld [vmem:[%s1700_s2 + $0x1c4] sm:$0xf0]  ;;  %443 = vmatpush.bf16.msra.mxu0 %v788_v29  ;;  %v908_v46 = vor.u32 %v1106_v41, %v907_v40  ;;  %v835_v49 = vld [vmem:[%s1700_s2 + $0xb0] sm:$0xf]  ;;  %v1088_v51 = vld [vmem:[%s1700_s2 + $0xb4] sm:$0xf0]  ;;  %v772_v56 = vor.u32 %v1072_v48, %v771_v47 }
   0xd   :  { %457 = vmatpush.bf16.msra.mxu1 %v852_v33  ;;  %v972_v50 = vor.u32 %v1122_v43, %v971_v42  ;;  %v899_v52 = vld [vmem:[%s1700_s2 + $0x130] sm:$0xf]  ;;  %v1104_v53 = vld [vmem:[%s1700_s2 + $0x134] sm:$0xf0]  ;;  %v836_v57 = vor.u32 %v1088_v51, %v835_v49  ;;  %v763_v59 = vld [vmem:[%s1700_s2 + $0x20] sm:$0xf] }
   0xe   :  { %471 = vmatpush.bf16.msra.mxu2 %v916_v34  ;;  %v963_v54 = vld [vmem:[%s1700_s2 + $0x1b0] sm:$0xf]  ;;  %v1120_v55 = vld [vmem:[%s1700_s2 + $0x1b4] sm:$0xf0]  ;;  %v900_v58 = vor.u32 %v1104_v53, %v899_v52  ;;  %v1070_v60 = vld [vmem:[%s1700_s2 + $0x24] sm:$0xf0] }
   0xf   :  { %485 = vmatpush.bf16.msra.mxu3 %v980_v38  ;;  %v827_v61 = vld [vmem:[%s1700_s2 + $0xa0] sm:$0xf]  ;;  %v964_v62 = vor.u32 %v1120_v55, %v963_v54  ;;  %v1086_v63 = vld [vmem:[%s1700_s2 + $0xa4] sm:$0xf0]  ;;  %v764_v4 = vor.u32 %v1070_v60, %v763_v59  ;;  %v755_v5 = vld [vmem:[%s1700_s2 + $0x10] sm:$0xf] }
  0x10   :  { %444 = vmatpush.bf16.msra.mxu0 %v780_v44  ;;  %v891_v0 = vld [vmem:[%s1700_s2 + $0x120] sm:$0xf]  ;;  %v1102_v1 = vld [vmem:[%s1700_s2 + $0x124] sm:$0xf0]  ;;  %v1068_v6 = vld [vmem:[%s1700_s2 + $0x14] sm:$0xf0]  ;;  %v828_v7 = vor.u32 %v1086_v63, %v827_v61 }
  0x11   :  { %458 = vmatpush.bf16.msra.mxu1 %v844_v45  ;;  %v955_v2 = vld [vmem:[%s1700_s2 + $0x1a0] sm:$0xf]  ;;  %v1118_v3 = vld [vmem:[%s1700_s2 + $0x1a4] sm:$0xf0]  ;;  %v892_v8 = vor.u32 %v1102_v1, %v891_v0  ;;  %v819_v9 = vld [vmem:[%s1700_s2 + $0x90] sm:$0xf]  ;;  %v756_v19 = vor.u32 %v1068_v6, %v755_v5 }
  0x12   :  { %472 = vmatpush.bf16.msra.mxu2 %v908_v46  ;;  %v1084_v10 = vld [vmem:[%s1700_s2 + $0x94] sm:$0xf0]  ;;  %v883_v11 = vld [vmem:[%s1700_s2 + $0x110] sm:$0xf]  ;;  %v956_v12 = vor.u32 %v1118_v3, %v955_v2  ;;  %v747_v16 = vld [vmem:[%s1700_s2] sm:$0xf] }
  0x13   :  { %486 = vmatpush.bf16.msra.mxu3 %v972_v50  ;;  %v1100_v13 = vld [vmem:[%s1700_s2 + $0x114] sm:$0xf0]  ;;  %v947_v14 = vld [vmem:[%s1700_s2 + $0x190] sm:$0xf]  ;;  %v1066_v17 = vld [vmem:[%s1700_s2 + $0x4] sm:$0xf0]  ;;  %v820_v23 = vor.u32 %v1084_v10, %v819_v9 }
  0x14   :  { %445 = vmatpush.bf16.msra.mxu0 %v772_v56  ;;  %v1116_v15 = vld [vmem:[%s1700_s2 + $0x194] sm:$0xf0]  ;;  %v1366_v18 = vld [vmem:[%s1700_s2 + $0x80] sm:$0xf]  ;;  %v1082_v20 = vld [vmem:[%s1700_s2 + $0x84] sm:$0xf0]  ;;  %v884_v24 = vor.u32 %v1100_v13, %v883_v11  ;;  %v748_v40 = vor.u32 %v1066_v17, %v747_v16 }
  0x15   :  { %459 = vmatpush.bf16.msra.mxu1 %v836_v57  ;;  %v875_v21 = vld [vmem:[%s1700_s2 + $0x100] sm:$0xf]  ;;  %v1098_v22 = vld [vmem:[%s1700_s2 + $0x104] sm:$0xf0]  ;;  %v1079_v27 = vld [vmem:[%s1700_s2 + $0x74] sm:$0xf]  ;;  %v948_v32 = vor.u32 %v1116_v15, %v947_v14  ;;  %v812_v41 = vor.u32 %v1082_v20, %v1366_v18 }
  0x16   :  { %473 = vmatpush.bf16.msra.mxu2 %v900_v58  ;;  %v939_v25 = vld [vmem:[%s1700_s2 + $0x180] sm:$0xf]  ;;  %v1114_v26 = vld [vmem:[%s1700_s2 + $0x184] sm:$0xf0]  ;;  %v805_v28 = vld [vmem:[%s1700_s2 + $0x78] sm:$0xf0]  ;;  %v876_v52 = vor.u32 %v1098_v22, %v875_v21 }
  0x17   :  { %487 = vmatpush.bf16.msra.mxu3 %v964_v62  ;;  %v25_v29 = vld [vmem:[%s1701_s0 + $0x10] sm:$0xff]  ;;  %v869_v34 = vld [vmem:[%s1700_s2 + $0xf8] sm:$0xf0]  ;;  %v23_v38 = vld [vmem:[%s1701_s0] sm:$0xff]  ;;  %v940_v58 = vor.u32 %v1114_v26, %v939_v25  ;;  %v808_v59 = vor.u32 %v1079_v27, %v805_v28 }
  0x18   :  { %446 = vmatpush.bf16.msra.mxu0 %v764_v4  ;;  %v29_v30 = vld [vmem:[%s1701_s0 + $0x30] sm:$0xff]  ;;  %v933_v36 = vld [vmem:[%s1700_s2 + $0x178] sm:$0xf0]  ;;  %v27_v39 = vld [vmem:[%s1701_s0 + $0x20] sm:$0xff] }
  0x19   :  { %460 = vmatpush.bf16.msra.mxu1 %v828_v7  ;;  %v33_v31 = vld [vmem:[%s1702_s1 + $0x10] sm:$0xff]  ;;  %v31_v42 = vld [vmem:[%s1702_s1] sm:$0xff]  ;;  %v26_v44 = vld [vmem:[%s1701_s0 + $0x18] sm:$0xff] }
  0x1a   :  { %474 = vmatpush.bf16.msra.mxu2 %v892_v8  ;;  %v1095_v33 = vld [vmem:[%s1700_s2 + $0xf4] sm:$0xf]  ;;  %v35_v43 = vld [vmem:[%s1702_s1 + $0x20] sm:$0xff]  ;;  %v41_v45 = vmul.f32 %v33_v31, %v25_v29  ;;  %v39_v47 = vmul.f32 %v31_v42, %v23_v38  ;;  %v30_v49 = vld [vmem:[%s1701_s0 + $0x38] sm:$0xff] }
  0x1b   :  { %488 = vmatpush.bf16.msra.mxu3 %v956_v12  ;;  %v1111_v35 = vld [vmem:[%s1700_s2 + $0x174] sm:$0xf]  ;;  %v43_v48 = vmul.f32 %v35_v43, %v27_v39  ;;  %v34_v50 = vld [vmem:[%s1702_s1 + $0x18] sm:$0xff]  ;;  %v1077_v57 = vld [vmem:[%s1700_s2 + $0x64] sm:$0xf]  ;;  %v872_v63 = vor.u32 %v1095_v33, %v869_v34 }
  0x1c   :  { %v37_v37 = vld [vmem:[%s1702_s1 + $0x30] sm:$0xff]  ;;  %447 = vmatpush.bf16.msra.mxu0 %v756_v19  ;;  %v38_v51 = vld [vmem:[%s1702_s1 + $0x38] sm:$0xff]  ;;  %v42_v55 = vmul.f32 %v34_v50, %v26_v44  ;;  %v797_v60 = vld [vmem:[%s1700_s2 + $0x68] sm:$0xf0]  ;;  %v936_v0 = vor.u32 %v1111_v35, %v933_v36 }
  0x1d   :  { %v45_v46 = vmul.f32 %v37_v37, %v29_v30  ;;  %461 = vmatpush.bf16.msra.mxu1 %v820_v23  ;;  %v1127_v53 = vld [vmem:[%s1700_s2 + $0x1f4] sm:$0xf]  ;;  %v997_v54 = vld [vmem:[%s1700_s2 + $0x1f8] sm:$0xf0]  ;;  %v46_v56 = vmul.f32 %v38_v51, %v30_v49  ;;  %v1093_v61 = vld [vmem:[%s1700_s2 + $0xe4] sm:$0xf]  ;;  %v1467_v6 = vpack.c.bf16 %v43_v48, %v39_v47  ;;  %v800_v15 = vor.u32 %v1077_v57, %v797_v60 }
  0x1e   :  { %475 = vmatpush.bf16.msra.mxu2 %v884_v24  ;;  %v861_v62 = vld [vmem:[%s1700_s2 + $0xe8] sm:$0xf0]  ;;  %v1109_v1 = vld [vmem:[%s1700_s2 + $0x164] sm:$0xf]  ;;  %v1000_v4 = vor.u32 %v1127_v53, %v997_v54  ;;  %v1075_v19 = vld [vmem:[%s1700_s2 + $0x54] sm:$0xf] }
  0x1f   :  { %489 = vmatpush.bf16.msra.mxu3 %v948_v32  ;;  %v925_v2 = vld [vmem:[%s1700_s2 + $0x168] sm:$0xf0]  ;;  %v1465_v5 = vpack.c.bf16 %v45_v46, %v41_v45  ;;  %v1478_v10 = vpack.c.bf16 %v46_v56, %v42_v55  ;;  %v1125_v11 = vld [vmem:[%s1700_s2 + $0x1e4] sm:$0xf]  ;;  %v864_v16 = vor.u32 %v1093_v61, %v861_v62  ;;  %v789_v20 = vld [vmem:[%s1700_s2 + $0x58] sm:$0xf0] }
  0x20   :  { %v24_v3 = vld [vmem:[%s1701_s0 + $0x8] sm:$0xff]  ;;  %448 = vmatpush.bf16.msra.mxu0 %v748_v40  ;;  %v928_v17 = vor.u32 %v1109_v1, %v925_v2  ;;  %v1091_v21 = vld [vmem:[%s1700_s2 + $0xd4] sm:$0xf]  ;;  %v853_v23 = vld [vmem:[%s1700_s2 + $0xd8] sm:$0xf0]  ;;  %v792_v28 = vor.u32 %v1075_v19, %v789_v20 }
  0x21   :  { %v28_v7 = vld [vmem:[%s1701_s0 + $0x28] sm:$0xff]  ;;  %462 = vmatpush.bf16.msra.mxu1 %v812_v41  ;;  %v1107_v24 = vld [vmem:[%s1700_s2 + $0x154] sm:$0xf]  ;;  %v917_v25 = vld [vmem:[%s1700_s2 + $0x158] sm:$0xf0]  ;;  %v856_v29 = vor.u32 %v1091_v21, %v853_v23 }
  0x22   :  { %v32_v8 = vld [vmem:[%s1702_s1 + $0x8] sm:$0xff]  ;;  %476 = vmatpush.bf16.msra.mxu2 %v876_v52  ;;  %v1123_v26 = vld [vmem:[%s1700_s2 + $0x1d4] sm:$0xf]  ;;  %v981_v27 = vld [vmem:[%s1700_s2 + $0x1d8] sm:$0xf0]  ;;  %v920_v30 = vor.u32 %v1107_v24, %v917_v25 }
  0x23   :  { %v36_v9 = vld [vmem:[%s1702_s1 + $0x28] sm:$0xff]  ;;  %v40_v13 = vmul.f32 %v32_v8, %v24_v3  ;;  %490 = vmatpush.bf16.msra.mxu3 %v940_v58  ;;  %449 = vmatmul.bf16.vlgmr.msra.gmra.mxu0 %v1467_v6  ;;  %v1073_v31 = vld [vmem:[%s1700_s2 + $0x44] sm:$0xf]  ;;  %v984_v34 = vor.u32 %v1123_v26, %v981_v27  ;;  %v1071_v43 = vld [vmem:[%s1700_s2 + $0x34] sm:$0xf] }
  0x24   :  { %v989_v12 = vld [vmem:[%s1700_s2 + $0x1e8] sm:$0xf0]  ;;  %v44_v14 = vmul.f32 %v36_v9, %v28_v7  ;;  %497 = vmatpush.bf16.msrb.mxu0 %v808_v59  ;;  %v1089_v33 = vld [vmem:[%s1700_s2 + $0xc4] sm:$0xf]  ;;  %v773_v44 = vld [vmem:[%s1700_s2 + $0x38] sm:$0xf0] }
  0x25   :  { %511 = vmatpush.bf16.msrb.mxu1 %v872_v63  ;;  %477 = vmatmul.bf16.vlgmr.msra.gmra.mxu2 %v1465_v5  ;;  %v992_v22 = vor.u32 %v1125_v11, %v989_v12  ;;  %v781_v32 = vld [vmem:[%s1700_s2 + $0x48] sm:$0xf0]  ;;  %v1105_v36 = vld [vmem:[%s1700_s2 + $0x144] sm:$0xf]  ;;  %v1087_v45 = vld [vmem:[%s1700_s2 + $0xb4] sm:$0xf]  ;;  %v776_v52 = vor.u32 %v1071_v43, %v773_v44 }
  0x26   :  { %525 = vmatpush.bf16.msrb.mxu2 %v936_v0  ;;  %v1486_v18 = vpack.c.bf16 %v44_v14, %v40_v13  ;;  %491 = vmatmul.bf16.vlgmr.msra.gmra.mxu3 %v1478_v10  ;;  %v845_v35 = vld [vmem:[%s1700_s2 + $0xc8] sm:$0xf0]  ;;  %v1121_v38 = vld [vmem:[%s1700_s2 + $0x1c4] sm:$0xf]  ;;  %v784_v40 = vor.u32 %v1073_v31, %v781_v32  ;;  %v837_v47 = vld [vmem:[%s1700_s2 + $0xb8] sm:$0xf0] }
  0x27   :  { %539 = vmatpush.bf16.msrb.mxu3 %v1000_v4  ;;  %v909_v37 = vld [vmem:[%s1700_s2 + $0x148] sm:$0xf0]  ;;  %v848_v41 = vor.u32 %v1089_v33, %v845_v35  ;;  %v1103_v48 = vld [vmem:[%s1700_s2 + $0x134] sm:$0xf]  ;;  %v901_v49 = vld [vmem:[%s1700_s2 + $0x138] sm:$0xf0]  ;;  %v840_v53 = vor.u32 %v1087_v45, %v837_v47 }
  0x28   :  { %498 = vmatpush.bf16.msrb.mxu0 %v800_v15  ;;  %463 = vmatmul.bf16.vlgmr.msra.gmra.mxu1 %v1486_v18  ;;  %v973_v39 = vld [vmem:[%s1700_s2 + $0x1c8] sm:$0xf0]  ;;  %v912_v42 = vor.u32 %v1105_v36, %v909_v37  ;;  %v1119_v50 = vld [vmem:[%s1700_s2 + $0x1b4] sm:$0xf]  ;;  %v965_v51 = vld [vmem:[%s1700_s2 + $0x1b8] sm:$0xf0]  ;;  %v904_v54 = vor.u32 %v1103_v48, %v901_v49 }
  0x29   :  { %512 = vmatpush.bf16.msrb.mxu1 %v864_v16  ;;  %v976_v46 = vor.u32 %v1121_v38, %v973_v39  ;;  %v1069_v55 = vld [vmem:[%s1700_s2 + $0x24] sm:$0xf]  ;;  %v765_v56 = vld [vmem:[%s1700_s2 + $0x28] sm:$0xf0]  ;;  %v968_v58 = vor.u32 %v1119_v50, %v965_v51  ;;  %v1067_v3 = vld [vmem:[%s1700_s2 + $0x14] sm:$0xf] }
  0x2a   :  { %526 = vmatpush.bf16.msrb.mxu2 %v928_v17  ;;  %v1085_v57 = vld [vmem:[%s1700_s2 + $0xa4] sm:$0xf]  ;;  %v829_v59 = vld [vmem:[%s1700_s2 + $0xa8] sm:$0xf0]  ;;  %v768_v0 = vor.u32 %v1069_v55, %v765_v56  ;;  %v757_v4 = vld [vmem:[%s1700_s2 + $0x18] sm:$0xf0] }
  0x2b   :  { %540 = vmatpush.bf16.msrb.mxu3 %v992_v22  ;;  %v1101_v60 = vld [vmem:[%s1700_s2 + $0x124] sm:$0xf]  ;;  %v893_v61 = vld [vmem:[%s1700_s2 + $0x128] sm:$0xf0]  ;;  %v832_v1 = vor.u32 %v1085_v57, %v829_v59  ;;  %v1083_v7 = vld [vmem:[%s1700_s2 + $0x94] sm:$0xf]  ;;  %v760_v15 = vor.u32 %v1067_v3, %v757_v4 }
  0x2c   :  { %499 = vmatpush.bf16.msrb.mxu0 %v792_v28  ;;  %v1117_v62 = vld [vmem:[%s1700_s2 + $0x1a4] sm:$0xf]  ;;  %v957_v63 = vld [vmem:[%s1700_s2 + $0x1a8] sm:$0xf0]  ;;  %v896_v2 = vor.u32 %v1101_v60, %v893_v61  ;;  %v821_v9 = vld [vmem:[%s1700_s2 + $0x98] sm:$0xf0] }
  0x2d   :  { %513 = vmatpush.bf16.msrb.mxu1 %v856_v29  ;;  %v960_v8 = vor.u32 %v1117_v62, %v957_v63  ;;  %v1099_v11 = vld [vmem:[%s1700_s2 + $0x114] sm:$0xf]  ;;  %v885_v12 = vld [vmem:[%s1700_s2 + $0x118] sm:$0xf0]  ;;  %v824_v16 = vor.u32 %v1083_v7, %v821_v9  ;;  %v1065_v19 = vld [vmem:[%s1700_s2 + $0x4] sm:$0xf] }
  0x2e   :  { %527 = vmatpush.bf16.msrb.mxu2 %v920_v30  ;;  %v1115_v13 = vld [vmem:[%s1700_s2 + $0x194] sm:$0xf]  ;;  %v949_v14 = vld [vmem:[%s1700_s2 + $0x198] sm:$0xf0]  ;;  %v888_v17 = vor.u32 %v1099_v11, %v885_v12  ;;  %v749_v20 = vld [vmem:[%s1700_s2 + $0x8] sm:$0xf0] }
  0x2f   :  { %541 = vmatpush.bf16.msrb.mxu3 %v984_v34  ;;  %v1081_v21 = vld [vmem:[%s1700_s2 + $0x84] sm:$0xf]  ;;  %v952_v22 = vor.u32 %v1115_v13, %v949_v14  ;;  %v813_v23 = vld [vmem:[%s1700_s2 + $0x88] sm:$0xf0]  ;;  %v752_v28 = vor.u32 %v1065_v19, %v749_v20  ;;  %v1136_v32 = vld [vmem:[%s1703_s4 + $0x38] sm:$0xff] }
  0x30   :  { %500 = vmatpush.bf16.msrb.mxu0 %v784_v40  ;;  %v1097_v24 = vld [vmem:[%s1700_s2 + $0x104] sm:$0xf]  ;;  %v877_v25 = vld [vmem:[%s1700_s2 + $0x108] sm:$0xf0]  ;;  %v816_v29 = vor.u32 %v1081_v21, %v813_v23  ;;  %v1135_v33 = vld [vmem:[%s1703_s4 + $0x30] sm:$0xff] }
  0x31   :  { %514 = vmatpush.bf16.msrb.mxu1 %v848_v41  ;;  %v1113_v26 = vld [vmem:[%s1700_s2 + $0x184] sm:$0xf]  ;;  %v941_v27 = vld [vmem:[%s1700_s2 + $0x188] sm:$0xf0]  ;;  %v880_v30 = vor.u32 %v1097_v24, %v877_v25  ;;  %v1144_v36 = vld [vmem:[%s1703_s4 + $0x78] sm:$0xff] }
  0x32   :  { %528 = vmatpush.bf16.msrb.mxu2 %v912_v42  ;;  %v944_v31 = vor.u32 %v1113_v26, %v941_v27  ;;  %v1134_v34 = vld [vmem:[%s1703_s4 + $0x28] sm:$0xff]  ;;  %v1133_v35 = vld [vmem:[%s1703_s4 + $0x20] sm:$0xff]  ;;  %v1143_v37 = vld [vmem:[%s1703_s4 + $0x70] sm:$0xff] }
  0x33   :  { %542 = vmatpush.bf16.msrb.mxu3 %v976_v46  ;;  %v115_v38 = vld [vmem:[%s1705_s3] sm:$0x3]  ;;  %v1142_v39 = vld [vmem:[%s1703_s4 + $0x68] sm:$0xff]  ;;  %v1140_v46 = vld [vmem:[%s1703_s4 + $0x58] sm:$0xff] }
  0x34   :  { %501 = vmatpush.bf16.msrb.mxu0 %v776_v52  ;;  %v117_v40 = vperm.slane %v115_v38, 0  ;;  %v1141_v41 = vld [vmem:[%s1703_s4 + $0x60] sm:$0xff]  ;;  %v1139_v51 = vld [vmem:[%s1703_s4 + $0x50] sm:$0xff]  ;;  %v1138_v56 = vld [vmem:[%s1703_s4 + $0x48] sm:$0xff] }
  0x35   :  { %515 = vmatpush.bf16.msrb.mxu1 %v840_v53  ;;  %v1137_v62 = vld [vmem:[%s1703_s4 + $0x40] sm:$0xff] }
  0x36   :  { %529 = vmatpush.bf16.msrb.mxu2 %v904_v54  ;;  %v1145_v26 = vld [vmem:[%s1704_s5] ss:$0 sm:$0xff] }
  0x37   :  { %543 = vmatpush.bf16.msrb.mxu3 %v968_v58 }
  0x38   :  { %502 = vmatpush.bf16.msrb.mxu0 %v768_v0 }
  0x39   :  { %516 = vmatpush.bf16.msrb.mxu1 %v832_v1  ;;  %v118_v1 = vperm.slane %v115_v38, 1 }
  0x3a   :  { %530 = vmatpush.bf16.msrb.mxu2 %v896_v2 }
  0x3b   :  { %544 = vmatpush.bf16.msrb.mxu3 %v960_v8 }
  0x3c   :  { %503 = vmatpush.bf16.msrb.mxu0 %v760_v15 }
  0x3d   :  { %517 = vmatpush.bf16.msrb.mxu1 %v824_v16 }
  0x3e   :  { %531 = vmatpush.bf16.msrb.mxu2 %v888_v17 }
  0x3f   :  { %545 = vmatpush.bf16.msrb.mxu3 %v952_v22 }
  0x40   :  { %504 = vmatpush.bf16.msrb.mxu0 %v752_v28 }
  0x41   :  { %518 = vmatpush.bf16.msrb.mxu1 %v816_v29 }
  0x42   :  { %532 = vmatpush.bf16.msrb.mxu2 %v880_v30 }
  0x43   :  { %546 = vmatpush.bf16.msrb.mxu3 %v944_v31  ;;  %505 = vmatmul.bf16.vlgmr.msrb.gmra.mxu0 %v1467_v6  ;;  %v1132_v6 = vld [vmem:[%s1703_s4 + $0x18] sm:$0xff] }
  0x44   :  { %691 = vmatpush.bf16.msra.mxu0 %v1136_v32  ;;  %519 = vmatmul.bf16.vlgmr.msrb.gmra.mxu1 %v1486_v18  ;;  %v1129_v18 = vld [vmem:[%s1703_s4] sm:$0xff] }
  0x45   :  { %533 = vmatmul.bf16.vlgmr.msrb.gmra.mxu2 %v1465_v5  ;;  %v1131_v5 = vld [vmem:[%s1703_s4 + $0x10] sm:$0xff]  ;;  %705 = vmatpush.bf16.msra.mxu1 %v1144_v36 }
  0x46   :  { %547 = vmatmul.bf16.vlgmr.msrb.gmra.mxu3 %v1478_v10  ;;  %v1130_v10 = vld [vmem:[%s1703_s4 + $0x8] sm:$0xff] }
  0x48   :  { %692 = vmatpush.bf16.msra.mxu0 %v1135_v33 }
  0x49   :  { %706 = vmatpush.bf16.msra.mxu1 %v1143_v37 }
  0x4c   :  { %693 = vmatpush.bf16.msra.mxu0 %v1134_v34 }
  0x4d   :  { %707 = vmatpush.bf16.msra.mxu1 %v1142_v39 }
  0x50   :  { %694 = vmatpush.bf16.msra.mxu0 %v1133_v35 }
  0x51   :  { %708 = vmatpush.bf16.msra.mxu1 %v1141_v41 }
  0x54   :  { %695 = vmatpush.bf16.msra.mxu0 %v1132_v6 }
  0x55   :  { %709 = vmatpush.bf16.msra.mxu1 %v1140_v46 }
  0x58   :  { %696 = vmatpush.bf16.msra.mxu0 %v1131_v5 }
  0x59   :  { %710 = vmatpush.bf16.msra.mxu1 %v1139_v51 }
  0x5c   :  { %697 = vmatpush.bf16.msra.mxu0 %v1130_v10 }
  0x5d   :  { %711 = vmatpush.bf16.msra.mxu1 %v1138_v56 }
  0x60   :  { %698 = vmatpush.bf16.msra.mxu0 %v1129_v18 }
  0x61   :  { %712 = vmatpush.bf16.msra.mxu1 %v1137_v62 }
  0xa0   :  { %v450_v42 = vpop.f32.mrf.mxu0 }
  0xa1   :  { %v451_v43 = vadd.f32 %v450_v42, %v117_v40 }
  0xa5   :  { %v464_v44 = vpop.f32.mrf.mxu1 }
  0xa6   :  { %v465_v45 = vadd.f32 %v464_v44, %v451_v43 }
  0xa8   :  { %v478_v47 = vpop.f32.mrf.mxu2  ;;  %v452_v50 = vpop.f32.mrf.mxu0 }
  0xa9   :  { %v492_v48 = vpop.f32.mrf.mxu3  ;;  %v479_v49 = vadd.f32 %v478_v47, %v465_v45  ;;  %v453_v52 = vadd.f32 %v452_v50, %v117_v40 }
  0xab   :  { %v493_v55 = vadd.f32 %v492_v48, %v479_v49 }
  0xad   :  { %v466_v53 = vpop.f32.mrf.mxu1  ;;  %v553_v60 = vmax.f32 %v493_v55, 0.0 }
  0xae   :  { %v467_v54 = vadd.f32 %v466_v53, %v453_v52 }
  0xb0   :  { %v480_v57 = vpop.f32.mrf.mxu2 }
  0xb1   :  { %v481_v58 = vadd.f32 %v480_v57, %v467_v54  ;;  %v494_v59 = vpop.f32.mrf.mxu3 }
  0xb3   :  { %v495_v61 = vadd.f32 %v494_v59, %v481_v58 }
  0xb5   :  { %v555_v63 = vmax.f32 %v495_v61, 0.0 }
  0xb7   :  { %v557_v0 = vpack.c.bf16 %v555_v63, %v553_v60 }
  0xb9   :  { %699 = vmatmul.bf16.vlgmr.msra.gmra.mxu0 %v557_v0 }
  0xc0   :  { %v506_v2 = vpop.f32.mrf.mxu0 }
  0xc1   :  { %v520_v3 = vpop.f32.mrf.mxu1  ;;  %v507_v4 = vadd.f32 %v506_v2, %v118_v1 }
  0xc3   :  { %v521_v8 = vadd.f32 %v520_v3, %v507_v4 }
  0xc8   :  { %v534_v7 = vpop.f32.mrf.mxu2  ;;  %v508_v11 = vpop.f32.mrf.mxu0 }
  0xc9   :  { %v548_v9 = vpop.f32.mrf.mxu3  ;;  %v509_v12 = vadd.f32 %v508_v11, %v118_v1  ;;  %v535_v13 = vadd.f32 %v534_v7, %v521_v8  ;;  %v522_v14 = vpop.f32.mrf.mxu1 }
  0xcb   :  { %v523_v15 = vadd.f32 %v522_v14, %v509_v12  ;;  %v549_v17 = vadd.f32 %v548_v9, %v535_v13 }
  0xcd   :  { %v554_v22 = vmax.f32 %v549_v17, 0.0 }
  0xd0   :  { %v536_v16 = vpop.f32.mrf.mxu2 }
  0xd1   :  { %v537_v19 = vadd.f32 %v536_v16, %v523_v15  ;;  %v550_v20 = vpop.f32.mrf.mxu3 }
  0xd3   :  { %v551_v21 = vadd.f32 %v550_v20, %v537_v19 }
  0xd5   :  { %v556_v23 = vmax.f32 %v551_v21, 0.0 }
  0xd7   :  { %v558_v24 = vpack.c.bf16 %v556_v23, %v554_v22 }
  0xd9   :  { %713 = vmatmul.bf16.vlgmr.msra.gmra.mxu1 %v558_v24 }
 0x136   :  { %v700_v25 = vpop.f32.mrf.mxu0 }
 0x137   :  { %v701_v27 = vadd.f32 %v1145_v26, %v700_v25 }
 0x13e   :  { %v702_v30 = vpop.f32.mrf.mxu0 }
 0x13f   :  { %v703_v31 = vadd.f32 %v1145_v26, %v702_v30 }
 0x156   :  { %v714_v28 = vpop.f32.mrf.mxu1 }
 0x157   :  { %v715_v29 = vadd.f32 %v714_v28, %v701_v27 }
 0x159   :  { %719 = vmax.xlane.f32.xlu0 %v715_v29 }
 0x15e   :  { %v716_v32 = vpop.f32.mrf.mxu1 }
 0x15f   :  { %v717_v33 = vadd.f32 %v716_v32, %v703_v31 }
 0x161   :  { %721 = vmax.xlane.f32.xlu0 %v717_v33 }
 0x1cc   :  { %v720_v34 = vpop.xlane.xlu0 %719 }
 0x1cd   :  { %v723_v35 = vsub.f32 %v715_v29, %v720_v34 }
 0x1cf   :  { %v725_v6 = vmul.f32 1.442695, %v723_v35 }
 0x1d1   :  { %1146 = vpow2.f32 %v725_v6 }
 0x1d4   :  { %v722_v5 = vpop.xlane.xlu0 %721 }
 0x1d5   :  { %v724_v10 = vsub.f32 %v717_v33, %v722_v5 }
 0x1d7   :  { %v1147_v18 = vpop.eup %1146  ;;  %v727_v36 = vmul.f32 1.442695, %v724_v10 }
 0x1d8   :  { %729 = vadd.xlane.f32.xlu1 %v1147_v18 }
 0x1d9   :  { %1148 = vpow2.f32 %v727_v36 }
 0x1df   :  { %v1149_v37 = vpop.eup %1148 }
 0x1e0   :  { %731 = vadd.xlane.f32.xlu1 %v1149_v37 }
 0x24b   :  { %v730_v38 = vpop.xlane.xlu1 %729 }
 0x24c   :  { %1150 = vlog2.f32 %v730_v38 }
 0x252   :  { %v1151_v39 = vpop.eup %1150 }
 0x253   :  { %v734_v40 = vmul.f32 0.6931472, %v1151_v39  ;;  %v732_v41 = vpop.xlane.xlu1 %731 }
 0x254   :  { %1152 = vlog2.f32 %v732_v41 }
 0x255   :  { %v737_v42 = vsub.f32 %v723_v35, %v734_v40 }
 0x257   :  { %739 = vst [vmem:[%s1706_s6] sm:$0xff] %v737_v42 }
 0x25a   :  { %v1153_v43 = vpop.eup %1152 }
 0x25b   :  { %v736_v44 = vmul.f32 0.6931472, %v1153_v43 }
 0x25d   :  { %v738_v45 = vsub.f32 %v724_v10, %v736_v44 }
 0x25f   :  { %740 = vst [vmem:[%s1706_s6 + $0x8] sm:$0xff] %v738_v45 }

</bundles_post_ra>
